<compile_context>
chip_gen: v7x
topology: tpu7x:2x2x1
jax: 0.10.0
libtpu: 0.0.40
codegen_flags: <defaults>
</compile_context>

<pallas_src>
import math
import jax
import jax.numpy as jnp
from jax.experimental import pallas as pl
from jax.experimental.pallas import tpu as pltpu

# ---------------- model hyper-parameters (small, consistent with module) ----
D_MODEL = 32
NUM_HEADS = 4
HEAD_DIM = D_MODEL // NUM_HEADS
SEQ_LEN = 8       # decoder (target) length T
SRC_LEN = 8       # encoder (source) length S
VOCAB = 64
N_LAYERS = 4
LN_EPS = 1e-5
NEG_INF = -1e9


# ---------------- in-kernel helpers (traced inside the Pallas body) ---------
def _layernorm(x, gamma, beta):
    mu = jnp.mean(x, axis=-1, keepdims=True)
    var = jnp.mean((x - mu) ** 2, axis=-1, keepdims=True)
    return (x - mu) * jax.lax.rsqrt(var + LN_EPS) * gamma + beta


def _attention(q_src, q_off, kv_src, k_off, v_off, mask, w_out, b_out):
    """Batch-fused multi-head attention.
    q_src : (R, >=q_off+D) rows = all batches' query rows
    kv_src: (C, >=v_off+D) rows = all batches' key/value rows
    mask  : (R, C) additive float; cross-batch quadrants are NEG_INF so the
            whole batch is handled by a single set of head matmuls.
    w_out : (D, D) pre-transposed output projection; b_out: (1, D)."""
    scale = 1.0 / math.sqrt(HEAD_DIM)
    ctxs = []
    for h in range(NUM_HEADS):                       # static unroll over heads
        lo = h * HEAD_DIM
        qh = q_src[:, q_off + lo: q_off + lo + HEAD_DIM]
        kh = kv_src[:, k_off + lo: k_off + lo + HEAD_DIM]
        vh = kv_src[:, v_off + lo: v_off + lo + HEAD_DIM]
        # q @ k^T without an explicit transpose
        s = jax.lax.dot_general(qh, kh, (((1,), (1,)), ((), ())),
                                preferred_element_type=jnp.float32)
        s = s * scale + mask
        s = s - jnp.max(s, axis=-1, keepdims=True)
        p = jnp.exp(s)
        p = p * pl.reciprocal(jnp.sum(p, axis=-1, keepdims=True), approx=True)
        ctxs.append(jnp.dot(p, vh, preferred_element_type=jnp.float32))
    ctx = jnp.concatenate(ctxs, axis=-1)             # one lane concat -> (R, D)
    return jnp.dot(ctx, w_out, preferred_element_type=jnp.float32) + b_out


# ---------------- the fused Pallas kernel: full Decoder stack ---------------
def decoder_kernel(ids_ref, emb_ref, pe_ref, enc_ref, sa_mask_ref, ca_mask_ref,
                   w_in_sa_ref, w_q_ca_ref, w_kv_ca_ref, b_kv_ca_ref,
                   w_o_ref, vec_ref, out_ref):
    # ---- fused token-embedding gather (one-hot matmul on the MXU) + PE add --
    ids = ids_ref[...]                                           # (R, 1) int32
    cols = jax.lax.broadcasted_iota(jnp.int32, (ids.shape[0], VOCAB), 1)
    onehot = (cols == ids).astype(jnp.float32)                   # (R, VOCAB)
    x = jnp.dot(onehot, emb_ref[...],
                preferred_element_type=jnp.float32) + pe_ref[...]  # (R, D)

    enc = enc_ref[...]                                           # (B*S, D)
    sa_mask = sa_mask_ref[...]                                   # (B*T, B*T)
    ca_mask = ca_mask_ref[...]                                   # (B*T, B*S)

    # ---- hoisted, layer-batched cross-attention K/V projection of enc -------
    # one (16,32)@(32, L*2D=256) matmul; per-layer K/V are static lane windows
    kv_ca_all = jnp.dot(enc, w_kv_ca_ref[...],
                        preferred_element_type=jnp.float32) + b_kv_ca_ref[...]

    for layer in range(N_LAYERS):       # static unroll: whole stack, one kernel
        # weights selected via leading-axis Ref indices (no lane rotates)
        w_in_sa = w_in_sa_ref[layer]            # (D, 3D)
        w_q_ca = w_q_ca_ref[layer]              # (D, D)
        w_out_sa = w_o_ref[layer, 0]            # (D, D)
        w_out_ca = w_o_ref[layer, 1]            # (D, D)
        w1 = w_o_ref[layer, 2]                  # (D, D)
        w2 = w_o_ref[layer, 3]                  # (D, D)

        b_in_sa = vec_ref[layer, 0:1, :]                    # (1, 3D)
        b_q_ca = vec_ref[layer, 1:2, 0:D_MODEL]
        b_out_sa = vec_ref[layer, 2:3, 0:D_MODEL]
        b_out_ca = vec_ref[layer, 3:4, 0:D_MODEL]
        b1 = vec_ref[layer, 4:5, 0:D_MODEL]
        b2 = vec_ref[layer, 5:6, 0:D_MODEL]
        g1 = vec_ref[layer, 6:7, 0:D_MODEL]
        be1 = vec_ref[layer, 7:8, 0:D_MODEL]
        g2 = vec_ref[layer, 8:9, 0:D_MODEL]
        be2 = vec_ref[layer, 9:10, 0:D_MODEL]
        g3 = vec_ref[layer, 10:11, 0:D_MODEL]
        be3 = vec_ref[layer, 11:12, 0:D_MODEL]

        # self-attention: Q,K,V in one matmul; batch folded via block mask
        qkv = jnp.dot(x, w_in_sa, preferred_element_type=jnp.float32) + b_in_sa
        sa = _attention(qkv, 0, qkv, D_MODEL, 2 * D_MODEL, sa_mask,
                        w_out_sa, b_out_sa)
        r2 = _layernorm(sa + x, g1, be1)

        # cross-attention: per-layer Q projection, K/V from the hoisted block
        q_ca = jnp.dot(r2, w_q_ca, preferred_element_type=jnp.float32) + b_q_ca
        kvo = layer * 2 * D_MODEL
        ca = _attention(q_ca, 0, kv_ca_all, kvo, kvo + D_MODEL, ca_mask,
                        w_out_ca, b_out_ca)
        r3 = _layernorm(ca + r2, g2, be2)

        # feed-forward (dropout == identity in eval) + residual + norm3
        h = jnp.maximum(
            jnp.dot(r3, w1, preferred_element_type=jnp.float32) + b1, 0.0)
        h = jnp.dot(h, w2, preferred_element_type=jnp.float32) + b2
        x = _layernorm(h + r3, g3, be3)

    out_ref[...] = x


# ---------------- host-side weight packing (pre-transpose, stack layers) ----
def pack_layer_weights(layers):
    D = D_MODEL
    w_in_sa_l, w_q_ca_l, w_o_l, vec_l = [], [], [], []
    kv_w_l, kv_b_l = [], []

    def row(v):  # place a <=3D-long vector at lane 0 of a 3D-wide row
        v = v.reshape(-1)
        return jnp.zeros((3 * D,), jnp.float32).at[:v.shape[0]].set(v)

    for lw in layers:
        w_in_sa_l.append(lw['w_in_sa'].T)                       # (D, 3D)
        w_in_ca_T = lw['w_in_ca'].T                             # (D, 3D)
        b_in_ca = lw['b_in_ca'].reshape(-1)                     # (3D,)
        w_q_ca_l.append(w_in_ca_T[:, 0:D])                      # (D, D)
        kv_w_l.append(w_in_ca_T[:, D:3 * D])                    # (D, 2D)
        kv_b_l.append(b_in_ca[D:3 * D])                         # (2D,)
        w_o_l.append(jnp.stack([lw['w_out_sa'].T, lw['w_out_ca'].T,
                                lw['w1'].T, lw['w2'].T], axis=0))  # (4, D, D)
        vec_l.append(jnp.stack([
            row(lw['b_in_sa']),        # 0: SA QKV bias (full 3D row)
            row(b_in_ca[0:D]),         # 1: CA Q bias
            row(lw['b_out_sa']),       # 2
            row(lw['b_out_ca']),       # 3
            row(lw['b1']),             # 4
            row(lw['b2']),             # 5
            row(lw['g1']),             # 6
            row(lw['be1']),            # 7
            row(lw['g2']),             # 8
            row(lw['be2']),            # 9
            row(lw['g3']),             # 10
            row(lw['be3']),            # 11
        ], axis=0))                                             # (12, 3D)

    return dict(
        w_in_sa=jnp.stack(w_in_sa_l).astype(jnp.float32),       # (L, D, 3D)
        w_q_ca=jnp.stack(w_q_ca_l).astype(jnp.float32),         # (L, D, D)
        w_kv_ca=jnp.concatenate(kv_w_l, axis=1).astype(jnp.float32),  # (D, L*2D)
        b_kv_ca=jnp.concatenate(kv_b_l, axis=0).reshape(1, -1)
                .astype(jnp.float32),                           # (1, L*2D)
        w_o=jnp.stack(w_o_l).astype(jnp.float32),               # (L, 4, D, D)
        vecs=jnp.stack(vec_l).astype(jnp.float32),              # (L, 12, 3D)
    )


def prepare_params(params):
    packed = pack_layer_weights(params['layers'])
    packed['emb'] = params['emb'].astype(jnp.float32)
    return packed


# ---------------- parameter construction (deterministic, synthetic) ---------
def make_params(key):
    keys = jax.random.split(key, 1 + N_LAYERS)
    params = {
        'emb': 0.1 * jax.random.normal(keys[0], (VOCAB, D_MODEL), jnp.float32)}
    layers = []
    for n in range(N_LAYERS):
        ks = jax.random.split(keys[1 + n], 8)
        sc = 1.0 / math.sqrt(D_MODEL)
        lw = dict(
            w_in_sa=sc * jax.random.normal(ks[0], (3 * D_MODEL, D_MODEL)),
            b_in_sa=jnp.zeros((1, 3 * D_MODEL), jnp.float32),
            w_out_sa=sc * jax.random.normal(ks[1], (D_MODEL, D_MODEL)),
            b_out_sa=jnp.zeros((1, D_MODEL), jnp.float32),
            w_in_ca=sc * jax.random.normal(ks[2], (3 * D_MODEL, D_MODEL)),
            b_in_ca=jnp.zeros((1, 3 * D_MODEL), jnp.float32),
            w_out_ca=sc * jax.random.normal(ks[3], (D_MODEL, D_MODEL)),
            b_out_ca=jnp.zeros((1, D_MODEL), jnp.float32),
            g1=jnp.ones((1, D_MODEL), jnp.float32),
            be1=jnp.zeros((1, D_MODEL), jnp.float32),
            g2=jnp.ones((1, D_MODEL), jnp.float32),
            be2=jnp.zeros((1, D_MODEL), jnp.float32),
            g3=jnp.ones((1, D_MODEL), jnp.float32),
            be3=jnp.zeros((1, D_MODEL), jnp.float32),
            w1=sc * jax.random.normal(ks[4], (D_MODEL, D_MODEL)),
            b1=0.01 * jax.random.normal(ks[5], (1, D_MODEL)),
            w2=sc * jax.random.normal(ks[6], (D_MODEL, D_MODEL)),
            b2=0.01 * jax.random.normal(ks[7], (1, D_MODEL)),
        )
        layers.append({k: v.astype(jnp.float32) for k, v in lw.items()})
    params['layers'] = layers
    return params


def sinusoidal_pe(seq_len, d_model):
    position = jnp.arange(seq_len, dtype=jnp.float32)[:, None]
    div_term = jnp.exp(jnp.arange(0, d_model, 2, dtype=jnp.float32)
                       * (-math.log(10000.0) / d_model))
    pe = jnp.zeros((seq_len, d_model), jnp.float32)
    pe = pe.at[:, 0::2].set(jnp.sin(position * div_term))
    pe = pe.at[:, 1::2].set(jnp.cos(position * div_term))
    return pe


# ---------------- full Decoder forward ---------------------------------------
def decoder_forward(prep, x_ids, encoder_output, tgt_mask_add, src_mask_bool):
    B, T = x_ids.shape
    S = encoder_output.shape[1]

    ids2d = x_ids.reshape(B * T, 1).astype(jnp.int32)
    pe_full = jnp.tile(sinusoidal_pe(SEQ_LEN, D_MODEL)[:T, :], (B, 1)) \
                 .astype(jnp.float32)                               # (B*T, D)
    enc2d = encoder_output.reshape(B * S, D_MODEL).astype(jnp.float32)

    # batch-fused block masks: cross-batch quadrants get NEG_INF so the kernel
    # can run attention over all batch rows with a single set of head matmuls.
    src_add = jnp.where(src_mask_bool, NEG_INF, 0.0).astype(jnp.float32)
    sa_mask = jnp.full((B * T, B * T), NEG_INF, jnp.float32)
    ca_mask = jnp.full((B * T, B * S), NEG_INF, jnp.float32)
    for b in range(B):
        sa_mask = sa_mask.at[b * T:(b + 1) * T, b * T:(b + 1) * T].set(
            tgt_mask_add.astype(jnp.float32))
        ca_mask = ca_mask.at[b * T:(b + 1) * T, b * S:(b + 1) * S].set(
            jnp.broadcast_to(src_add[b], (T, S)))

    out2d = pl.pallas_call(
        decoder_kernel,
        out_shape=jax.ShapeDtypeStruct((B * T, D_MODEL), jnp.float32),
        compiler_params=pltpu.CompilerParams(vmem_limit_bytes=2 * 1024 * 1024),
        cost_estimate=pl.CostEstimate(flops=1_800_000, transcendentals=9_000,
                                      bytes_accessed=200_000),
    )(ids2d, prep['emb'], pe_full, enc2d, sa_mask, ca_mask,
      prep['w_in_sa'], prep['w_q_ca'], prep['w_kv_ca'], prep['b_kv_ca'],
      prep['w_o'], prep['vecs'])
    return out2d.reshape(B, T, D_MODEL)


# ---------------- main --------------------------------------------------------
if __name__ == "__main__":
    key = jax.random.PRNGKey(0)
    k_par, k_ids, k_enc = jax.random.split(key, 3)

    B = 2
    params = make_params(k_par)
    prep = prepare_params(params)          # pre-transpose / pack once, on host
    x_ids = jax.random.randint(k_ids, (B, SEQ_LEN), 0, VOCAB, dtype=jnp.int32)
    encoder_output = jax.random.normal(k_enc, (B, SRC_LEN, D_MODEL), jnp.float32)

    # causal target mask as additive float (what nn.Transformer conventionally uses)
    causal = jnp.tril(jnp.ones((SEQ_LEN, SEQ_LEN), jnp.bool_))
    tgt_mask_add = jnp.where(causal, 0.0, NEG_INF).astype(jnp.float32)

    # source key-padding mask: True == padding; pad last 2 positions of batch 1
    src_mask_bool = jnp.zeros((B, SRC_LEN), jnp.bool_)
    src_mask_bool = src_mask_bool.at[1, -2:].set(True)

    fwd = jax.jit(decoder_forward)
    out = fwd(prep, x_ids, encoder_output, tgt_mask_add, src_mask_bool)
    out = jax.block_until_ready(out)

    assert out.shape == (B, SEQ_LEN, D_MODEL)
    assert bool(jnp.all(jnp.isfinite(out)))
    print("KERNEL_OK")
</pallas_src>

<mosaic_0001>
module attributes {stable_mosaic.version = 11 : i64} {
  func.func @decoder_kernel(%arg0: memref<16x1xi32, #tpu.memory_space<vmem>>, %arg1: memref<64x32xf32, #tpu.memory_space<vmem>>, %arg2: memref<16x32xf32, #tpu.memory_space<vmem>>, %arg3: memref<16x32xf32, #tpu.memory_space<vmem>>, %arg4: memref<16x16xf32, #tpu.memory_space<vmem>>, %arg5: memref<16x16xf32, #tpu.memory_space<vmem>>, %arg6: memref<4x32x96xf32, #tpu.memory_space<vmem>>, %arg7: memref<4x32x32xf32, #tpu.memory_space<vmem>>, %arg8: memref<32x256xf32, #tpu.memory_space<vmem>>, %arg9: memref<1x256xf32, #tpu.memory_space<vmem>>, %arg10: memref<4x4x32x32xf32, #tpu.memory_space<vmem>>, %arg11: memref<4x12x96xf32, #tpu.memory_space<vmem>>, %arg12: memref<16x32xf32, #tpu.memory_space<vmem>>) attributes {dimension_semantics = [], scalar_prefetch = 0 : i64, scratch_operands = 0 : i64, tpu.core_type = #tpu.core_type<tc>} {
    %c0 = arith.constant 0 : index
    %c0_0 = arith.constant 0 : index
    %0 = vector.load %arg0[%c0, %c0_0] : memref<16x1xi32, #tpu.memory_space<vmem>>, vector<16x1xi32>
    %1 = tpu.iota {dimensions = array<i32: 1>} : vector<16x64xi32>
    %2 = vector.broadcast %0 : vector<16x1xi32> to vector<16x64xi32>
    %3 = arith.cmpi eq, %1, %2 : vector<16x64xi32>
    %4 = arith.extui %3 : vector<16x64xi1> to vector<16x64xi32>
    %5 = arith.sitofp %4 : vector<16x64xi32> to vector<16x64xf32>
    %c0_1 = arith.constant 0 : index
    %c0_2 = arith.constant 0 : index
    %6 = vector.load %arg1[%c0_1, %c0_2] : memref<64x32xf32, #tpu.memory_space<vmem>>, vector<64x32xf32>
    %cst = arith.constant dense<0.000000e+00> : vector<16x32xf32>
    %7 = tpu.matmul %5, %6, %cst {dimension_numbers = #tpu.dot_dimension_numbers<[1], [0], [0], [1], [0, 0, 1, 1], [], []>} : vector<16x64xf32>, vector<64x32xf32>, vector<16x32xf32> -> vector<16x32xf32>
    %c0_3 = arith.constant 0 : index
    %c0_4 = arith.constant 0 : index
    %8 = vector.load %arg2[%c0_3, %c0_4] : memref<16x32xf32, #tpu.memory_space<vmem>>, vector<16x32xf32>
    %9 = arith.addf %7, %8 : vector<16x32xf32>
    %c0_5 = arith.constant 0 : index
    %c0_6 = arith.constant 0 : index
    %10 = vector.load %arg3[%c0_5, %c0_6] : memref<16x32xf32, #tpu.memory_space<vmem>>, vector<16x32xf32>
    %c0_7 = arith.constant 0 : index
    %c0_8 = arith.constant 0 : index
    %11 = vector.load %arg4[%c0_7, %c0_8] : memref<16x16xf32, #tpu.memory_space<vmem>>, vector<16x16xf32>
    %c0_9 = arith.constant 0 : index
    %c0_10 = arith.constant 0 : index
    %12 = vector.load %arg5[%c0_9, %c0_10] : memref<16x16xf32, #tpu.memory_space<vmem>>, vector<16x16xf32>
    %c0_11 = arith.constant 0 : index
    %c0_12 = arith.constant 0 : index
    %13 = vector.load %arg8[%c0_11, %c0_12] : memref<32x256xf32, #tpu.memory_space<vmem>>, vector<32x256xf32>
    %cst_13 = arith.constant dense<0.000000e+00> : vector<16x256xf32>
    %14 = tpu.matmul %10, %13, %cst_13 {dimension_numbers = #tpu.dot_dimension_numbers<[1], [0], [0], [1], [0, 0, 1, 1], [], []>} : vector<16x32xf32>, vector<32x256xf32>, vector<16x256xf32> -> vector<16x256xf32>
    %c0_14 = arith.constant 0 : index
    %c0_15 = arith.constant 0 : index
    %15 = vector.load %arg9[%c0_14, %c0_15] : memref<1x256xf32, #tpu.memory_space<vmem>>, vector<1x256xf32>
    %16 = vector.broadcast %15 : vector<1x256xf32> to vector<16x256xf32>
    %17 = arith.addf %14, %16 : vector<16x256xf32>
    %c0_16 = arith.constant 0 : index
    %c0_17 = arith.constant 0 : index
    %c0_18 = arith.constant 0 : index
    %18 = vector.load %arg6[%c0_16, %c0_17, %c0_18] : memref<4x32x96xf32, #tpu.memory_space<vmem>>, vector<1x32x96xf32>
    %19 = vector.shape_cast %18 : vector<1x32x96xf32> to vector<32x96xf32>
    %c0_19 = arith.constant 0 : index
    %c0_20 = arith.constant 0 : index
    %c0_21 = arith.constant 0 : index
    %20 = vector.load %arg7[%c0_19, %c0_20, %c0_21] : memref<4x32x32xf32, #tpu.memory_space<vmem>>, vector<1x32x32xf32>
    %21 = vector.shape_cast %20 : vector<1x32x32xf32> to vector<32x32xf32>
    %c0_22 = arith.constant 0 : index
    %c0_23 = arith.constant 0 : index
    %c0_24 = arith.constant 0 : index
    %c0_25 = arith.constant 0 : index
    %22 = vector.load %arg10[%c0_22, %c0_23, %c0_24, %c0_25] : memref<4x4x32x32xf32, #tpu.memory_space<vmem>>, vector<1x1x32x32xf32>
    %23 = vector.shape_cast %22 : vector<1x1x32x32xf32> to vector<32x32xf32>
    %c0_26 = arith.constant 0 : index
    %c1 = arith.constant 1 : index
    %c0_27 = arith.constant 0 : index
    %c0_28 = arith.constant 0 : index
    %24 = vector.load %arg10[%c0_26, %c1, %c0_27, %c0_28] : memref<4x4x32x32xf32, #tpu.memory_space<vmem>>, vector<1x1x32x32xf32>
    %25 = vector.shape_cast %24 : vector<1x1x32x32xf32> to vector<32x32xf32>
    %c0_29 = arith.constant 0 : index
    %c2 = arith.constant 2 : index
    %c0_30 = arith.constant 0 : index
    %c0_31 = arith.constant 0 : index
    %26 = vector.load %arg10[%c0_29, %c2, %c0_30, %c0_31] : memref<4x4x32x32xf32, #tpu.memory_space<vmem>>, vector<1x1x32x32xf32>
    %27 = vector.shape_cast %26 : vector<1x1x32x32xf32> to vector<32x32xf32>
    %c0_32 = arith.constant 0 : index
    %c3 = arith.constant 3 : index
    %c0_33 = arith.constant 0 : index
    %c0_34 = arith.constant 0 : index
    %28 = vector.load %arg10[%c0_32, %c3, %c0_33, %c0_34] : memref<4x4x32x32xf32, #tpu.memory_space<vmem>>, vector<1x1x32x32xf32>
    %29 = vector.shape_cast %28 : vector<1x1x32x32xf32> to vector<32x32xf32>
    %c0_35 = arith.constant 0 : index
    %c0_36 = arith.constant 0 : index
    %c0_37 = arith.constant 0 : index
    %30 = vector.load %arg11[%c0_35, %c0_36, %c0_37] : memref<4x12x96xf32, #tpu.memory_space<vmem>>, vector<1x1x96xf32>
    %31 = vector.shape_cast %30 : vector<1x1x96xf32> to vector<1x96xf32>
    %c0_38 = arith.constant 0 : index
    %c1_39 = arith.constant 1 : index
    %c0_40 = arith.constant 0 : index
    %32 = vector.load %arg11[%c0_38, %c1_39, %c0_40] : memref<4x12x96xf32, #tpu.memory_space<vmem>>, vector<1x1x32xf32>
    %33 = vector.shape_cast %32 : vector<1x1x32xf32> to vector<1x32xf32>
    %c0_41 = arith.constant 0 : index
    %c2_42 = arith.constant 2 : index
    %c0_43 = arith.constant 0 : index
    %34 = vector.load %arg11[%c0_41, %c2_42, %c0_43] : memref<4x12x96xf32, #tpu.memory_space<vmem>>, vector<1x1x32xf32>
    %35 = vector.shape_cast %34 : vector<1x1x32xf32> to vector<1x32xf32>
    %c0_44 = arith.constant 0 : index
    %c3_45 = arith.constant 3 : index
    %c0_46 = arith.constant 0 : index
    %36 = vector.load %arg11[%c0_44, %c3_45, %c0_46] : memref<4x12x96xf32, #tpu.memory_space<vmem>>, vector<1x1x32xf32>
    %37 = vector.shape_cast %36 : vector<1x1x32xf32> to vector<1x32xf32>
    %c0_47 = arith.constant 0 : index
    %c4 = arith.constant 4 : index
    %c0_48 = arith.constant 0 : index
    %38 = vector.load %arg11[%c0_47, %c4, %c0_48] : memref<4x12x96xf32, #tpu.memory_space<vmem>>, vector<1x1x32xf32>
    %39 = vector.shape_cast %38 : vector<1x1x32xf32> to vector<1x32xf32>
    %c0_49 = arith.constant 0 : index
    %c5 = arith.constant 5 : index
    %c0_50 = arith.constant 0 : index
    %40 = vector.load %arg11[%c0_49, %c5, %c0_50] : memref<4x12x96xf32, #tpu.memory_space<vmem>>, vector<1x1x32xf32>
    %41 = vector.shape_cast %40 : vector<1x1x32xf32> to vector<1x32xf32>
    %c0_51 = arith.constant 0 : index
    %c6 = arith.constant 6 : index
    %c0_52 = arith.constant 0 : index
    %42 = vector.load %arg11[%c0_51, %c6, %c0_52] : memref<4x12x96xf32, #tpu.memory_space<vmem>>, vector<1x1x32xf32>
    %43 = vector.shape_cast %42 : vector<1x1x32xf32> to vector<1x32xf32>
    %c0_53 = arith.constant 0 : index
    %c7 = arith.constant 7 : index
    %c0_54 = arith.constant 0 : index
    %44 = vector.load %arg11[%c0_53, %c7, %c0_54] : memref<4x12x96xf32, #tpu.memory_space<vmem>>, vector<1x1x32xf32>
    %45 = vector.shape_cast %44 : vector<1x1x32xf32> to vector<1x32xf32>
    %c0_55 = arith.constant 0 : index
    %c8 = arith.constant 8 : index
    %c0_56 = arith.constant 0 : index
    %46 = vector.load %arg11[%c0_55, %c8, %c0_56] : memref<4x12x96xf32, #tpu.memory_space<vmem>>, vector<1x1x32xf32>
    %47 = vector.shape_cast %46 : vector<1x1x32xf32> to vector<1x32xf32>
    %c0_57 = arith.constant 0 : index
    %c9 = arith.constant 9 : index
    %c0_58 = arith.constant 0 : index
    %48 = vector.load %arg11[%c0_57, %c9, %c0_58] : memref<4x12x96xf32, #tpu.memory_space<vmem>>, vector<1x1x32xf32>
    %49 = vector.shape_cast %48 : vector<1x1x32xf32> to vector<1x32xf32>
    %c0_59 = arith.constant 0 : index
    %c10 = arith.constant 10 : index
    %c0_60 = arith.constant 0 : index
    %50 = vector.load %arg11[%c0_59, %c10, %c0_60] : memref<4x12x96xf32, #tpu.memory_space<vmem>>, vector<1x1x32xf32>
    %51 = vector.shape_cast %50 : vector<1x1x32xf32> to vector<1x32xf32>
    %c0_61 = arith.constant 0 : index
    %c11 = arith.constant 11 : index
    %c0_62 = arith.constant 0 : index
    %52 = vector.load %arg11[%c0_61, %c11, %c0_62] : memref<4x12x96xf32, #tpu.memory_space<vmem>>, vector<1x1x32xf32>
    %53 = vector.shape_cast %52 : vector<1x1x32xf32> to vector<1x32xf32>
    %cst_63 = arith.constant dense<0.000000e+00> : vector<16x96xf32>
    %54 = tpu.matmul %9, %19, %cst_63 {dimension_numbers = #tpu.dot_dimension_numbers<[1], [0], [0], [1], [0, 0, 1, 1], [], []>} : vector<16x32xf32>, vector<32x96xf32>, vector<16x96xf32> -> vector<16x96xf32>
    %55 = vector.broadcast %31 : vector<1x96xf32> to vector<16x96xf32>
    %56 = arith.addf %54, %55 : vector<16x96xf32>
    %57 = vector.extract_strided_slice %56 {offsets = [0, 0], sizes = [16, 8], strides = [1, 1]} : vector<16x96xf32> to vector<16x8xf32>
    %58 = vector.extract_strided_slice %56 {offsets = [0, 32], sizes = [16, 8], strides = [1, 1]} : vector<16x96xf32> to vector<16x8xf32>
    %59 = vector.extract_strided_slice %56 {offsets = [0, 64], sizes = [16, 8], strides = [1, 1]} : vector<16x96xf32> to vector<16x8xf32>
    %cst_64 = arith.constant dense<0.000000e+00> : vector<16x16xf32>
    %60 = tpu.matmul %57, %58, %cst_64 {dimension_numbers = #tpu.dot_dimension_numbers<[1], [1], [0], [0], [0, 0, 1, 0], [], []>} : vector<16x8xf32>, vector<16x8xf32>, vector<16x16xf32> -> vector<16x16xf32>
    %cst_65 = arith.constant 0.353553385 : f32
    %61 = vector.broadcast %cst_65 : f32 to vector<16x16xf32>
    %62 = arith.mulf %60, %61 : vector<16x16xf32>
    %63 = arith.addf %62, %11 : vector<16x16xf32>
    %cst_66 = arith.constant dense<0xFF800000> : vector<16xf32>
    %64 = vector.multi_reduction <maximumf>, %63, %cst_66 [1] : vector<16x16xf32> to vector<16xf32>
    %65 = vector.shape_cast %64 : vector<16xf32> to vector<16x1xf32>
    %66 = vector.broadcast %65 : vector<16x1xf32> to vector<16x16xf32>
    %67 = arith.subf %63, %66 : vector<16x16xf32>
    %68 = math.exp %67 : vector<16x16xf32>
    %cst_67 = arith.constant dense<0.000000e+00> : vector<16xf32>
    %69 = vector.multi_reduction <add>, %68, %cst_67 [1] : vector<16x16xf32> to vector<16xf32>
    %70 = vector.shape_cast %69 : vector<16xf32> to vector<16x1xf32>
    %71 = tpu.reciprocal %70 {approx = true} : vector<16x1xf32> -> vector<16x1xf32>
    %72 = vector.broadcast %71 : vector<16x1xf32> to vector<16x16xf32>
    %73 = arith.mulf %68, %72 : vector<16x16xf32>
    %cst_68 = arith.constant dense<0.000000e+00> : vector<16x8xf32>
    %74 = tpu.matmul %73, %59, %cst_68 {dimension_numbers = #tpu.dot_dimension_numbers<[1], [0], [0], [1], [0, 0, 1, 1], [], []>} : vector<16x16xf32>, vector<16x8xf32>, vector<16x8xf32> -> vector<16x8xf32>
    %75 = vector.extract_strided_slice %56 {offsets = [0, 8], sizes = [16, 8], strides = [1, 1]} : vector<16x96xf32> to vector<16x8xf32>
    %76 = vector.extract_strided_slice %56 {offsets = [0, 40], sizes = [16, 8], strides = [1, 1]} : vector<16x96xf32> to vector<16x8xf32>
    %77 = vector.extract_strided_slice %56 {offsets = [0, 72], sizes = [16, 8], strides = [1, 1]} : vector<16x96xf32> to vector<16x8xf32>
    %cst_69 = arith.constant dense<0.000000e+00> : vector<16x16xf32>
    %78 = tpu.matmul %75, %76, %cst_69 {dimension_numbers = #tpu.dot_dimension_numbers<[1], [1], [0], [0], [0, 0, 1, 0], [], []>} : vector<16x8xf32>, vector<16x8xf32>, vector<16x16xf32> -> vector<16x16xf32>
    %cst_70 = arith.constant 0.353553385 : f32
    %79 = vector.broadcast %cst_70 : f32 to vector<16x16xf32>
    %80 = arith.mulf %78, %79 : vector<16x16xf32>
    %81 = arith.addf %80, %11 : vector<16x16xf32>
    %cst_71 = arith.constant dense<0xFF800000> : vector<16xf32>
    %82 = vector.multi_reduction <maximumf>, %81, %cst_71 [1] : vector<16x16xf32> to vector<16xf32>
    %83 = vector.shape_cast %82 : vector<16xf32> to vector<16x1xf32>
    %84 = vector.broadcast %83 : vector<16x1xf32> to vector<16x16xf32>
    %85 = arith.subf %81, %84 : vector<16x16xf32>
    %86 = math.exp %85 : vector<16x16xf32>
    %cst_72 = arith.constant dense<0.000000e+00> : vector<16xf32>
    %87 = vector.multi_reduction <add>, %86, %cst_72 [1] : vector<16x16xf32> to vector<16xf32>
    %88 = vector.shape_cast %87 : vector<16xf32> to vector<16x1xf32>
    %89 = tpu.reciprocal %88 {approx = true} : vector<16x1xf32> -> vector<16x1xf32>
    %90 = vector.broadcast %89 : vector<16x1xf32> to vector<16x16xf32>
    %91 = arith.mulf %86, %90 : vector<16x16xf32>
    %cst_73 = arith.constant dense<0.000000e+00> : vector<16x8xf32>
    %92 = tpu.matmul %91, %77, %cst_73 {dimension_numbers = #tpu.dot_dimension_numbers<[1], [0], [0], [1], [0, 0, 1, 1], [], []>} : vector<16x16xf32>, vector<16x8xf32>, vector<16x8xf32> -> vector<16x8xf32>
    %93 = vector.extract_strided_slice %56 {offsets = [0, 16], sizes = [16, 8], strides = [1, 1]} : vector<16x96xf32> to vector<16x8xf32>
    %94 = vector.extract_strided_slice %56 {offsets = [0, 48], sizes = [16, 8], strides = [1, 1]} : vector<16x96xf32> to vector<16x8xf32>
    %95 = vector.extract_strided_slice %56 {offsets = [0, 80], sizes = [16, 8], strides = [1, 1]} : vector<16x96xf32> to vector<16x8xf32>
    %cst_74 = arith.constant dense<0.000000e+00> : vector<16x16xf32>
    %96 = tpu.matmul %93, %94, %cst_74 {dimension_numbers = #tpu.dot_dimension_numbers<[1], [1], [0], [0], [0, 0, 1, 0], [], []>} : vector<16x8xf32>, vector<16x8xf32>, vector<16x16xf32> -> vector<16x16xf32>
    %cst_75 = arith.constant 0.353553385 : f32
    %97 = vector.broadcast %cst_75 : f32 to vector<16x16xf32>
    %98 = arith.mulf %96, %97 : vector<16x16xf32>
    %99 = arith.addf %98, %11 : vector<16x16xf32>
    %cst_76 = arith.constant dense<0xFF800000> : vector<16xf32>
    %100 = vector.multi_reduction <maximumf>, %99, %cst_76 [1] : vector<16x16xf32> to vector<16xf32>
    %101 = vector.shape_cast %100 : vector<16xf32> to vector<16x1xf32>
    %102 = vector.broadcast %101 : vector<16x1xf32> to vector<16x16xf32>
    %103 = arith.subf %99, %102 : vector<16x16xf32>
    %104 = math.exp %103 : vector<16x16xf32>
    %cst_77 = arith.constant dense<0.000000e+00> : vector<16xf32>
    %105 = vector.multi_reduction <add>, %104, %cst_77 [1] : vector<16x16xf32> to vector<16xf32>
    %106 = vector.shape_cast %105 : vector<16xf32> to vector<16x1xf32>
    %107 = tpu.reciprocal %106 {approx = true} : vector<16x1xf32> -> vector<16x1xf32>
    %108 = vector.broadcast %107 : vector<16x1xf32> to vector<16x16xf32>
    %109 = arith.mulf %104, %108 : vector<16x16xf32>
    %cst_78 = arith.constant dense<0.000000e+00> : vector<16x8xf32>
    %110 = tpu.matmul %109, %95, %cst_78 {dimension_numbers = #tpu.dot_dimension_numbers<[1], [0], [0], [1], [0, 0, 1, 1], [], []>} : vector<16x16xf32>, vector<16x8xf32>, vector<16x8xf32> -> vector<16x8xf32>
    %111 = vector.extract_strided_slice %56 {offsets = [0, 24], sizes = [16, 8], strides = [1, 1]} : vector<16x96xf32> to vector<16x8xf32>
    %112 = vector.extract_strided_slice %56 {offsets = [0, 56], sizes = [16, 8], strides = [1, 1]} : vector<16x96xf32> to vector<16x8xf32>
    %113 = vector.extract_strided_slice %56 {offsets = [0, 88], sizes = [16, 8], strides = [1, 1]} : vector<16x96xf32> to vector<16x8xf32>
    %cst_79 = arith.constant dense<0.000000e+00> : vector<16x16xf32>
    %114 = tpu.matmul %111, %112, %cst_79 {dimension_numbers = #tpu.dot_dimension_numbers<[1], [1], [0], [0], [0, 0, 1, 0], [], []>} : vector<16x8xf32>, vector<16x8xf32>, vector<16x16xf32> -> vector<16x16xf32>
    %cst_80 = arith.constant 0.353553385 : f32
    %115 = vector.broadcast %cst_80 : f32 to vector<16x16xf32>
    %116 = arith.mulf %114, %115 : vector<16x16xf32>
    %117 = arith.addf %116, %11 : vector<16x16xf32>
    %cst_81 = arith.constant dense<0xFF800000> : vector<16xf32>
    %118 = vector.multi_reduction <maximumf>, %117, %cst_81 [1] : vector<16x16xf32> to vector<16xf32>
    %119 = vector.shape_cast %118 : vector<16xf32> to vector<16x1xf32>
    %120 = vector.broadcast %119 : vector<16x1xf32> to vector<16x16xf32>
    %121 = arith.subf %117, %120 : vector<16x16xf32>
    %122 = math.exp %121 : vector<16x16xf32>
    %cst_82 = arith.constant dense<0.000000e+00> : vector<16xf32>
    %123 = vector.multi_reduction <add>, %122, %cst_82 [1] : vector<16x16xf32> to vector<16xf32>
    %124 = vector.shape_cast %123 : vector<16xf32> to vector<16x1xf32>
    %125 = tpu.reciprocal %124 {approx = true} : vector<16x1xf32> -> vector<16x1xf32>
    %126 = vector.broadcast %125 : vector<16x1xf32> to vector<16x16xf32>
    %127 = arith.mulf %122, %126 : vector<16x16xf32>
    %cst_83 = arith.constant dense<0.000000e+00> : vector<16x8xf32>
    %128 = tpu.matmul %127, %113, %cst_83 {dimension_numbers = #tpu.dot_dimension_numbers<[1], [0], [0], [1], [0, 0, 1, 1], [], []>} : vector<16x16xf32>, vector<16x8xf32>, vector<16x8xf32> -> vector<16x8xf32>
    %129 = tpu.concatenate %74, %92, %110, %128 in 1 : vector<16x8xf32>, vector<16x8xf32>, vector<16x8xf32>, vector<16x8xf32> -> vector<16x32xf32>
    %cst_84 = arith.constant dense<0.000000e+00> : vector<16x32xf32>
    %130 = tpu.matmul %129, %23, %cst_84 {dimension_numbers = #tpu.dot_dimension_numbers<[1], [0], [0], [1], [0, 0, 1, 1], [], []>} : vector<16x32xf32>, vector<32x32xf32>, vector<16x32xf32> -> vector<16x32xf32>
    %131 = vector.broadcast %35 : vector<1x32xf32> to vector<16x32xf32>
    %132 = arith.addf %130, %131 : vector<16x32xf32>
    %133 = arith.addf %132, %9 : vector<16x32xf32>
    %cst_85 = arith.constant dense<0.000000e+00> : vector<16xf32>
    %134 = vector.multi_reduction <add>, %133, %cst_85 [1] : vector<16x32xf32> to vector<16xf32>
    %135 = vector.shape_cast %134 : vector<16xf32> to vector<16x1xf32>
    %cst_86 = arith.constant 3.200000e+01 : f32
    %136 = vector.broadcast %cst_86 : f32 to vector<16x1xf32>
    %137 = arith.divf %135, %136 : vector<16x1xf32>
    %138 = vector.broadcast %137 : vector<16x1xf32> to vector<16x32xf32>
    %139 = arith.subf %133, %138 : vector<16x32xf32>
    %140 = arith.mulf %139, %139 : vector<16x32xf32>
    %cst_87 = arith.constant dense<0.000000e+00> : vector<16xf32>
    %141 = vector.multi_reduction <add>, %140, %cst_87 [1] : vector<16x32xf32> to vector<16xf32>
    %142 = vector.shape_cast %141 : vector<16xf32> to vector<16x1xf32>
    %cst_88 = arith.constant 3.200000e+01 : f32
    %143 = vector.broadcast %cst_88 : f32 to vector<16x1xf32>
    %144 = arith.divf %142, %143 : vector<16x1xf32>
    %145 = vector.broadcast %137 : vector<16x1xf32> to vector<16x32xf32>
    %146 = arith.subf %133, %145 : vector<16x32xf32>
    %cst_89 = arith.constant 9.99999974E-6 : f32
    %147 = vector.broadcast %cst_89 : f32 to vector<16x1xf32>
    %148 = arith.addf %144, %147 : vector<16x1xf32>
    %149 = math.rsqrt %148 : vector<16x1xf32>
    %150 = vector.broadcast %149 : vector<16x1xf32> to vector<16x32xf32>
    %151 = arith.mulf %146, %150 : vector<16x32xf32>
    %152 = vector.broadcast %43 : vector<1x32xf32> to vector<16x32xf32>
    %153 = arith.mulf %151, %152 : vector<16x32xf32>
    %154 = vector.broadcast %45 : vector<1x32xf32> to vector<16x32xf32>
    %155 = arith.addf %153, %154 : vector<16x32xf32>
    %cst_90 = arith.constant dense<0.000000e+00> : vector<16x32xf32>
    %156 = tpu.matmul %155, %21, %cst_90 {dimension_numbers = #tpu.dot_dimension_numbers<[1], [0], [0], [1], [0, 0, 1, 1], [], []>} : vector<16x32xf32>, vector<32x32xf32>, vector<16x32xf32> -> vector<16x32xf32>
    %157 = vector.broadcast %33 : vector<1x32xf32> to vector<16x32xf32>
    %158 = arith.addf %156, %157 : vector<16x32xf32>
    %159 = vector.extract_strided_slice %158 {offsets = [0, 0], sizes = [16, 8], strides = [1, 1]} : vector<16x32xf32> to vector<16x8xf32>
    %160 = vector.extract_strided_slice %17 {offsets = [0, 0], sizes = [16, 8], strides = [1, 1]} : vector<16x256xf32> to vector<16x8xf32>
    %161 = vector.extract_strided_slice %17 {offsets = [0, 32], sizes = [16, 8], strides = [1, 1]} : vector<16x256xf32> to vector<16x8xf32>
    %cst_91 = arith.constant dense<0.000000e+00> : vector<16x16xf32>
    %162 = tpu.matmul %159, %160, %cst_91 {dimension_numbers = #tpu.dot_dimension_numbers<[1], [1], [0], [0], [0, 0, 1, 0], [], []>} : vector<16x8xf32>, vector<16x8xf32>, vector<16x16xf32> -> vector<16x16xf32>
    %cst_92 = arith.constant 0.353553385 : f32
    %163 = vector.broadcast %cst_92 : f32 to vector<16x16xf32>
    %164 = arith.mulf %162, %163 : vector<16x16xf32>
    %165 = arith.addf %164, %12 : vector<16x16xf32>
    %cst_93 = arith.constant dense<0xFF800000> : vector<16xf32>
    %166 = vector.multi_reduction <maximumf>, %165, %cst_93 [1] : vector<16x16xf32> to vector<16xf32>
    %167 = vector.shape_cast %166 : vector<16xf32> to vector<16x1xf32>
    %168 = vector.broadcast %167 : vector<16x1xf32> to vector<16x16xf32>
    %169 = arith.subf %165, %168 : vector<16x16xf32>
    %170 = math.exp %169 : vector<16x16xf32>
    %cst_94 = arith.constant dense<0.000000e+00> : vector<16xf32>
    %171 = vector.multi_reduction <add>, %170, %cst_94 [1] : vector<16x16xf32> to vector<16xf32>
    %172 = vector.shape_cast %171 : vector<16xf32> to vector<16x1xf32>
    %173 = tpu.reciprocal %172 {approx = true} : vector<16x1xf32> -> vector<16x1xf32>
    %174 = vector.broadcast %173 : vector<16x1xf32> to vector<16x16xf32>
    %175 = arith.mulf %170, %174 : vector<16x16xf32>
    %cst_95 = arith.constant dense<0.000000e+00> : vector<16x8xf32>
    %176 = tpu.matmul %175, %161, %cst_95 {dimension_numbers = #tpu.dot_dimension_numbers<[1], [0], [0], [1], [0, 0, 1, 1], [], []>} : vector<16x16xf32>, vector<16x8xf32>, vector<16x8xf32> -> vector<16x8xf32>
    %177 = vector.extract_strided_slice %158 {offsets = [0, 8], sizes = [16, 8], strides = [1, 1]} : vector<16x32xf32> to vector<16x8xf32>
    %178 = vector.extract_strided_slice %17 {offsets = [0, 8], sizes = [16, 8], strides = [1, 1]} : vector<16x256xf32> to vector<16x8xf32>
    %179 = vector.extract_strided_slice %17 {offsets = [0, 40], sizes = [16, 8], strides = [1, 1]} : vector<16x256xf32> to vector<16x8xf32>
    %cst_96 = arith.constant dense<0.000000e+00> : vector<16x16xf32>
    %180 = tpu.matmul %177, %178, %cst_96 {dimension_numbers = #tpu.dot_dimension_numbers<[1], [1], [0], [0], [0, 0, 1, 0], [], []>} : vector<16x8xf32>, vector<16x8xf32>, vector<16x16xf32> -> vector<16x16xf32>
    %cst_97 = arith.constant 0.353553385 : f32
    %181 = vector.broadcast %cst_97 : f32 to vector<16x16xf32>
    %182 = arith.mulf %180, %181 : vector<16x16xf32>
    %183 = arith.addf %182, %12 : vector<16x16xf32>
    %cst_98 = arith.constant dense<0xFF800000> : vector<16xf32>
    %184 = vector.multi_reduction <maximumf>, %183, %cst_98 [1] : vector<16x16xf32> to vector<16xf32>
    %185 = vector.shape_cast %184 : vector<16xf32> to vector<16x1xf32>
    %186 = vector.broadcast %185 : vector<16x1xf32> to vector<16x16xf32>
    %187 = arith.subf %183, %186 : vector<16x16xf32>
    %188 = math.exp %187 : vector<16x16xf32>
    %cst_99 = arith.constant dense<0.000000e+00> : vector<16xf32>
    %189 = vector.multi_reduction <add>, %188, %cst_99 [1] : vector<16x16xf32> to vector<16xf32>
    %190 = vector.shape_cast %189 : vector<16xf32> to vector<16x1xf32>
    %191 = tpu.reciprocal %190 {approx = true} : vector<16x1xf32> -> vector<16x1xf32>
    %192 = vector.broadcast %191 : vector<16x1xf32> to vector<16x16xf32>
    %193 = arith.mulf %188, %192 : vector<16x16xf32>
    %cst_100 = arith.constant dense<0.000000e+00> : vector<16x8xf32>
    %194 = tpu.matmul %193, %179, %cst_100 {dimension_numbers = #tpu.dot_dimension_numbers<[1], [0], [0], [1], [0, 0, 1, 1], [], []>} : vector<16x16xf32>, vector<16x8xf32>, vector<16x8xf32> -> vector<16x8xf32>
    %195 = vector.extract_strided_slice %158 {offsets = [0, 16], sizes = [16, 8], strides = [1, 1]} : vector<16x32xf32> to vector<16x8xf32>
    %196 = vector.extract_strided_slice %17 {offsets = [0, 16], sizes = [16, 8], strides = [1, 1]} : vector<16x256xf32> to vector<16x8xf32>
    %197 = vector.extract_strided_slice %17 {offsets = [0, 48], sizes = [16, 8], strides = [1, 1]} : vector<16x256xf32> to vector<16x8xf32>
    %cst_101 = arith.constant dense<0.000000e+00> : vector<16x16xf32>
    %198 = tpu.matmul %195, %196, %cst_101 {dimension_numbers = #tpu.dot_dimension_numbers<[1], [1], [0], [0], [0, 0, 1, 0], [], []>} : vector<16x8xf32>, vector<16x8xf32>, vector<16x16xf32> -> vector<16x16xf32>
    %cst_102 = arith.constant 0.353553385 : f32
    %199 = vector.broadcast %cst_102 : f32 to vector<16x16xf32>
    %200 = arith.mulf %198, %199 : vector<16x16xf32>
    %201 = arith.addf %200, %12 : vector<16x16xf32>
    %cst_103 = arith.constant dense<0xFF800000> : vector<16xf32>
    %202 = vector.multi_reduction <maximumf>, %201, %cst_103 [1] : vector<16x16xf32> to vector<16xf32>
    %203 = vector.shape_cast %202 : vector<16xf32> to vector<16x1xf32>
    %204 = vector.broadcast %203 : vector<16x1xf32> to vector<16x16xf32>
    %205 = arith.subf %201, %204 : vector<16x16xf32>
    %206 = math.exp %205 : vector<16x16xf32>
    %cst_104 = arith.constant dense<0.000000e+00> : vector<16xf32>
    %207 = vector.multi_reduction <add>, %206, %cst_104 [1] : vector<16x16xf32> to vector<16xf32>
    %208 = vector.shape_cast %207 : vector<16xf32> to vector<16x1xf32>
    %209 = tpu.reciprocal %208 {approx = true} : vector<16x1xf32> -> vector<16x1xf32>
    %210 = vector.broadcast %209 : vector<16x1xf32> to vector<16x16xf32>
    %211 = arith.mulf %206, %210 : vector<16x16xf32>
    %cst_105 = arith.constant dense<0.000000e+00> : vector<16x8xf32>
    %212 = tpu.matmul %211, %197, %cst_105 {dimension_numbers = #tpu.dot_dimension_numbers<[1], [0], [0], [1], [0, 0, 1, 1], [], []>} : vector<16x16xf32>, vector<16x8xf32>, vector<16x8xf32> -> vector<16x8xf32>
    %213 = vector.extract_strided_slice %158 {offsets = [0, 24], sizes = [16, 8], strides = [1, 1]} : vector<16x32xf32> to vector<16x8xf32>
    %214 = vector.extract_strided_slice %17 {offsets = [0, 24], sizes = [16, 8], strides = [1, 1]} : vector<16x256xf32> to vector<16x8xf32>
    %215 = vector.extract_strided_slice %17 {offsets = [0, 56], sizes = [16, 8], strides = [1, 1]} : vector<16x256xf32> to vector<16x8xf32>
    %cst_106 = arith.constant dense<0.000000e+00> : vector<16x16xf32>
    %216 = tpu.matmul %213, %214, %cst_106 {dimension_numbers = #tpu.dot_dimension_numbers<[1], [1], [0], [0], [0, 0, 1, 0], [], []>} : vector<16x8xf32>, vector<16x8xf32>, vector<16x16xf32> -> vector<16x16xf32>
    %cst_107 = arith.constant 0.353553385 : f32
    %217 = vector.broadcast %cst_107 : f32 to vector<16x16xf32>
    %218 = arith.mulf %216, %217 : vector<16x16xf32>
    %219 = arith.addf %218, %12 : vector<16x16xf32>
    %cst_108 = arith.constant dense<0xFF800000> : vector<16xf32>
    %220 = vector.multi_reduction <maximumf>, %219, %cst_108 [1] : vector<16x16xf32> to vector<16xf32>
    %221 = vector.shape_cast %220 : vector<16xf32> to vector<16x1xf32>
    %222 = vector.broadcast %221 : vector<16x1xf32> to vector<16x16xf32>
    %223 = arith.subf %219, %222 : vector<16x16xf32>
    %224 = math.exp %223 : vector<16x16xf32>
    %cst_109 = arith.constant dense<0.000000e+00> : vector<16xf32>
    %225 = vector.multi_reduction <add>, %224, %cst_109 [1] : vector<16x16xf32> to vector<16xf32>
    %226 = vector.shape_cast %225 : vector<16xf32> to vector<16x1xf32>
    %227 = tpu.reciprocal %226 {approx = true} : vector<16x1xf32> -> vector<16x1xf32>
    %228 = vector.broadcast %227 : vector<16x1xf32> to vector<16x16xf32>
    %229 = arith.mulf %224, %228 : vector<16x16xf32>
    %cst_110 = arith.constant dense<0.000000e+00> : vector<16x8xf32>
    %230 = tpu.matmul %229, %215, %cst_110 {dimension_numbers = #tpu.dot_dimension_numbers<[1], [0], [0], [1], [0, 0, 1, 1], [], []>} : vector<16x16xf32>, vector<16x8xf32>, vector<16x8xf32> -> vector<16x8xf32>
    %231 = tpu.concatenate %176, %194, %212, %230 in 1 : vector<16x8xf32>, vector<16x8xf32>, vector<16x8xf32>, vector<16x8xf32> -> vector<16x32xf32>
    %cst_111 = arith.constant dense<0.000000e+00> : vector<16x32xf32>
    %232 = tpu.matmul %231, %25, %cst_111 {dimension_numbers = #tpu.dot_dimension_numbers<[1], [0], [0], [1], [0, 0, 1, 1], [], []>} : vector<16x32xf32>, vector<32x32xf32>, vector<16x32xf32> -> vector<16x32xf32>
    %233 = vector.broadcast %37 : vector<1x32xf32> to vector<16x32xf32>
    %234 = arith.addf %232, %233 : vector<16x32xf32>
    %235 = arith.addf %234, %155 : vector<16x32xf32>
    %cst_112 = arith.constant dense<0.000000e+00> : vector<16xf32>
    %236 = vector.multi_reduction <add>, %235, %cst_112 [1] : vector<16x32xf32> to vector<16xf32>
    %237 = vector.shape_cast %236 : vector<16xf32> to vector<16x1xf32>
    %cst_113 = arith.constant 3.200000e+01 : f32
    %238 = vector.broadcast %cst_113 : f32 to vector<16x1xf32>
    %239 = arith.divf %237, %238 : vector<16x1xf32>
    %240 = vector.broadcast %239 : vector<16x1xf32> to vector<16x32xf32>
    %241 = arith.subf %235, %240 : vector<16x32xf32>
    %242 = arith.mulf %241, %241 : vector<16x32xf32>
    %cst_114 = arith.constant dense<0.000000e+00> : vector<16xf32>
    %243 = vector.multi_reduction <add>, %242, %cst_114 [1] : vector<16x32xf32> to vector<16xf32>
    %244 = vector.shape_cast %243 : vector<16xf32> to vector<16x1xf32>
    %cst_115 = arith.constant 3.200000e+01 : f32
    %245 = vector.broadcast %cst_115 : f32 to vector<16x1xf32>
    %246 = arith.divf %244, %245 : vector<16x1xf32>
    %247 = vector.broadcast %239 : vector<16x1xf32> to vector<16x32xf32>
    %248 = arith.subf %235, %247 : vector<16x32xf32>
    %cst_116 = arith.constant 9.99999974E-6 : f32
    %249 = vector.broadcast %cst_116 : f32 to vector<16x1xf32>
    %250 = arith.addf %246, %249 : vector<16x1xf32>
    %251 = math.rsqrt %250 : vector<16x1xf32>
    %252 = vector.broadcast %251 : vector<16x1xf32> to vector<16x32xf32>
    %253 = arith.mulf %248, %252 : vector<16x32xf32>
    %254 = vector.broadcast %47 : vector<1x32xf32> to vector<16x32xf32>
    %255 = arith.mulf %253, %254 : vector<16x32xf32>
    %256 = vector.broadcast %49 : vector<1x32xf32> to vector<16x32xf32>
    %257 = arith.addf %255, %256 : vector<16x32xf32>
    %cst_117 = arith.constant dense<0.000000e+00> : vector<16x32xf32>
    %258 = tpu.matmul %257, %27, %cst_117 {dimension_numbers = #tpu.dot_dimension_numbers<[1], [0], [0], [1], [0, 0, 1, 1], [], []>} : vector<16x32xf32>, vector<32x32xf32>, vector<16x32xf32> -> vector<16x32xf32>
    %259 = vector.broadcast %39 : vector<1x32xf32> to vector<16x32xf32>
    %260 = arith.addf %258, %259 : vector<16x32xf32>
    %cst_118 = arith.constant 0.000000e+00 : f32
    %261 = vector.broadcast %cst_118 : f32 to vector<16x32xf32>
    %262 = arith.maximumf %260, %261 : vector<16x32xf32>
    %cst_119 = arith.constant dense<0.000000e+00> : vector<16x32xf32>
    %263 = tpu.matmul %262, %29, %cst_119 {dimension_numbers = #tpu.dot_dimension_numbers<[1], [0], [0], [1], [0, 0, 1, 1], [], []>} : vector<16x32xf32>, vector<32x32xf32>, vector<16x32xf32> -> vector<16x32xf32>
    %264 = vector.broadcast %41 : vector<1x32xf32> to vector<16x32xf32>
    %265 = arith.addf %263, %264 : vector<16x32xf32>
    %266 = arith.addf %265, %257 : vector<16x32xf32>
    %cst_120 = arith.constant dense<0.000000e+00> : vector<16xf32>
    %267 = vector.multi_reduction <add>, %266, %cst_120 [1] : vector<16x32xf32> to vector<16xf32>
    %268 = vector.shape_cast %267 : vector<16xf32> to vector<16x1xf32>
    %cst_121 = arith.constant 3.200000e+01 : f32
    %269 = vector.broadcast %cst_121 : f32 to vector<16x1xf32>
    %270 = arith.divf %268, %269 : vector<16x1xf32>
    %271 = vector.broadcast %270 : vector<16x1xf32> to vector<16x32xf32>
    %272 = arith.subf %266, %271 : vector<16x32xf32>
    %273 = arith.mulf %272, %272 : vector<16x32xf32>
    %cst_122 = arith.constant dense<0.000000e+00> : vector<16xf32>
    %274 = vector.multi_reduction <add>, %273, %cst_122 [1] : vector<16x32xf32> to vector<16xf32>
    %275 = vector.shape_cast %274 : vector<16xf32> to vector<16x1xf32>
    %cst_123 = arith.constant 3.200000e+01 : f32
    %276 = vector.broadcast %cst_123 : f32 to vector<16x1xf32>
    %277 = arith.divf %275, %276 : vector<16x1xf32>
    %278 = vector.broadcast %270 : vector<16x1xf32> to vector<16x32xf32>
    %279 = arith.subf %266, %278 : vector<16x32xf32>
    %cst_124 = arith.constant 9.99999974E-6 : f32
    %280 = vector.broadcast %cst_124 : f32 to vector<16x1xf32>
    %281 = arith.addf %277, %280 : vector<16x1xf32>
    %282 = math.rsqrt %281 : vector<16x1xf32>
    %283 = vector.broadcast %282 : vector<16x1xf32> to vector<16x32xf32>
    %284 = arith.mulf %279, %283 : vector<16x32xf32>
    %285 = vector.broadcast %51 : vector<1x32xf32> to vector<16x32xf32>
    %286 = arith.mulf %284, %285 : vector<16x32xf32>
    %287 = vector.broadcast %53 : vector<1x32xf32> to vector<16x32xf32>
    %288 = arith.addf %286, %287 : vector<16x32xf32>
    %c1_125 = arith.constant 1 : index
    %c0_126 = arith.constant 0 : index
    %c0_127 = arith.constant 0 : index
    %289 = vector.load %arg6[%c1_125, %c0_126, %c0_127] : memref<4x32x96xf32, #tpu.memory_space<vmem>>, vector<1x32x96xf32>
    %290 = vector.shape_cast %289 : vector<1x32x96xf32> to vector<32x96xf32>
    %c1_128 = arith.constant 1 : index
    %c0_129 = arith.constant 0 : index
    %c0_130 = arith.constant 0 : index
    %291 = vector.load %arg7[%c1_128, %c0_129, %c0_130] : memref<4x32x32xf32, #tpu.memory_space<vmem>>, vector<1x32x32xf32>
    %292 = vector.shape_cast %291 : vector<1x32x32xf32> to vector<32x32xf32>
    %c1_131 = arith.constant 1 : index
    %c0_132 = arith.constant 0 : index
    %c0_133 = arith.constant 0 : index
    %c0_134 = arith.constant 0 : index
    %293 = vector.load %arg10[%c1_131, %c0_132, %c0_133, %c0_134] : memref<4x4x32x32xf32, #tpu.memory_space<vmem>>, vector<1x1x32x32xf32>
    %294 = vector.shape_cast %293 : vector<1x1x32x32xf32> to vector<32x32xf32>
    %c1_135 = arith.constant 1 : index
    %c1_136 = arith.constant 1 : index
    %c0_137 = arith.constant 0 : index
    %c0_138 = arith.constant 0 : index
    %295 = vector.load %arg10[%c1_135, %c1_136, %c0_137, %c0_138] : memref<4x4x32x32xf32, #tpu.memory_space<vmem>>, vector<1x1x32x32xf32>
    %296 = vector.shape_cast %295 : vector<1x1x32x32xf32> to vector<32x32xf32>
    %c1_139 = arith.constant 1 : index
    %c2_140 = arith.constant 2 : index
    %c0_141 = arith.constant 0 : index
    %c0_142 = arith.constant 0 : index
    %297 = vector.load %arg10[%c1_139, %c2_140, %c0_141, %c0_142] : memref<4x4x32x32xf32, #tpu.memory_space<vmem>>, vector<1x1x32x32xf32>
    %298 = vector.shape_cast %297 : vector<1x1x32x32xf32> to vector<32x32xf32>
    %c1_143 = arith.constant 1 : index
    %c3_144 = arith.constant 3 : index
    %c0_145 = arith.constant 0 : index
    %c0_146 = arith.constant 0 : index
    %299 = vector.load %arg10[%c1_143, %c3_144, %c0_145, %c0_146] : memref<4x4x32x32xf32, #tpu.memory_space<vmem>>, vector<1x1x32x32xf32>
    %300 = vector.shape_cast %299 : vector<1x1x32x32xf32> to vector<32x32xf32>
    %c1_147 = arith.constant 1 : index
    %c0_148 = arith.constant 0 : index
    %c0_149 = arith.constant 0 : index
    %301 = vector.load %arg11[%c1_147, %c0_148, %c0_149] : memref<4x12x96xf32, #tpu.memory_space<vmem>>, vector<1x1x96xf32>
    %302 = vector.shape_cast %301 : vector<1x1x96xf32> to vector<1x96xf32>
    %c1_150 = arith.constant 1 : index
    %c1_151 = arith.constant 1 : index
    %c0_152 = arith.constant 0 : index
    %303 = vector.load %arg11[%c1_150, %c1_151, %c0_152] : memref<4x12x96xf32, #tpu.memory_space<vmem>>, vector<1x1x32xf32>
    %304 = vector.shape_cast %303 : vector<1x1x32xf32> to vector<1x32xf32>
    %c1_153 = arith.constant 1 : index
    %c2_154 = arith.constant 2 : index
    %c0_155 = arith.constant 0 : index
    %305 = vector.load %arg11[%c1_153, %c2_154, %c0_155] : memref<4x12x96xf32, #tpu.memory_space<vmem>>, vector<1x1x32xf32>
    %306 = vector.shape_cast %305 : vector<1x1x32xf32> to vector<1x32xf32>
    %c1_156 = arith.constant 1 : index
    %c3_157 = arith.constant 3 : index
    %c0_158 = arith.constant 0 : index
    %307 = vector.load %arg11[%c1_156, %c3_157, %c0_158] : memref<4x12x96xf32, #tpu.memory_space<vmem>>, vector<1x1x32xf32>
    %308 = vector.shape_cast %307 : vector<1x1x32xf32> to vector<1x32xf32>
    %c1_159 = arith.constant 1 : index
    %c4_160 = arith.constant 4 : index
    %c0_161 = arith.constant 0 : index
    %309 = vector.load %arg11[%c1_159, %c4_160, %c0_161] : memref<4x12x96xf32, #tpu.memory_space<vmem>>, vector<1x1x32xf32>
    %310 = vector.shape_cast %309 : vector<1x1x32xf32> to vector<1x32xf32>
    %c1_162 = arith.constant 1 : index
    %c5_163 = arith.constant 5 : index
    %c0_164 = arith.constant 0 : index
    %311 = vector.load %arg11[%c1_162, %c5_163, %c0_164] : memref<4x12x96xf32, #tpu.memory_space<vmem>>, vector<1x1x32xf32>
    %312 = vector.shape_cast %311 : vector<1x1x32xf32> to vector<1x32xf32>
    %c1_165 = arith.constant 1 : index
    %c6_166 = arith.constant 6 : index
    %c0_167 = arith.constant 0 : index
    %313 = vector.load %arg11[%c1_165, %c6_166, %c0_167] : memref<4x12x96xf32, #tpu.memory_space<vmem>>, vector<1x1x32xf32>
    %314 = vector.shape_cast %313 : vector<1x1x32xf32> to vector<1x32xf32>
    %c1_168 = arith.constant 1 : index
    %c7_169 = arith.constant 7 : index
    %c0_170 = arith.constant 0 : index
    %315 = vector.load %arg11[%c1_168, %c7_169, %c0_170] : memref<4x12x96xf32, #tpu.memory_space<vmem>>, vector<1x1x32xf32>
    %316 = vector.shape_cast %315 : vector<1x1x32xf32> to vector<1x32xf32>
    %c1_171 = arith.constant 1 : index
    %c8_172 = arith.constant 8 : index
    %c0_173 = arith.constant 0 : index
    %317 = vector.load %arg11[%c1_171, %c8_172, %c0_173] : memref<4x12x96xf32, #tpu.memory_space<vmem>>, vector<1x1x32xf32>
    %318 = vector.shape_cast %317 : vector<1x1x32xf32> to vector<1x32xf32>
    %c1_174 = arith.constant 1 : index
    %c9_175 = arith.constant 9 : index
    %c0_176 = arith.constant 0 : index
    %319 = vector.load %arg11[%c1_174, %c9_175, %c0_176] : memref<4x12x96xf32, #tpu.memory_space<vmem>>, vector<1x1x32xf32>
    %320 = vector.shape_cast %319 : vector<1x1x32xf32> to vector<1x32xf32>
    %c1_177 = arith.constant 1 : index
    %c10_178 = arith.constant 10 : index
    %c0_179 = arith.constant 0 : index
    %321 = vector.load %arg11[%c1_177, %c10_178, %c0_179] : memref<4x12x96xf32, #tpu.memory_space<vmem>>, vector<1x1x32xf32>
    %322 = vector.shape_cast %321 : vector<1x1x32xf32> to vector<1x32xf32>
    %c1_180 = arith.constant 1 : index
    %c11_181 = arith.constant 11 : index
    %c0_182 = arith.constant 0 : index
    %323 = vector.load %arg11[%c1_180, %c11_181, %c0_182] : memref<4x12x96xf32, #tpu.memory_space<vmem>>, vector<1x1x32xf32>
    %324 = vector.shape_cast %323 : vector<1x1x32xf32> to vector<1x32xf32>
    %cst_183 = arith.constant dense<0.000000e+00> : vector<16x96xf32>
    %325 = tpu.matmul %288, %290, %cst_183 {dimension_numbers = #tpu.dot_dimension_numbers<[1], [0], [0], [1], [0, 0, 1, 1], [], []>} : vector<16x32xf32>, vector<32x96xf32>, vector<16x96xf32> -> vector<16x96xf32>
    %326 = vector.broadcast %302 : vector<1x96xf32> to vector<16x96xf32>
    %327 = arith.addf %325, %326 : vector<16x96xf32>
    %328 = vector.extract_strided_slice %327 {offsets = [0, 0], sizes = [16, 8], strides = [1, 1]} : vector<16x96xf32> to vector<16x8xf32>
    %329 = vector.extract_strided_slice %327 {offsets = [0, 32], sizes = [16, 8], strides = [1, 1]} : vector<16x96xf32> to vector<16x8xf32>
    %330 = vector.extract_strided_slice %327 {offsets = [0, 64], sizes = [16, 8], strides = [1, 1]} : vector<16x96xf32> to vector<16x8xf32>
    %cst_184 = arith.constant dense<0.000000e+00> : vector<16x16xf32>
    %331 = tpu.matmul %328, %329, %cst_184 {dimension_numbers = #tpu.dot_dimension_numbers<[1], [1], [0], [0], [0, 0, 1, 0], [], []>} : vector<16x8xf32>, vector<16x8xf32>, vector<16x16xf32> -> vector<16x16xf32>
    %cst_185 = arith.constant 0.353553385 : f32
    %332 = vector.broadcast %cst_185 : f32 to vector<16x16xf32>
    %333 = arith.mulf %331, %332 : vector<16x16xf32>
    %334 = arith.addf %333, %11 : vector<16x16xf32>
    %cst_186 = arith.constant dense<0xFF800000> : vector<16xf32>
    %335 = vector.multi_reduction <maximumf>, %334, %cst_186 [1] : vector<16x16xf32> to vector<16xf32>
    %336 = vector.shape_cast %335 : vector<16xf32> to vector<16x1xf32>
    %337 = vector.broadcast %336 : vector<16x1xf32> to vector<16x16xf32>
    %338 = arith.subf %334, %337 : vector<16x16xf32>
    %339 = math.exp %338 : vector<16x16xf32>
    %cst_187 = arith.constant dense<0.000000e+00> : vector<16xf32>
    %340 = vector.multi_reduction <add>, %339, %cst_187 [1] : vector<16x16xf32> to vector<16xf32>
    %341 = vector.shape_cast %340 : vector<16xf32> to vector<16x1xf32>
    %342 = tpu.reciprocal %341 {approx = true} : vector<16x1xf32> -> vector<16x1xf32>
    %343 = vector.broadcast %342 : vector<16x1xf32> to vector<16x16xf32>
    %344 = arith.mulf %339, %343 : vector<16x16xf32>
    %cst_188 = arith.constant dense<0.000000e+00> : vector<16x8xf32>
    %345 = tpu.matmul %344, %330, %cst_188 {dimension_numbers = #tpu.dot_dimension_numbers<[1], [0], [0], [1], [0, 0, 1, 1], [], []>} : vector<16x16xf32>, vector<16x8xf32>, vector<16x8xf32> -> vector<16x8xf32>
    %346 = vector.extract_strided_slice %327 {offsets = [0, 8], sizes = [16, 8], strides = [1, 1]} : vector<16x96xf32> to vector<16x8xf32>
    %347 = vector.extract_strided_slice %327 {offsets = [0, 40], sizes = [16, 8], strides = [1, 1]} : vector<16x96xf32> to vector<16x8xf32>
    %348 = vector.extract_strided_slice %327 {offsets = [0, 72], sizes = [16, 8], strides = [1, 1]} : vector<16x96xf32> to vector<16x8xf32>
    %cst_189 = arith.constant dense<0.000000e+00> : vector<16x16xf32>
    %349 = tpu.matmul %346, %347, %cst_189 {dimension_numbers = #tpu.dot_dimension_numbers<[1], [1], [0], [0], [0, 0, 1, 0], [], []>} : vector<16x8xf32>, vector<16x8xf32>, vector<16x16xf32> -> vector<16x16xf32>
    %cst_190 = arith.constant 0.353553385 : f32
    %350 = vector.broadcast %cst_190 : f32 to vector<16x16xf32>
    %351 = arith.mulf %349, %350 : vector<16x16xf32>
    %352 = arith.addf %351, %11 : vector<16x16xf32>
    %cst_191 = arith.constant dense<0xFF800000> : vector<16xf32>
    %353 = vector.multi_reduction <maximumf>, %352, %cst_191 [1] : vector<16x16xf32> to vector<16xf32>
    %354 = vector.shape_cast %353 : vector<16xf32> to vector<16x1xf32>
    %355 = vector.broadcast %354 : vector<16x1xf32> to vector<16x16xf32>
    %356 = arith.subf %352, %355 : vector<16x16xf32>
    %357 = math.exp %356 : vector<16x16xf32>
    %cst_192 = arith.constant dense<0.000000e+00> : vector<16xf32>
    %358 = vector.multi_reduction <add>, %357, %cst_192 [1] : vector<16x16xf32> to vector<16xf32>
    %359 = vector.shape_cast %358 : vector<16xf32> to vector<16x1xf32>
    %360 = tpu.reciprocal %359 {approx = true} : vector<16x1xf32> -> vector<16x1xf32>
    %361 = vector.broadcast %360 : vector<16x1xf32> to vector<16x16xf32>
    %362 = arith.mulf %357, %361 : vector<16x16xf32>
    %cst_193 = arith.constant dense<0.000000e+00> : vector<16x8xf32>
    %363 = tpu.matmul %362, %348, %cst_193 {dimension_numbers = #tpu.dot_dimension_numbers<[1], [0], [0], [1], [0, 0, 1, 1], [], []>} : vector<16x16xf32>, vector<16x8xf32>, vector<16x8xf32> -> vector<16x8xf32>
    %364 = vector.extract_strided_slice %327 {offsets = [0, 16], sizes = [16, 8], strides = [1, 1]} : vector<16x96xf32> to vector<16x8xf32>
    %365 = vector.extract_strided_slice %327 {offsets = [0, 48], sizes = [16, 8], strides = [1, 1]} : vector<16x96xf32> to vector<16x8xf32>
    %366 = vector.extract_strided_slice %327 {offsets = [0, 80], sizes = [16, 8], strides = [1, 1]} : vector<16x96xf32> to vector<16x8xf32>
    %cst_194 = arith.constant dense<0.000000e+00> : vector<16x16xf32>
    %367 = tpu.matmul %364, %365, %cst_194 {dimension_numbers = #tpu.dot_dimension_numbers<[1], [1], [0], [0], [0, 0, 1, 0], [], []>} : vector<16x8xf32>, vector<16x8xf32>, vector<16x16xf32> -> vector<16x16xf32>
    %cst_195 = arith.constant 0.353553385 : f32
    %368 = vector.broadcast %cst_195 : f32 to vector<16x16xf32>
    %369 = arith.mulf %367, %368 : vector<16x16xf32>
    %370 = arith.addf %369, %11 : vector<16x16xf32>
    %cst_196 = arith.constant dense<0xFF800000> : vector<16xf32>
    %371 = vector.multi_reduction <maximumf>, %370, %cst_196 [1] : vector<16x16xf32> to vector<16xf32>
    %372 = vector.shape_cast %371 : vector<16xf32> to vector<16x1xf32>
    %373 = vector.broadcast %372 : vector<16x1xf32> to vector<16x16xf32>
    %374 = arith.subf %370, %373 : vector<16x16xf32>
    %375 = math.exp %374 : vector<16x16xf32>
    %cst_197 = arith.constant dense<0.000000e+00> : vector<16xf32>
    %376 = vector.multi_reduction <add>, %375, %cst_197 [1] : vector<16x16xf32> to vector<16xf32>
    %377 = vector.shape_cast %376 : vector<16xf32> to vector<16x1xf32>
    %378 = tpu.reciprocal %377 {approx = true} : vector<16x1xf32> -> vector<16x1xf32>
    %379 = vector.broadcast %378 : vector<16x1xf32> to vector<16x16xf32>
    %380 = arith.mulf %375, %379 : vector<16x16xf32>
    %cst_198 = arith.constant dense<0.000000e+00> : vector<16x8xf32>
    %381 = tpu.matmul %380, %366, %cst_198 {dimension_numbers = #tpu.dot_dimension_numbers<[1], [0], [0], [1], [0, 0, 1, 1], [], []>} : vector<16x16xf32>, vector<16x8xf32>, vector<16x8xf32> -> vector<16x8xf32>
    %382 = vector.extract_strided_slice %327 {offsets = [0, 24], sizes = [16, 8], strides = [1, 1]} : vector<16x96xf32> to vector<16x8xf32>
    %383 = vector.extract_strided_slice %327 {offsets = [0, 56], sizes = [16, 8], strides = [1, 1]} : vector<16x96xf32> to vector<16x8xf32>
    %384 = vector.extract_strided_slice %327 {offsets = [0, 88], sizes = [16, 8], strides = [1, 1]} : vector<16x96xf32> to vector<16x8xf32>
    %cst_199 = arith.constant dense<0.000000e+00> : vector<16x16xf32>
    %385 = tpu.matmul %382, %383, %cst_199 {dimension_numbers = #tpu.dot_dimension_numbers<[1], [1], [0], [0], [0, 0, 1, 0], [], []>} : vector<16x8xf32>, vector<16x8xf32>, vector<16x16xf32> -> vector<16x16xf32>
    %cst_200 = arith.constant 0.353553385 : f32
    %386 = vector.broadcast %cst_200 : f32 to vector<16x16xf32>
    %387 = arith.mulf %385, %386 : vector<16x16xf32>
    %388 = arith.addf %387, %11 : vector<16x16xf32>
    %cst_201 = arith.constant dense<0xFF800000> : vector<16xf32>
    %389 = vector.multi_reduction <maximumf>, %388, %cst_201 [1] : vector<16x16xf32> to vector<16xf32>
    %390 = vector.shape_cast %389 : vector<16xf32> to vector<16x1xf32>
    %391 = vector.broadcast %390 : vector<16x1xf32> to vector<16x16xf32>
    %392 = arith.subf %388, %391 : vector<16x16xf32>
    %393 = math.exp %392 : vector<16x16xf32>
    %cst_202 = arith.constant dense<0.000000e+00> : vector<16xf32>
    %394 = vector.multi_reduction <add>, %393, %cst_202 [1] : vector<16x16xf32> to vector<16xf32>
    %395 = vector.shape_cast %394 : vector<16xf32> to vector<16x1xf32>
    %396 = tpu.reciprocal %395 {approx = true} : vector<16x1xf32> -> vector<16x1xf32>
    %397 = vector.broadcast %396 : vector<16x1xf32> to vector<16x16xf32>
    %398 = arith.mulf %393, %397 : vector<16x16xf32>
    %cst_203 = arith.constant dense<0.000000e+00> : vector<16x8xf32>
    %399 = tpu.matmul %398, %384, %cst_203 {dimension_numbers = #tpu.dot_dimension_numbers<[1], [0], [0], [1], [0, 0, 1, 1], [], []>} : vector<16x16xf32>, vector<16x8xf32>, vector<16x8xf32> -> vector<16x8xf32>
    %400 = tpu.concatenate %345, %363, %381, %399 in 1 : vector<16x8xf32>, vector<16x8xf32>, vector<16x8xf32>, vector<16x8xf32> -> vector<16x32xf32>
    %cst_204 = arith.constant dense<0.000000e+00> : vector<16x32xf32>
    %401 = tpu.matmul %400, %294, %cst_204 {dimension_numbers = #tpu.dot_dimension_numbers<[1], [0], [0], [1], [0, 0, 1, 1], [], []>} : vector<16x32xf32>, vector<32x32xf32>, vector<16x32xf32> -> vector<16x32xf32>
    %402 = vector.broadcast %306 : vector<1x32xf32> to vector<16x32xf32>
    %403 = arith.addf %401, %402 : vector<16x32xf32>
    %404 = arith.addf %403, %288 : vector<16x32xf32>
    %cst_205 = arith.constant dense<0.000000e+00> : vector<16xf32>
    %405 = vector.multi_reduction <add>, %404, %cst_205 [1] : vector<16x32xf32> to vector<16xf32>
    %406 = vector.shape_cast %405 : vector<16xf32> to vector<16x1xf32>
    %cst_206 = arith.constant 3.200000e+01 : f32
    %407 = vector.broadcast %cst_206 : f32 to vector<16x1xf32>
    %408 = arith.divf %406, %407 : vector<16x1xf32>
    %409 = vector.broadcast %408 : vector<16x1xf32> to vector<16x32xf32>
    %410 = arith.subf %404, %409 : vector<16x32xf32>
    %411 = arith.mulf %410, %410 : vector<16x32xf32>
    %cst_207 = arith.constant dense<0.000000e+00> : vector<16xf32>
    %412 = vector.multi_reduction <add>, %411, %cst_207 [1] : vector<16x32xf32> to vector<16xf32>
    %413 = vector.shape_cast %412 : vector<16xf32> to vector<16x1xf32>
    %cst_208 = arith.constant 3.200000e+01 : f32
    %414 = vector.broadcast %cst_208 : f32 to vector<16x1xf32>
    %415 = arith.divf %413, %414 : vector<16x1xf32>
    %416 = vector.broadcast %408 : vector<16x1xf32> to vector<16x32xf32>
    %417 = arith.subf %404, %416 : vector<16x32xf32>
    %cst_209 = arith.constant 9.99999974E-6 : f32
    %418 = vector.broadcast %cst_209 : f32 to vector<16x1xf32>
    %419 = arith.addf %415, %418 : vector<16x1xf32>
    %420 = math.rsqrt %419 : vector<16x1xf32>
    %421 = vector.broadcast %420 : vector<16x1xf32> to vector<16x32xf32>
    %422 = arith.mulf %417, %421 : vector<16x32xf32>
    %423 = vector.broadcast %314 : vector<1x32xf32> to vector<16x32xf32>
    %424 = arith.mulf %422, %423 : vector<16x32xf32>
    %425 = vector.broadcast %316 : vector<1x32xf32> to vector<16x32xf32>
    %426 = arith.addf %424, %425 : vector<16x32xf32>
    %cst_210 = arith.constant dense<0.000000e+00> : vector<16x32xf32>
    %427 = tpu.matmul %426, %292, %cst_210 {dimension_numbers = #tpu.dot_dimension_numbers<[1], [0], [0], [1], [0, 0, 1, 1], [], []>} : vector<16x32xf32>, vector<32x32xf32>, vector<16x32xf32> -> vector<16x32xf32>
    %428 = vector.broadcast %304 : vector<1x32xf32> to vector<16x32xf32>
    %429 = arith.addf %427, %428 : vector<16x32xf32>
    %430 = vector.extract_strided_slice %429 {offsets = [0, 0], sizes = [16, 8], strides = [1, 1]} : vector<16x32xf32> to vector<16x8xf32>
    %431 = vector.extract_strided_slice %17 {offsets = [0, 64], sizes = [16, 8], strides = [1, 1]} : vector<16x256xf32> to vector<16x8xf32>
    %432 = vector.extract_strided_slice %17 {offsets = [0, 96], sizes = [16, 8], strides = [1, 1]} : vector<16x256xf32> to vector<16x8xf32>
    %cst_211 = arith.constant dense<0.000000e+00> : vector<16x16xf32>
    %433 = tpu.matmul %430, %431, %cst_211 {dimension_numbers = #tpu.dot_dimension_numbers<[1], [1], [0], [0], [0, 0, 1, 0], [], []>} : vector<16x8xf32>, vector<16x8xf32>, vector<16x16xf32> -> vector<16x16xf32>
    %cst_212 = arith.constant 0.353553385 : f32
    %434 = vector.broadcast %cst_212 : f32 to vector<16x16xf32>
    %435 = arith.mulf %433, %434 : vector<16x16xf32>
    %436 = arith.addf %435, %12 : vector<16x16xf32>
    %cst_213 = arith.constant dense<0xFF800000> : vector<16xf32>
    %437 = vector.multi_reduction <maximumf>, %436, %cst_213 [1] : vector<16x16xf32> to vector<16xf32>
    %438 = vector.shape_cast %437 : vector<16xf32> to vector<16x1xf32>
    %439 = vector.broadcast %438 : vector<16x1xf32> to vector<16x16xf32>
    %440 = arith.subf %436, %439 : vector<16x16xf32>
    %441 = math.exp %440 : vector<16x16xf32>
    %cst_214 = arith.constant dense<0.000000e+00> : vector<16xf32>
    %442 = vector.multi_reduction <add>, %441, %cst_214 [1] : vector<16x16xf32> to vector<16xf32>
    %443 = vector.shape_cast %442 : vector<16xf32> to vector<16x1xf32>
    %444 = tpu.reciprocal %443 {approx = true} : vector<16x1xf32> -> vector<16x1xf32>
    %445 = vector.broadcast %444 : vector<16x1xf32> to vector<16x16xf32>
    %446 = arith.mulf %441, %445 : vector<16x16xf32>
    %cst_215 = arith.constant dense<0.000000e+00> : vector<16x8xf32>
    %447 = tpu.matmul %446, %432, %cst_215 {dimension_numbers = #tpu.dot_dimension_numbers<[1], [0], [0], [1], [0, 0, 1, 1], [], []>} : vector<16x16xf32>, vector<16x8xf32>, vector<16x8xf32> -> vector<16x8xf32>
    %448 = vector.extract_strided_slice %429 {offsets = [0, 8], sizes = [16, 8], strides = [1, 1]} : vector<16x32xf32> to vector<16x8xf32>
    %449 = vector.extract_strided_slice %17 {offsets = [0, 72], sizes = [16, 8], strides = [1, 1]} : vector<16x256xf32> to vector<16x8xf32>
    %450 = vector.extract_strided_slice %17 {offsets = [0, 104], sizes = [16, 8], strides = [1, 1]} : vector<16x256xf32> to vector<16x8xf32>
    %cst_216 = arith.constant dense<0.000000e+00> : vector<16x16xf32>
    %451 = tpu.matmul %448, %449, %cst_216 {dimension_numbers = #tpu.dot_dimension_numbers<[1], [1], [0], [0], [0, 0, 1, 0], [], []>} : vector<16x8xf32>, vector<16x8xf32>, vector<16x16xf32> -> vector<16x16xf32>
    %cst_217 = arith.constant 0.353553385 : f32
    %452 = vector.broadcast %cst_217 : f32 to vector<16x16xf32>
    %453 = arith.mulf %451, %452 : vector<16x16xf32>
    %454 = arith.addf %453, %12 : vector<16x16xf32>
    %cst_218 = arith.constant dense<0xFF800000> : vector<16xf32>
    %455 = vector.multi_reduction <maximumf>, %454, %cst_218 [1] : vector<16x16xf32> to vector<16xf32>
    %456 = vector.shape_cast %455 : vector<16xf32> to vector<16x1xf32>
    %457 = vector.broadcast %456 : vector<16x1xf32> to vector<16x16xf32>
    %458 = arith.subf %454, %457 : vector<16x16xf32>
    %459 = math.exp %458 : vector<16x16xf32>
    %cst_219 = arith.constant dense<0.000000e+00> : vector<16xf32>
    %460 = vector.multi_reduction <add>, %459, %cst_219 [1] : vector<16x16xf32> to vector<16xf32>
    %461 = vector.shape_cast %460 : vector<16xf32> to vector<16x1xf32>
    %462 = tpu.reciprocal %461 {approx = true} : vector<16x1xf32> -> vector<16x1xf32>
    %463 = vector.broadcast %462 : vector<16x1xf32> to vector<16x16xf32>
    %464 = arith.mulf %459, %463 : vector<16x16xf32>
    %cst_220 = arith.constant dense<0.000000e+00> : vector<16x8xf32>
    %465 = tpu.matmul %464, %450, %cst_220 {dimension_numbers = #tpu.dot_dimension_numbers<[1], [0], [0], [1], [0, 0, 1, 1], [], []>} : vector<16x16xf32>, vector<16x8xf32>, vector<16x8xf32> -> vector<16x8xf32>
    %466 = vector.extract_strided_slice %429 {offsets = [0, 16], sizes = [16, 8], strides = [1, 1]} : vector<16x32xf32> to vector<16x8xf32>
    %467 = vector.extract_strided_slice %17 {offsets = [0, 80], sizes = [16, 8], strides = [1, 1]} : vector<16x256xf32> to vector<16x8xf32>
    %468 = vector.extract_strided_slice %17 {offsets = [0, 112], sizes = [16, 8], strides = [1, 1]} : vector<16x256xf32> to vector<16x8xf32>
    %cst_221 = arith.constant dense<0.000000e+00> : vector<16x16xf32>
    %469 = tpu.matmul %466, %467, %cst_221 {dimension_numbers = #tpu.dot_dimension_numbers<[1], [1], [0], [0], [0, 0, 1, 0], [], []>} : vector<16x8xf32>, vector<16x8xf32>, vector<16x16xf32> -> vector<16x16xf32>
    %cst_222 = arith.constant 0.353553385 : f32
    %470 = vector.broadcast %cst_222 : f32 to vector<16x16xf32>
    %471 = arith.mulf %469, %470 : vector<16x16xf32>
    %472 = arith.addf %471, %12 : vector<16x16xf32>
    %cst_223 = arith.constant dense<0xFF800000> : vector<16xf32>
    %473 = vector.multi_reduction <maximumf>, %472, %cst_223 [1] : vector<16x16xf32> to vector<16xf32>
    %474 = vector.shape_cast %473 : vector<16xf32> to vector<16x1xf32>
    %475 = vector.broadcast %474 : vector<16x1xf32> to vector<16x16xf32>
    %476 = arith.subf %472, %475 : vector<16x16xf32>
    %477 = math.exp %476 : vector<16x16xf32>
    %cst_224 = arith.constant dense<0.000000e+00> : vector<16xf32>
    %478 = vector.multi_reduction <add>, %477, %cst_224 [1] : vector<16x16xf32> to vector<16xf32>
    %479 = vector.shape_cast %478 : vector<16xf32> to vector<16x1xf32>
    %480 = tpu.reciprocal %479 {approx = true} : vector<16x1xf32> -> vector<16x1xf32>
    %481 = vector.broadcast %480 : vector<16x1xf32> to vector<16x16xf32>
    %482 = arith.mulf %477, %481 : vector<16x16xf32>
    %cst_225 = arith.constant dense<0.000000e+00> : vector<16x8xf32>
    %483 = tpu.matmul %482, %468, %cst_225 {dimension_numbers = #tpu.dot_dimension_numbers<[1], [0], [0], [1], [0, 0, 1, 1], [], []>} : vector<16x16xf32>, vector<16x8xf32>, vector<16x8xf32> -> vector<16x8xf32>
    %484 = vector.extract_strided_slice %429 {offsets = [0, 24], sizes = [16, 8], strides = [1, 1]} : vector<16x32xf32> to vector<16x8xf32>
    %485 = vector.extract_strided_slice %17 {offsets = [0, 88], sizes = [16, 8], strides = [1, 1]} : vector<16x256xf32> to vector<16x8xf32>
    %486 = vector.extract_strided_slice %17 {offsets = [0, 120], sizes = [16, 8], strides = [1, 1]} : vector<16x256xf32> to vector<16x8xf32>
    %cst_226 = arith.constant dense<0.000000e+00> : vector<16x16xf32>
    %487 = tpu.matmul %484, %485, %cst_226 {dimension_numbers = #tpu.dot_dimension_numbers<[1], [1], [0], [0], [0, 0, 1, 0], [], []>} : vector<16x8xf32>, vector<16x8xf32>, vector<16x16xf32> -> vector<16x16xf32>
    %cst_227 = arith.constant 0.353553385 : f32
    %488 = vector.broadcast %cst_227 : f32 to vector<16x16xf32>
    %489 = arith.mulf %487, %488 : vector<16x16xf32>
    %490 = arith.addf %489, %12 : vector<16x16xf32>
    %cst_228 = arith.constant dense<0xFF800000> : vector<16xf32>
    %491 = vector.multi_reduction <maximumf>, %490, %cst_228 [1] : vector<16x16xf32> to vector<16xf32>
    %492 = vector.shape_cast %491 : vector<16xf32> to vector<16x1xf32>
    %493 = vector.broadcast %492 : vector<16x1xf32> to vector<16x16xf32>
    %494 = arith.subf %490, %493 : vector<16x16xf32>
    %495 = math.exp %494 : vector<16x16xf32>
    %cst_229 = arith.constant dense<0.000000e+00> : vector<16xf32>
    %496 = vector.multi_reduction <add>, %495, %cst_229 [1] : vector<16x16xf32> to vector<16xf32>
    %497 = vector.shape_cast %496 : vector<16xf32> to vector<16x1xf32>
    %498 = tpu.reciprocal %497 {approx = true} : vector<16x1xf32> -> vector<16x1xf32>
    %499 = vector.broadcast %498 : vector<16x1xf32> to vector<16x16xf32>
    %500 = arith.mulf %495, %499 : vector<16x16xf32>
    %cst_230 = arith.constant dense<0.000000e+00> : vector<16x8xf32>
    %501 = tpu.matmul %500, %486, %cst_230 {dimension_numbers = #tpu.dot_dimension_numbers<[1], [0], [0], [1], [0, 0, 1, 1], [], []>} : vector<16x16xf32>, vector<16x8xf32>, vector<16x8xf32> -> vector<16x8xf32>
    %502 = tpu.concatenate %447, %465, %483, %501 in 1 : vector<16x8xf32>, vector<16x8xf32>, vector<16x8xf32>, vector<16x8xf32> -> vector<16x32xf32>
    %cst_231 = arith.constant dense<0.000000e+00> : vector<16x32xf32>
    %503 = tpu.matmul %502, %296, %cst_231 {dimension_numbers = #tpu.dot_dimension_numbers<[1], [0], [0], [1], [0, 0, 1, 1], [], []>} : vector<16x32xf32>, vector<32x32xf32>, vector<16x32xf32> -> vector<16x32xf32>
    %504 = vector.broadcast %308 : vector<1x32xf32> to vector<16x32xf32>
    %505 = arith.addf %503, %504 : vector<16x32xf32>
    %506 = arith.addf %505, %426 : vector<16x32xf32>
    %cst_232 = arith.constant dense<0.000000e+00> : vector<16xf32>
    %507 = vector.multi_reduction <add>, %506, %cst_232 [1] : vector<16x32xf32> to vector<16xf32>
    %508 = vector.shape_cast %507 : vector<16xf32> to vector<16x1xf32>
    %cst_233 = arith.constant 3.200000e+01 : f32
    %509 = vector.broadcast %cst_233 : f32 to vector<16x1xf32>
    %510 = arith.divf %508, %509 : vector<16x1xf32>
    %511 = vector.broadcast %510 : vector<16x1xf32> to vector<16x32xf32>
    %512 = arith.subf %506, %511 : vector<16x32xf32>
    %513 = arith.mulf %512, %512 : vector<16x32xf32>
    %cst_234 = arith.constant dense<0.000000e+00> : vector<16xf32>
    %514 = vector.multi_reduction <add>, %513, %cst_234 [1] : vector<16x32xf32> to vector<16xf32>
    %515 = vector.shape_cast %514 : vector<16xf32> to vector<16x1xf32>
    %cst_235 = arith.constant 3.200000e+01 : f32
    %516 = vector.broadcast %cst_235 : f32 to vector<16x1xf32>
    %517 = arith.divf %515, %516 : vector<16x1xf32>
    %518 = vector.broadcast %510 : vector<16x1xf32> to vector<16x32xf32>
    %519 = arith.subf %506, %518 : vector<16x32xf32>
    %cst_236 = arith.constant 9.99999974E-6 : f32
    %520 = vector.broadcast %cst_236 : f32 to vector<16x1xf32>
    %521 = arith.addf %517, %520 : vector<16x1xf32>
    %522 = math.rsqrt %521 : vector<16x1xf32>
    %523 = vector.broadcast %522 : vector<16x1xf32> to vector<16x32xf32>
    %524 = arith.mulf %519, %523 : vector<16x32xf32>
    %525 = vector.broadcast %318 : vector<1x32xf32> to vector<16x32xf32>
    %526 = arith.mulf %524, %525 : vector<16x32xf32>
    %527 = vector.broadcast %320 : vector<1x32xf32> to vector<16x32xf32>
    %528 = arith.addf %526, %527 : vector<16x32xf32>
    %cst_237 = arith.constant dense<0.000000e+00> : vector<16x32xf32>
    %529 = tpu.matmul %528, %298, %cst_237 {dimension_numbers = #tpu.dot_dimension_numbers<[1], [0], [0], [1], [0, 0, 1, 1], [], []>} : vector<16x32xf32>, vector<32x32xf32>, vector<16x32xf32> -> vector<16x32xf32>
    %530 = vector.broadcast %310 : vector<1x32xf32> to vector<16x32xf32>
    %531 = arith.addf %529, %530 : vector<16x32xf32>
    %cst_238 = arith.constant 0.000000e+00 : f32
    %532 = vector.broadcast %cst_238 : f32 to vector<16x32xf32>
    %533 = arith.maximumf %531, %532 : vector<16x32xf32>
    %cst_239 = arith.constant dense<0.000000e+00> : vector<16x32xf32>
    %534 = tpu.matmul %533, %300, %cst_239 {dimension_numbers = #tpu.dot_dimension_numbers<[1], [0], [0], [1], [0, 0, 1, 1], [], []>} : vector<16x32xf32>, vector<32x32xf32>, vector<16x32xf32> -> vector<16x32xf32>
    %535 = vector.broadcast %312 : vector<1x32xf32> to vector<16x32xf32>
    %536 = arith.addf %534, %535 : vector<16x32xf32>
    %537 = arith.addf %536, %528 : vector<16x32xf32>
    %cst_240 = arith.constant dense<0.000000e+00> : vector<16xf32>
    %538 = vector.multi_reduction <add>, %537, %cst_240 [1] : vector<16x32xf32> to vector<16xf32>
    %539 = vector.shape_cast %538 : vector<16xf32> to vector<16x1xf32>
    %cst_241 = arith.constant 3.200000e+01 : f32
    %540 = vector.broadcast %cst_241 : f32 to vector<16x1xf32>
    %541 = arith.divf %539, %540 : vector<16x1xf32>
    %542 = vector.broadcast %541 : vector<16x1xf32> to vector<16x32xf32>
    %543 = arith.subf %537, %542 : vector<16x32xf32>
    %544 = arith.mulf %543, %543 : vector<16x32xf32>
    %cst_242 = arith.constant dense<0.000000e+00> : vector<16xf32>
    %545 = vector.multi_reduction <add>, %544, %cst_242 [1] : vector<16x32xf32> to vector<16xf32>
    %546 = vector.shape_cast %545 : vector<16xf32> to vector<16x1xf32>
    %cst_243 = arith.constant 3.200000e+01 : f32
    %547 = vector.broadcast %cst_243 : f32 to vector<16x1xf32>
    %548 = arith.divf %546, %547 : vector<16x1xf32>
    %549 = vector.broadcast %541 : vector<16x1xf32> to vector<16x32xf32>
    %550 = arith.subf %537, %549 : vector<16x32xf32>
    %cst_244 = arith.constant 9.99999974E-6 : f32
    %551 = vector.broadcast %cst_244 : f32 to vector<16x1xf32>
    %552 = arith.addf %548, %551 : vector<16x1xf32>
    %553 = math.rsqrt %552 : vector<16x1xf32>
    %554 = vector.broadcast %553 : vector<16x1xf32> to vector<16x32xf32>
    %555 = arith.mulf %550, %554 : vector<16x32xf32>
    %556 = vector.broadcast %322 : vector<1x32xf32> to vector<16x32xf32>
    %557 = arith.mulf %555, %556 : vector<16x32xf32>
    %558 = vector.broadcast %324 : vector<1x32xf32> to vector<16x32xf32>
    %559 = arith.addf %557, %558 : vector<16x32xf32>
    %c2_245 = arith.constant 2 : index
    %c0_246 = arith.constant 0 : index
    %c0_247 = arith.constant 0 : index
    %560 = vector.load %arg6[%c2_245, %c0_246, %c0_247] : memref<4x32x96xf32, #tpu.memory_space<vmem>>, vector<1x32x96xf32>
    %561 = vector.shape_cast %560 : vector<1x32x96xf32> to vector<32x96xf32>
    %c2_248 = arith.constant 2 : index
    %c0_249 = arith.constant 0 : index
    %c0_250 = arith.constant 0 : index
    %562 = vector.load %arg7[%c2_248, %c0_249, %c0_250] : memref<4x32x32xf32, #tpu.memory_space<vmem>>, vector<1x32x32xf32>
    %563 = vector.shape_cast %562 : vector<1x32x32xf32> to vector<32x32xf32>
    %c2_251 = arith.constant 2 : index
    %c0_252 = arith.constant 0 : index
    %c0_253 = arith.constant 0 : index
    %c0_254 = arith.constant 0 : index
    %564 = vector.load %arg10[%c2_251, %c0_252, %c0_253, %c0_254] : memref<4x4x32x32xf32, #tpu.memory_space<vmem>>, vector<1x1x32x32xf32>
    %565 = vector.shape_cast %564 : vector<1x1x32x32xf32> to vector<32x32xf32>
    %c2_255 = arith.constant 2 : index
    %c1_256 = arith.constant 1 : index
    %c0_257 = arith.constant 0 : index
    %c0_258 = arith.constant 0 : index
    %566 = vector.load %arg10[%c2_255, %c1_256, %c0_257, %c0_258] : memref<4x4x32x32xf32, #tpu.memory_space<vmem>>, vector<1x1x32x32xf32>
    %567 = vector.shape_cast %566 : vector<1x1x32x32xf32> to vector<32x32xf32>
    %c2_259 = arith.constant 2 : index
    %c2_260 = arith.constant 2 : index
    %c0_261 = arith.constant 0 : index
    %c0_262 = arith.constant 0 : index
    %568 = vector.load %arg10[%c2_259, %c2_260, %c0_261, %c0_262] : memref<4x4x32x32xf32, #tpu.memory_space<vmem>>, vector<1x1x32x32xf32>
    %569 = vector.shape_cast %568 : vector<1x1x32x32xf32> to vector<32x32xf32>
    %c2_263 = arith.constant 2 : index
    %c3_264 = arith.constant 3 : index
    %c0_265 = arith.constant 0 : index
    %c0_266 = arith.constant 0 : index
    %570 = vector.load %arg10[%c2_263, %c3_264, %c0_265, %c0_266] : memref<4x4x32x32xf32, #tpu.memory_space<vmem>>, vector<1x1x32x32xf32>
    %571 = vector.shape_cast %570 : vector<1x1x32x32xf32> to vector<32x32xf32>
    %c2_267 = arith.constant 2 : index
    %c0_268 = arith.constant 0 : index
    %c0_269 = arith.constant 0 : index
    %572 = vector.load %arg11[%c2_267, %c0_268, %c0_269] : memref<4x12x96xf32, #tpu.memory_space<vmem>>, vector<1x1x96xf32>
    %573 = vector.shape_cast %572 : vector<1x1x96xf32> to vector<1x96xf32>
    %c2_270 = arith.constant 2 : index
    %c1_271 = arith.constant 1 : index
    %c0_272 = arith.constant 0 : index
    %574 = vector.load %arg11[%c2_270, %c1_271, %c0_272] : memref<4x12x96xf32, #tpu.memory_space<vmem>>, vector<1x1x32xf32>
    %575 = vector.shape_cast %574 : vector<1x1x32xf32> to vector<1x32xf32>
    %c2_273 = arith.constant 2 : index
    %c2_274 = arith.constant 2 : index
    %c0_275 = arith.constant 0 : index
    %576 = vector.load %arg11[%c2_273, %c2_274, %c0_275] : memref<4x12x96xf32, #tpu.memory_space<vmem>>, vector<1x1x32xf32>
    %577 = vector.shape_cast %576 : vector<1x1x32xf32> to vector<1x32xf32>
    %c2_276 = arith.constant 2 : index
    %c3_277 = arith.constant 3 : index
    %c0_278 = arith.constant 0 : index
    %578 = vector.load %arg11[%c2_276, %c3_277, %c0_278] : memref<4x12x96xf32, #tpu.memory_space<vmem>>, vector<1x1x32xf32>
    %579 = vector.shape_cast %578 : vector<1x1x32xf32> to vector<1x32xf32>
    %c2_279 = arith.constant 2 : index
    %c4_280 = arith.constant 4 : index
    %c0_281 = arith.constant 0 : index
    %580 = vector.load %arg11[%c2_279, %c4_280, %c0_281] : memref<4x12x96xf32, #tpu.memory_space<vmem>>, vector<1x1x32xf32>
    %581 = vector.shape_cast %580 : vector<1x1x32xf32> to vector<1x32xf32>
    %c2_282 = arith.constant 2 : index
    %c5_283 = arith.constant 5 : index
    %c0_284 = arith.constant 0 : index
    %582 = vector.load %arg11[%c2_282, %c5_283, %c0_284] : memref<4x12x96xf32, #tpu.memory_space<vmem>>, vector<1x1x32xf32>
    %583 = vector.shape_cast %582 : vector<1x1x32xf32> to vector<1x32xf32>
    %c2_285 = arith.constant 2 : index
    %c6_286 = arith.constant 6 : index
    %c0_287 = arith.constant 0 : index
    %584 = vector.load %arg11[%c2_285, %c6_286, %c0_287] : memref<4x12x96xf32, #tpu.memory_space<vmem>>, vector<1x1x32xf32>
    %585 = vector.shape_cast %584 : vector<1x1x32xf32> to vector<1x32xf32>
    %c2_288 = arith.constant 2 : index
    %c7_289 = arith.constant 7 : index
    %c0_290 = arith.constant 0 : index
    %586 = vector.load %arg11[%c2_288, %c7_289, %c0_290] : memref<4x12x96xf32, #tpu.memory_space<vmem>>, vector<1x1x32xf32>
    %587 = vector.shape_cast %586 : vector<1x1x32xf32> to vector<1x32xf32>
    %c2_291 = arith.constant 2 : index
    %c8_292 = arith.constant 8 : index
    %c0_293 = arith.constant 0 : index
    %588 = vector.load %arg11[%c2_291, %c8_292, %c0_293] : memref<4x12x96xf32, #tpu.memory_space<vmem>>, vector<1x1x32xf32>
    %589 = vector.shape_cast %588 : vector<1x1x32xf32> to vector<1x32xf32>
    %c2_294 = arith.constant 2 : index
    %c9_295 = arith.constant 9 : index
    %c0_296 = arith.constant 0 : index
    %590 = vector.load %arg11[%c2_294, %c9_295, %c0_296] : memref<4x12x96xf32, #tpu.memory_space<vmem>>, vector<1x1x32xf32>
    %591 = vector.shape_cast %590 : vector<1x1x32xf32> to vector<1x32xf32>
    %c2_297 = arith.constant 2 : index
    %c10_298 = arith.constant 10 : index
    %c0_299 = arith.constant 0 : index
    %592 = vector.load %arg11[%c2_297, %c10_298, %c0_299] : memref<4x12x96xf32, #tpu.memory_space<vmem>>, vector<1x1x32xf32>
    %593 = vector.shape_cast %592 : vector<1x1x32xf32> to vector<1x32xf32>
    %c2_300 = arith.constant 2 : index
    %c11_301 = arith.constant 11 : index
    %c0_302 = arith.constant 0 : index
    %594 = vector.load %arg11[%c2_300, %c11_301, %c0_302] : memref<4x12x96xf32, #tpu.memory_space<vmem>>, vector<1x1x32xf32>
    %595 = vector.shape_cast %594 : vector<1x1x32xf32> to vector<1x32xf32>
    %cst_303 = arith.constant dense<0.000000e+00> : vector<16x96xf32>
    %596 = tpu.matmul %559, %561, %cst_303 {dimension_numbers = #tpu.dot_dimension_numbers<[1], [0], [0], [1], [0, 0, 1, 1], [], []>} : vector<16x32xf32>, vector<32x96xf32>, vector<16x96xf32> -> vector<16x96xf32>
    %597 = vector.broadcast %573 : vector<1x96xf32> to vector<16x96xf32>
    %598 = arith.addf %596, %597 : vector<16x96xf32>
    %599 = vector.extract_strided_slice %598 {offsets = [0, 0], sizes = [16, 8], strides = [1, 1]} : vector<16x96xf32> to vector<16x8xf32>
    %600 = vector.extract_strided_slice %598 {offsets = [0, 32], sizes = [16, 8], strides = [1, 1]} : vector<16x96xf32> to vector<16x8xf32>
    %601 = vector.extract_strided_slice %598 {offsets = [0, 64], sizes = [16, 8], strides = [1, 1]} : vector<16x96xf32> to vector<16x8xf32>
    %cst_304 = arith.constant dense<0.000000e+00> : vector<16x16xf32>
    %602 = tpu.matmul %599, %600, %cst_304 {dimension_numbers = #tpu.dot_dimension_numbers<[1], [1], [0], [0], [0, 0, 1, 0], [], []>} : vector<16x8xf32>, vector<16x8xf32>, vector<16x16xf32> -> vector<16x16xf32>
    %cst_305 = arith.constant 0.353553385 : f32
    %603 = vector.broadcast %cst_305 : f32 to vector<16x16xf32>
    %604 = arith.mulf %602, %603 : vector<16x16xf32>
    %605 = arith.addf %604, %11 : vector<16x16xf32>
    %cst_306 = arith.constant dense<0xFF800000> : vector<16xf32>
    %606 = vector.multi_reduction <maximumf>, %605, %cst_306 [1] : vector<16x16xf32> to vector<16xf32>
    %607 = vector.shape_cast %606 : vector<16xf32> to vector<16x1xf32>
    %608 = vector.broadcast %607 : vector<16x1xf32> to vector<16x16xf32>
    %609 = arith.subf %605, %608 : vector<16x16xf32>
    %610 = math.exp %609 : vector<16x16xf32>
    %cst_307 = arith.constant dense<0.000000e+00> : vector<16xf32>
    %611 = vector.multi_reduction <add>, %610, %cst_307 [1] : vector<16x16xf32> to vector<16xf32>
    %612 = vector.shape_cast %611 : vector<16xf32> to vector<16x1xf32>
    %613 = tpu.reciprocal %612 {approx = true} : vector<16x1xf32> -> vector<16x1xf32>
    %614 = vector.broadcast %613 : vector<16x1xf32> to vector<16x16xf32>
    %615 = arith.mulf %610, %614 : vector<16x16xf32>
    %cst_308 = arith.constant dense<0.000000e+00> : vector<16x8xf32>
    %616 = tpu.matmul %615, %601, %cst_308 {dimension_numbers = #tpu.dot_dimension_numbers<[1], [0], [0], [1], [0, 0, 1, 1], [], []>} : vector<16x16xf32>, vector<16x8xf32>, vector<16x8xf32> -> vector<16x8xf32>
    %617 = vector.extract_strided_slice %598 {offsets = [0, 8], sizes = [16, 8], strides = [1, 1]} : vector<16x96xf32> to vector<16x8xf32>
    %618 = vector.extract_strided_slice %598 {offsets = [0, 40], sizes = [16, 8], strides = [1, 1]} : vector<16x96xf32> to vector<16x8xf32>
    %619 = vector.extract_strided_slice %598 {offsets = [0, 72], sizes = [16, 8], strides = [1, 1]} : vector<16x96xf32> to vector<16x8xf32>
    %cst_309 = arith.constant dense<0.000000e+00> : vector<16x16xf32>
    %620 = tpu.matmul %617, %618, %cst_309 {dimension_numbers = #tpu.dot_dimension_numbers<[1], [1], [0], [0], [0, 0, 1, 0], [], []>} : vector<16x8xf32>, vector<16x8xf32>, vector<16x16xf32> -> vector<16x16xf32>
    %cst_310 = arith.constant 0.353553385 : f32
    %621 = vector.broadcast %cst_310 : f32 to vector<16x16xf32>
    %622 = arith.mulf %620, %621 : vector<16x16xf32>
    %623 = arith.addf %622, %11 : vector<16x16xf32>
    %cst_311 = arith.constant dense<0xFF800000> : vector<16xf32>
    %624 = vector.multi_reduction <maximumf>, %623, %cst_311 [1] : vector<16x16xf32> to vector<16xf32>
    %625 = vector.shape_cast %624 : vector<16xf32> to vector<16x1xf32>
    %626 = vector.broadcast %625 : vector<16x1xf32> to vector<16x16xf32>
    %627 = arith.subf %623, %626 : vector<16x16xf32>
    %628 = math.exp %627 : vector<16x16xf32>
    %cst_312 = arith.constant dense<0.000000e+00> : vector<16xf32>
    %629 = vector.multi_reduction <add>, %628, %cst_312 [1] : vector<16x16xf32> to vector<16xf32>
    %630 = vector.shape_cast %629 : vector<16xf32> to vector<16x1xf32>
    %631 = tpu.reciprocal %630 {approx = true} : vector<16x1xf32> -> vector<16x1xf32>
    %632 = vector.broadcast %631 : vector<16x1xf32> to vector<16x16xf32>
    %633 = arith.mulf %628, %632 : vector<16x16xf32>
    %cst_313 = arith.constant dense<0.000000e+00> : vector<16x8xf32>
    %634 = tpu.matmul %633, %619, %cst_313 {dimension_numbers = #tpu.dot_dimension_numbers<[1], [0], [0], [1], [0, 0, 1, 1], [], []>} : vector<16x16xf32>, vector<16x8xf32>, vector<16x8xf32> -> vector<16x8xf32>
    %635 = vector.extract_strided_slice %598 {offsets = [0, 16], sizes = [16, 8], strides = [1, 1]} : vector<16x96xf32> to vector<16x8xf32>
    %636 = vector.extract_strided_slice %598 {offsets = [0, 48], sizes = [16, 8], strides = [1, 1]} : vector<16x96xf32> to vector<16x8xf32>
    %637 = vector.extract_strided_slice %598 {offsets = [0, 80], sizes = [16, 8], strides = [1, 1]} : vector<16x96xf32> to vector<16x8xf32>
    %cst_314 = arith.constant dense<0.000000e+00> : vector<16x16xf32>
    %638 = tpu.matmul %635, %636, %cst_314 {dimension_numbers = #tpu.dot_dimension_numbers<[1], [1], [0], [0], [0, 0, 1, 0], [], []>} : vector<16x8xf32>, vector<16x8xf32>, vector<16x16xf32> -> vector<16x16xf32>
    %cst_315 = arith.constant 0.353553385 : f32
    %639 = vector.broadcast %cst_315 : f32 to vector<16x16xf32>
    %640 = arith.mulf %638, %639 : vector<16x16xf32>
    %641 = arith.addf %640, %11 : vector<16x16xf32>
    %cst_316 = arith.constant dense<0xFF800000> : vector<16xf32>
    %642 = vector.multi_reduction <maximumf>, %641, %cst_316 [1] : vector<16x16xf32> to vector<16xf32>
    %643 = vector.shape_cast %642 : vector<16xf32> to vector<16x1xf32>
    %644 = vector.broadcast %643 : vector<16x1xf32> to vector<16x16xf32>
    %645 = arith.subf %641, %644 : vector<16x16xf32>
    %646 = math.exp %645 : vector<16x16xf32>
    %cst_317 = arith.constant dense<0.000000e+00> : vector<16xf32>
    %647 = vector.multi_reduction <add>, %646, %cst_317 [1] : vector<16x16xf32> to vector<16xf32>
    %648 = vector.shape_cast %647 : vector<16xf32> to vector<16x1xf32>
    %649 = tpu.reciprocal %648 {approx = true} : vector<16x1xf32> -> vector<16x1xf32>
    %650 = vector.broadcast %649 : vector<16x1xf32> to vector<16x16xf32>
    %651 = arith.mulf %646, %650 : vector<16x16xf32>
    %cst_318 = arith.constant dense<0.000000e+00> : vector<16x8xf32>
    %652 = tpu.matmul %651, %637, %cst_318 {dimension_numbers = #tpu.dot_dimension_numbers<[1], [0], [0], [1], [0, 0, 1, 1], [], []>} : vector<16x16xf32>, vector<16x8xf32>, vector<16x8xf32> -> vector<16x8xf32>
    %653 = vector.extract_strided_slice %598 {offsets = [0, 24], sizes = [16, 8], strides = [1, 1]} : vector<16x96xf32> to vector<16x8xf32>
    %654 = vector.extract_strided_slice %598 {offsets = [0, 56], sizes = [16, 8], strides = [1, 1]} : vector<16x96xf32> to vector<16x8xf32>
    %655 = vector.extract_strided_slice %598 {offsets = [0, 88], sizes = [16, 8], strides = [1, 1]} : vector<16x96xf32> to vector<16x8xf32>
    %cst_319 = arith.constant dense<0.000000e+00> : vector<16x16xf32>
    %656 = tpu.matmul %653, %654, %cst_319 {dimension_numbers = #tpu.dot_dimension_numbers<[1], [1], [0], [0], [0, 0, 1, 0], [], []>} : vector<16x8xf32>, vector<16x8xf32>, vector<16x16xf32> -> vector<16x16xf32>
    %cst_320 = arith.constant 0.353553385 : f32
    %657 = vector.broadcast %cst_320 : f32 to vector<16x16xf32>
    %658 = arith.mulf %656, %657 : vector<16x16xf32>
    %659 = arith.addf %658, %11 : vector<16x16xf32>
    %cst_321 = arith.constant dense<0xFF800000> : vector<16xf32>
    %660 = vector.multi_reduction <maximumf>, %659, %cst_321 [1] : vector<16x16xf32> to vector<16xf32>
    %661 = vector.shape_cast %660 : vector<16xf32> to vector<16x1xf32>
    %662 = vector.broadcast %661 : vector<16x1xf32> to vector<16x16xf32>
    %663 = arith.subf %659, %662 : vector<16x16xf32>
    %664 = math.exp %663 : vector<16x16xf32>
    %cst_322 = arith.constant dense<0.000000e+00> : vector<16xf32>
    %665 = vector.multi_reduction <add>, %664, %cst_322 [1] : vector<16x16xf32> to vector<16xf32>
    %666 = vector.shape_cast %665 : vector<16xf32> to vector<16x1xf32>
    %667 = tpu.reciprocal %666 {approx = true} : vector<16x1xf32> -> vector<16x1xf32>
    %668 = vector.broadcast %667 : vector<16x1xf32> to vector<16x16xf32>
    %669 = arith.mulf %664, %668 : vector<16x16xf32>
    %cst_323 = arith.constant dense<0.000000e+00> : vector<16x8xf32>
    %670 = tpu.matmul %669, %655, %cst_323 {dimension_numbers = #tpu.dot_dimension_numbers<[1], [0], [0], [1], [0, 0, 1, 1], [], []>} : vector<16x16xf32>, vector<16x8xf32>, vector<16x8xf32> -> vector<16x8xf32>
    %671 = tpu.concatenate %616, %634, %652, %670 in 1 : vector<16x8xf32>, vector<16x8xf32>, vector<16x8xf32>, vector<16x8xf32> -> vector<16x32xf32>
    %cst_324 = arith.constant dense<0.000000e+00> : vector<16x32xf32>
    %672 = tpu.matmul %671, %565, %cst_324 {dimension_numbers = #tpu.dot_dimension_numbers<[1], [0], [0], [1], [0, 0, 1, 1], [], []>} : vector<16x32xf32>, vector<32x32xf32>, vector<16x32xf32> -> vector<16x32xf32>
    %673 = vector.broadcast %577 : vector<1x32xf32> to vector<16x32xf32>
    %674 = arith.addf %672, %673 : vector<16x32xf32>
    %675 = arith.addf %674, %559 : vector<16x32xf32>
    %cst_325 = arith.constant dense<0.000000e+00> : vector<16xf32>
    %676 = vector.multi_reduction <add>, %675, %cst_325 [1] : vector<16x32xf32> to vector<16xf32>
    %677 = vector.shape_cast %676 : vector<16xf32> to vector<16x1xf32>
    %cst_326 = arith.constant 3.200000e+01 : f32
    %678 = vector.broadcast %cst_326 : f32 to vector<16x1xf32>
    %679 = arith.divf %677, %678 : vector<16x1xf32>
    %680 = vector.broadcast %679 : vector<16x1xf32> to vector<16x32xf32>
    %681 = arith.subf %675, %680 : vector<16x32xf32>
    %682 = arith.mulf %681, %681 : vector<16x32xf32>
    %cst_327 = arith.constant dense<0.000000e+00> : vector<16xf32>
    %683 = vector.multi_reduction <add>, %682, %cst_327 [1] : vector<16x32xf32> to vector<16xf32>
    %684 = vector.shape_cast %683 : vector<16xf32> to vector<16x1xf32>
    %cst_328 = arith.constant 3.200000e+01 : f32
    %685 = vector.broadcast %cst_328 : f32 to vector<16x1xf32>
    %686 = arith.divf %684, %685 : vector<16x1xf32>
    %687 = vector.broadcast %679 : vector<16x1xf32> to vector<16x32xf32>
    %688 = arith.subf %675, %687 : vector<16x32xf32>
    %cst_329 = arith.constant 9.99999974E-6 : f32
    %689 = vector.broadcast %cst_329 : f32 to vector<16x1xf32>
    %690 = arith.addf %686, %689 : vector<16x1xf32>
    %691 = math.rsqrt %690 : vector<16x1xf32>
    %692 = vector.broadcast %691 : vector<16x1xf32> to vector<16x32xf32>
    %693 = arith.mulf %688, %692 : vector<16x32xf32>
    %694 = vector.broadcast %585 : vector<1x32xf32> to vector<16x32xf32>
    %695 = arith.mulf %693, %694 : vector<16x32xf32>
    %696 = vector.broadcast %587 : vector<1x32xf32> to vector<16x32xf32>
    %697 = arith.addf %695, %696 : vector<16x32xf32>
    %cst_330 = arith.constant dense<0.000000e+00> : vector<16x32xf32>
    %698 = tpu.matmul %697, %563, %cst_330 {dimension_numbers = #tpu.dot_dimension_numbers<[1], [0], [0], [1], [0, 0, 1, 1], [], []>} : vector<16x32xf32>, vector<32x32xf32>, vector<16x32xf32> -> vector<16x32xf32>
    %699 = vector.broadcast %575 : vector<1x32xf32> to vector<16x32xf32>
    %700 = arith.addf %698, %699 : vector<16x32xf32>
    %701 = vector.extract_strided_slice %700 {offsets = [0, 0], sizes = [16, 8], strides = [1, 1]} : vector<16x32xf32> to vector<16x8xf32>
    %702 = vector.extract_strided_slice %17 {offsets = [0, 128], sizes = [16, 8], strides = [1, 1]} : vector<16x256xf32> to vector<16x8xf32>
    %703 = vector.extract_strided_slice %17 {offsets = [0, 160], sizes = [16, 8], strides = [1, 1]} : vector<16x256xf32> to vector<16x8xf32>
    %cst_331 = arith.constant dense<0.000000e+00> : vector<16x16xf32>
    %704 = tpu.matmul %701, %702, %cst_331 {dimension_numbers = #tpu.dot_dimension_numbers<[1], [1], [0], [0], [0, 0, 1, 0], [], []>} : vector<16x8xf32>, vector<16x8xf32>, vector<16x16xf32> -> vector<16x16xf32>
    %cst_332 = arith.constant 0.353553385 : f32
    %705 = vector.broadcast %cst_332 : f32 to vector<16x16xf32>
    %706 = arith.mulf %704, %705 : vector<16x16xf32>
    %707 = arith.addf %706, %12 : vector<16x16xf32>
    %cst_333 = arith.constant dense<0xFF800000> : vector<16xf32>
    %708 = vector.multi_reduction <maximumf>, %707, %cst_333 [1] : vector<16x16xf32> to vector<16xf32>
    %709 = vector.shape_cast %708 : vector<16xf32> to vector<16x1xf32>
    %710 = vector.broadcast %709 : vector<16x1xf32> to vector<16x16xf32>
    %711 = arith.subf %707, %710 : vector<16x16xf32>
    %712 = math.exp %711 : vector<16x16xf32>
    %cst_334 = arith.constant dense<0.000000e+00> : vector<16xf32>
    %713 = vector.multi_reduction <add>, %712, %cst_334 [1] : vector<16x16xf32> to vector<16xf32>
    %714 = vector.shape_cast %713 : vector<16xf32> to vector<16x1xf32>
    %715 = tpu.reciprocal %714 {approx = true} : vector<16x1xf32> -> vector<16x1xf32>
    %716 = vector.broadcast %715 : vector<16x1xf32> to vector<16x16xf32>
    %717 = arith.mulf %712, %716 : vector<16x16xf32>
    %cst_335 = arith.constant dense<0.000000e+00> : vector<16x8xf32>
    %718 = tpu.matmul %717, %703, %cst_335 {dimension_numbers = #tpu.dot_dimension_numbers<[1], [0], [0], [1], [0, 0, 1, 1], [], []>} : vector<16x16xf32>, vector<16x8xf32>, vector<16x8xf32> -> vector<16x8xf32>
    %719 = vector.extract_strided_slice %700 {offsets = [0, 8], sizes = [16, 8], strides = [1, 1]} : vector<16x32xf32> to vector<16x8xf32>
    %720 = vector.extract_strided_slice %17 {offsets = [0, 136], sizes = [16, 8], strides = [1, 1]} : vector<16x256xf32> to vector<16x8xf32>
    %721 = vector.extract_strided_slice %17 {offsets = [0, 168], sizes = [16, 8], strides = [1, 1]} : vector<16x256xf32> to vector<16x8xf32>
    %cst_336 = arith.constant dense<0.000000e+00> : vector<16x16xf32>
    %722 = tpu.matmul %719, %720, %cst_336 {dimension_numbers = #tpu.dot_dimension_numbers<[1], [1], [0], [0], [0, 0, 1, 0], [], []>} : vector<16x8xf32>, vector<16x8xf32>, vector<16x16xf32> -> vector<16x16xf32>
    %cst_337 = arith.constant 0.353553385 : f32
    %723 = vector.broadcast %cst_337 : f32 to vector<16x16xf32>
    %724 = arith.mulf %722, %723 : vector<16x16xf32>
    %725 = arith.addf %724, %12 : vector<16x16xf32>
    %cst_338 = arith.constant dense<0xFF800000> : vector<16xf32>
    %726 = vector.multi_reduction <maximumf>, %725, %cst_338 [1] : vector<16x16xf32> to vector<16xf32>
    %727 = vector.shape_cast %726 : vector<16xf32> to vector<16x1xf32>
    %728 = vector.broadcast %727 : vector<16x1xf32> to vector<16x16xf32>
    %729 = arith.subf %725, %728 : vector<16x16xf32>
    %730 = math.exp %729 : vector<16x16xf32>
    %cst_339 = arith.constant dense<0.000000e+00> : vector<16xf32>
    %731 = vector.multi_reduction <add>, %730, %cst_339 [1] : vector<16x16xf32> to vector<16xf32>
    %732 = vector.shape_cast %731 : vector<16xf32> to vector<16x1xf32>
    %733 = tpu.reciprocal %732 {approx = true} : vector<16x1xf32> -> vector<16x1xf32>
    %734 = vector.broadcast %733 : vector<16x1xf32> to vector<16x16xf32>
    %735 = arith.mulf %730, %734 : vector<16x16xf32>
    %cst_340 = arith.constant dense<0.000000e+00> : vector<16x8xf32>
    %736 = tpu.matmul %735, %721, %cst_340 {dimension_numbers = #tpu.dot_dimension_numbers<[1], [0], [0], [1], [0, 0, 1, 1], [], []>} : vector<16x16xf32>, vector<16x8xf32>, vector<16x8xf32> -> vector<16x8xf32>
    %737 = vector.extract_strided_slice %700 {offsets = [0, 16], sizes = [16, 8], strides = [1, 1]} : vector<16x32xf32> to vector<16x8xf32>
    %738 = vector.extract_strided_slice %17 {offsets = [0, 144], sizes = [16, 8], strides = [1, 1]} : vector<16x256xf32> to vector<16x8xf32>
    %739 = vector.extract_strided_slice %17 {offsets = [0, 176], sizes = [16, 8], strides = [1, 1]} : vector<16x256xf32> to vector<16x8xf32>
    %cst_341 = arith.constant dense<0.000000e+00> : vector<16x16xf32>
    %740 = tpu.matmul %737, %738, %cst_341 {dimension_numbers = #tpu.dot_dimension_numbers<[1], [1], [0], [0], [0, 0, 1, 0], [], []>} : vector<16x8xf32>, vector<16x8xf32>, vector<16x16xf32> -> vector<16x16xf32>
    %cst_342 = arith.constant 0.353553385 : f32
    %741 = vector.broadcast %cst_342 : f32 to vector<16x16xf32>
    %742 = arith.mulf %740, %741 : vector<16x16xf32>
    %743 = arith.addf %742, %12 : vector<16x16xf32>
    %cst_343 = arith.constant dense<0xFF800000> : vector<16xf32>
    %744 = vector.multi_reduction <maximumf>, %743, %cst_343 [1] : vector<16x16xf32> to vector<16xf32>
    %745 = vector.shape_cast %744 : vector<16xf32> to vector<16x1xf32>
    %746 = vector.broadcast %745 : vector<16x1xf32> to vector<16x16xf32>
    %747 = arith.subf %743, %746 : vector<16x16xf32>
    %748 = math.exp %747 : vector<16x16xf32>
    %cst_344 = arith.constant dense<0.000000e+00> : vector<16xf32>
    %749 = vector.multi_reduction <add>, %748, %cst_344 [1] : vector<16x16xf32> to vector<16xf32>
    %750 = vector.shape_cast %749 : vector<16xf32> to vector<16x1xf32>
    %751 = tpu.reciprocal %750 {approx = true} : vector<16x1xf32> -> vector<16x1xf32>
    %752 = vector.broadcast %751 : vector<16x1xf32> to vector<16x16xf32>
    %753 = arith.mulf %748, %752 : vector<16x16xf32>
    %cst_345 = arith.constant dense<0.000000e+00> : vector<16x8xf32>
    %754 = tpu.matmul %753, %739, %cst_345 {dimension_numbers = #tpu.dot_dimension_numbers<[1], [0], [0], [1], [0, 0, 1, 1], [], []>} : vector<16x16xf32>, vector<16x8xf32>, vector<16x8xf32> -> vector<16x8xf32>
    %755 = vector.extract_strided_slice %700 {offsets = [0, 24], sizes = [16, 8], strides = [1, 1]} : vector<16x32xf32> to vector<16x8xf32>
    %756 = vector.extract_strided_slice %17 {offsets = [0, 152], sizes = [16, 8], strides = [1, 1]} : vector<16x256xf32> to vector<16x8xf32>
    %757 = vector.extract_strided_slice %17 {offsets = [0, 184], sizes = [16, 8], strides = [1, 1]} : vector<16x256xf32> to vector<16x8xf32>
    %cst_346 = arith.constant dense<0.000000e+00> : vector<16x16xf32>
    %758 = tpu.matmul %755, %756, %cst_346 {dimension_numbers = #tpu.dot_dimension_numbers<[1], [1], [0], [0], [0, 0, 1, 0], [], []>} : vector<16x8xf32>, vector<16x8xf32>, vector<16x16xf32> -> vector<16x16xf32>
    %cst_347 = arith.constant 0.353553385 : f32
    %759 = vector.broadcast %cst_347 : f32 to vector<16x16xf32>
    %760 = arith.mulf %758, %759 : vector<16x16xf32>
    %761 = arith.addf %760, %12 : vector<16x16xf32>
    %cst_348 = arith.constant dense<0xFF800000> : vector<16xf32>
    %762 = vector.multi_reduction <maximumf>, %761, %cst_348 [1] : vector<16x16xf32> to vector<16xf32>
    %763 = vector.shape_cast %762 : vector<16xf32> to vector<16x1xf32>
    %764 = vector.broadcast %763 : vector<16x1xf32> to vector<16x16xf32>
    %765 = arith.subf %761, %764 : vector<16x16xf32>
    %766 = math.exp %765 : vector<16x16xf32>
    %cst_349 = arith.constant dense<0.000000e+00> : vector<16xf32>
    %767 = vector.multi_reduction <add>, %766, %cst_349 [1] : vector<16x16xf32> to vector<16xf32>
    %768 = vector.shape_cast %767 : vector<16xf32> to vector<16x1xf32>
    %769 = tpu.reciprocal %768 {approx = true} : vector<16x1xf32> -> vector<16x1xf32>
    %770 = vector.broadcast %769 : vector<16x1xf32> to vector<16x16xf32>
    %771 = arith.mulf %766, %770 : vector<16x16xf32>
    %cst_350 = arith.constant dense<0.000000e+00> : vector<16x8xf32>
    %772 = tpu.matmul %771, %757, %cst_350 {dimension_numbers = #tpu.dot_dimension_numbers<[1], [0], [0], [1], [0, 0, 1, 1], [], []>} : vector<16x16xf32>, vector<16x8xf32>, vector<16x8xf32> -> vector<16x8xf32>
    %773 = tpu.concatenate %718, %736, %754, %772 in 1 : vector<16x8xf32>, vector<16x8xf32>, vector<16x8xf32>, vector<16x8xf32> -> vector<16x32xf32>
    %cst_351 = arith.constant dense<0.000000e+00> : vector<16x32xf32>
    %774 = tpu.matmul %773, %567, %cst_351 {dimension_numbers = #tpu.dot_dimension_numbers<[1], [0], [0], [1], [0, 0, 1, 1], [], []>} : vector<16x32xf32>, vector<32x32xf32>, vector<16x32xf32> -> vector<16x32xf32>
    %775 = vector.broadcast %579 : vector<1x32xf32> to vector<16x32xf32>
    %776 = arith.addf %774, %775 : vector<16x32xf32>
    %777 = arith.addf %776, %697 : vector<16x32xf32>
    %cst_352 = arith.constant dense<0.000000e+00> : vector<16xf32>
    %778 = vector.multi_reduction <add>, %777, %cst_352 [1] : vector<16x32xf32> to vector<16xf32>
    %779 = vector.shape_cast %778 : vector<16xf32> to vector<16x1xf32>
    %cst_353 = arith.constant 3.200000e+01 : f32
    %780 = vector.broadcast %cst_353 : f32 to vector<16x1xf32>
    %781 = arith.divf %779, %780 : vector<16x1xf32>
    %782 = vector.broadcast %781 : vector<16x1xf32> to vector<16x32xf32>
    %783 = arith.subf %777, %782 : vector<16x32xf32>
    %784 = arith.mulf %783, %783 : vector<16x32xf32>
    %cst_354 = arith.constant dense<0.000000e+00> : vector<16xf32>
    %785 = vector.multi_reduction <add>, %784, %cst_354 [1] : vector<16x32xf32> to vector<16xf32>
    %786 = vector.shape_cast %785 : vector<16xf32> to vector<16x1xf32>
    %cst_355 = arith.constant 3.200000e+01 : f32
    %787 = vector.broadcast %cst_355 : f32 to vector<16x1xf32>
    %788 = arith.divf %786, %787 : vector<16x1xf32>
    %789 = vector.broadcast %781 : vector<16x1xf32> to vector<16x32xf32>
    %790 = arith.subf %777, %789 : vector<16x32xf32>
    %cst_356 = arith.constant 9.99999974E-6 : f32
    %791 = vector.broadcast %cst_356 : f32 to vector<16x1xf32>
    %792 = arith.addf %788, %791 : vector<16x1xf32>
    %793 = math.rsqrt %792 : vector<16x1xf32>
    %794 = vector.broadcast %793 : vector<16x1xf32> to vector<16x32xf32>
    %795 = arith.mulf %790, %794 : vector<16x32xf32>
    %796 = vector.broadcast %589 : vector<1x32xf32> to vector<16x32xf32>
    %797 = arith.mulf %795, %796 : vector<16x32xf32>
    %798 = vector.broadcast %591 : vector<1x32xf32> to vector<16x32xf32>
    %799 = arith.addf %797, %798 : vector<16x32xf32>
    %cst_357 = arith.constant dense<0.000000e+00> : vector<16x32xf32>
    %800 = tpu.matmul %799, %569, %cst_357 {dimension_numbers = #tpu.dot_dimension_numbers<[1], [0], [0], [1], [0, 0, 1, 1], [], []>} : vector<16x32xf32>, vector<32x32xf32>, vector<16x32xf32> -> vector<16x32xf32>
    %801 = vector.broadcast %581 : vector<1x32xf32> to vector<16x32xf32>
    %802 = arith.addf %800, %801 : vector<16x32xf32>
    %cst_358 = arith.constant 0.000000e+00 : f32
    %803 = vector.broadcast %cst_358 : f32 to vector<16x32xf32>
    %804 = arith.maximumf %802, %803 : vector<16x32xf32>
    %cst_359 = arith.constant dense<0.000000e+00> : vector<16x32xf32>
    %805 = tpu.matmul %804, %571, %cst_359 {dimension_numbers = #tpu.dot_dimension_numbers<[1], [0], [0], [1], [0, 0, 1, 1], [], []>} : vector<16x32xf32>, vector<32x32xf32>, vector<16x32xf32> -> vector<16x32xf32>
    %806 = vector.broadcast %583 : vector<1x32xf32> to vector<16x32xf32>
    %807 = arith.addf %805, %806 : vector<16x32xf32>
    %808 = arith.addf %807, %799 : vector<16x32xf32>
    %cst_360 = arith.constant dense<0.000000e+00> : vector<16xf32>
    %809 = vector.multi_reduction <add>, %808, %cst_360 [1] : vector<16x32xf32> to vector<16xf32>
    %810 = vector.shape_cast %809 : vector<16xf32> to vector<16x1xf32>
    %cst_361 = arith.constant 3.200000e+01 : f32
    %811 = vector.broadcast %cst_361 : f32 to vector<16x1xf32>
    %812 = arith.divf %810, %811 : vector<16x1xf32>
    %813 = vector.broadcast %812 : vector<16x1xf32> to vector<16x32xf32>
    %814 = arith.subf %808, %813 : vector<16x32xf32>
    %815 = arith.mulf %814, %814 : vector<16x32xf32>
    %cst_362 = arith.constant dense<0.000000e+00> : vector<16xf32>
    %816 = vector.multi_reduction <add>, %815, %cst_362 [1] : vector<16x32xf32> to vector<16xf32>
    %817 = vector.shape_cast %816 : vector<16xf32> to vector<16x1xf32>
    %cst_363 = arith.constant 3.200000e+01 : f32
    %818 = vector.broadcast %cst_363 : f32 to vector<16x1xf32>
    %819 = arith.divf %817, %818 : vector<16x1xf32>
    %820 = vector.broadcast %812 : vector<16x1xf32> to vector<16x32xf32>
    %821 = arith.subf %808, %820 : vector<16x32xf32>
    %cst_364 = arith.constant 9.99999974E-6 : f32
    %822 = vector.broadcast %cst_364 : f32 to vector<16x1xf32>
    %823 = arith.addf %819, %822 : vector<16x1xf32>
    %824 = math.rsqrt %823 : vector<16x1xf32>
    %825 = vector.broadcast %824 : vector<16x1xf32> to vector<16x32xf32>
    %826 = arith.mulf %821, %825 : vector<16x32xf32>
    %827 = vector.broadcast %593 : vector<1x32xf32> to vector<16x32xf32>
    %828 = arith.mulf %826, %827 : vector<16x32xf32>
    %829 = vector.broadcast %595 : vector<1x32xf32> to vector<16x32xf32>
    %830 = arith.addf %828, %829 : vector<16x32xf32>
    %c3_365 = arith.constant 3 : index
    %c0_366 = arith.constant 0 : index
    %c0_367 = arith.constant 0 : index
    %831 = vector.load %arg6[%c3_365, %c0_366, %c0_367] : memref<4x32x96xf32, #tpu.memory_space<vmem>>, vector<1x32x96xf32>
    %832 = vector.shape_cast %831 : vector<1x32x96xf32> to vector<32x96xf32>
    %c3_368 = arith.constant 3 : index
    %c0_369 = arith.constant 0 : index
    %c0_370 = arith.constant 0 : index
    %833 = vector.load %arg7[%c3_368, %c0_369, %c0_370] : memref<4x32x32xf32, #tpu.memory_space<vmem>>, vector<1x32x32xf32>
    %834 = vector.shape_cast %833 : vector<1x32x32xf32> to vector<32x32xf32>
    %c3_371 = arith.constant 3 : index
    %c0_372 = arith.constant 0 : index
    %c0_373 = arith.constant 0 : index
    %c0_374 = arith.constant 0 : index
    %835 = vector.load %arg10[%c3_371, %c0_372, %c0_373, %c0_374] : memref<4x4x32x32xf32, #tpu.memory_space<vmem>>, vector<1x1x32x32xf32>
    %836 = vector.shape_cast %835 : vector<1x1x32x32xf32> to vector<32x32xf32>
    %c3_375 = arith.constant 3 : index
    %c1_376 = arith.constant 1 : index
    %c0_377 = arith.constant 0 : index
    %c0_378 = arith.constant 0 : index
    %837 = vector.load %arg10[%c3_375, %c1_376, %c0_377, %c0_378] : memref<4x4x32x32xf32, #tpu.memory_space<vmem>>, vector<1x1x32x32xf32>
    %838 = vector.shape_cast %837 : vector<1x1x32x32xf32> to vector<32x32xf32>
    %c3_379 = arith.constant 3 : index
    %c2_380 = arith.constant 2 : index
    %c0_381 = arith.constant 0 : index
    %c0_382 = arith.constant 0 : index
    %839 = vector.load %arg10[%c3_379, %c2_380, %c0_381, %c0_382] : memref<4x4x32x32xf32, #tpu.memory_space<vmem>>, vector<1x1x32x32xf32>
    %840 = vector.shape_cast %839 : vector<1x1x32x32xf32> to vector<32x32xf32>
    %c3_383 = arith.constant 3 : index
    %c3_384 = arith.constant 3 : index
    %c0_385 = arith.constant 0 : index
    %c0_386 = arith.constant 0 : index
    %841 = vector.load %arg10[%c3_383, %c3_384, %c0_385, %c0_386] : memref<4x4x32x32xf32, #tpu.memory_space<vmem>>, vector<1x1x32x32xf32>
    %842 = vector.shape_cast %841 : vector<1x1x32x32xf32> to vector<32x32xf32>
    %c3_387 = arith.constant 3 : index
    %c0_388 = arith.constant 0 : index
    %c0_389 = arith.constant 0 : index
    %843 = vector.load %arg11[%c3_387, %c0_388, %c0_389] : memref<4x12x96xf32, #tpu.memory_space<vmem>>, vector<1x1x96xf32>
    %844 = vector.shape_cast %843 : vector<1x1x96xf32> to vector<1x96xf32>
    %c3_390 = arith.constant 3 : index
    %c1_391 = arith.constant 1 : index
    %c0_392 = arith.constant 0 : index
    %845 = vector.load %arg11[%c3_390, %c1_391, %c0_392] : memref<4x12x96xf32, #tpu.memory_space<vmem>>, vector<1x1x32xf32>
    %846 = vector.shape_cast %845 : vector<1x1x32xf32> to vector<1x32xf32>
    %c3_393 = arith.constant 3 : index
    %c2_394 = arith.constant 2 : index
    %c0_395 = arith.constant 0 : index
    %847 = vector.load %arg11[%c3_393, %c2_394, %c0_395] : memref<4x12x96xf32, #tpu.memory_space<vmem>>, vector<1x1x32xf32>
    %848 = vector.shape_cast %847 : vector<1x1x32xf32> to vector<1x32xf32>
    %c3_396 = arith.constant 3 : index
    %c3_397 = arith.constant 3 : index
    %c0_398 = arith.constant 0 : index
    %849 = vector.load %arg11[%c3_396, %c3_397, %c0_398] : memref<4x12x96xf32, #tpu.memory_space<vmem>>, vector<1x1x32xf32>
    %850 = vector.shape_cast %849 : vector<1x1x32xf32> to vector<1x32xf32>
    %c3_399 = arith.constant 3 : index
    %c4_400 = arith.constant 4 : index
    %c0_401 = arith.constant 0 : index
    %851 = vector.load %arg11[%c3_399, %c4_400, %c0_401] : memref<4x12x96xf32, #tpu.memory_space<vmem>>, vector<1x1x32xf32>
    %852 = vector.shape_cast %851 : vector<1x1x32xf32> to vector<1x32xf32>
    %c3_402 = arith.constant 3 : index
    %c5_403 = arith.constant 5 : index
    %c0_404 = arith.constant 0 : index
    %853 = vector.load %arg11[%c3_402, %c5_403, %c0_404] : memref<4x12x96xf32, #tpu.memory_space<vmem>>, vector<1x1x32xf32>
    %854 = vector.shape_cast %853 : vector<1x1x32xf32> to vector<1x32xf32>
    %c3_405 = arith.constant 3 : index
    %c6_406 = arith.constant 6 : index
    %c0_407 = arith.constant 0 : index
    %855 = vector.load %arg11[%c3_405, %c6_406, %c0_407] : memref<4x12x96xf32, #tpu.memory_space<vmem>>, vector<1x1x32xf32>
    %856 = vector.shape_cast %855 : vector<1x1x32xf32> to vector<1x32xf32>
    %c3_408 = arith.constant 3 : index
    %c7_409 = arith.constant 7 : index
    %c0_410 = arith.constant 0 : index
    %857 = vector.load %arg11[%c3_408, %c7_409, %c0_410] : memref<4x12x96xf32, #tpu.memory_space<vmem>>, vector<1x1x32xf32>
    %858 = vector.shape_cast %857 : vector<1x1x32xf32> to vector<1x32xf32>
    %c3_411 = arith.constant 3 : index
    %c8_412 = arith.constant 8 : index
    %c0_413 = arith.constant 0 : index
    %859 = vector.load %arg11[%c3_411, %c8_412, %c0_413] : memref<4x12x96xf32, #tpu.memory_space<vmem>>, vector<1x1x32xf32>
    %860 = vector.shape_cast %859 : vector<1x1x32xf32> to vector<1x32xf32>
    %c3_414 = arith.constant 3 : index
    %c9_415 = arith.constant 9 : index
    %c0_416 = arith.constant 0 : index
    %861 = vector.load %arg11[%c3_414, %c9_415, %c0_416] : memref<4x12x96xf32, #tpu.memory_space<vmem>>, vector<1x1x32xf32>
    %862 = vector.shape_cast %861 : vector<1x1x32xf32> to vector<1x32xf32>
    %c3_417 = arith.constant 3 : index
    %c10_418 = arith.constant 10 : index
    %c0_419 = arith.constant 0 : index
    %863 = vector.load %arg11[%c3_417, %c10_418, %c0_419] : memref<4x12x96xf32, #tpu.memory_space<vmem>>, vector<1x1x32xf32>
    %864 = vector.shape_cast %863 : vector<1x1x32xf32> to vector<1x32xf32>
    %c3_420 = arith.constant 3 : index
    %c11_421 = arith.constant 11 : index
    %c0_422 = arith.constant 0 : index
    %865 = vector.load %arg11[%c3_420, %c11_421, %c0_422] : memref<4x12x96xf32, #tpu.memory_space<vmem>>, vector<1x1x32xf32>
    %866 = vector.shape_cast %865 : vector<1x1x32xf32> to vector<1x32xf32>
    %cst_423 = arith.constant dense<0.000000e+00> : vector<16x96xf32>
    %867 = tpu.matmul %830, %832, %cst_423 {dimension_numbers = #tpu.dot_dimension_numbers<[1], [0], [0], [1], [0, 0, 1, 1], [], []>} : vector<16x32xf32>, vector<32x96xf32>, vector<16x96xf32> -> vector<16x96xf32>
    %868 = vector.broadcast %844 : vector<1x96xf32> to vector<16x96xf32>
    %869 = arith.addf %867, %868 : vector<16x96xf32>
    %870 = vector.extract_strided_slice %869 {offsets = [0, 0], sizes = [16, 8], strides = [1, 1]} : vector<16x96xf32> to vector<16x8xf32>
    %871 = vector.extract_strided_slice %869 {offsets = [0, 32], sizes = [16, 8], strides = [1, 1]} : vector<16x96xf32> to vector<16x8xf32>
    %872 = vector.extract_strided_slice %869 {offsets = [0, 64], sizes = [16, 8], strides = [1, 1]} : vector<16x96xf32> to vector<16x8xf32>
    %cst_424 = arith.constant dense<0.000000e+00> : vector<16x16xf32>
    %873 = tpu.matmul %870, %871, %cst_424 {dimension_numbers = #tpu.dot_dimension_numbers<[1], [1], [0], [0], [0, 0, 1, 0], [], []>} : vector<16x8xf32>, vector<16x8xf32>, vector<16x16xf32> -> vector<16x16xf32>
    %cst_425 = arith.constant 0.353553385 : f32
    %874 = vector.broadcast %cst_425 : f32 to vector<16x16xf32>
    %875 = arith.mulf %873, %874 : vector<16x16xf32>
    %876 = arith.addf %875, %11 : vector<16x16xf32>
    %cst_426 = arith.constant dense<0xFF800000> : vector<16xf32>
    %877 = vector.multi_reduction <maximumf>, %876, %cst_426 [1] : vector<16x16xf32> to vector<16xf32>
    %878 = vector.shape_cast %877 : vector<16xf32> to vector<16x1xf32>
    %879 = vector.broadcast %878 : vector<16x1xf32> to vector<16x16xf32>
    %880 = arith.subf %876, %879 : vector<16x16xf32>
    %881 = math.exp %880 : vector<16x16xf32>
    %cst_427 = arith.constant dense<0.000000e+00> : vector<16xf32>
    %882 = vector.multi_reduction <add>, %881, %cst_427 [1] : vector<16x16xf32> to vector<16xf32>
    %883 = vector.shape_cast %882 : vector<16xf32> to vector<16x1xf32>
    %884 = tpu.reciprocal %883 {approx = true} : vector<16x1xf32> -> vector<16x1xf32>
    %885 = vector.broadcast %884 : vector<16x1xf32> to vector<16x16xf32>
    %886 = arith.mulf %881, %885 : vector<16x16xf32>
    %cst_428 = arith.constant dense<0.000000e+00> : vector<16x8xf32>
    %887 = tpu.matmul %886, %872, %cst_428 {dimension_numbers = #tpu.dot_dimension_numbers<[1], [0], [0], [1], [0, 0, 1, 1], [], []>} : vector<16x16xf32>, vector<16x8xf32>, vector<16x8xf32> -> vector<16x8xf32>
    %888 = vector.extract_strided_slice %869 {offsets = [0, 8], sizes = [16, 8], strides = [1, 1]} : vector<16x96xf32> to vector<16x8xf32>
    %889 = vector.extract_strided_slice %869 {offsets = [0, 40], sizes = [16, 8], strides = [1, 1]} : vector<16x96xf32> to vector<16x8xf32>
    %890 = vector.extract_strided_slice %869 {offsets = [0, 72], sizes = [16, 8], strides = [1, 1]} : vector<16x96xf32> to vector<16x8xf32>
    %cst_429 = arith.constant dense<0.000000e+00> : vector<16x16xf32>
    %891 = tpu.matmul %888, %889, %cst_429 {dimension_numbers = #tpu.dot_dimension_numbers<[1], [1], [0], [0], [0, 0, 1, 0], [], []>} : vector<16x8xf32>, vector<16x8xf32>, vector<16x16xf32> -> vector<16x16xf32>
    %cst_430 = arith.constant 0.353553385 : f32
    %892 = vector.broadcast %cst_430 : f32 to vector<16x16xf32>
    %893 = arith.mulf %891, %892 : vector<16x16xf32>
    %894 = arith.addf %893, %11 : vector<16x16xf32>
    %cst_431 = arith.constant dense<0xFF800000> : vector<16xf32>
    %895 = vector.multi_reduction <maximumf>, %894, %cst_431 [1] : vector<16x16xf32> to vector<16xf32>
    %896 = vector.shape_cast %895 : vector<16xf32> to vector<16x1xf32>
    %897 = vector.broadcast %896 : vector<16x1xf32> to vector<16x16xf32>
    %898 = arith.subf %894, %897 : vector<16x16xf32>
    %899 = math.exp %898 : vector<16x16xf32>
    %cst_432 = arith.constant dense<0.000000e+00> : vector<16xf32>
    %900 = vector.multi_reduction <add>, %899, %cst_432 [1] : vector<16x16xf32> to vector<16xf32>
    %901 = vector.shape_cast %900 : vector<16xf32> to vector<16x1xf32>
    %902 = tpu.reciprocal %901 {approx = true} : vector<16x1xf32> -> vector<16x1xf32>
    %903 = vector.broadcast %902 : vector<16x1xf32> to vector<16x16xf32>
    %904 = arith.mulf %899, %903 : vector<16x16xf32>
    %cst_433 = arith.constant dense<0.000000e+00> : vector<16x8xf32>
    %905 = tpu.matmul %904, %890, %cst_433 {dimension_numbers = #tpu.dot_dimension_numbers<[1], [0], [0], [1], [0, 0, 1, 1], [], []>} : vector<16x16xf32>, vector<16x8xf32>, vector<16x8xf32> -> vector<16x8xf32>
    %906 = vector.extract_strided_slice %869 {offsets = [0, 16], sizes = [16, 8], strides = [1, 1]} : vector<16x96xf32> to vector<16x8xf32>
    %907 = vector.extract_strided_slice %869 {offsets = [0, 48], sizes = [16, 8], strides = [1, 1]} : vector<16x96xf32> to vector<16x8xf32>
    %908 = vector.extract_strided_slice %869 {offsets = [0, 80], sizes = [16, 8], strides = [1, 1]} : vector<16x96xf32> to vector<16x8xf32>
    %cst_434 = arith.constant dense<0.000000e+00> : vector<16x16xf32>
    %909 = tpu.matmul %906, %907, %cst_434 {dimension_numbers = #tpu.dot_dimension_numbers<[1], [1], [0], [0], [0, 0, 1, 0], [], []>} : vector<16x8xf32>, vector<16x8xf32>, vector<16x16xf32> -> vector<16x16xf32>
    %cst_435 = arith.constant 0.353553385 : f32
    %910 = vector.broadcast %cst_435 : f32 to vector<16x16xf32>
    %911 = arith.mulf %909, %910 : vector<16x16xf32>
    %912 = arith.addf %911, %11 : vector<16x16xf32>
    %cst_436 = arith.constant dense<0xFF800000> : vector<16xf32>
    %913 = vector.multi_reduction <maximumf>, %912, %cst_436 [1] : vector<16x16xf32> to vector<16xf32>
    %914 = vector.shape_cast %913 : vector<16xf32> to vector<16x1xf32>
    %915 = vector.broadcast %914 : vector<16x1xf32> to vector<16x16xf32>
    %916 = arith.subf %912, %915 : vector<16x16xf32>
    %917 = math.exp %916 : vector<16x16xf32>
    %cst_437 = arith.constant dense<0.000000e+00> : vector<16xf32>
    %918 = vector.multi_reduction <add>, %917, %cst_437 [1] : vector<16x16xf32> to vector<16xf32>
    %919 = vector.shape_cast %918 : vector<16xf32> to vector<16x1xf32>
    %920 = tpu.reciprocal %919 {approx = true} : vector<16x1xf32> -> vector<16x1xf32>
    %921 = vector.broadcast %920 : vector<16x1xf32> to vector<16x16xf32>
    %922 = arith.mulf %917, %921 : vector<16x16xf32>
    %cst_438 = arith.constant dense<0.000000e+00> : vector<16x8xf32>
    %923 = tpu.matmul %922, %908, %cst_438 {dimension_numbers = #tpu.dot_dimension_numbers<[1], [0], [0], [1], [0, 0, 1, 1], [], []>} : vector<16x16xf32>, vector<16x8xf32>, vector<16x8xf32> -> vector<16x8xf32>
    %924 = vector.extract_strided_slice %869 {offsets = [0, 24], sizes = [16, 8], strides = [1, 1]} : vector<16x96xf32> to vector<16x8xf32>
    %925 = vector.extract_strided_slice %869 {offsets = [0, 56], sizes = [16, 8], strides = [1, 1]} : vector<16x96xf32> to vector<16x8xf32>
    %926 = vector.extract_strided_slice %869 {offsets = [0, 88], sizes = [16, 8], strides = [1, 1]} : vector<16x96xf32> to vector<16x8xf32>
    %cst_439 = arith.constant dense<0.000000e+00> : vector<16x16xf32>
    %927 = tpu.matmul %924, %925, %cst_439 {dimension_numbers = #tpu.dot_dimension_numbers<[1], [1], [0], [0], [0, 0, 1, 0], [], []>} : vector<16x8xf32>, vector<16x8xf32>, vector<16x16xf32> -> vector<16x16xf32>
    %cst_440 = arith.constant 0.353553385 : f32
    %928 = vector.broadcast %cst_440 : f32 to vector<16x16xf32>
    %929 = arith.mulf %927, %928 : vector<16x16xf32>
    %930 = arith.addf %929, %11 : vector<16x16xf32>
    %cst_441 = arith.constant dense<0xFF800000> : vector<16xf32>
    %931 = vector.multi_reduction <maximumf>, %930, %cst_441 [1] : vector<16x16xf32> to vector<16xf32>
    %932 = vector.shape_cast %931 : vector<16xf32> to vector<16x1xf32>
    %933 = vector.broadcast %932 : vector<16x1xf32> to vector<16x16xf32>
    %934 = arith.subf %930, %933 : vector<16x16xf32>
    %935 = math.exp %934 : vector<16x16xf32>
    %cst_442 = arith.constant dense<0.000000e+00> : vector<16xf32>
    %936 = vector.multi_reduction <add>, %935, %cst_442 [1] : vector<16x16xf32> to vector<16xf32>
    %937 = vector.shape_cast %936 : vector<16xf32> to vector<16x1xf32>
    %938 = tpu.reciprocal %937 {approx = true} : vector<16x1xf32> -> vector<16x1xf32>
    %939 = vector.broadcast %938 : vector<16x1xf32> to vector<16x16xf32>
    %940 = arith.mulf %935, %939 : vector<16x16xf32>
    %cst_443 = arith.constant dense<0.000000e+00> : vector<16x8xf32>
    %941 = tpu.matmul %940, %926, %cst_443 {dimension_numbers = #tpu.dot_dimension_numbers<[1], [0], [0], [1], [0, 0, 1, 1], [], []>} : vector<16x16xf32>, vector<16x8xf32>, vector<16x8xf32> -> vector<16x8xf32>
    %942 = tpu.concatenate %887, %905, %923, %941 in 1 : vector<16x8xf32>, vector<16x8xf32>, vector<16x8xf32>, vector<16x8xf32> -> vector<16x32xf32>
    %cst_444 = arith.constant dense<0.000000e+00> : vector<16x32xf32>
    %943 = tpu.matmul %942, %836, %cst_444 {dimension_numbers = #tpu.dot_dimension_numbers<[1], [0], [0], [1], [0, 0, 1, 1], [], []>} : vector<16x32xf32>, vector<32x32xf32>, vector<16x32xf32> -> vector<16x32xf32>
    %944 = vector.broadcast %848 : vector<1x32xf32> to vector<16x32xf32>
    %945 = arith.addf %943, %944 : vector<16x32xf32>
    %946 = arith.addf %945, %830 : vector<16x32xf32>
    %cst_445 = arith.constant dense<0.000000e+00> : vector<16xf32>
    %947 = vector.multi_reduction <add>, %946, %cst_445 [1] : vector<16x32xf32> to vector<16xf32>
    %948 = vector.shape_cast %947 : vector<16xf32> to vector<16x1xf32>
    %cst_446 = arith.constant 3.200000e+01 : f32
    %949 = vector.broadcast %cst_446 : f32 to vector<16x1xf32>
    %950 = arith.divf %948, %949 : vector<16x1xf32>
    %951 = vector.broadcast %950 : vector<16x1xf32> to vector<16x32xf32>
    %952 = arith.subf %946, %951 : vector<16x32xf32>
    %953 = arith.mulf %952, %952 : vector<16x32xf32>
    %cst_447 = arith.constant dense<0.000000e+00> : vector<16xf32>
    %954 = vector.multi_reduction <add>, %953, %cst_447 [1] : vector<16x32xf32> to vector<16xf32>
    %955 = vector.shape_cast %954 : vector<16xf32> to vector<16x1xf32>
    %cst_448 = arith.constant 3.200000e+01 : f32
    %956 = vector.broadcast %cst_448 : f32 to vector<16x1xf32>
    %957 = arith.divf %955, %956 : vector<16x1xf32>
    %958 = vector.broadcast %950 : vector<16x1xf32> to vector<16x32xf32>
    %959 = arith.subf %946, %958 : vector<16x32xf32>
    %cst_449 = arith.constant 9.99999974E-6 : f32
    %960 = vector.broadcast %cst_449 : f32 to vector<16x1xf32>
    %961 = arith.addf %957, %960 : vector<16x1xf32>
    %962 = math.rsqrt %961 : vector<16x1xf32>
    %963 = vector.broadcast %962 : vector<16x1xf32> to vector<16x32xf32>
    %964 = arith.mulf %959, %963 : vector<16x32xf32>
    %965 = vector.broadcast %856 : vector<1x32xf32> to vector<16x32xf32>
    %966 = arith.mulf %964, %965 : vector<16x32xf32>
    %967 = vector.broadcast %858 : vector<1x32xf32> to vector<16x32xf32>
    %968 = arith.addf %966, %967 : vector<16x32xf32>
    %cst_450 = arith.constant dense<0.000000e+00> : vector<16x32xf32>
    %969 = tpu.matmul %968, %834, %cst_450 {dimension_numbers = #tpu.dot_dimension_numbers<[1], [0], [0], [1], [0, 0, 1, 1], [], []>} : vector<16x32xf32>, vector<32x32xf32>, vector<16x32xf32> -> vector<16x32xf32>
    %970 = vector.broadcast %846 : vector<1x32xf32> to vector<16x32xf32>
    %971 = arith.addf %969, %970 : vector<16x32xf32>
    %972 = vector.extract_strided_slice %971 {offsets = [0, 0], sizes = [16, 8], strides = [1, 1]} : vector<16x32xf32> to vector<16x8xf32>
    %973 = vector.extract_strided_slice %17 {offsets = [0, 192], sizes = [16, 8], strides = [1, 1]} : vector<16x256xf32> to vector<16x8xf32>
    %974 = vector.extract_strided_slice %17 {offsets = [0, 224], sizes = [16, 8], strides = [1, 1]} : vector<16x256xf32> to vector<16x8xf32>
    %cst_451 = arith.constant dense<0.000000e+00> : vector<16x16xf32>
    %975 = tpu.matmul %972, %973, %cst_451 {dimension_numbers = #tpu.dot_dimension_numbers<[1], [1], [0], [0], [0, 0, 1, 0], [], []>} : vector<16x8xf32>, vector<16x8xf32>, vector<16x16xf32> -> vector<16x16xf32>
    %cst_452 = arith.constant 0.353553385 : f32
    %976 = vector.broadcast %cst_452 : f32 to vector<16x16xf32>
    %977 = arith.mulf %975, %976 : vector<16x16xf32>
    %978 = arith.addf %977, %12 : vector<16x16xf32>
    %cst_453 = arith.constant dense<0xFF800000> : vector<16xf32>
    %979 = vector.multi_reduction <maximumf>, %978, %cst_453 [1] : vector<16x16xf32> to vector<16xf32>
    %980 = vector.shape_cast %979 : vector<16xf32> to vector<16x1xf32>
    %981 = vector.broadcast %980 : vector<16x1xf32> to vector<16x16xf32>
    %982 = arith.subf %978, %981 : vector<16x16xf32>
    %983 = math.exp %982 : vector<16x16xf32>
    %cst_454 = arith.constant dense<0.000000e+00> : vector<16xf32>
    %984 = vector.multi_reduction <add>, %983, %cst_454 [1] : vector<16x16xf32> to vector<16xf32>
    %985 = vector.shape_cast %984 : vector<16xf32> to vector<16x1xf32>
    %986 = tpu.reciprocal %985 {approx = true} : vector<16x1xf32> -> vector<16x1xf32>
    %987 = vector.broadcast %986 : vector<16x1xf32> to vector<16x16xf32>
    %988 = arith.mulf %983, %987 : vector<16x16xf32>
    %cst_455 = arith.constant dense<0.000000e+00> : vector<16x8xf32>
    %989 = tpu.matmul %988, %974, %cst_455 {dimension_numbers = #tpu.dot_dimension_numbers<[1], [0], [0], [1], [0, 0, 1, 1], [], []>} : vector<16x16xf32>, vector<16x8xf32>, vector<16x8xf32> -> vector<16x8xf32>
    %990 = vector.extract_strided_slice %971 {offsets = [0, 8], sizes = [16, 8], strides = [1, 1]} : vector<16x32xf32> to vector<16x8xf32>
    %991 = vector.extract_strided_slice %17 {offsets = [0, 200], sizes = [16, 8], strides = [1, 1]} : vector<16x256xf32> to vector<16x8xf32>
    %992 = vector.extract_strided_slice %17 {offsets = [0, 232], sizes = [16, 8], strides = [1, 1]} : vector<16x256xf32> to vector<16x8xf32>
    %cst_456 = arith.constant dense<0.000000e+00> : vector<16x16xf32>
    %993 = tpu.matmul %990, %991, %cst_456 {dimension_numbers = #tpu.dot_dimension_numbers<[1], [1], [0], [0], [0, 0, 1, 0], [], []>} : vector<16x8xf32>, vector<16x8xf32>, vector<16x16xf32> -> vector<16x16xf32>
    %cst_457 = arith.constant 0.353553385 : f32
    %994 = vector.broadcast %cst_457 : f32 to vector<16x16xf32>
    %995 = arith.mulf %993, %994 : vector<16x16xf32>
    %996 = arith.addf %995, %12 : vector<16x16xf32>
    %cst_458 = arith.constant dense<0xFF800000> : vector<16xf32>
    %997 = vector.multi_reduction <maximumf>, %996, %cst_458 [1] : vector<16x16xf32> to vector<16xf32>
    %998 = vector.shape_cast %997 : vector<16xf32> to vector<16x1xf32>
    %999 = vector.broadcast %998 : vector<16x1xf32> to vector<16x16xf32>
    %1000 = arith.subf %996, %999 : vector<16x16xf32>
    %1001 = math.exp %1000 : vector<16x16xf32>
    %cst_459 = arith.constant dense<0.000000e+00> : vector<16xf32>
    %1002 = vector.multi_reduction <add>, %1001, %cst_459 [1] : vector<16x16xf32> to vector<16xf32>
    %1003 = vector.shape_cast %1002 : vector<16xf32> to vector<16x1xf32>
    %1004 = tpu.reciprocal %1003 {approx = true} : vector<16x1xf32> -> vector<16x1xf32>
    %1005 = vector.broadcast %1004 : vector<16x1xf32> to vector<16x16xf32>
    %1006 = arith.mulf %1001, %1005 : vector<16x16xf32>
    %cst_460 = arith.constant dense<0.000000e+00> : vector<16x8xf32>
    %1007 = tpu.matmul %1006, %992, %cst_460 {dimension_numbers = #tpu.dot_dimension_numbers<[1], [0], [0], [1], [0, 0, 1, 1], [], []>} : vector<16x16xf32>, vector<16x8xf32>, vector<16x8xf32> -> vector<16x8xf32>
    %1008 = vector.extract_strided_slice %971 {offsets = [0, 16], sizes = [16, 8], strides = [1, 1]} : vector<16x32xf32> to vector<16x8xf32>
    %1009 = vector.extract_strided_slice %17 {offsets = [0, 208], sizes = [16, 8], strides = [1, 1]} : vector<16x256xf32> to vector<16x8xf32>
    %1010 = vector.extract_strided_slice %17 {offsets = [0, 240], sizes = [16, 8], strides = [1, 1]} : vector<16x256xf32> to vector<16x8xf32>
    %cst_461 = arith.constant dense<0.000000e+00> : vector<16x16xf32>
    %1011 = tpu.matmul %1008, %1009, %cst_461 {dimension_numbers = #tpu.dot_dimension_numbers<[1], [1], [0], [0], [0, 0, 1, 0], [], []>} : vector<16x8xf32>, vector<16x8xf32>, vector<16x16xf32> -> vector<16x16xf32>
    %cst_462 = arith.constant 0.353553385 : f32
    %1012 = vector.broadcast %cst_462 : f32 to vector<16x16xf32>
    %1013 = arith.mulf %1011, %1012 : vector<16x16xf32>
    %1014 = arith.addf %1013, %12 : vector<16x16xf32>
    %cst_463 = arith.constant dense<0xFF800000> : vector<16xf32>
    %1015 = vector.multi_reduction <maximumf>, %1014, %cst_463 [1] : vector<16x16xf32> to vector<16xf32>
    %1016 = vector.shape_cast %1015 : vector<16xf32> to vector<16x1xf32>
    %1017 = vector.broadcast %1016 : vector<16x1xf32> to vector<16x16xf32>
    %1018 = arith.subf %1014, %1017 : vector<16x16xf32>
    %1019 = math.exp %1018 : vector<16x16xf32>
    %cst_464 = arith.constant dense<0.000000e+00> : vector<16xf32>
    %1020 = vector.multi_reduction <add>, %1019, %cst_464 [1] : vector<16x16xf32> to vector<16xf32>
    %1021 = vector.shape_cast %1020 : vector<16xf32> to vector<16x1xf32>
    %1022 = tpu.reciprocal %1021 {approx = true} : vector<16x1xf32> -> vector<16x1xf32>
    %1023 = vector.broadcast %1022 : vector<16x1xf32> to vector<16x16xf32>
    %1024 = arith.mulf %1019, %1023 : vector<16x16xf32>
    %cst_465 = arith.constant dense<0.000000e+00> : vector<16x8xf32>
    %1025 = tpu.matmul %1024, %1010, %cst_465 {dimension_numbers = #tpu.dot_dimension_numbers<[1], [0], [0], [1], [0, 0, 1, 1], [], []>} : vector<16x16xf32>, vector<16x8xf32>, vector<16x8xf32> -> vector<16x8xf32>
    %1026 = vector.extract_strided_slice %971 {offsets = [0, 24], sizes = [16, 8], strides = [1, 1]} : vector<16x32xf32> to vector<16x8xf32>
    %1027 = vector.extract_strided_slice %17 {offsets = [0, 216], sizes = [16, 8], strides = [1, 1]} : vector<16x256xf32> to vector<16x8xf32>
    %1028 = vector.extract_strided_slice %17 {offsets = [0, 248], sizes = [16, 8], strides = [1, 1]} : vector<16x256xf32> to vector<16x8xf32>
    %cst_466 = arith.constant dense<0.000000e+00> : vector<16x16xf32>
    %1029 = tpu.matmul %1026, %1027, %cst_466 {dimension_numbers = #tpu.dot_dimension_numbers<[1], [1], [0], [0], [0, 0, 1, 0], [], []>} : vector<16x8xf32>, vector<16x8xf32>, vector<16x16xf32> -> vector<16x16xf32>
    %cst_467 = arith.constant 0.353553385 : f32
    %1030 = vector.broadcast %cst_467 : f32 to vector<16x16xf32>
    %1031 = arith.mulf %1029, %1030 : vector<16x16xf32>
    %1032 = arith.addf %1031, %12 : vector<16x16xf32>
    %cst_468 = arith.constant dense<0xFF800000> : vector<16xf32>
    %1033 = vector.multi_reduction <maximumf>, %1032, %cst_468 [1] : vector<16x16xf32> to vector<16xf32>
    %1034 = vector.shape_cast %1033 : vector<16xf32> to vector<16x1xf32>
    %1035 = vector.broadcast %1034 : vector<16x1xf32> to vector<16x16xf32>
    %1036 = arith.subf %1032, %1035 : vector<16x16xf32>
    %1037 = math.exp %1036 : vector<16x16xf32>
    %cst_469 = arith.constant dense<0.000000e+00> : vector<16xf32>
    %1038 = vector.multi_reduction <add>, %1037, %cst_469 [1] : vector<16x16xf32> to vector<16xf32>
    %1039 = vector.shape_cast %1038 : vector<16xf32> to vector<16x1xf32>
    %1040 = tpu.reciprocal %1039 {approx = true} : vector<16x1xf32> -> vector<16x1xf32>
    %1041 = vector.broadcast %1040 : vector<16x1xf32> to vector<16x16xf32>
    %1042 = arith.mulf %1037, %1041 : vector<16x16xf32>
    %cst_470 = arith.constant dense<0.000000e+00> : vector<16x8xf32>
    %1043 = tpu.matmul %1042, %1028, %cst_470 {dimension_numbers = #tpu.dot_dimension_numbers<[1], [0], [0], [1], [0, 0, 1, 1], [], []>} : vector<16x16xf32>, vector<16x8xf32>, vector<16x8xf32> -> vector<16x8xf32>
    %1044 = tpu.concatenate %989, %1007, %1025, %1043 in 1 : vector<16x8xf32>, vector<16x8xf32>, vector<16x8xf32>, vector<16x8xf32> -> vector<16x32xf32>
    %cst_471 = arith.constant dense<0.000000e+00> : vector<16x32xf32>
    %1045 = tpu.matmul %1044, %838, %cst_471 {dimension_numbers = #tpu.dot_dimension_numbers<[1], [0], [0], [1], [0, 0, 1, 1], [], []>} : vector<16x32xf32>, vector<32x32xf32>, vector<16x32xf32> -> vector<16x32xf32>
    %1046 = vector.broadcast %850 : vector<1x32xf32> to vector<16x32xf32>
    %1047 = arith.addf %1045, %1046 : vector<16x32xf32>
    %1048 = arith.addf %1047, %968 : vector<16x32xf32>
    %cst_472 = arith.constant dense<0.000000e+00> : vector<16xf32>
    %1049 = vector.multi_reduction <add>, %1048, %cst_472 [1] : vector<16x32xf32> to vector<16xf32>
    %1050 = vector.shape_cast %1049 : vector<16xf32> to vector<16x1xf32>
    %cst_473 = arith.constant 3.200000e+01 : f32
    %1051 = vector.broadcast %cst_473 : f32 to vector<16x1xf32>
    %1052 = arith.divf %1050, %1051 : vector<16x1xf32>
    %1053 = vector.broadcast %1052 : vector<16x1xf32> to vector<16x32xf32>
    %1054 = arith.subf %1048, %1053 : vector<16x32xf32>
    %1055 = arith.mulf %1054, %1054 : vector<16x32xf32>
    %cst_474 = arith.constant dense<0.000000e+00> : vector<16xf32>
    %1056 = vector.multi_reduction <add>, %1055, %cst_474 [1] : vector<16x32xf32> to vector<16xf32>
    %1057 = vector.shape_cast %1056 : vector<16xf32> to vector<16x1xf32>
    %cst_475 = arith.constant 3.200000e+01 : f32
    %1058 = vector.broadcast %cst_475 : f32 to vector<16x1xf32>
    %1059 = arith.divf %1057, %1058 : vector<16x1xf32>
    %1060 = vector.broadcast %1052 : vector<16x1xf32> to vector<16x32xf32>
    %1061 = arith.subf %1048, %1060 : vector<16x32xf32>
    %cst_476 = arith.constant 9.99999974E-6 : f32
    %1062 = vector.broadcast %cst_476 : f32 to vector<16x1xf32>
    %1063 = arith.addf %1059, %1062 : vector<16x1xf32>
    %1064 = math.rsqrt %1063 : vector<16x1xf32>
    %1065 = vector.broadcast %1064 : vector<16x1xf32> to vector<16x32xf32>
    %1066 = arith.mulf %1061, %1065 : vector<16x32xf32>
    %1067 = vector.broadcast %860 : vector<1x32xf32> to vector<16x32xf32>
    %1068 = arith.mulf %1066, %1067 : vector<16x32xf32>
    %1069 = vector.broadcast %862 : vector<1x32xf32> to vector<16x32xf32>
    %1070 = arith.addf %1068, %1069 : vector<16x32xf32>
    %cst_477 = arith.constant dense<0.000000e+00> : vector<16x32xf32>
    %1071 = tpu.matmul %1070, %840, %cst_477 {dimension_numbers = #tpu.dot_dimension_numbers<[1], [0], [0], [1], [0, 0, 1, 1], [], []>} : vector<16x32xf32>, vector<32x32xf32>, vector<16x32xf32> -> vector<16x32xf32>
    %1072 = vector.broadcast %852 : vector<1x32xf32> to vector<16x32xf32>
    %1073 = arith.addf %1071, %1072 : vector<16x32xf32>
    %cst_478 = arith.constant 0.000000e+00 : f32
    %1074 = vector.broadcast %cst_478 : f32 to vector<16x32xf32>
    %1075 = arith.maximumf %1073, %1074 : vector<16x32xf32>
    %cst_479 = arith.constant dense<0.000000e+00> : vector<16x32xf32>
    %1076 = tpu.matmul %1075, %842, %cst_479 {dimension_numbers = #tpu.dot_dimension_numbers<[1], [0], [0], [1], [0, 0, 1, 1], [], []>} : vector<16x32xf32>, vector<32x32xf32>, vector<16x32xf32> -> vector<16x32xf32>
    %1077 = vector.broadcast %854 : vector<1x32xf32> to vector<16x32xf32>
    %1078 = arith.addf %1076, %1077 : vector<16x32xf32>
    %1079 = arith.addf %1078, %1070 : vector<16x32xf32>
    %cst_480 = arith.constant dense<0.000000e+00> : vector<16xf32>
    %1080 = vector.multi_reduction <add>, %1079, %cst_480 [1] : vector<16x32xf32> to vector<16xf32>
    %1081 = vector.shape_cast %1080 : vector<16xf32> to vector<16x1xf32>
    %cst_481 = arith.constant 3.200000e+01 : f32
    %1082 = vector.broadcast %cst_481 : f32 to vector<16x1xf32>
    %1083 = arith.divf %1081, %1082 : vector<16x1xf32>
    %1084 = vector.broadcast %1083 : vector<16x1xf32> to vector<16x32xf32>
    %1085 = arith.subf %1079, %1084 : vector<16x32xf32>
    %1086 = arith.mulf %1085, %1085 : vector<16x32xf32>
    %cst_482 = arith.constant dense<0.000000e+00> : vector<16xf32>
    %1087 = vector.multi_reduction <add>, %1086, %cst_482 [1] : vector<16x32xf32> to vector<16xf32>
    %1088 = vector.shape_cast %1087 : vector<16xf32> to vector<16x1xf32>
    %cst_483 = arith.constant 3.200000e+01 : f32
    %1089 = vector.broadcast %cst_483 : f32 to vector<16x1xf32>
    %1090 = arith.divf %1088, %1089 : vector<16x1xf32>
    %1091 = vector.broadcast %1083 : vector<16x1xf32> to vector<16x32xf32>
    %1092 = arith.subf %1079, %1091 : vector<16x32xf32>
    %cst_484 = arith.constant 9.99999974E-6 : f32
    %1093 = vector.broadcast %cst_484 : f32 to vector<16x1xf32>
    %1094 = arith.addf %1090, %1093 : vector<16x1xf32>
    %1095 = math.rsqrt %1094 : vector<16x1xf32>
    %1096 = vector.broadcast %1095 : vector<16x1xf32> to vector<16x32xf32>
    %1097 = arith.mulf %1092, %1096 : vector<16x32xf32>
    %1098 = vector.broadcast %864 : vector<1x32xf32> to vector<16x32xf32>
    %1099 = arith.mulf %1097, %1098 : vector<16x32xf32>
    %1100 = vector.broadcast %866 : vector<1x32xf32> to vector<16x32xf32>
    %1101 = arith.addf %1099, %1100 : vector<16x32xf32>
    %c0_485 = arith.constant 0 : index
    %c0_486 = arith.constant 0 : index
    %1102 = vector.load %arg12[%c0_485, %c0_486] : memref<16x32xf32, #tpu.memory_space<vmem>>, vector<16x32xf32>
    tpu.vector_store %arg12[%c0_485, %c0_486], %1101 {strides = array<i32>} : memref<16x32xf32, #tpu.memory_space<vmem>>, vector<16x32xf32>,
    return
  }
}

</mosaic_0001>

<bundles_post_ra>
// kernel: decoder_forward.1
= control target key start
LH: loop header
LB: loop body
LE: loop exit
PB: predicated region body
PF: predicated region fallthrough
CT: control target
= control target key end

     0   :  { %17 = vsyncpa [#allocation3], 0  ;;  %s14071_s0 = inlined_call_operand.vmem [shape: s32[16,1], index: 0, kind: input, shape index: {}]   ;;  %s14072_s1 = inlined_call_operand.vmem [shape: f32[64,32], index: 1, kind: input, shape index: {}]   ;;  %s14073_s2 = inlined_call_operand.vmem [shape: f32[16,32], index: 2, kind: input, shape index: {}]   ;;  %s14074_s3 = inlined_call_operand.vmem [shape: f32[16,32], index: 3, kind: input, shape index: {}]   ;;  %s14075_s4 = inlined_call_operand.vmem [shape: f32[16,16], index: 4, kind: input, shape index: {}]   ;;  %s14076_s5 = inlined_call_operand.vmem [shape: f32[16,16], index: 5, kind: input, shape index: {}]   ;;  %s14077_s6 = inlined_call_operand.vmem [shape: f32[4,32,96], index: 6, kind: input, shape index: {}]   ;;  %s14078_s7 = inlined_call_operand.vmem [shape: f32[4,32,32], index: 7, kind: input, shape index: {}]   ;;  %s14079_s8 = inlined_call_operand.vmem [shape: f32[32,256], index: 8, kind: input, shape index: {}]   ;;  %s14080_s9 = inlined_call_operand.vmem [shape: f32[1,256], index: 9, kind: input, shape index: {}]   ;;  %s14081_s10 = inlined_call_operand.hbm [shape: f32[4,4,32,32], index: 10, kind: input, shape index: {}]   ;;  %s14082_s11 = inlined_call_operand.vmem [shape: f32[4,12,96], index: 11, kind: input, shape index: {}]   ;;  %s14083_s12 = inlined_call_operand.hbm [shape: f32[16,32], index: 12, kind: output, shape index: {}]  }
   0x1   :  { %18 = vsyncpa [#allocation4], 0  ;;  %s12467_s21 = smov [#allocation2]   ;;  %s12419_s25 = scalar_lea.hbm %s14081_s10, 8192 }
   0x2   :  { %s44_s22 = sshll.u32 %s12467_s21, 4  ;;  %p12420_p0 = scmp.ne.s32.totalorder %s14081_s10, %s12419_s25  ;;  %s45_s22 = int_to_ptr.vmem [resolvable:$true] %s44_s22 }
   0x3   :  { %p12423_p1 = scmp.lt.u32.totalorder %s12419_s25, %s14081_s10 }
   0x5   :  { %p12425_p2 = pnand %p12423_p1, %p12420_p0 }
   0x7   :  { %12428 = shalt.err (!%p12425_p2)
}
   0x8   :  { %s12429_s30 = scalar_lea.vmem %s45_s22, 8192  ;;  %p12434_p4 = scmp.lt.s32.totalorder %s45_s22, %s45_s22 }
   0x9   :  { %p12430_p3 = scmp.ne.s32.totalorder %s45_s22, %s12429_s30  ;;  %p12435_p5 = scmp.lt.s32.totalorder %s12429_s30, %s12429_s30 }
   0xb   :  { %p12436_p6 = por %p12435_p5, %p12434_p4 }
   0xd   :  { %p12437_p7 = pnand %p12436_p6, %p12430_p3 }
   0xf   :  { %12440 = shalt.err (!%p12437_p7)
}
  0x10   :  { %s12468_s13 = smov 128   ;;  %s12469_s14 = smov 8  }
  0x11   :  { %50 = dma.hbm_to_vmem [thread:$0]  %s14081_s10, 8192, %s45_s22, [#allocation3], %s12468_s13, %s12468_s13, %s12469_s14  }
  0x12   :  { %12463 = dma.done.wait [#allocation3], 8192  }
  0x13   :  { %12464 = vsyncadd [#allocation3], 4294959104  ;;  %v12470_v0 = vmov 0   ;;  %v56_v1 = vld [vmem:[%s14071_s0] sm:$0xff]  ;;  %v73_v3 = vld [vmem:[%s14072_s1 + $0x8] sm:$0xff]  ;;  %v12471_v9 = vmov 0.0   ;;  %v58_v33 = vlaneseq }
  0x14   :  { %11792 = vset.pattern.permute.xlu0 %v12470_v0  ;;  %v72_v2 = vld [vmem:[%s14072_s1] sm:$0xff]  ;;  %v74_v4 = vld [vmem:[%s14072_s1 + $0x10] sm:$0xff]  ;;  %v75_v5 = vld [vmem:[%s14072_s1 + $0x18] sm:$0xff]  ;;  %261 = vmatprep.mubr.f32.mxu1 %v12471_v9  ;;  %vm190_vm0 = vcmask 261120   ;;  %vm82_vm1 = vcmask 523264   ;;  %vm404_vm4 = vcmask 64512  }
  0x15   :  { %61 = vperm.xlu0 %11792, %v56_v1   ;;  %v57_v6 = vld [vmem:[%s14071_s0 + $0x8] sm:$0xff]  ;;  %v11236_v7 = vpack.c.bf16 %v73_v3, %v72_v2  ;;  %v11240_v8 = vpack.c.bf16 %v75_v5, %v74_v4  ;;  %v76_v10 = vld [vmem:[%s14072_s1 + $0x20] sm:$0xff]  ;;  %v78_v13 = vld [vmem:[%s14072_s1 + $0x30] sm:$0xff]  ;;  %v59_v34 = vand.u32 127, %v58_v33  ;;  %v181_v42 = vshrl.u32 %v58_v33, 7  ;;  %s12472_s30 = smov 96  }
  0x16   :  { %v77_v11 = vld [vmem:[%s14072_s1 + $0x28] sm:$0xff]  ;;  %v79_v14 = vld [vmem:[%s14072_s1 + $0x38] sm:$0xff]  ;;  %v170_v17 = vld [vmem:[%s14079_s8] sm:$0xff]  ;;  %vm492_vm6 = vcmask 130048   ;;  %s12473_s18 = smov 88   ;;  %s12474_s19 = smov 120  }
  0x17   :  { %11237 = vmatprep.subr.bf16.mxu0 %v11236_v7  ;;  %v11244_v12 = vpack.c.bf16 %v77_v11, %v76_v10  ;;  %v171_v15 = vld [vmem:[%s14079_s8 + $0x8] sm:$0xff]  ;;  %v173_v16 = vld [vmem:[%s14079_s8 + $0x18] sm:$0xff]  ;;  %v172_v19 = vld [vmem:[%s14079_s8 + $0x10] sm:$0xff]  ;;  %v11248_v26 = vpack.c.bf16 %v79_v14, %v78_v13  ;;  %v186_v44 = vsub.s32 1, %v181_v42  ;;  %v182_v58 = vsub.s32 0, %v181_v42  ;;  %s12475_s20 = smov 64  }
  0x18   :  { %11239 = vmatpush3.bf16.msra.mxu0 %v11236_v7  ;;  %v11252_v18 = vpack.c.bf16 %v173_v16, %v171_v15  ;;  %v175_v20 = vld [vmem:[%s14079_s8 + $0x28] sm:$0xff]  ;;  %v177_v21 = vld [vmem:[%s14079_s8 + $0x38] sm:$0xff]  ;;  %v11254_v22 = vpack.c.bf16 %v172_v19, %v170_v17  ;;  %v174_v24 = vld [vmem:[%s14079_s8 + $0x20] sm:$0xff]  ;;  %s12477_s21 = smov 112   ;;  %s12478_s23 = smov 56   ;;  %vm1242_vm7 = vcmask 195584  }
  0x19   :  { %64 = vperm.xlu0 %11792, %v57_v6   ;;  %11241 = vmatprep.subr.bf16.mxu0 %v11240_v8  ;;  %v11256_v23 = vpack.c.bf16 %v177_v21, %v175_v20  ;;  %v176_v25 = vld [vmem:[%s14079_s8 + $0x30] sm:$0xff]  ;;  %v274_v27 = vld [vmem:[%s14077_s6] sm:$0xff]  ;;  %v275_v28 = vld [vmem:[%s14077_s6 + $0x8] sm:$0xff]  ;;  %s12476_s8 = smov 80   ;;  %s12479_s24 = smov 48  }
  0x1a   :  { %11253 = vmatprep.subr.bf16.mxu1 %v11252_v18  ;;  %v11258_v29 = vpack.c.bf16 %v176_v25, %v174_v24  ;;  %v11260_v30 = vpack.c.bf16 %v275_v28, %v274_v27  ;;  %v164_v31 = vld [vmem:[%s14074_s3] sm:$0xff]  ;;  %v165_v32 = vld [vmem:[%s14074_s3 + $0x8] sm:$0xff]  ;;  %v276_v39 = vld [vmem:[%s14077_s6 + $0x10] sm:$0xff]  ;;  %s12480_s25 = smov 104   ;;  %s12481_s10 = smov 72  }
  0x1b   :  { %11255 = vmatpush1.bf16.msra.mxu1 %v11254_v22  ;;  %v277_v40 = vld [vmem:[%s14077_s6 + $0x18] sm:$0xff]  ;;  %v178_v43 = vld [vmem:[%s14080_s9] sm:$0x3]  ;;  %v81_v53 = vld [vmem:[%s14073_s2 + $0x8] sm:$0xff]  ;;  %s12482_s3 = smov 40   ;;  %s12483_s22 = smov 16  }
  0x1c   :  { %11243 = vmatpush3.bf16.msra.mxu0 %v11240_v8  ;;  %11257 = vmatprep.subr.bf16.mxu1 %v11256_v23  ;;  %v11264_v41 = vpack.c.bf16 %v277_v40, %v276_v39  ;;  %v187_v45 = vrot.slane %v178_v43, %v186_v44  ;;  %v80_v52 = vld [vmem:[%s14073_s2] sm:$0xff]  ;;  %v183_v59 = vrot.slane %v178_v43, %v182_v58  ;;  %vm12683_vm5 = vmpackc.low %vm404_vm4, %vm404_vm4  ;;  %v12696_v14 = vld [vmem:[%s14075_s4 + $0x8] sm:$0xff]  ;;  %s12484_s26 = smov 24   ;;  %s12485_s17 = smov 32  }
  0x1d   :  { %11245 = vmatprep.subr.bf16.mxu0 %v11244_v12  ;;  %v9747_v2 = vld [vmem:[%s14082_s11] ss:$0 sm:$0xff] }
  0x1e   :  { %v12701_v17 = vld [vmem:[%s14075_s4] sm:$0xff] }
  0x1f   :  { %11259 = vmatpush1.bf16.msra.mxu1 %v11258_v29 }
  0x20   :  { %11247 = vmatpush3.bf16.msra.mxu0 %v11244_v12  ;;  %11261 = vmatprep.subr.bf16.mxu1 %v11260_v30 }
  0x21   :  { %11249 = vmatprep.subr.bf16.mxu0 %v11248_v26 }
  0x22   :  { %9745 = vmatmul.mubr.msk.f32.vlgmr.msra.gmra.mrb[0].mxu1 %vm190_vm0, %v164_v31 }
  0x23   :  { %267 = vmatprep.mubr.f32.mxu1 %v12471_v9  ;;  %11263 = vmatpush3.bf16.msra.mxu1 %v11260_v30 }
  0x24   :  { %11251 = vmatpush3.bf16.msra.mxu0 %v11248_v26  ;;  %11265 = vmatprep.subr.bf16.mxu1 %v11264_v41 }
  0x26   :  { %9746 = vmatmul.mubr.msk.f32.gmra.mrb[2].mxu1 %vm190_vm0, %v165_v32 }
  0x27   :  { %11267 = vmatpush3.bf16.msra.mxu1 %v11264_v41 }
  0x94   :  { %v62_v35 = vpop.permute.xlu0 %61 }
  0x95   :  { %vm66_vm2 = vcmp.eq.s32.totalorder %v59_v34, %v62_v35 }
  0x96   :  { %v9741_v36 = vsel %vm66_vm2, 1.0, %v12471_v9 }
  0x97   :  { %10521 = vmatprep.mubr.msk.f32.mxu0 %vm82_vm1, %v9741_v36 }
  0x98   :  { %v65_v37 = vpop.permute.xlu0 %64 }
  0x99   :  { %vm67_vm3 = vcmp.eq.s32.totalorder %v59_v34, %v65_v37 }
  0x9a   :  { %v9742_v38 = vsel %vm67_vm3, 1.0, %v12471_v9 }
  0x9b   :  { %10522 = vmatmul.mubr.msk.f32.vlgmr.msra.gmra.mrb[0].mxu0 %vm82_vm1, %v9742_v38 }
  0xf5   :  { %v263_v46 = vpop.f32.mrb[0].mxu1 }
  0xf6   :  { %v265_v47 = vpop.f32.mrb[1].mxu1  ;;  %v264_v60 = vadd.f32 %v263_v46, %v183_v59 }
  0xf7   :  { %v266_v48 = vadd.f32 %v265_v47, %v187_v45 }
  0xf9   :  { %v269_v49 = vpop.f32.mrb[2].mxu1 }
  0xfa   :  { %v271_v50 = vpop.f32.mrb[3].mxu1  ;;  %v270_v61 = vadd.f32 %v269_v49, %v183_v59 }
  0xfb   :  { %v272_v51 = vadd.f32 %v271_v50, %v187_v45 }
  0xfc   :  { %v12658_v62 = vpack.c.bf16 %v270_v61, %v264_v60  ;;  %v12660_v63 = vpack.i.bf16 %v270_v61, %v264_v60 }
  0xfd   :  { %v12662_v0 = vpack.c.bf16 %v272_v51, %v266_v48  ;;  %v12664_v1 = vpack.i.bf16 %v272_v51, %v266_v48 }
 0x16e   :  { %v10523_v54 = vpop.f32.mrb[0].mxu0 }
 0x16f   :  { %v155_v55 = vpop.f32.mrb[1].mxu0  ;;  %v12652_v57 = vadd.f32 %v10523_v54, %v81_v53 }
 0x170   :  { %v12650_v56 = vadd.f32 %v155_v55, %v80_v52 }
 0x172   :  { %10532 = vmatprep.mubr.msk.f32.mxu1 %vm190_vm0, %v12650_v56 }
 0x173   :  { %10533 = vmatmul.mubr.msk.f32.vlgmr.msra.gmra.mrb[4].mxu1 %vm190_vm0, %v12652_v57 }
 0x246   :  { %v10534_v3 = vpop.f32.mrb[4].mxu1 }
 0x247   :  { %v12669_v4 = vadd.f32 %v10534_v3, %v9747_v2  ;;  %v389_v5 = vpop.f32.mrb[5].mxu1 }
 0x248   :  { %v12671_v6 = vadd.f32 %v9747_v2, %v389_v5 }
 0x24a   :  { %10539 = vmatprep.mubr.msk.f32.mxu0 %vm404_vm4, %v12671_v6  ;;  %v12677_v7 = vpack.i.bf16 %v12669_v4, %v12671_v6 }
 0x24c   :  { %11794 = vrot.lane.b32.xlu1 %v12677_v7, %s12472_s30 }
 0x2be   :  { %v11795_v8 = vpop.permute.xlu1 %11794 }
 0x2bf   :  { %v11797_v9 = vunpack.i.h.bf16 %v11795_v8  ;;  %v11796_v10 = vunpack.i.l.bf16 %v11795_v8 }
 0x2c1   :  { %v11268_v12 = vpack.c.bf16 %v11797_v9, %v11796_v10 }
 0x2c3   :  { %11270 = vmatprep.subr.msk.bf16.mxu0 %vm12683_vm5, %v11268_v12 }
 0x2c4   :  { %11273 = vmatpush3.bf16.xpose.msk.msra.mxu0 %vm12683_vm5, %v11268_v12 }
 0x2cb   :  { %10540 = vmatmul.mubr.msk.f32.vlgmr.msra.gmra.mrb[2].mxu0 %vm404_vm4, %v12669_v4 }
 0x39e   :  { %v10541_v13 = vpop.f32.mrb[2].mxu0 }
 0x39f   :  { %v489_v15 = vmul.f32 0.35355338, %v10541_v13  ;;  %v479_v16 = vpop.f32.mrb[3].mxu0 }
 0x3a0   :  { %v488_v18 = vmul.f32 0.35355338, %v479_v16 }
 0x3a1   :  { %v491_v19 = vadd.f32 %v489_v15, %v12696_v14 }
 0x3a2   :  { %v490_v20 = vadd.f32 %v488_v18, %v12701_v17 }
 0x3a3   :  { %v496_v21 = vsel %vm492_vm6, %v491_v19, -inf }
 0x3a4   :  { %497 = vmax.xlane.f32.xlu0 %v496_v21  ;;  %v493_v22 = vsel %vm492_vm6, %v490_v20, -inf }
 0x3a5   :  { %494 = vmax.xlane.f32.xlu1 %v493_v22 }
 0x431   :  { %v498_v23 = vpop.xlane.xlu0 %497 }
 0x432   :  { %v500_v24 = vsub.f32 %v491_v19, %v498_v23  ;;  %v495_v25 = vpop.xlane.xlu1 %494 }
 0x433   :  { %v499_v26 = vsub.f32 %v490_v20, %v495_v25 }
 0x434   :  { %v503_v27 = vmul.f32 1.442695, %v500_v24 }
 0x435   :  { %v501_v28 = vmul.f32 1.442695, %v499_v26 }
 0x436   :  { %12103 = vpow2.f32 %v503_v27 }
 0x437   :  { %12105 = vpow2.f32 %v501_v28 }
 0x440   :  { %v12104_v29 = vpop.eup %12103 }
 0x441   :  { %v12106_v30 = vpop.eup %12105  ;;  %v508_v31 = vsel %vm492_vm6, %v12104_v29, 0.0 }
 0x442   :  { %509 = vadd.xlane.f32.xlu1 %v508_v31  ;;  %v505_v32 = vsel %vm492_vm6, %v12106_v30, 0.0 }
 0x443   :  { %506 = vadd.xlane.f32.xlu0 %v505_v32 }
 0x453   :  { %11804 = vrot.lane.b32.xlu1 %v12677_v7, %s12473_s18 }
 0x457   :  { %602 = vrot.lane.b32.xlu1 %v12671_v6, %s12474_s19 }
 0x459   :  { %11799 = vrot.lane.b32.xlu0 %v12677_v7, %s12475_s20 }
 0x45b   :  { %604 = vrot.lane.b32.xlu1 %v12669_v4, %s12474_s19 }
 0x45d   :  { %11809 = vrot.lane.b32.xlu0 %v12677_v7, %s12476_s8 }
 0x45f   :  { %808 = vrot.lane.b32.xlu1 %v12669_v4, %s12477_s21 }
 0x461   :  { %806 = vrot.lane.b32.xlu0 %v12671_v6, %s12477_s21 }
 0x4cf   :  { %v510_v33 = vpop.xlane.xlu1 %509 }
 0x4d0   :  { %12107 = vrcp.f32 %v510_v33  ;;  %v507_v34 = vpop.xlane.xlu0 %506 }
 0x4d1   :  { %12109 = vrcp.f32 %v507_v34 }
 0x4d3   :  { %v11805_v35 = vpop.permute.xlu1 %11804 }
 0x4d4   :  { %v11800_v36 = vpop.permute.xlu0 %11799  ;;  %v11807_v37 = vunpack.i.h.bf16 %v11805_v35  ;;  %v11806_v38 = vunpack.i.l.bf16 %v11805_v35 }
 0x4d5   :  { %v11802_v39 = vunpack.i.h.bf16 %v11800_v36  ;;  %v11801_v40 = vunpack.i.l.bf16 %v11800_v36 }
 0x4d6   :  { %v11278_v44 = vpack.c.bf16 %v11807_v37, %v11806_v38 }
 0x4d7   :  { %v11274_v41 = vpack.c.bf16 %v11802_v39, %v11801_v40  ;;  %v603_v42 = vpop.permute.xlu1 %602 }
 0x4d8   :  { %v11810_v43 = vpop.permute.xlu0 %11809 }
 0x4d9   :  { %v11812_v45 = vunpack.i.h.bf16 %v11810_v43  ;;  %v11811_v46 = vunpack.i.l.bf16 %v11810_v43  ;;  %11275 = vmatprep.subr.bf16.mxu1 %v11274_v41 }
 0x4da   :  { %v12108_v47 = vpop.eup %12107  ;;  %11277 = vmatpush3.bf16.msra.mxu1 %v11274_v41 }
 0x4db   :  { %v12110_v48 = vpop.eup %12109  ;;  %v11288_v49 = vpack.c.bf16 %v11812_v45, %v11811_v46  ;;  %11280 = vmatprep.subr.msk.bf16.mxu1 %vm12683_vm5, %v11278_v44  ;;  %v514_v52 = vmul.f32 %v12108_v47, %v12104_v29  ;;  %v605_v53 = vpop.permute.xlu1 %604 }
 0x4dc   :  { %v807_v50 = vpop.permute.xlu0 %806  ;;  %v513_v51 = vmul.f32 %v12110_v48, %v12106_v30 }
 0x4dd   :  { %11290 = vmatprep.subr.msk.bf16.mxu0 %vm12683_vm5, %v11288_v49  ;;  %10567 = vmatprep.mubr.msk.f32.mxu0 %vm404_vm4, %v807_v50 }
 0x4de   :  { %10546 = vmatprep.mubr.msk.f32.mxu1 %vm492_vm6, %v513_v51  ;;  %11293 = vmatpush3.bf16.xpose.msk.msra.mxu0 %vm12683_vm5, %v11288_v49 }
 0x4df   :  { %10547 = vmatmul.mubr.msk.f32.vlgmr.msra.gmra.mrb[6].mxu1 %vm492_vm6, %v514_v52  ;;  %v809_v54 = vpop.permute.xlu1 %808 }
 0x4e0   :  { %10553 = vmatprep.mubr.msk.f32.mxu1 %vm404_vm4, %v603_v42 }
 0x4e3   :  { %11283 = vmatpush3.bf16.xpose.msk.msra.mxu1 %vm12683_vm5, %v11278_v44 }
 0x4e5   :  { %10568 = vmatmul.mubr.msk.f32.vlgmr.msra.gmra.mrb[4].mxu0 %vm404_vm4, %v809_v54 }
 0x4ea   :  { %10554 = vmatmul.mubr.msk.f32.vlgmr.msra.gmra.mrb[8].mxu1 %vm404_vm4, %v605_v53 }
 0x5b2   :  { %v12737_v55 = vpop.f32.mrb[6].mxu1 }
 0x5b3   :  { %v12739_v58 = vpop.f32.mrb[7].mxu1 }
 0x5b8   :  { %v10569_v59 = vpop.f32.mrb[4].mxu0 }
 0x5b9   :  { %v888_v60 = vpop.f32.mrb[5].mxu0  ;;  %v898_v13 = vmul.f32 0.35355338, %v10569_v59 }
 0x5ba   :  { %v897_v5 = vmul.f32 0.35355338, %v888_v60 }
 0x5bb   :  { %v900_v19 = vadd.f32 %v898_v13, %v12696_v14 }
 0x5bc   :  { %v899_v16 = vadd.f32 %v897_v5, %v12701_v17 }
 0x5bd   :  { %v10555_v61 = vpop.f32.mrb[8].mxu1  ;;  %v904_v20 = vsel %vm492_vm6, %v900_v19, -inf }
 0x5be   :  { %v694_v2 = vmul.f32 0.35355338, %v10555_v61  ;;  %v684_v3 = vpop.f32.mrb[9].mxu1  ;;  %v901_v18 = vsel %vm492_vm6, %v899_v16, -inf }
 0x5bf   :  { %v693_v8 = vmul.f32 0.35355338, %v684_v3 }
 0x5c0   :  { %v696_v9 = vadd.f32 %v694_v2, %v12696_v14 }
 0x5c1   :  { %v695_v10 = vadd.f32 %v693_v8, %v12701_v17 }
 0x5c2   :  { %v700_v12 = vsel %vm492_vm6, %v696_v9, -inf }
 0x5c3   :  { %701 = vmax.xlane.f32.xlu1 %v700_v12  ;;  %v697_v15 = vsel %vm492_vm6, %v695_v10, -inf }
 0x5c4   :  { %698 = vmax.xlane.f32.xlu0 %v697_v15 }
 0x5c8   :  { %902 = vmax.xlane.f32.xlu0 %v901_v18 }
 0x5cc   :  { %905 = vmax.xlane.f32.xlu0 %v904_v20 }
 0x650   :  { %v702_v22 = vpop.xlane.xlu1 %701 }
 0x651   :  { %v699_v21 = vpop.xlane.xlu0 %698  ;;  %v704_v25 = vsub.f32 %v696_v9, %v702_v22 }
 0x652   :  { %v703_v37 = vsub.f32 %v695_v10, %v699_v21 }
 0x653   :  { %v707_v29 = vmul.f32 1.442695, %v704_v25 }
 0x654   :  { %v705_v38 = vmul.f32 1.442695, %v703_v37 }
 0x655   :  { %v903_v23 = vpop.xlane.xlu0 %902 }
 0x656   :  { %v907_v24 = vsub.f32 %v899_v16, %v903_v23 }
 0x658   :  { %v909_v26 = vmul.f32 1.442695, %v907_v24 }
 0x659   :  { %v906_v27 = vpop.xlane.xlu0 %905 }
 0x65a   :  { %12111 = vpow2.f32 %v909_v26  ;;  %v908_v28 = vsub.f32 %v900_v19, %v906_v27 }
 0x65c   :  { %v911_v30 = vmul.f32 1.442695, %v908_v28 }
 0x65e   :  { %12113 = vpow2.f32 %v911_v30 }
 0x65f   :  { %12115 = vpow2.f32 %v707_v29 }
 0x660   :  { %12117 = vpow2.f32 %v705_v38  ;;  %v282_v38 = vld [vmem:[#allocation2] sm:$0xff] }
 0x664   :  { %v12112_v31 = vpop.eup %12111 }
 0x665   :  { %v913_v32 = vsel %vm492_vm6, %v12112_v31, 0.0 }
 0x666   :  { %914 = vadd.xlane.f32.xlu1 %v913_v32 }
 0x668   :  { %v12114_v33 = vpop.eup %12113 }
 0x669   :  { %v916_v34 = vsel %vm492_vm6, %v12114_v33, 0.0  ;;  %v12116_v35 = vpop.eup %12115 }
 0x66a   :  { %917 = vadd.xlane.f32.xlu0 %v916_v34  ;;  %v712_v36 = vsel %vm492_vm6, %v12116_v35, 0.0  ;;  %v12118_v39 = vpop.eup %12117 }
 0x66b   :  { %v709_v40 = vsel %vm492_vm6, %v12118_v39, 0.0 }
 0x66e   :  { %713 = vadd.xlane.f32.xlu0 %v712_v36 }
 0x677   :  { %11814 = vrot.lane.b32.xlu1 %v12677_v7, %s12478_s23 }
 0x684   :  { %11819 = vrot.lane.b32.xlu0 %v12677_v7, %s12479_s24 }
 0x688   :  { %1012 = vrot.lane.b32.xlu0 %v12669_v4, %s12480_s25 }
 0x69b   :  { %710 = vadd.xlane.f32.xlu1 %v709_v40 }
 0x6ac   :  { %11824 = vrot.lane.b32.xlu1 %v12677_v7, %s12481_s10 }
 0x6b0   :  { %1010 = vrot.lane.b32.xlu1 %v12671_v6, %s12480_s25 }
 0x6f3   :  { %v915_v41 = vpop.xlane.xlu1 %914 }
 0x6f4   :  { %12119 = vrcp.f32 %v915_v41 }
 0x6f7   :  { %v11815_v42 = vpop.permute.xlu1 %11814  ;;  %v918_v43 = vpop.xlane.xlu0 %917 }
 0x6f8   :  { %v11817_v44 = vunpack.i.h.bf16 %v11815_v42  ;;  %v11816_v45 = vunpack.i.l.bf16 %v11815_v42 }
 0x6fa   :  { %v11284_v46 = vpack.c.bf16 %v11817_v44, %v11816_v45  ;;  %v285_v45 = vld [vmem:[#allocation2 + $0x18] sm:$0xff] }
 0x6fb   :  { %v714_v4 = vpop.xlane.xlu0 %713 }
 0x6fc   :  { %11285 = vmatprep.subr.bf16.mxu1 %v11284_v46  ;;  %12121 = vrcp.f32 %v714_v4 }
 0x6fd   :  { %11287 = vmatpush3.bf16.msra.mxu1 %v11284_v46 }
 0x6fe   :  { %v12120_v52 = vpop.eup %12119 }
 0x6ff   :  { %v11820_v47 = vpop.permute.xlu0 %11819  ;;  %v921_v5 = vmul.f32 %v12120_v52, %v12112_v31 }
 0x700   :  { %v11822_v48 = vunpack.i.h.bf16 %v11820_v47  ;;  %v11821_v49 = vunpack.i.l.bf16 %v11820_v47 }
 0x702   :  { %v11294_v50 = vpack.c.bf16 %v11822_v48, %v11821_v49 }
 0x703   :  { %v1013_v12 = vpop.permute.xlu0 %1012 }
 0x704   :  { %11295 = vmatprep.subr.bf16.mxu1 %v11294_v50 }
 0x706   :  { %v12122_v53 = vpop.eup %12121 }
 0x707   :  { %v718_v2 = vmul.f32 %v12122_v53, %v12116_v35 }
 0x728   :  { %v711_v51 = vpop.xlane.xlu1 %710 }
 0x729   :  { %12123 = vrcp.f32 %v711_v51 }
 0x72a   :  { %12125 = vrcp.f32 %v918_v43 }
 0x72c   :  { %v11825_v6 = vpop.permute.xlu1 %11824 }
 0x72d   :  { %v11827_v59 = vunpack.i.h.bf16 %v11825_v6  ;;  %v11826_v60 = vunpack.i.l.bf16 %v11825_v6 }
 0x72f   :  { %v11298_v8 = vpack.c.bf16 %v11827_v59, %v11826_v60 }
 0x730   :  { %v1011_v10 = vpop.permute.xlu1 %1010 }
 0x733   :  { %v12124_v54 = vpop.eup %12123 }
 0x734   :  { %v717_v61 = vmul.f32 %v12124_v54, %v12118_v39  ;;  %v12126_v3 = vpop.eup %12125  ;;  %v283_v39 = vld [vmem:[#allocation2 + $0x8] sm:$0xff] }
 0x735   :  { %v922_v9 = vmul.f32 %v12126_v3, %v12114_v33  ;;  %v11308_v43 = vpack.c.bf16 %v283_v39, %v282_v38  ;;  %v9778_v39 = vld [vmem:[%s14082_s11 + $0x7] ss:$0 sm:$0xff] }
 0x736   :  { %10560 = vmatprep.mubr.msk.f32.mxu1 %vm492_vm6, %v717_v61 }
 0x737   :  { %10561 = vmatmul.mubr.msk.f32.vlgmr.msra.gmra.mrb[10].mxu1 %vm492_vm6, %v718_v2 }
 0x738   :  { %11297 = vmatpush3.bf16.msra.mxu1 %v11294_v50  ;;  %10574 = vmatprep.mubr.msk.f32.mxu1 %vm492_vm6, %v921_v5 }
 0x739   :  { %11300 = vmatprep.subr.msk.bf16.mxu1 %vm12683_vm5, %v11298_v8 }
 0x73b   :  { %10575 = vmatmul.mubr.msk.f32.vlgmr.msra.gmra.mrb[12].mxu1 %vm492_vm6, %v922_v9 }
 0x73c   :  { %10581 = vmatprep.mubr.msk.f32.mxu1 %vm404_vm4, %v1011_v10 }
 0x741   :  { %11303 = vmatpush3.bf16.xpose.msk.msra.mxu1 %vm12683_vm5, %v11298_v8 }
 0x748   :  { %10582 = vmatmul.mubr.msk.f32.vlgmr.msra.gmra.mrb[14].mxu1 %vm404_vm4, %v1013_v12 }
 0x80a   :  { %v10562_v13 = vpop.f32.mrb[10].mxu1 }
 0x80b   :  { %v797_v15 = vpop.f32.mrb[11].mxu1 }
 0x80e   :  { %v10576_v16 = vpop.f32.mrb[12].mxu1 }
 0x80f   :  { %v1001_v18 = vpop.f32.mrb[13].mxu1 }
 0x81b   :  { %v10583_v19 = vpop.f32.mrb[14].mxu1 }
 0x81c   :  { %v1102_v20 = vmul.f32 0.35355338, %v10583_v19  ;;  %v1092_v21 = vpop.f32.mrb[15].mxu1 }
 0x81d   :  { %v1101_v22 = vmul.f32 0.35355338, %v1092_v21 }
 0x81e   :  { %v1104_v23 = vadd.f32 %v1102_v20, %v12696_v14 }
 0x81f   :  { %v1103_v24 = vadd.f32 %v1101_v22, %v12701_v17 }
 0x820   :  { %v1108_v25 = vsel %vm492_vm6, %v1104_v23, -inf }
 0x821   :  { %1109 = vmax.xlane.f32.xlu0 %v1108_v25  ;;  %v1105_v26 = vsel %vm492_vm6, %v1103_v24, -inf }
 0x822   :  { %1106 = vmax.xlane.f32.xlu1 %v1105_v26 }
 0x8ae   :  { %v1110_v27 = vpop.xlane.xlu0 %1109 }
 0x8af   :  { %v1112_v28 = vsub.f32 %v1104_v23, %v1110_v27  ;;  %v1107_v29 = vpop.xlane.xlu1 %1106  ;;  %v279_v27 = vld [vmem:[%s14078_s7 + $0x8] sm:$0xff] }
 0x8b0   :  { %v1111_v30 = vsub.f32 %v1103_v24, %v1107_v29 }
 0x8b1   :  { %v1115_v31 = vmul.f32 1.442695, %v1112_v28  ;;  %v280_v28 = vld [vmem:[%s14078_s7 + $0x10] sm:$0xff] }
 0x8b2   :  { %v1113_v32 = vmul.f32 1.442695, %v1111_v30  ;;  %v281_v30 = vld [vmem:[%s14078_s7 + $0x18] sm:$0xff] }
 0x8b3   :  { %12127 = vpow2.f32 %v1115_v31  ;;  %v11320_v31 = vpack.c.bf16 %v281_v30, %v280_v28 }
 0x8b4   :  { %12129 = vpow2.f32 %v1113_v32 }
 0x8bd   :  { %v12128_v33 = vpop.eup %12127 }
 0x8be   :  { %v12130_v34 = vpop.eup %12129  ;;  %v1120_v14 = vsel %vm492_vm6, %v12128_v33, 0.0 }
 0x8bf   :  { %1121 = vadd.xlane.f32.xlu1 %v1120_v14  ;;  %v1117_v17 = vsel %vm492_vm6, %v12130_v34, 0.0 }
 0x8c0   :  { %1118 = vadd.xlane.f32.xlu0 %v1117_v17 }
 0x8d0   :  { %1216 = vrot.lane.b32.xlu1 %v797_v15, %s12469_s14 }
 0x8d4   :  { %1218 = vrot.lane.b32.xlu1 %v10562_v13, %s12469_s14 }
 0x8d6   :  { %11829 = vrot.lane.b32.xlu0 %v12677_v7, %s12482_s3  ;;  %v284_v7 = vld [vmem:[#allocation2 + $0x10] sm:$0xff] }
 0x8d7   :  { %v11312_v48 = vpack.c.bf16 %v285_v45, %v284_v7  ;;  %v9779_v45 = vld [vmem:[%s14082_s11 + $0x1] ss:$0 sm:$0xff] }
 0x8d8   :  { %1226 = vrot.lane.b32.xlu1 %v10576_v16, %s12483_s22 }
 0x8da   :  { %1224 = vrot.lane.b32.xlu0 %v1001_v18, %s12483_s22 }
 0x94c   :  { %v1122_v35 = vpop.xlane.xlu1 %1121 }
 0x94d   :  { %12131 = vrcp.f32 %v1122_v35  ;;  %v1119_v36 = vpop.xlane.xlu0 %1118 }
 0x94e   :  { %12133 = vrcp.f32 %v1119_v36 }
 0x950   :  { %v1217_v51 = vpop.permute.xlu1 %1216 }
 0x951   :  { %v11830_v37 = vpop.permute.xlu0 %11829  ;;  %v1238_v54 = vsel %vm404_vm4, %v12739_v58, %v1217_v51 }
 0x952   :  { %v11832_v40 = vunpack.i.h.bf16 %v11830_v37  ;;  %v11831_v41 = vunpack.i.l.bf16 %v11830_v37  ;;  %v9777_v37 = vld [vmem:[%s14082_s11 + $0x6] ss:$0 sm:$0xff] }
 0x954   :  { %v11304_v42 = vpack.c.bf16 %v11832_v40, %v11831_v41  ;;  %v1219_v6 = vpop.permute.xlu1 %1218 }
 0x955   :  { %v1225_v53 = vpop.permute.xlu0 %1224  ;;  %v1239_v60 = vsel %vm404_vm4, %v12737_v55, %v1219_v6  ;;  %v9774_v55 = vld [vmem:[%s14082_s11 + $0x2] ss:$0 sm:$0xff] }
 0x956   :  { %11305 = vmatprep.subr.bf16.mxu0 %v11304_v42  ;;  %v1240_v61 = vsel %vm492_vm6, %v1238_v54, %v1225_v53 }
 0x957   :  { %v12132_v44 = vpop.eup %12131  ;;  %11307 = vmatpush3.bf16.msra.mxu0 %v11304_v42 }
 0x958   :  { %v12134_v46 = vpop.eup %12133  ;;  %11309 = vmatprep.subr.bf16.mxu0 %v11308_v43  ;;  %v1126_v47 = vmul.f32 %v12132_v44, %v12128_v33  ;;  %v1227_v52 = vpop.permute.xlu1 %1226 }
 0x959   :  { %v1125_v4 = vmul.f32 %v12134_v46, %v12130_v34  ;;  %v1241_v3 = vsel %vm492_vm6, %v1239_v60, %v1227_v52  ;;  %v12859_v52 = vld [vmem:[%s14076_s5] sm:$0xff] }
 0x95b   :  { %10588 = vmatprep.mubr.msk.f32.mxu0 %vm492_vm6, %v1125_v4 }
 0x95c   :  { %10589 = vmatmul.mubr.msk.f32.vlgmr.msra.gmra.mrb[6].mxu0 %vm492_vm6, %v1126_v47 }
 0x95d   :  { %11311 = vmatpush3.bf16.msra.mxu0 %v11308_v43 }
 0x95e   :  { %11313 = vmatprep.subr.bf16.mxu0 %v11312_v48 }
 0x961   :  { %11315 = vmatpush3.bf16.msra.mxu0 %v11312_v48 }
 0x962   :  { %11326 = vmatprep.subr.msk.bf16.mxu0 %vm12683_vm5, %v12658_v62 }
 0xa2f   :  { %v10590_v49 = vpop.f32.mrb[6].mxu0 }
 0xa30   :  { %1234 = vrot.lane.b32.xlu1 %v10590_v49, %s12484_s26  ;;  %v1205_v50 = vpop.f32.mrb[7].mxu0 }
 0xa31   :  { %1232 = vrot.lane.b32.xlu0 %v1205_v50, %s12484_s26  ;;  %v12854_v50 = vld [vmem:[%s14076_s5 + $0x8] sm:$0xff] }
 0xaa2   :  { %v1235_v59 = vpop.permute.xlu1 %1234 }
 0xaa3   :  { %v1233_v2 = vpop.permute.xlu0 %1232  ;;  %v1244_v8 = vsel %vm1242_vm7, %v1241_v3, %v1235_v59 }
 0xaa4   :  { %v1243_v5 = vsel %vm1242_vm7, %v1240_v61, %v1233_v2 }
 0xaa5   :  { %10599 = vmatprep.mubr.msk.f32.mxu0 %vm190_vm0, %v1243_v5 }
 0xaa6   :  { %10600 = vmatmul.mubr.msk.f32.vlgmr.msra.gmra.mrb[8].mxu0 %vm190_vm0, %v1244_v8 }
 0xaa7   :  { %11329 = vmatpush3.bf16.xpose.msk.msra.mxu0 %vm12683_vm5, %v12658_v62 }
 0xb79   :  { %v10601_v58 = vpop.f32.mrb[8].mxu0 }
 0xb7a   :  { %v1327_v9 = vadd.f32 %v10601_v58, %v9774_v55  ;;  %v1321_v10 = vpop.f32.mrb[9].mxu0 }
 0xb7b   :  { %v1322_v12 = vadd.f32 %v9774_v55, %v1321_v10 }
 0xb7c   :  { %v1331_v13 = vadd.f32 %v1327_v9, %v12652_v57 }
 0xb7d   :  { %v1330_v15 = vadd.f32 %v1322_v12, %v12650_v56  ;;  %v278_v56 = vld [vmem:[%s14078_s7] sm:$0xff] }
 0xb7e   :  { %v1335_v16 = vsel %vm190_vm0, %v1331_v13, 0.0  ;;  %v11316_v29 = vpack.c.bf16 %v279_v27, %v278_v56 }
 0xb7f   :  { %1336 = vadd.xlane.f32.xlu1 %v1335_v16  ;;  %v1332_v18 = vsel %vm190_vm0, %v1330_v15, 0.0 }
 0xb80   :  { %1333 = vadd.xlane.f32.xlu0 %v1332_v18  ;;  %11317 = vmatprep.subr.bf16.mxu1 %v11316_v29 }
 0xb81   :  { %11319 = vmatpush3.bf16.msra.mxu1 %v11316_v29 }
 0xb82   :  { %11321 = vmatprep.subr.bf16.mxu1 %v11320_v31 }
 0xb85   :  { %11323 = vmatpush3.bf16.msra.mxu1 %v11320_v31 }
 0xc0c   :  { %v1337_v19 = vpop.xlane.xlu1 %1336 }
 0xc0d   :  { %v1340_v62 = vmul.f32 0.03125, %v1337_v19  ;;  %v1334_v20 = vpop.xlane.xlu0 %1333 }
 0xc0e   :  { %v1339_v21 = vmul.f32 0.03125, %v1334_v20 }
 0xc0f   :  { %v1342_v22 = vsub.f32 %v1331_v13, %v1340_v62 }
 0xc10   :  { %v1341_v23 = vsub.f32 %v1330_v15, %v1339_v21 }
 0xc11   :  { %v1344_v26 = vmul.f32 %v1342_v22, %v1342_v22 }
 0xc12   :  { %v1343_v24 = vmul.f32 %v1341_v23, %v1341_v23 }
 0xc13   :  { %v1348_v57 = vsel %vm190_vm0, %v1344_v26, 0.0 }
 0xc14   :  { %v1345_v25 = vsel %vm190_vm0, %v1343_v24, 0.0 }
 0xc15   :  { %1346 = vadd.xlane.f32.xlu0 %v1345_v25 }
 0xc19   :  { %1349 = vadd.xlane.f32.xlu0 %v1348_v57 }
 0xca2   :  { %v1347_v32 = vpop.xlane.xlu0 %1346 }
 0xca3   :  { %v1351_v33 = vmul.f32 0.03125, %v1347_v32 }
 0xca5   :  { %v1353_v34 = vadd.f32 1e-05, %v1351_v33 }
 0xca6   :  { %v1350_v14 = vpop.xlane.xlu0 %1349 }
 0xca7   :  { %12135 = vrsqrt.f32 %v1353_v34  ;;  %v1352_v17 = vmul.f32 0.03125, %v1350_v14 }
 0xca9   :  { %v1354_v35 = vadd.f32 1e-05, %v1352_v17 }
 0xcab   :  { %12137 = vrsqrt.f32 %v1354_v35 }
 0xcb1   :  { %v12136_v36 = vpop.eup %12135 }
 0xcb2   :  { %v1357_v38 = vmul.f32 %v12136_v36, %v1341_v23 }
 0xcb4   :  { %v1363_v40 = vmul.f32 %v9777_v37, %v1357_v38 }
 0xcb5   :  { %v12138_v41 = vpop.eup %12137 }
 0xcb6   :  { %v1358_v42 = vmul.f32 %v12138_v41, %v1342_v22  ;;  %v12832_v43 = vadd.f32 %v9778_v39, %v1363_v40 }
 0xcb8   :  { %v1364_v44 = vmul.f32 %v9777_v37, %v1358_v42  ;;  %10610 = vmatprep.mubr.msk.f32.mxu1 %vm190_vm0, %v12832_v43 }
 0xcba   :  { %v12836_v7 = vadd.f32 %v9778_v39, %v1364_v44 }
 0xcbc   :  { %10611 = vmatmul.mubr.msk.f32.vlgmr.msra.gmra.mrb[16].mxu1 %vm190_vm0, %v12836_v7 }
 0xd8f   :  { %v10612_v46 = vpop.f32.mrb[16].mxu1 }
 0xd90   :  { %v1447_v4 = vpop.f32.mrb[17].mxu1  ;;  %v12845_v48 = vadd.f32 %v10612_v46, %v9779_v45 }
 0xd91   :  { %v12843_v47 = vadd.f32 %v9779_v45, %v1447_v4 }
 0xd93   :  { %10617 = vmatprep.mubr.msk.f32.mxu0 %vm404_vm4, %v12843_v47 }
 0xd94   :  { %10618 = vmatmul.mubr.msk.f32.vlgmr.msra.gmra.mrb[10].mxu0 %vm404_vm4, %v12845_v48 }
 0xe67   :  { %v10619_v49 = vpop.f32.mrb[10].mxu0 }
 0xe68   :  { %v1544_v51 = vmul.f32 0.35355338, %v10619_v49  ;;  %v1534_v6 = vpop.f32.mrb[11].mxu0 }
 0xe69   :  { %v1543_v53 = vmul.f32 0.35355338, %v1534_v6 }
 0xe6a   :  { %v1546_v54 = vadd.f32 %v1544_v51, %v12854_v50 }
 0xe6b   :  { %v1545_v59 = vadd.f32 %v1543_v53, %v12859_v52 }
 0xe6c   :  { %v1550_v60 = vsel %vm492_vm6, %v1546_v54, -inf }
 0xe6d   :  { %1551 = vmax.xlane.f32.xlu0 %v1550_v60  ;;  %v1547_v61 = vsel %vm492_vm6, %v1545_v59, -inf }
 0xe6e   :  { %1548 = vmax.xlane.f32.xlu1 %v1547_v61 }
 0xe7f   :  { %11834 = vrot.lane.b32.xlu1 %v12660_v63, %s12472_s30 }
 0xe83   :  { %1656 = vrot.lane.b32.xlu1 %v12843_v47, %s12474_s19 }
 0xefa   :  { %v1552_v2 = vpop.xlane.xlu0 %1551 }
 0xefb   :  { %v1554_v3 = vsub.f32 %v1546_v54, %v1552_v2  ;;  %v1549_v5 = vpop.xlane.xlu1 %1548 }
 0xefc   :  { %v1553_v8 = vsub.f32 %v1545_v59, %v1549_v5 }
 0xefd   :  { %v1557_v55 = vmul.f32 1.442695, %v1554_v3 }
 0xefe   :  { %v1555_v58 = vmul.f32 1.442695, %v1553_v8 }
 0xeff   :  { %12139 = vpow2.f32 %v1557_v55  ;;  %v11835_v9 = vpop.permute.xlu1 %11834 }
 0xf00   :  { %12141 = vpow2.f32 %v1555_v58  ;;  %v11837_v10 = vunpack.i.h.bf16 %v11835_v9  ;;  %v11836_v12 = vunpack.i.l.bf16 %v11835_v9 }
 0xf02   :  { %v11330_v13 = vpack.c.bf16 %v11837_v10, %v11836_v12 }
 0xf03   :  { %v1657_v62 = vpop.permute.xlu1 %1656 }
 0xf04   :  { %11331 = vmatprep.subr.bf16.mxu1 %v11330_v13 }
 0xf05   :  { %11333 = vmatpush3.bf16.msra.mxu1 %v11330_v13 }
 0xf09   :  { %v12140_v15 = vpop.eup %12139 }
 0xf0a   :  { %v12142_v16 = vpop.eup %12141  ;;  %v1562_v18 = vsel %vm492_vm6, %v12140_v15, 0.0 }
 0xf0b   :  { %1563 = vadd.xlane.f32.xlu0 %v1562_v18  ;;  %v1559_v19 = vsel %vm492_vm6, %v12142_v16, 0.0 }
 0xf0c   :  { %1560 = vadd.xlane.f32.xlu1 %v1559_v19 }
 0xf1d   :  { %1658 = vrot.lane.b32.xlu1 %v12845_v48, %s12474_s19 }
 0xf21   :  { %11839 = vrot.lane.b32.xlu0 %v12660_v63, %s12474_s19 }
 0xf98   :  { %v1564_v20 = vpop.xlane.xlu0 %1563 }
 0xf99   :  { %12143 = vrcp.f32 %v1564_v20  ;;  %v1561_v21 = vpop.xlane.xlu1 %1560 }
 0xf9a   :  { %12145 = vrcp.f32 %v1561_v21 }
 0xf9c   :  { %v11840_v22 = vpop.permute.xlu0 %11839 }
 0xf9d   :  { %v11842_v23 = vunpack.i.h.bf16 %v11840_v22  ;;  %v11841_v24 = vunpack.i.l.bf16 %v11840_v22  ;;  %v1659_v28 = vpop.permute.xlu1 %1658 }
 0xf9f   :  { %v11334_v25 = vpack.c.bf16 %v11842_v23, %v11841_v24 }
 0xfa1   :  { %11336 = vmatprep.subr.msk.bf16.mxu1 %vm12683_vm5, %v11334_v25 }
 0xfa3   :  { %v12144_v26 = vpop.eup %12143 }
 0xfa4   :  { %v12146_v57 = vpop.eup %12145  ;;  %v1568_v27 = vmul.f32 %v12144_v26, %v12140_v15 }
 0xfa5   :  { %v1567_v56 = vmul.f32 %v12146_v57, %v12142_v16 }
 0xfa7   :  { %10624 = vmatprep.mubr.msk.f32.mxu1 %vm492_vm6, %v1567_v56 }
 0xfa8   :  { %10625 = vmatmul.mubr.msk.f32.vlgmr.msra.gmra.mrb[18].mxu1 %vm492_vm6, %v1568_v27 }
 0xfa9   :  { %11339 = vmatpush3.bf16.xpose.msk.msra.mxu1 %vm12683_vm5, %v11334_v25  ;;  %10631 = vmatprep.mubr.msk.f32.mxu1 %vm404_vm4, %v1657_v62 }
 0xfb0   :  { %10632 = vmatmul.mubr.msk.f32.vlgmr.msra.gmra.mrb[20].mxu1 %vm404_vm4, %v1659_v28 }
0x107b   :  { %v12883_v29 = vpop.f32.mrb[18].mxu1 }
0x107c   :  { %v12885_v30 = vpop.f32.mrb[19].mxu1 }
0x1083   :  { %v10633_v31 = vpop.f32.mrb[20].mxu1 }
0x1084   :  { %v1748_v32 = vmul.f32 0.35355338, %v10633_v31  ;;  %v1738_v33 = vpop.f32.mrb[21].mxu1 }
0x1085   :  { %v1747_v34 = vmul.f32 0.35355338, %v1738_v33 }
0x1086   :  { %v1750_v14 = vadd.f32 %v1748_v32, %v12854_v50 }
0x1087   :  { %v1749_v17 = vadd.f32 %v1747_v34, %v12859_v52 }
0x1088   :  { %v1754_v35 = vsel %vm492_vm6, %v1750_v14, -inf }
0x1089   :  { %1755 = vmax.xlane.f32.xlu1 %v1754_v35  ;;  %v1751_v36 = vsel %vm492_vm6, %v1749_v17, -inf }
0x108a   :  { %1752 = vmax.xlane.f32.xlu0 %v1751_v36 }
0x109a   :  { %11844 = vrot.lane.b32.xlu1 %v12660_v63, %s12473_s18 }
0x109e   :  { %1860 = vrot.lane.b32.xlu1 %v12843_v47, %s12477_s21 }
0x10a2   :  { %1862 = vrot.lane.b32.xlu1 %v12845_v48, %s12477_s21 }
0x1116   :  { %v1756_v37 = vpop.xlane.xlu1 %1755 }
0x1117   :  { %v1758_v38 = vsub.f32 %v1750_v14, %v1756_v37  ;;  %v1753_v39 = vpop.xlane.xlu0 %1752 }
0x1118   :  { %v1757_v40 = vsub.f32 %v1749_v17, %v1753_v39 }
0x1119   :  { %v1761_v41 = vmul.f32 1.442695, %v1758_v38 }
0x111a   :  { %v1759_v42 = vmul.f32 1.442695, %v1757_v40  ;;  %v11845_v44 = vpop.permute.xlu1 %11844 }
0x111b   :  { %12147 = vpow2.f32 %v1761_v41  ;;  %v11847_v45 = vunpack.i.h.bf16 %v11845_v44  ;;  %v11846_v46 = vunpack.i.l.bf16 %v11845_v44 }
0x111c   :  { %12149 = vpow2.f32 %v1759_v42 }
0x111d   :  { %v11340_v4 = vpack.c.bf16 %v11847_v45, %v11846_v46 }
0x111e   :  { %v1861_v9 = vpop.permute.xlu1 %1860 }
0x111f   :  { %11341 = vmatprep.subr.bf16.mxu0 %v11340_v4 }
0x1120   :  { %11343 = vmatpush3.bf16.msra.mxu0 %v11340_v4 }
0x1122   :  { %v1863_v10 = vpop.permute.xlu1 %1862 }
0x1125   :  { %v12148_v49 = vpop.eup %12147 }
0x1126   :  { %v1766_v51 = vsel %vm492_vm6, %v12148_v49, 0.0  ;;  %v12150_v6 = vpop.eup %12149 }
0x1127   :  { %1767 = vadd.xlane.f32.xlu0 %v1766_v51  ;;  %v1763_v53 = vsel %vm492_vm6, %v12150_v6, 0.0 }
0x112b   :  { %1764 = vadd.xlane.f32.xlu0 %v1763_v53 }
0x1141   :  { %11849 = vrot.lane.b32.xlu0 %v12660_v63, %s12477_s21 }
0x11b4   :  { %v1768_v54 = vpop.xlane.xlu0 %1767 }
0x11b5   :  { %12151 = vrcp.f32 %v1768_v54 }
0x11b8   :  { %v1765_v59 = vpop.xlane.xlu0 %1764 }
0x11b9   :  { %12153 = vrcp.f32 %v1765_v59 }
0x11bc   :  { %v11850_v60 = vpop.permute.xlu0 %11849 }
0x11bd   :  { %v11852_v61 = vunpack.i.h.bf16 %v11850_v60  ;;  %v11851_v2 = vunpack.i.l.bf16 %v11850_v60 }
0x11bf   :  { %v11344_v3 = vpack.c.bf16 %v11852_v61, %v11851_v2  ;;  %v12152_v5 = vpop.eup %12151 }
0x11c0   :  { %v1772_v58 = vmul.f32 %v12152_v5, %v12148_v49 }
0x11c1   :  { %11346 = vmatprep.subr.msk.bf16.mxu0 %vm12683_vm5, %v11344_v3 }
0x11c3   :  { %v12154_v8 = vpop.eup %12153 }
0x11c4   :  { %v1771_v55 = vmul.f32 %v12154_v8, %v12150_v6 }
0x11c6   :  { %10638 = vmatprep.mubr.msk.f32.mxu0 %vm492_vm6, %v1771_v55 }
0x11c7   :  { %10639 = vmatmul.mubr.msk.f32.vlgmr.msra.gmra.mrb[12].mxu0 %vm492_vm6, %v1772_v58 }
0x11c8   :  { %11349 = vmatpush3.bf16.xpose.msk.msra.mxu0 %vm12683_vm5, %v11344_v3  ;;  %10645 = vmatprep.mubr.msk.f32.mxu0 %vm404_vm4, %v1861_v9 }
0x11cf   :  { %10646 = vmatmul.mubr.msk.f32.vlgmr.msra.gmra.mrb[14].mxu0 %vm404_vm4, %v1863_v10 }
0x129a   :  { %v12909_v12 = vpop.f32.mrb[12].mxu0 }
0x129b   :  { %v12911_v13 = vpop.f32.mrb[13].mxu0 }
0x12a2   :  { %v10647_v15 = vpop.f32.mrb[14].mxu0 }
0x12a3   :  { %v1952_v16 = vmul.f32 0.35355338, %v10647_v15  ;;  %v1942_v18 = vpop.f32.mrb[15].mxu0 }
0x12a4   :  { %v1951_v19 = vmul.f32 0.35355338, %v1942_v18 }
0x12a5   :  { %v1954_v62 = vadd.f32 %v1952_v16, %v12854_v50 }
0x12a6   :  { %v1953_v20 = vadd.f32 %v1951_v19, %v12859_v52 }
0x12a7   :  { %v1958_v21 = vsel %vm492_vm6, %v1954_v62, -inf }
0x12a8   :  { %1959 = vmax.xlane.f32.xlu1 %v1958_v21  ;;  %v1955_v22 = vsel %vm492_vm6, %v1953_v20, -inf }
0x12a9   :  { %1956 = vmax.xlane.f32.xlu0 %v1955_v22 }
0x12b9   :  { %11854 = vrot.lane.b32.xlu1 %v12660_v63, %s12476_s8 }
0x12bd   :  { %2064 = vrot.lane.b32.xlu1 %v12843_v47, %s12480_s25 }
0x12c1   :  { %2066 = vrot.lane.b32.xlu1 %v12845_v48, %s12480_s25 }
0x1335   :  { %v1960_v23 = vpop.xlane.xlu1 %1959 }
0x1336   :  { %v1962_v24 = vsub.f32 %v1954_v62, %v1960_v23  ;;  %v1957_v25 = vpop.xlane.xlu0 %1956 }
0x1337   :  { %v1961_v26 = vsub.f32 %v1953_v20, %v1957_v25  ;;  %v288_v25 = vld [vmem:[#allocation2 + $0x28] sm:$0xff] }
0x1338   :  { %v1965_v57 = vmul.f32 1.442695, %v1962_v24  ;;  %v287_v24 = vld [vmem:[#allocation2 + $0x20] sm:$0xff] }
0x1339   :  { %v1963_v56 = vmul.f32 1.442695, %v1961_v26  ;;  %v11855_v27 = vpop.permute.xlu1 %11854  ;;  %v289_v26 = vld [vmem:[#allocation2 + $0x30] sm:$0xff] }
0x133a   :  { %12155 = vpow2.f32 %v1965_v57  ;;  %v11857_v28 = vunpack.i.h.bf16 %v11855_v27  ;;  %v11856_v31 = vunpack.i.l.bf16 %v11855_v27  ;;  %v11364_v57 = vpack.c.bf16 %v288_v25, %v287_v24 }
0x133b   :  { %12157 = vpow2.f32 %v1963_v56  ;;  %v290_v56 = vld [vmem:[#allocation2 + $0x38] sm:$0xff] }
0x133c   :  { %v11350_v32 = vpack.c.bf16 %v11857_v28, %v11856_v31 }
0x133d   :  { %v2065_v44 = vpop.permute.xlu1 %2064 }
0x133e   :  { %11351 = vmatprep.subr.bf16.mxu1 %v11350_v32 }
0x133f   :  { %11353 = vmatpush3.bf16.msra.mxu1 %v11350_v32 }
0x1341   :  { %v2067_v45 = vpop.permute.xlu1 %2066 }
0x1344   :  { %v12156_v33 = vpop.eup %12155 }
0x1345   :  { %v1970_v47 = vsel %vm492_vm6, %v12156_v33, 0.0  ;;  %v12158_v34 = vpop.eup %12157 }
0x1346   :  { %1971 = vadd.xlane.f32.xlu0 %v1970_v47  ;;  %v1967_v48 = vsel %vm492_vm6, %v12158_v34, 0.0 }
0x134a   :  { %1968 = vadd.xlane.f32.xlu0 %v1967_v48 }
0x1360   :  { %11859 = vrot.lane.b32.xlu0 %v12660_v63, %s12480_s25 }
0x13d3   :  { %v1972_v14 = vpop.xlane.xlu0 %1971 }
0x13d4   :  { %12159 = vrcp.f32 %v1972_v14 }
0x13d7   :  { %v1969_v17 = vpop.xlane.xlu0 %1968 }
0x13d8   :  { %12161 = vrcp.f32 %v1969_v17 }
0x13db   :  { %v11860_v35 = vpop.permute.xlu0 %11859 }
0x13dc   :  { %v11862_v36 = vunpack.i.h.bf16 %v11860_v35  ;;  %v11861_v37 = vunpack.i.l.bf16 %v11860_v35 }
0x13de   :  { %v11354_v38 = vpack.c.bf16 %v11862_v36, %v11861_v37  ;;  %v12160_v39 = vpop.eup %12159 }
0x13df   :  { %v1976_v42 = vmul.f32 %v12160_v39, %v12156_v33 }
0x13e0   :  { %11356 = vmatprep.subr.msk.bf16.mxu1 %vm12683_vm5, %v11354_v38 }
0x13e2   :  { %v12162_v40 = vpop.eup %12161 }
0x13e3   :  { %v1975_v41 = vmul.f32 %v12162_v40, %v12158_v34 }
0x13e5   :  { %10652 = vmatprep.mubr.msk.f32.mxu1 %vm492_vm6, %v1975_v41 }
0x13e6   :  { %10653 = vmatmul.mubr.msk.f32.vlgmr.msra.gmra.mrb[22].mxu1 %vm492_vm6, %v1976_v42 }
0x13e7   :  { %11359 = vmatpush3.bf16.xpose.msk.msra.mxu1 %vm12683_vm5, %v11354_v38  ;;  %10659 = vmatprep.mubr.msk.f32.mxu1 %vm404_vm4, %v2065_v44 }
0x13ee   :  { %10660 = vmatmul.mubr.msk.f32.vlgmr.msra.gmra.mrb[24].mxu1 %vm404_vm4, %v2067_v45 }
0x14b9   :  { %v10654_v46 = vpop.f32.mrb[22].mxu1 }
0x14ba   :  { %v2055_v4 = vpop.f32.mrb[23].mxu1 }
0x14c1   :  { %v10661_v49 = vpop.f32.mrb[24].mxu1 }
0x14c2   :  { %v2156_v51 = vmul.f32 0.35355338, %v10661_v49  ;;  %v2146_v6 = vpop.f32.mrb[25].mxu1 }
0x14c3   :  { %v2155_v53 = vmul.f32 0.35355338, %v2146_v6 }
0x14c4   :  { %v2158_v54 = vadd.f32 %v2156_v51, %v12854_v50 }
0x14c5   :  { %v2157_v59 = vadd.f32 %v2155_v53, %v12859_v52 }
0x14c6   :  { %v2162_v60 = vsel %vm492_vm6, %v2158_v54, -inf }
0x14c7   :  { %2163 = vmax.xlane.f32.xlu1 %v2162_v60  ;;  %v2159_v61 = vsel %vm492_vm6, %v2157_v59, -inf }
0x14c8   :  { %2160 = vmax.xlane.f32.xlu0 %v2159_v61 }
0x14d8   :  { %11864 = vrot.lane.b32.xlu1 %v12660_v63, %s12481_s10 }
0x14dc   :  { %2272 = vrot.lane.b32.xlu1 %v12909_v12, %s12469_s14 }
0x14e0   :  { %2278 = vrot.lane.b32.xlu1 %v2055_v4, %s12483_s22 }
0x1554   :  { %v2164_v2 = vpop.xlane.xlu1 %2163 }
0x1555   :  { %v2166_v3 = vsub.f32 %v2158_v54, %v2164_v2  ;;  %v2161_v5 = vpop.xlane.xlu0 %2160  ;;  %v293_v2 = vld [vmem:[#allocation2 + $0x48] sm:$0xff] }
0x1556   :  { %v2165_v50 = vsub.f32 %v2157_v59, %v2161_v5 }
0x1557   :  { %v2169_v8 = vmul.f32 1.442695, %v2166_v3  ;;  %v294_v3 = vld [vmem:[#allocation2 + $0x50] sm:$0xff] }
0x1558   :  { %v2167_v52 = vmul.f32 1.442695, %v2165_v50  ;;  %v11865_v55 = vpop.permute.xlu1 %11864  ;;  %v295_v50 = vld [vmem:[#allocation2 + $0x58] sm:$0xff] }
0x1559   :  { %v11867_v58 = vunpack.i.h.bf16 %v11865_v55  ;;  %v11866_v9 = vunpack.i.l.bf16 %v11865_v55  ;;  %v298_v55 = vld [vmem:[#allocation2 + $0x68] sm:$0xff] }
0x155a   :  { %12163 = vpow2.f32 %v2167_v52  ;;  %v297_v52 = vld [vmem:[#allocation2 + $0x60] sm:$0xff] }
0x155b   :  { %v11360_v10 = vpack.c.bf16 %v11867_v58, %v11866_v9  ;;  %12165 = vpow2.f32 %v2169_v8  ;;  %v11376_v8 = vpack.c.bf16 %v295_v50, %v294_v3  ;;  %v11380_v58 = vpack.c.bf16 %v298_v55, %v297_v52  ;;  %v9817_v55 = vld [vmem:[%s14082_s11 + $0xa] ss:$0 sm:$0xff] }
0x155c   :  { %v2273_v32 = vpop.permute.xlu1 %2272 }
0x155d   :  { %11361 = vmatprep.subr.bf16.mxu0 %v11360_v10  ;;  %v2293_v14 = vsel %vm404_vm4, %v12883_v29, %v2273_v32 }
0x155e   :  { %11363 = vmatpush3.bf16.msra.mxu0 %v11360_v10 }
0x155f   :  { %11365 = vmatprep.subr.bf16.mxu0 %v11364_v57 }
0x1560   :  { %v2279_v47 = vpop.permute.xlu1 %2278 }
0x1564   :  { %v12164_v15 = vpop.eup %12163 }
0x1565   :  { %v2171_v16 = vsel %vm492_vm6, %v12164_v15, 0.0  ;;  %v12166_v12 = vpop.eup %12165 }
0x1566   :  { %2172 = vadd.xlane.f32.xlu0 %v2171_v16  ;;  %v2174_v18 = vsel %vm492_vm6, %v12166_v12, 0.0 }
0x156a   :  { %2175 = vadd.xlane.f32.xlu0 %v2174_v18 }
0x1580   :  { %2270 = vrot.lane.b32.xlu0 %v12911_v13, %s12469_s14  ;;  %v11368_v13 = vpack.c.bf16 %v290_v56, %v289_v26  ;;  %v299_v56 = vld [vmem:[#allocation2 + $0x70] sm:$0xff] }
0x1584   :  { %2280 = vrot.lane.b32.xlu0 %v10654_v46, %s12483_s22 }
0x15f3   :  { %v2173_v19 = vpop.xlane.xlu0 %2172 }
0x15f4   :  { %12167 = vrcp.f32 %v2173_v19 }
0x15f7   :  { %v2176_v62 = vpop.xlane.xlu0 %2175 }
0x15f8   :  { %12169 = vrcp.f32 %v2176_v62  ;;  %v9809_v62 = vld [vmem:[%s14082_s11 + $0x8] ss:$0 sm:$0xff] }
0x15fb   :  { %v2271_v31 = vpop.permute.xlu0 %2270 }
0x15fc   :  { %v2292_v34 = vsel %vm404_vm4, %v12885_v30, %v2271_v31  ;;  %v9806_v30 = vld [vmem:[%s14082_s11 + $0x3] ss:$0 sm:$0xff] }
0x15fd   :  { %v2294_v35 = vsel %vm492_vm6, %v2292_v34, %v2279_v47 }
0x15fe   :  { %v12168_v20 = vpop.eup %12167 }
0x15ff   :  { %v2179_v21 = vmul.f32 %v12168_v20, %v12164_v15  ;;  %v2281_v33 = vpop.permute.xlu0 %2280 }
0x1600   :  { %v2295_v36 = vsel %vm492_vm6, %v2293_v14, %v2281_v33  ;;  %v9814_v14 = vld [vmem:[%s14082_s11 + $0x5] ss:$0 sm:$0xff] }
0x1601   :  { %10666 = vmatprep.mubr.msk.f32.mxu0 %vm492_vm6, %v2179_v21 }
0x1602   :  { %v12170_v22 = vpop.eup %12169 }
0x1603   :  { %v2180_v23 = vmul.f32 %v12170_v22, %v12166_v12 }
0x1605   :  { %10667 = vmatmul.mubr.msk.f32.vlgmr.msra.gmra.mrb[16].mxu0 %vm492_vm6, %v2180_v23  ;;  %v9810_v23 = vld [vmem:[%s14082_s11 + $0x9] ss:$0 sm:$0xff] }
0x1606   :  { %11367 = vmatpush3.bf16.msra.mxu0 %v11364_v57 }
0x1607   :  { %11369 = vmatprep.subr.bf16.mxu0 %v11368_v13 }
0x160a   :  { %11371 = vmatpush3.bf16.msra.mxu0 %v11368_v13  ;;  %v300_v13 = vld [vmem:[#allocation2 + $0x78] sm:$0xff] }
0x160b   :  { %11381 = vmatprep.subr.bf16.mxu0 %v11380_v58 }
0x16d8   :  { %v10668_v27 = vpop.f32.mrb[16].mxu0 }
0x16d9   :  { %2288 = vrot.lane.b32.xlu0 %v10668_v27, %s12484_s26  ;;  %v2259_v28 = vpop.f32.mrb[17].mxu0  ;;  %v11384_v27 = vpack.c.bf16 %v300_v13, %v299_v56 }
0x16da   :  { %2286 = vrot.lane.b32.xlu1 %v2259_v28, %s12484_s26  ;;  %v9811_v28 = vld [vmem:[%s14082_s11 + $0x4] ss:$0 sm:$0xff] }
0x174b   :  { %v2289_v48 = vpop.permute.xlu0 %2288 }
0x174c   :  { %v2287_v17 = vpop.permute.xlu1 %2286  ;;  %v2297_v38 = vsel %vm1242_vm7, %v2295_v36, %v2289_v48 }
0x174d   :  { %v2296_v37 = vsel %vm1242_vm7, %v2294_v35, %v2287_v17 }
0x174e   :  { %10677 = vmatprep.mubr.msk.f32.mxu0 %vm190_vm0, %v2296_v37 }
0x174f   :  { %10678 = vmatmul.mubr.msk.f32.vlgmr.msra.gmra.mrb[18].mxu0 %vm190_vm0, %v2297_v38 }
0x1750   :  { %11383 = vmatpush3.bf16.msra.mxu0 %v11380_v58 }
0x1751   :  { %11385 = vmatprep.subr.bf16.mxu0 %v11384_v27 }
0x1754   :  { %11387 = vmatpush3.bf16.msra.mxu0 %v11384_v27 }
0x1822   :  { %v10679_v39 = vpop.f32.mrb[18].mxu0 }
0x1823   :  { %v2380_v40 = vadd.f32 %v10679_v39, %v9806_v30  ;;  %v2374_v29 = vpop.f32.mrb[19].mxu0 }
0x1824   :  { %v2375_v41 = vadd.f32 %v9806_v30, %v2374_v29 }
0x1825   :  { %v2384_v42 = vadd.f32 %v2380_v40, %v12836_v7 }
0x1826   :  { %v2383_v44 = vadd.f32 %v2375_v41, %v12832_v43  ;;  %v292_v43 = vld [vmem:[#allocation2 + $0x40] sm:$0xff] }
0x1827   :  { %v2388_v45 = vsel %vm190_vm0, %v2384_v42, 0.0  ;;  %v11372_v5 = vpack.c.bf16 %v293_v2, %v292_v43 }
0x1828   :  { %2389 = vadd.xlane.f32.xlu0 %v2388_v45  ;;  %v2385_v46 = vsel %vm190_vm0, %v2383_v44, 0.0 }
0x1829   :  { %2386 = vadd.xlane.f32.xlu1 %v2385_v46  ;;  %11373 = vmatprep.subr.bf16.mxu1 %v11372_v5 }
0x182a   :  { %11375 = vmatpush3.bf16.msra.mxu1 %v11372_v5 }
0x182b   :  { %11377 = vmatprep.subr.bf16.mxu1 %v11376_v8 }
0x182e   :  { %11379 = vmatpush3.bf16.msra.mxu1 %v11376_v8 }
0x18b5   :  { %v2390_v4 = vpop.xlane.xlu0 %2389 }
0x18b6   :  { %v2392_v49 = vmul.f32 0.03125, %v2390_v4  ;;  %v2387_v51 = vpop.xlane.xlu1 %2386 }
0x18b7   :  { %v2391_v6 = vmul.f32 0.03125, %v2387_v51 }
0x18b8   :  { %v2394_v53 = vsub.f32 %v2384_v42, %v2392_v49 }
0x18b9   :  { %v2393_v54 = vsub.f32 %v2383_v44, %v2391_v6 }
0x18ba   :  { %v2396_v59 = vmul.f32 %v2394_v53, %v2394_v53 }
0x18bb   :  { %v2395_v60 = vmul.f32 %v2393_v54, %v2393_v54 }
0x18bc   :  { %v2400_v61 = vsel %vm190_vm0, %v2396_v59, 0.0  ;;  %v9821_v59 = vld [vmem:[%s14077_s6 + $0x30] sm:$0xff] }
0x18bd   :  { %2401 = vadd.xlane.f32.xlu1 %v2400_v61  ;;  %v2397_v7 = vsel %vm190_vm0, %v2395_v60, 0.0  ;;  %v9822_v61 = vld [vmem:[%s14077_s6 + $0x38] sm:$0xff] }
0x18be   :  { %2398 = vadd.xlane.f32.xlu0 %v2397_v7  ;;  %v11392_v7 = vpack.c.bf16 %v9822_v61, %v9821_v59 }
0x194a   :  { %v2402_v9 = vpop.xlane.xlu1 %2401 }
0x194b   :  { %v2404_v10 = vmul.f32 0.03125, %v2402_v9  ;;  %v2399_v15 = vpop.xlane.xlu0 %2398 }
0x194c   :  { %v2403_v16 = vmul.f32 0.03125, %v2399_v15  ;;  %v9818_v15 = vld [vmem:[%s14082_s11 + $0xb] ss:$0 sm:$0xff] }
0x194d   :  { %v2406_v12 = vadd.f32 1e-05, %v2404_v10 }
0x194e   :  { %v2405_v18 = vadd.f32 1e-05, %v2403_v16 }
0x194f   :  { %12171 = vrsqrt.f32 %v2406_v12 }
0x1950   :  { %12173 = vrsqrt.f32 %v2405_v18 }
0x1959   :  { %v12172_v19 = vpop.eup %12171 }
0x195a   :  { %v12174_v20 = vpop.eup %12173  ;;  %v2410_v21 = vmul.f32 %v12172_v19, %v2394_v53  ;;  %v9819_v53 = vld [vmem:[%s14077_s6 + $0x20] sm:$0xff] }
0x195b   :  { %v2409_v22 = vmul.f32 %v12174_v20, %v2393_v54  ;;  %v9820_v54 = vld [vmem:[%s14077_s6 + $0x28] sm:$0xff] }
0x195c   :  { %v2416_v24 = vmul.f32 %v9809_v62, %v2410_v21  ;;  %v11388_v60 = vpack.c.bf16 %v9820_v54, %v9819_v53 }
0x195d   :  { %v2415_v25 = vmul.f32 %v9809_v62, %v2409_v22  ;;  %v9839_v62 = vld [vmem:[%s14082_s11 + $0x10] ss:$0 sm:$0xff] }
0x195e   :  { %v2422_v57 = vadd.f32 %v9810_v23, %v2416_v24  ;;  %11389 = vmatprep.subr.bf16.mxu1 %v11388_v60 }
0x195f   :  { %v2421_v26 = vadd.f32 %v9810_v23, %v2415_v25 }
0x1961   :  { %10688 = vmatprep.mubr.msk.f32.mxu1 %vm190_vm0, %v2421_v26 }
0x1962   :  { %10689 = vmatmul.mubr.msk.f32.vlgmr.msra.gmra.mrb[26].mxu1 %vm190_vm0, %v2422_v57 }
0x1963   :  { %11391 = vmatpush3.bf16.msra.mxu1 %v11388_v60 }
0x1964   :  { %11393 = vmatprep.subr.bf16.mxu1 %v11392_v7 }
0x1967   :  { %11395 = vmatpush3.bf16.msra.mxu1 %v11392_v7 }
0x1a35   :  { %v10690_v31 = vpop.f32.mrb[26].mxu1 }
0x1a36   :  { %v2505_v32 = vadd.f32 %v10690_v31, %v9811_v28  ;;  %v2499_v33 = vpop.f32.mrb[27].mxu1 }
0x1a37   :  { %v2500_v47 = vadd.f32 %v9811_v28, %v2499_v33 }
0x1a38   :  { %v2509_v48 = vmax.f32 %v2505_v32, 0.0  ;;  %v13048_v32 = vld [vmem:[%s14075_s4] sm:$0xff] }
0x1a39   :  { %v2508_v34 = vmax.f32 %v2500_v47, 0.0 }
0x1a3b   :  { %10699 = vmatprep.mubr.msk.f32.mxu0 %vm190_vm0, %v2508_v34  ;;  %v13055_v34 = vld [vmem:[%s14075_s4 + $0x8] sm:$0xff] }
0x1a3c   :  { %10700 = vmatmul.mubr.msk.f32.vlgmr.msra.gmra.mrb[20].mxu0 %vm190_vm0, %v2509_v48 }
0x1b0f   :  { %v10701_v17 = vpop.f32.mrb[20].mxu0 }
0x1b10   :  { %v2592_v35 = vadd.f32 %v10701_v17, %v9814_v14  ;;  %v2586_v36 = vpop.f32.mrb[21].mxu0 }
0x1b11   :  { %v2587_v37 = vadd.f32 %v9814_v14, %v2586_v36 }
0x1b12   :  { %v2596_v38 = vadd.f32 %v2592_v35, %v2422_v57 }
0x1b13   :  { %v2595_v30 = vadd.f32 %v2587_v37, %v2421_v26 }
0x1b14   :  { %v2600_v39 = vsel %vm190_vm0, %v2596_v38, 0.0 }
0x1b15   :  { %2601 = vadd.xlane.f32.xlu1 %v2600_v39  ;;  %v2597_v40 = vsel %vm190_vm0, %v2595_v30, 0.0 }
0x1b16   :  { %2598 = vadd.xlane.f32.xlu0 %v2597_v40 }
0x1ba2   :  { %v2602_v29 = vpop.xlane.xlu1 %2601 }
0x1ba3   :  { %v2604_v41 = vmul.f32 0.03125, %v2602_v29  ;;  %v2599_v42 = vpop.xlane.xlu0 %2598 }
0x1ba4   :  { %v2603_v44 = vmul.f32 0.03125, %v2599_v42 }
0x1ba5   :  { %v2606_v45 = vsub.f32 %v2596_v38, %v2604_v41 }
0x1ba6   :  { %v2605_v46 = vsub.f32 %v2595_v30, %v2603_v44 }
0x1ba7   :  { %v2608_v4 = vmul.f32 %v2606_v45, %v2606_v45 }
0x1ba8   :  { %v2607_v49 = vmul.f32 %v2605_v46, %v2605_v46 }
0x1ba9   :  { %v2612_v51 = vsel %vm190_vm0, %v2608_v4, 0.0 }
0x1baa   :  { %2613 = vadd.xlane.f32.xlu1 %v2612_v51  ;;  %v2609_v6 = vsel %vm190_vm0, %v2607_v49, 0.0 }
0x1bab   :  { %2610 = vadd.xlane.f32.xlu0 %v2609_v6 }
0x1c37   :  { %v2614_v43 = vpop.xlane.xlu1 %2613 }
0x1c38   :  { %v2616_v2 = vmul.f32 0.03125, %v2614_v43  ;;  %v2611_v3 = vpop.xlane.xlu0 %2610 }
0x1c39   :  { %v2615_v5 = vmul.f32 0.03125, %v2611_v3 }
0x1c3a   :  { %v2618_v50 = vadd.f32 1e-05, %v2616_v2 }
0x1c3b   :  { %v2617_v8 = vadd.f32 1e-05, %v2615_v5 }
0x1c3c   :  { %12175 = vrsqrt.f32 %v2618_v50 }
0x1c3d   :  { %12177 = vrsqrt.f32 %v2617_v8 }
0x1c46   :  { %v12176_v52 = vpop.eup %12175 }
0x1c47   :  { %v12178_v58 = vpop.eup %12177  ;;  %v2622_v9 = vmul.f32 %v12176_v52, %v2606_v45 }
0x1c48   :  { %v2621_v10 = vmul.f32 %v12178_v58, %v2605_v46 }
0x1c49   :  { %v2628_v16 = vmul.f32 %v9817_v55, %v2622_v9 }
0x1c4a   :  { %v2627_v12 = vmul.f32 %v9817_v55, %v2621_v10 }
0x1c4b   :  { %v13012_v19 = vadd.f32 %v9818_v15, %v2628_v16 }
0x1c4c   :  { %v13010_v18 = vadd.f32 %v9818_v15, %v2627_v12 }
0x1c4e   :  { %10710 = vmatprep.mubr.msk.f32.mxu1 %vm190_vm0, %v13010_v18 }
0x1c4f   :  { %10711 = vmatmul.mubr.msk.f32.vlgmr.msra.gmra.mrb[28].mxu1 %vm190_vm0, %v13012_v19 }
0x1d22   :  { %v10712_v20 = vpop.f32.mrb[28].mxu1 }
0x1d23   :  { %v13021_v21 = vadd.f32 %v10712_v20, %v9839_v62  ;;  %v2754_v22 = vpop.f32.mrb[29].mxu1 }
0x1d24   :  { %v13023_v23 = vadd.f32 %v9839_v62, %v2754_v22 }
0x1d26   :  { %10717 = vmatprep.mubr.msk.f32.mxu0 %vm404_vm4, %v13023_v23  ;;  %v13029_v24 = vpack.i.bf16 %v13021_v21, %v13023_v23 }
0x1d28   :  { %11869 = vrot.lane.b32.xlu0 %v13029_v24, %s12472_s30 }
0x1d2c   :  { %11879 = vrot.lane.b32.xlu0 %v13029_v24, %s12473_s18 }
0x1d30   :  { %2965 = vrot.lane.b32.xlu0 %v13023_v23, %s12474_s19 }
0x1d34   :  { %2967 = vrot.lane.b32.xlu0 %v13021_v21, %s12474_s19 }
0x1d9a   :  { %v11870_v25 = vpop.permute.xlu0 %11869 }
0x1d9b   :  { %v11872_v26 = vunpack.i.h.bf16 %v11870_v25  ;;  %v11871_v57 = vunpack.i.l.bf16 %v11870_v25 }
0x1d9d   :  { %v11396_v56 = vpack.c.bf16 %v11872_v26, %v11871_v57 }
0x1d9e   :  { %v11880_v45 = vpop.permute.xlu0 %11879 }
0x1d9f   :  { %11398 = vmatprep.subr.msk.bf16.mxu0 %vm12683_vm5, %v11396_v56  ;;  %v11882_v4 = vunpack.i.h.bf16 %v11880_v45  ;;  %v11881_v49 = vunpack.i.l.bf16 %v11880_v45 }
0x1da0   :  { %11401 = vmatpush3.bf16.xpose.msk.msra.mxu0 %vm12683_vm5, %v11396_v56 }
0x1da1   :  { %v11406_v54 = vpack.c.bf16 %v11882_v4, %v11881_v49 }
0x1da2   :  { %v2966_v43 = vpop.permute.xlu0 %2965 }
0x1da6   :  { %v2968_v2 = vpop.permute.xlu0 %2967 }
0x1da7   :  { %10718 = vmatmul.mubr.msk.f32.vlgmr.msra.gmra.mrb[22].mxu0 %vm404_vm4, %v13021_v21 }
0x1e7a   :  { %v10719_v13 = vpop.f32.mrb[22].mxu0 }
0x1e7b   :  { %v2843_v27 = vpop.f32.mrb[23].mxu0  ;;  %v2853_v28 = vmul.f32 0.35355338, %v10719_v13 }
0x1e7c   :  { %v2852_v31 = vmul.f32 0.35355338, %v2843_v27 }
0x1e7d   :  { %v2855_v48 = vadd.f32 %v13055_v34, %v2853_v28 }
0x1e7e   :  { %v2854_v33 = vadd.f32 %v13048_v32, %v2852_v31 }
0x1e7f   :  { %v2859_v14 = vsel %vm492_vm6, %v2855_v48, -inf }
0x1e80   :  { %v2856_v47 = vsel %vm492_vm6, %v2854_v33, -inf }
0x1e81   :  { %2857 = vmax.xlane.f32.xlu1 %v2856_v47 }
0x1e85   :  { %2860 = vmax.xlane.f32.xlu1 %v2859_v14 }
0x1f0e   :  { %v2858_v17 = vpop.xlane.xlu1 %2857 }
0x1f0f   :  { %v2862_v35 = vsub.f32 %v2854_v33, %v2858_v17 }
0x1f11   :  { %v2864_v38 = vmul.f32 1.442695, %v2862_v35 }
0x1f12   :  { %v2861_v36 = vpop.xlane.xlu1 %2860 }
0x1f13   :  { %v2863_v37 = vsub.f32 %v2855_v48, %v2861_v36 }
0x1f15   :  { %v2866_v30 = vmul.f32 1.442695, %v2863_v37 }
0x1f17   :  { %12179 = vpow2.f32 %v2866_v30 }
0x1f18   :  { %12181 = vpow2.f32 %v2864_v38 }
0x1f21   :  { %v12180_v39 = vpop.eup %12179 }
0x1f22   :  { %v2871_v40 = vsel %vm492_vm6, %v12180_v39, 0.0  ;;  %v12182_v29 = vpop.eup %12181 }
0x1f23   :  { %2872 = vadd.xlane.f32.xlu1 %v2871_v40  ;;  %v2868_v41 = vsel %vm492_vm6, %v12182_v29, 0.0 }
0x1f27   :  { %2869 = vadd.xlane.f32.xlu1 %v2868_v41 }
0x1f38   :  { %11874 = vrot.lane.b32.xlu1 %v13029_v24, %s12475_s20 }
0x1fb0   :  { %v2873_v42 = vpop.xlane.xlu1 %2872 }
0x1fb1   :  { %12183 = vrcp.f32 %v2873_v42 }
0x1fb4   :  { %v2870_v44 = vpop.xlane.xlu1 %2869 }
0x1fb5   :  { %12185 = vrcp.f32 %v2870_v44 }
0x1fb8   :  { %v11875_v46 = vpop.permute.xlu1 %11874 }
0x1fb9   :  { %v11877_v51 = vunpack.i.h.bf16 %v11875_v46  ;;  %v11876_v6 = vunpack.i.l.bf16 %v11875_v46 }
0x1fbb   :  { %v11402_v53 = vpack.c.bf16 %v11877_v51, %v11876_v6  ;;  %v12184_v59 = vpop.eup %12183 }
0x1fbc   :  { %v2877_v7 = vmul.f32 %v12184_v59, %v12180_v39 }
0x1fbd   :  { %11403 = vmatprep.subr.bf16.mxu1 %v11402_v53 }
0x1fbe   :  { %11405 = vmatpush3.bf16.msra.mxu1 %v11402_v53 }
0x1fbf   :  { %v12186_v60 = vpop.eup %12185  ;;  %11408 = vmatprep.subr.msk.bf16.mxu1 %vm12683_vm5, %v11406_v54 }
0x1fc0   :  { %v2876_v61 = vmul.f32 %v12186_v60, %v12182_v29 }
0x1fc2   :  { %10724 = vmatprep.mubr.msk.f32.mxu1 %vm492_vm6, %v2876_v61 }
0x1fc3   :  { %10725 = vmatmul.mubr.msk.f32.vlgmr.msra.gmra.mrb[30].mxu1 %vm492_vm6, %v2877_v7 }
0x1fc4   :  { %10731 = vmatprep.mubr.msk.f32.mxu1 %vm404_vm4, %v2966_v43 }
0x1fc7   :  { %11411 = vmatpush3.bf16.xpose.msk.msra.mxu1 %vm12683_vm5, %v11406_v54 }
0x1fce   :  { %10732 = vmatmul.mubr.msk.f32.vlgmr.msra.gmra.mrb[32].mxu1 %vm404_vm4, %v2968_v2 }
0x2096   :  { %v13071_v3 = vpop.f32.mrb[30].mxu1 }
0x2097   :  { %v13073_v5 = vpop.f32.mrb[31].mxu1 }
0x20a1   :  { %v10733_v50 = vpop.f32.mrb[32].mxu1 }
0x20a2   :  { %v3057_v8 = vmul.f32 0.35355338, %v10733_v50  ;;  %v3047_v52 = vpop.f32.mrb[33].mxu1 }
0x20a3   :  { %v3056_v55 = vmul.f32 0.35355338, %v3047_v52 }
0x20a4   :  { %v3059_v58 = vadd.f32 %v13055_v34, %v3057_v8 }
0x20a5   :  { %v3058_v9 = vadd.f32 %v13048_v32, %v3056_v55 }
0x20a6   :  { %v3063_v10 = vsel %vm492_vm6, %v3059_v58, -inf }
0x20a7   :  { %3064 = vmax.xlane.f32.xlu1 %v3063_v10  ;;  %v3060_v15 = vsel %vm492_vm6, %v3058_v9, -inf }
0x20a8   :  { %3061 = vmax.xlane.f32.xlu0 %v3060_v15 }
0x20b8   :  { %11884 = vrot.lane.b32.xlu1 %v13029_v24, %s12478_s23 }
0x20bc   :  { %3169 = vrot.lane.b32.xlu1 %v13023_v23, %s12477_s21 }
0x20c0   :  { %3171 = vrot.lane.b32.xlu1 %v13021_v21, %s12477_s21 }
0x2134   :  { %v3065_v16 = vpop.xlane.xlu1 %3064 }
0x2135   :  { %v3067_v12 = vsub.f32 %v3059_v58, %v3065_v16  ;;  %v3062_v62 = vpop.xlane.xlu0 %3061 }
0x2136   :  { %v3066_v20 = vsub.f32 %v3058_v9, %v3062_v62 }
0x2137   :  { %v3070_v22 = vmul.f32 1.442695, %v3067_v12 }
0x2138   :  { %v3068_v25 = vmul.f32 1.442695, %v3066_v20  ;;  %v11885_v26 = vpop.permute.xlu1 %11884 }
0x2139   :  { %12187 = vpow2.f32 %v3070_v22  ;;  %v11887_v57 = vunpack.i.h.bf16 %v11885_v26  ;;  %v11886_v56 = vunpack.i.l.bf16 %v11885_v26 }
0x213a   :  { %12189 = vpow2.f32 %v3068_v25 }
0x213b   :  { %v11412_v13 = vpack.c.bf16 %v11887_v57, %v11886_v56 }
0x213c   :  { %v3170_v40 = vpop.permute.xlu1 %3169 }
0x213d   :  { %11413 = vmatprep.subr.bf16.mxu0 %v11412_v13 }
0x213e   :  { %11415 = vmatpush3.bf16.msra.mxu0 %v11412_v13 }
0x2140   :  { %v3172_v29 = vpop.permute.xlu1 %3171 }
0x2143   :  { %v12188_v27 = vpop.eup %12187 }
0x2144   :  { %v3075_v28 = vsel %vm492_vm6, %v12188_v27, 0.0  ;;  %v12190_v31 = vpop.eup %12189 }
0x2145   :  { %3076 = vadd.xlane.f32.xlu0 %v3075_v28  ;;  %v3072_v33 = vsel %vm492_vm6, %v12190_v31, 0.0 }
0x2149   :  { %3073 = vadd.xlane.f32.xlu0 %v3072_v33 }
0x215f   :  { %11889 = vrot.lane.b32.xlu0 %v13029_v24, %s12476_s8 }
0x21d2   :  { %v3077_v47 = vpop.xlane.xlu0 %3076 }
0x21d3   :  { %12191 = vrcp.f32 %v3077_v47 }
0x21d6   :  { %v3074_v48 = vpop.xlane.xlu0 %3073 }
0x21d7   :  { %12193 = vrcp.f32 %v3074_v48 }
0x21da   :  { %v11890_v14 = vpop.permute.xlu0 %11889 }
0x21db   :  { %v11892_v17 = vunpack.i.h.bf16 %v11890_v14  ;;  %v11891_v35 = vunpack.i.l.bf16 %v11890_v14 }
0x21dd   :  { %v11416_v36 = vpack.c.bf16 %v11892_v17, %v11891_v35  ;;  %v12192_v37 = vpop.eup %12191 }
0x21de   :  { %v3081_v39 = vmul.f32 %v12192_v37, %v12188_v27 }
0x21df   :  { %11418 = vmatprep.subr.msk.bf16.mxu0 %vm12683_vm5, %v11416_v36 }
0x21e1   :  { %v12194_v38 = vpop.eup %12193 }
0x21e2   :  { %v3080_v30 = vmul.f32 %v12194_v38, %v12190_v31 }
0x21e4   :  { %10738 = vmatprep.mubr.msk.f32.mxu0 %vm492_vm6, %v3080_v30 }
0x21e5   :  { %10739 = vmatmul.mubr.msk.f32.vlgmr.msra.gmra.mrb[24].mxu0 %vm492_vm6, %v3081_v39 }
0x21e6   :  { %11421 = vmatpush3.bf16.xpose.msk.msra.mxu0 %vm12683_vm5, %v11416_v36  ;;  %10745 = vmatprep.mubr.msk.f32.mxu0 %vm404_vm4, %v3170_v40 }
0x21ed   :  { %10746 = vmatmul.mubr.msk.f32.vlgmr.msra.gmra.mrb[26].mxu0 %vm404_vm4, %v3172_v29 }
0x22b8   :  { %v13097_v41 = vpop.f32.mrb[24].mxu0 }
0x22b9   :  { %v13099_v42 = vpop.f32.mrb[25].mxu0 }
0x22c0   :  { %v10747_v44 = vpop.f32.mrb[26].mxu0 }
0x22c1   :  { %v3261_v45 = vmul.f32 0.35355338, %v10747_v44  ;;  %v3251_v46 = vpop.f32.mrb[27].mxu0 }
0x22c2   :  { %v3260_v4 = vmul.f32 0.35355338, %v3251_v46 }
0x22c3   :  { %v3263_v49 = vadd.f32 %v13055_v34, %v3261_v45 }
0x22c4   :  { %v3262_v51 = vadd.f32 %v13048_v32, %v3260_v4 }
0x22c5   :  { %v3267_v6 = vsel %vm492_vm6, %v3263_v49, -inf }
0x22c6   :  { %3268 = vmax.xlane.f32.xlu1 %v3267_v6  ;;  %v3264_v53 = vsel %vm492_vm6, %v3262_v51, -inf }
0x22c7   :  { %3265 = vmax.xlane.f32.xlu0 %v3264_v53 }
0x22d7   :  { %11894 = vrot.lane.b32.xlu1 %v13029_v24, %s12479_s24 }
0x22db   :  { %3373 = vrot.lane.b32.xlu1 %v13023_v23, %s12480_s25 }
0x22df   :  { %3375 = vrot.lane.b32.xlu1 %v13021_v21, %s12480_s25 }
0x2353   :  { %v3269_v54 = vpop.xlane.xlu1 %3268 }
0x2354   :  { %v3271_v59 = vsub.f32 %v3263_v49, %v3269_v54  ;;  %v3266_v60 = vpop.xlane.xlu0 %3265 }
0x2355   :  { %v3270_v61 = vsub.f32 %v3262_v51, %v3266_v60  ;;  %v2647_v60 = vld [vmem:[#allocation2 + $0x88] sm:$0xff] }
0x2356   :  { %v3274_v7 = vmul.f32 1.442695, %v3271_v59  ;;  %v2646_v59 = vld [vmem:[#allocation2 + $0x80] sm:$0xff] }
0x2357   :  { %v3272_v43 = vmul.f32 1.442695, %v3270_v61  ;;  %v11895_v2 = vpop.permute.xlu1 %11894  ;;  %v2648_v61 = vld [vmem:[#allocation2 + $0x90] sm:$0xff] }
0x2358   :  { %12195 = vpow2.f32 %v3274_v7  ;;  %v11897_v50 = vunpack.i.h.bf16 %v11895_v2  ;;  %v11896_v8 = vunpack.i.l.bf16 %v11895_v2  ;;  %v11436_v7 = vpack.c.bf16 %v2647_v60, %v2646_v59  ;;  %v9870_v59 = vld [vmem:[%s14082_s11 + $0x17] ss:$0 sm:$0xff] }
0x2359   :  { %12197 = vpow2.f32 %v3272_v43  ;;  %v2649_v43 = vld [vmem:[#allocation2 + $0x98] sm:$0xff] }
0x235a   :  { %v11422_v52 = vpack.c.bf16 %v11897_v50, %v11896_v8 }
0x235b   :  { %v3374_v57 = vpop.permute.xlu1 %3373 }
0x235c   :  { %11423 = vmatprep.subr.bf16.mxu1 %v11422_v52 }
0x235d   :  { %11425 = vmatpush3.bf16.msra.mxu1 %v11422_v52 }
0x235f   :  { %v3376_v56 = vpop.permute.xlu1 %3375 }
0x2362   :  { %v12196_v55 = vpop.eup %12195 }
0x2363   :  { %v3279_v23 = vsel %vm492_vm6, %v12196_v55, 0.0  ;;  %v12198_v58 = vpop.eup %12197 }
0x2364   :  { %3280 = vadd.xlane.f32.xlu0 %v3279_v23  ;;  %v3276_v21 = vsel %vm492_vm6, %v12198_v58, 0.0 }
0x2368   :  { %3277 = vadd.xlane.f32.xlu0 %v3276_v21 }
0x237e   :  { %11899 = vrot.lane.b32.xlu0 %v13029_v24, %s12481_s10 }
0x23f1   :  { %v3281_v9 = vpop.xlane.xlu0 %3280 }
0x23f2   :  { %12199 = vrcp.f32 %v3281_v9 }
0x23f5   :  { %v3278_v10 = vpop.xlane.xlu0 %3277 }
0x23f6   :  { %12201 = vrcp.f32 %v3278_v10 }
0x23f9   :  { %v11900_v15 = vpop.permute.xlu0 %11899 }
0x23fa   :  { %v11902_v16 = vunpack.i.h.bf16 %v11900_v15  ;;  %v11901_v12 = vunpack.i.l.bf16 %v11900_v15 }
0x23fc   :  { %v11426_v62 = vpack.c.bf16 %v11902_v16, %v11901_v12  ;;  %v12200_v20 = vpop.eup %12199 }
0x23fd   :  { %v3285_v26 = vmul.f32 %v12200_v20, %v12196_v55 }
0x23fe   :  { %11428 = vmatprep.subr.msk.bf16.mxu1 %vm12683_vm5, %v11426_v62 }
0x2400   :  { %v12202_v22 = vpop.eup %12201 }
0x2401   :  { %v3284_v25 = vmul.f32 %v12202_v22, %v12198_v58 }
0x2403   :  { %10752 = vmatprep.mubr.msk.f32.mxu1 %vm492_vm6, %v3284_v25 }
0x2404   :  { %10753 = vmatmul.mubr.msk.f32.vlgmr.msra.gmra.mrb[34].mxu1 %vm492_vm6, %v3285_v26 }
0x2405   :  { %11431 = vmatpush3.bf16.xpose.msk.msra.mxu1 %vm12683_vm5, %v11426_v62  ;;  %10759 = vmatprep.mubr.msk.f32.mxu1 %vm404_vm4, %v3374_v57 }
0x240c   :  { %10760 = vmatmul.mubr.msk.f32.vlgmr.msra.gmra.mrb[36].mxu1 %vm404_vm4, %v3376_v56 }
0x24d7   :  { %v10754_v13 = vpop.f32.mrb[34].mxu1 }
0x24d8   :  { %v3364_v27 = vpop.f32.mrb[35].mxu1 }
0x24df   :  { %v10761_v28 = vpop.f32.mrb[36].mxu1 }
0x24e0   :  { %v3465_v31 = vmul.f32 0.35355338, %v10761_v28  ;;  %v3455_v33 = vpop.f32.mrb[37].mxu1 }
0x24e1   :  { %v3464_v47 = vmul.f32 0.35355338, %v3455_v33 }
0x24e2   :  { %v3467_v48 = vadd.f32 %v13055_v34, %v3465_v31 }
0x24e3   :  { %v3466_v14 = vadd.f32 %v13048_v32, %v3464_v47 }
0x24e4   :  { %v3471_v17 = vsel %vm492_vm6, %v3467_v48, -inf }
0x24e5   :  { %3472 = vmax.xlane.f32.xlu1 %v3471_v17  ;;  %v3468_v35 = vsel %vm492_vm6, %v3466_v14, -inf }
0x24e6   :  { %3469 = vmax.xlane.f32.xlu0 %v3468_v35 }
0x24f6   :  { %11904 = vrot.lane.b32.xlu1 %v13029_v24, %s12482_s3 }
0x24fa   :  { %3581 = vrot.lane.b32.xlu1 %v13097_v41, %s12469_s14 }
0x24fe   :  { %3587 = vrot.lane.b32.xlu1 %v3364_v27, %s12483_s22 }
0x2572   :  { %v3473_v36 = vpop.xlane.xlu1 %3472 }
0x2573   :  { %v3475_v37 = vsub.f32 %v3467_v48, %v3473_v36  ;;  %v3470_v38 = vpop.xlane.xlu0 %3469  ;;  %v9824_v36 = vld [vmem:[%s14078_s7 + $0x28] sm:$0xff] }
0x2574   :  { %v3474_v34 = vsub.f32 %v3466_v14, %v3470_v38 }
0x2575   :  { %v3478_v30 = vmul.f32 1.442695, %v3475_v37  ;;  %v9825_v37 = vld [vmem:[%s14078_s7 + $0x30] sm:$0xff] }
0x2576   :  { %v3476_v32 = vmul.f32 1.442695, %v3474_v34  ;;  %v11905_v39 = vpop.permute.xlu1 %11904  ;;  %v9826_v34 = vld [vmem:[%s14078_s7 + $0x38] sm:$0xff] }
0x2577   :  { %v11907_v40 = vunpack.i.h.bf16 %v11905_v39  ;;  %v11906_v29 = vunpack.i.l.bf16 %v11905_v39 }
0x2578   :  { %12203 = vpow2.f32 %v3476_v32 }
0x2579   :  { %v11432_v44 = vpack.c.bf16 %v11907_v40, %v11906_v29  ;;  %12205 = vpow2.f32 %v3478_v30  ;;  %v11448_v30 = vpack.c.bf16 %v9826_v34, %v9825_v37 }
0x257a   :  { %v3582_v52 = vpop.permute.xlu1 %3581 }
0x257b   :  { %11433 = vmatprep.subr.bf16.mxu0 %v11432_v44  ;;  %v3602_v9 = vsel %vm404_vm4, %v13071_v3, %v3582_v52 }
0x257c   :  { %11435 = vmatpush3.bf16.msra.mxu0 %v11432_v44 }
0x257d   :  { %11437 = vmatprep.subr.bf16.mxu0 %v11436_v7 }
0x257e   :  { %v3588_v23 = vpop.permute.xlu1 %3587 }
0x2582   :  { %v12204_v24 = vpop.eup %12203 }
0x2583   :  { %v3480_v45 = vsel %vm492_vm6, %v12204_v24, 0.0  ;;  %v12206_v41 = vpop.eup %12205 }
0x2584   :  { %3481 = vadd.xlane.f32.xlu0 %v3480_v45  ;;  %v3483_v46 = vsel %vm492_vm6, %v12206_v41, 0.0 }
0x2588   :  { %3484 = vadd.xlane.f32.xlu0 %v3483_v46 }
0x259e   :  { %3579 = vrot.lane.b32.xlu0 %v13099_v42, %s12469_s14  ;;  %v11440_v42 = vpack.c.bf16 %v2649_v43, %v2648_v61 }
0x25a2   :  { %3589 = vrot.lane.b32.xlu0 %v10754_v13, %s12483_s22 }
0x2611   :  { %v3482_v4 = vpop.xlane.xlu0 %3481 }
0x2612   :  { %12207 = vrcp.f32 %v3482_v4 }
0x2615   :  { %v3485_v49 = vpop.xlane.xlu0 %3484 }
0x2616   :  { %12209 = vrcp.f32 %v3485_v49 }
0x2619   :  { %v3580_v8 = vpop.permute.xlu0 %3579 }
0x261a   :  { %v3601_v58 = vsel %vm404_vm4, %v13073_v5, %v3580_v8  ;;  %v9866_v5 = vld [vmem:[%s14082_s11 + $0x12] ss:$0 sm:$0xff] }
0x261b   :  { %v3603_v15 = vsel %vm492_vm6, %v3601_v58, %v3588_v23 }
0x261c   :  { %v12208_v51 = vpop.eup %12207 }
0x261d   :  { %v3488_v6 = vmul.f32 %v12208_v51, %v12204_v24  ;;  %v3590_v55 = vpop.permute.xlu0 %3589  ;;  %v9869_v51 = vld [vmem:[%s14082_s11 + $0x16] ss:$0 sm:$0xff] }
0x261e   :  { %v3604_v16 = vsel %vm492_vm6, %v3602_v9, %v3590_v55  ;;  %v13212_v9 = vld [vmem:[%s14076_s5] sm:$0xff] }
0x261f   :  { %10766 = vmatprep.mubr.msk.f32.mxu0 %vm492_vm6, %v3488_v6 }
0x2620   :  { %v12210_v53 = vpop.eup %12209 }
0x2621   :  { %v3489_v54 = vmul.f32 %v12210_v53, %v12206_v41 }
0x2623   :  { %10767 = vmatmul.mubr.msk.f32.vlgmr.msra.gmra.mrb[28].mxu0 %vm492_vm6, %v3489_v54 }
0x2624   :  { %11439 = vmatpush3.bf16.msra.mxu0 %v11436_v7 }
0x2625   :  { %11441 = vmatprep.subr.bf16.mxu0 %v11440_v42 }
0x2628   :  { %11443 = vmatpush3.bf16.msra.mxu0 %v11440_v42  ;;  %v9871_v42 = vld [vmem:[%s14082_s11 + $0x11] ss:$0 sm:$0xff] }
0x26f6   :  { %v10768_v2 = vpop.f32.mrb[28].mxu0 }
0x26f7   :  { %3597 = vrot.lane.b32.xlu0 %v10768_v2, %s12484_s26  ;;  %v3568_v50 = vpop.f32.mrb[29].mxu0 }
0x26f8   :  { %3595 = vrot.lane.b32.xlu1 %v3568_v50, %s12484_s26 }
0x2769   :  { %v3598_v21 = vpop.permute.xlu0 %3597 }
0x276a   :  { %v3596_v10 = vpop.permute.xlu1 %3595  ;;  %v3606_v62 = vsel %vm1242_vm7, %v3604_v16, %v3598_v21 }
0x276b   :  { %v3605_v12 = vsel %vm1242_vm7, %v3603_v15, %v3596_v10  ;;  %v13218_v15 = vld [vmem:[%s14076_s5 + $0x8] sm:$0xff] }
0x276c   :  { %10777 = vmatprep.mubr.msk.f32.mxu0 %vm190_vm0, %v3605_v12 }
0x276d   :  { %10778 = vmatmul.mubr.msk.f32.vlgmr.msra.gmra.mrb[30].mxu0 %vm190_vm0, %v3606_v62 }
0x2840   :  { %v10779_v20 = vpop.f32.mrb[30].mxu0 }
0x2841   :  { %v3689_v22 = vadd.f32 %v10779_v20, %v9866_v5  ;;  %v3683_v3 = vpop.f32.mrb[31].mxu0 }
0x2842   :  { %v3684_v25 = vadd.f32 %v9866_v5, %v3683_v3 }
0x2843   :  { %v3693_v26 = vadd.f32 %v3689_v22, %v13012_v19 }
0x2844   :  { %v3692_v57 = vadd.f32 %v3684_v25, %v13010_v18  ;;  %v9823_v18 = vld [vmem:[%s14078_s7 + $0x20] sm:$0xff] }
0x2845   :  { %v3697_v56 = vsel %vm190_vm0, %v3693_v26, 0.0  ;;  %v11444_v38 = vpack.c.bf16 %v9824_v36, %v9823_v18 }
0x2846   :  { %3698 = vadd.xlane.f32.xlu0 %v3697_v56  ;;  %v3694_v13 = vsel %vm190_vm0, %v3692_v57, 0.0 }
0x2847   :  { %3695 = vadd.xlane.f32.xlu1 %v3694_v13  ;;  %11445 = vmatprep.subr.bf16.mxu1 %v11444_v38 }
0x2848   :  { %11447 = vmatpush3.bf16.msra.mxu1 %v11444_v38 }
0x2849   :  { %11449 = vmatprep.subr.bf16.mxu1 %v11448_v30 }
0x284c   :  { %11451 = vmatpush3.bf16.msra.mxu1 %v11448_v30 }
0x28d3   :  { %v3699_v27 = vpop.xlane.xlu0 %3698 }
0x28d4   :  { %v3701_v28 = vmul.f32 0.03125, %v3699_v27  ;;  %v3696_v31 = vpop.xlane.xlu1 %3695 }
0x28d5   :  { %v3700_v33 = vmul.f32 0.03125, %v3696_v31 }
0x28d6   :  { %v3703_v47 = vsub.f32 %v3693_v26, %v3701_v28 }
0x28d7   :  { %v3702_v48 = vsub.f32 %v3692_v57, %v3700_v33 }
0x28d8   :  { %v3705_v14 = vmul.f32 %v3703_v47, %v3703_v47 }
0x28d9   :  { %v3704_v17 = vmul.f32 %v3702_v48, %v3702_v48 }
0x28da   :  { %v3709_v35 = vsel %vm190_vm0, %v3705_v14, 0.0 }
0x28db   :  { %3710 = vadd.xlane.f32.xlu1 %v3709_v35  ;;  %v3706_v19 = vsel %vm190_vm0, %v3704_v17, 0.0 }
0x28dc   :  { %3707 = vadd.xlane.f32.xlu0 %v3706_v19 }
0x28f2   :  { %11909 = vrot.lane.b32.xlu0 %v12660_v63, %s12475_s20 }
0x28f6   :  { %11919 = vrot.lane.b32.xlu0 %v12660_v63, %s12478_s23 }
0x2968   :  { %v3711_v32 = vpop.xlane.xlu1 %3710 }
0x2969   :  { %v3713_v39 = vmul.f32 0.03125, %v3711_v32  ;;  %v3708_v40 = vpop.xlane.xlu0 %3707 }
0x296a   :  { %v3712_v29 = vmul.f32 0.03125, %v3708_v40 }
0x296b   :  { %v3715_v44 = vadd.f32 1e-05, %v3713_v39 }
0x296c   :  { %v3714_v24 = vadd.f32 1e-05, %v3712_v29 }
0x296d   :  { %12211 = vrsqrt.f32 %v3715_v44  ;;  %v11910_v45 = vpop.permute.xlu0 %11909 }
0x296e   :  { %12213 = vrsqrt.f32 %v3714_v24  ;;  %v11912_v41 = vunpack.i.h.bf16 %v11910_v45  ;;  %v11911_v46 = vunpack.i.l.bf16 %v11910_v45 }
0x2970   :  { %v11452_v4 = vpack.c.bf16 %v11912_v41, %v11911_v46 }
0x2971   :  { %v11920_v33 = vpop.permute.xlu0 %11919 }
0x2972   :  { %11454 = vmatprep.subr.msk.bf16.mxu0 %vm12683_vm5, %v11452_v4  ;;  %v11921_v14 = vunpack.i.l.bf16 %v11920_v33 }
0x2973   :  { %11457 = vmatpush3.bf16.xpose.msk.msra.mxu0 %vm12683_vm5, %v11452_v4 }
0x2977   :  { %v12212_v49 = vpop.eup %12211 }
0x2978   :  { %v12214_v6 = vpop.eup %12213  ;;  %v3719_v53 = vmul.f32 %v12212_v49, %v3703_v47 }
0x2979   :  { %v3718_v54 = vmul.f32 %v12214_v6, %v3702_v48  ;;  %v11922_v48 = vunpack.i.h.bf16 %v11920_v33 }
0x297a   :  { %v3725_v60 = vmul.f32 %v9869_v51, %v3719_v53 }
0x297b   :  { %v3724_v61 = vmul.f32 %v9869_v51, %v3718_v54  ;;  %v11462_v18 = vpack.c.bf16 %v11922_v48, %v11921_v14 }
0x297c   :  { %v13188_v43 = vadd.f32 %v9870_v59, %v3725_v60 }
0x297d   :  { %v13186_v7 = vadd.f32 %v9870_v59, %v3724_v61 }
0x297f   :  { %10788 = vmatprep.mubr.msk.f32.mxu1 %vm190_vm0, %v13186_v7 }
0x2980   :  { %10789 = vmatmul.mubr.msk.f32.vlgmr.msra.gmra.mrb[38].mxu1 %vm190_vm0, %v13188_v43 }
0x2a53   :  { %v10790_v2 = vpop.f32.mrb[38].mxu1 }
0x2a54   :  { %v3808_v50 = vpop.f32.mrb[39].mxu1  ;;  %v13199_v52 = vadd.f32 %v10790_v2, %v9871_v42 }
0x2a55   :  { %v13197_v8 = vadd.f32 %v9871_v42, %v3808_v50 }
0x2a57   :  { %4019 = vrot.lane.b32.xlu0 %v13197_v8, %s12474_s19  ;;  %10795 = vmatprep.mubr.msk.f32.mxu0 %vm404_vm4, %v13197_v8 }
0x2a58   :  { %10796 = vmatmul.mubr.msk.f32.vlgmr.msra.gmra.mrb[32].mxu0 %vm404_vm4, %v13199_v52 }
0x2a5b   :  { %4021 = vrot.lane.b32.xlu0 %v13199_v52, %s12474_s19 }
0x2ac9   :  { %v4020_v30 = vpop.permute.xlu0 %4019 }
0x2acd   :  { %v4022_v32 = vpop.permute.xlu0 %4021 }
0x2b2b   :  { %v10797_v55 = vpop.f32.mrb[32].mxu0 }
0x2b2c   :  { %v3897_v23 = vpop.f32.mrb[33].mxu0  ;;  %v3907_v58 = vmul.f32 0.35355338, %v10797_v55 }
0x2b2d   :  { %v3906_v21 = vmul.f32 0.35355338, %v3897_v23 }
0x2b2e   :  { %v3909_v16 = vadd.f32 %v13218_v15, %v3907_v58 }
0x2b2f   :  { %v3908_v10 = vadd.f32 %v13212_v9, %v3906_v21 }
0x2b30   :  { %v3913_v62 = vsel %vm492_vm6, %v3909_v16, -inf }
0x2b31   :  { %v3910_v12 = vsel %vm492_vm6, %v3908_v10, -inf }
0x2b32   :  { %3911 = vmax.xlane.f32.xlu1 %v3910_v12 }
0x2b36   :  { %3914 = vmax.xlane.f32.xlu1 %v3913_v62 }
0x2bbf   :  { %v3912_v5 = vpop.xlane.xlu1 %3911 }
0x2bc0   :  { %v3916_v20 = vsub.f32 %v3908_v10, %v3912_v5 }
0x2bc2   :  { %v3918_v25 = vmul.f32 1.442695, %v3916_v20 }
0x2bc3   :  { %v3915_v22 = vpop.xlane.xlu1 %3914 }
0x2bc4   :  { %v3917_v3 = vsub.f32 %v3909_v16, %v3915_v22 }
0x2bc6   :  { %v3920_v26 = vmul.f32 1.442695, %v3917_v3 }
0x2bc8   :  { %12215 = vpow2.f32 %v3920_v26 }
0x2bc9   :  { %12217 = vpow2.f32 %v3918_v25 }
0x2bd2   :  { %v12216_v57 = vpop.eup %12215 }
0x2bd3   :  { %v3925_v56 = vsel %vm492_vm6, %v12216_v57, 0.0  ;;  %v12218_v13 = vpop.eup %12217 }
0x2bd4   :  { %3926 = vadd.xlane.f32.xlu1 %v3925_v56  ;;  %v3922_v27 = vsel %vm492_vm6, %v12218_v13, 0.0 }
0x2bd8   :  { %3923 = vadd.xlane.f32.xlu1 %v3922_v27 }
0x2be9   :  { %11914 = vrot.lane.b32.xlu1 %v12660_v63, %s12485_s17 }
0x2c61   :  { %v3927_v28 = vpop.xlane.xlu1 %3926 }
0x2c62   :  { %12219 = vrcp.f32 %v3927_v28 }
0x2c65   :  { %v3924_v31 = vpop.xlane.xlu1 %3923 }
0x2c66   :  { %12221 = vrcp.f32 %v3924_v31 }
0x2c69   :  { %v11915_v47 = vpop.permute.xlu1 %11914 }
0x2c6a   :  { %v11917_v17 = vunpack.i.h.bf16 %v11915_v47  ;;  %v11916_v35 = vunpack.i.l.bf16 %v11915_v47 }
0x2c6c   :  { %v11458_v19 = vpack.c.bf16 %v11917_v17, %v11916_v35  ;;  %v12220_v36 = vpop.eup %12219 }
0x2c6d   :  { %v3931_v34 = vmul.f32 %v12220_v36, %v12216_v57 }
0x2c6e   :  { %11459 = vmatprep.subr.bf16.mxu1 %v11458_v19 }
0x2c6f   :  { %11461 = vmatpush3.bf16.msra.mxu1 %v11458_v19 }
0x2c70   :  { %v12222_v37 = vpop.eup %12221  ;;  %11464 = vmatprep.subr.msk.bf16.mxu1 %vm12683_vm5, %v11462_v18 }
0x2c71   :  { %v3930_v38 = vmul.f32 %v12222_v37, %v12218_v13 }
0x2c73   :  { %10802 = vmatprep.mubr.msk.f32.mxu1 %vm492_vm6, %v3930_v38 }
0x2c74   :  { %10803 = vmatmul.mubr.msk.f32.vlgmr.msra.gmra.mrb[40].mxu1 %vm492_vm6, %v3931_v34 }
0x2c75   :  { %10809 = vmatprep.mubr.msk.f32.mxu1 %vm404_vm4, %v4020_v30 }
0x2c78   :  { %11467 = vmatpush3.bf16.xpose.msk.msra.mxu1 %vm12683_vm5, %v11462_v18 }
0x2c7f   :  { %10810 = vmatmul.mubr.msk.f32.vlgmr.msra.gmra.mrb[42].mxu1 %vm404_vm4, %v4022_v32 }
0x2d47   :  { %v13235_v39 = vpop.f32.mrb[40].mxu1 }
0x2d48   :  { %v13237_v40 = vpop.f32.mrb[41].mxu1 }
0x2d52   :  { %v10811_v29 = vpop.f32.mrb[42].mxu1 }
0x2d53   :  { %v4111_v44 = vmul.f32 0.35355338, %v10811_v29  ;;  %v4101_v24 = vpop.f32.mrb[43].mxu1 }
0x2d54   :  { %v4110_v45 = vmul.f32 0.35355338, %v4101_v24 }
0x2d55   :  { %v4113_v41 = vadd.f32 %v13218_v15, %v4111_v44 }
0x2d56   :  { %v4112_v46 = vadd.f32 %v13212_v9, %v4110_v45 }
0x2d57   :  { %v4117_v4 = vsel %vm492_vm6, %v4113_v41, -inf }
0x2d58   :  { %4118 = vmax.xlane.f32.xlu1 %v4117_v4  ;;  %v4114_v49 = vsel %vm492_vm6, %v4112_v46, -inf }
0x2d59   :  { %4115 = vmax.xlane.f32.xlu0 %v4114_v49 }
0x2d69   :  { %11924 = vrot.lane.b32.xlu1 %v12660_v63, %s12484_s26 }
0x2d6d   :  { %4223 = vrot.lane.b32.xlu1 %v13197_v8, %s12477_s21 }
0x2d71   :  { %4225 = vrot.lane.b32.xlu1 %v13199_v52, %s12477_s21 }
0x2de5   :  { %v4119_v51 = vpop.xlane.xlu1 %4118 }
0x2de6   :  { %v4121_v6 = vsub.f32 %v4113_v41, %v4119_v51  ;;  %v4116_v53 = vpop.xlane.xlu0 %4115 }
0x2de7   :  { %v4120_v54 = vsub.f32 %v4112_v46, %v4116_v53 }
0x2de8   :  { %v4124_v59 = vmul.f32 1.442695, %v4121_v6 }
0x2de9   :  { %v4122_v60 = vmul.f32 1.442695, %v4120_v54  ;;  %v11925_v61 = vpop.permute.xlu1 %11924 }
0x2dea   :  { %12223 = vpow2.f32 %v4124_v59  ;;  %v11927_v42 = vunpack.i.h.bf16 %v11925_v61  ;;  %v11926_v2 = vunpack.i.l.bf16 %v11925_v61 }
0x2deb   :  { %12225 = vpow2.f32 %v4122_v60 }
0x2dec   :  { %v11468_v50 = vpack.c.bf16 %v11927_v42, %v11926_v2 }
0x2ded   :  { %v4224_v57 = vpop.permute.xlu1 %4223 }
0x2dee   :  { %11469 = vmatprep.subr.bf16.mxu0 %v11468_v50 }
0x2def   :  { %11471 = vmatpush3.bf16.msra.mxu0 %v11468_v50 }
0x2df1   :  { %v4226_v56 = vpop.permute.xlu1 %4225 }
0x2df4   :  { %v12224_v55 = vpop.eup %12223 }
0x2df5   :  { %v4129_v23 = vsel %vm492_vm6, %v12224_v55, 0.0  ;;  %v12226_v58 = vpop.eup %12225 }
0x2df6   :  { %4130 = vadd.xlane.f32.xlu0 %v4129_v23  ;;  %v4126_v21 = vsel %vm492_vm6, %v12226_v58, 0.0 }
0x2dfa   :  { %4127 = vadd.xlane.f32.xlu0 %v4126_v21 }
0x2e10   :  { %11929 = vrot.lane.b32.xlu0 %v12660_v63, %s12479_s24 }
0x2e83   :  { %v4131_v10 = vpop.xlane.xlu0 %4130 }
0x2e84   :  { %12227 = vrcp.f32 %v4131_v10 }
0x2e87   :  { %v4128_v16 = vpop.xlane.xlu0 %4127 }
0x2e88   :  { %12229 = vrcp.f32 %v4128_v16 }
0x2e8b   :  { %v11930_v12 = vpop.permute.xlu0 %11929 }
0x2e8c   :  { %v11932_v62 = vunpack.i.h.bf16 %v11930_v12  ;;  %v11931_v5 = vunpack.i.l.bf16 %v11930_v12 }
0x2e8e   :  { %v11472_v20 = vpack.c.bf16 %v11932_v62, %v11931_v5  ;;  %v12228_v22 = vpop.eup %12227 }
0x2e8f   :  { %v4135_v26 = vmul.f32 %v12228_v22, %v12224_v55 }
0x2e90   :  { %11474 = vmatprep.subr.msk.bf16.mxu0 %vm12683_vm5, %v11472_v20 }
0x2e92   :  { %v12230_v3 = vpop.eup %12229 }
0x2e93   :  { %v4134_v25 = vmul.f32 %v12230_v3, %v12226_v58 }
0x2e95   :  { %10816 = vmatprep.mubr.msk.f32.mxu0 %vm492_vm6, %v4134_v25 }
0x2e96   :  { %10817 = vmatmul.mubr.msk.f32.vlgmr.msra.gmra.mrb[34].mxu0 %vm492_vm6, %v4135_v26 }
0x2e97   :  { %11477 = vmatpush3.bf16.xpose.msk.msra.mxu0 %vm12683_vm5, %v11472_v20  ;;  %10823 = vmatprep.mubr.msk.f32.mxu0 %vm404_vm4, %v4224_v57 }
0x2e9e   :  { %10824 = vmatmul.mubr.msk.f32.vlgmr.msra.gmra.mrb[36].mxu0 %vm404_vm4, %v4226_v56 }
0x2f69   :  { %v13261_v13 = vpop.f32.mrb[34].mxu0 }
0x2f6a   :  { %v13263_v27 = vpop.f32.mrb[35].mxu0 }
0x2f71   :  { %v10825_v28 = vpop.f32.mrb[36].mxu0 }
0x2f72   :  { %v4315_v31 = vmul.f32 0.35355338, %v10825_v28  ;;  %v4305_v33 = vpop.f32.mrb[37].mxu0 }
0x2f73   :  { %v4314_v47 = vmul.f32 0.35355338, %v4305_v33 }
0x2f74   :  { %v4317_v48 = vadd.f32 %v13218_v15, %v4315_v31 }
0x2f75   :  { %v4316_v14 = vadd.f32 %v13212_v9, %v4314_v47 }
0x2f76   :  { %v4321_v17 = vsel %vm492_vm6, %v4317_v48, -inf }
0x2f77   :  { %4322 = vmax.xlane.f32.xlu1 %v4321_v17  ;;  %v4318_v35 = vsel %vm492_vm6, %v4316_v14, -inf }
0x2f78   :  { %4319 = vmax.xlane.f32.xlu0 %v4318_v35 }
0x2f88   :  { %11934 = vrot.lane.b32.xlu1 %v12660_v63, %s12483_s22 }
0x2f8c   :  { %4427 = vrot.lane.b32.xlu1 %v13197_v8, %s12480_s25 }
0x2f90   :  { %4429 = vrot.lane.b32.xlu1 %v13199_v52, %s12480_s25 }
0x3004   :  { %v4323_v19 = vpop.xlane.xlu1 %4322 }
0x3005   :  { %v4325_v18 = vsub.f32 %v4317_v48, %v4323_v19  ;;  %v4320_v36 = vpop.xlane.xlu0 %4319  ;;  %v2651_v19 = vld [vmem:[#allocation2 + $0xa0] sm:$0xff] }
0x3006   :  { %v4324_v37 = vsub.f32 %v4316_v14, %v4320_v36  ;;  %v2653_v36 = vld [vmem:[#allocation2 + $0xb0] sm:$0xff] }
0x3007   :  { %v4328_v38 = vmul.f32 1.442695, %v4325_v18  ;;  %v2652_v18 = vld [vmem:[#allocation2 + $0xa8] sm:$0xff] }
0x3008   :  { %v4326_v34 = vmul.f32 1.442695, %v4324_v37  ;;  %v11935_v30 = vpop.permute.xlu1 %11934  ;;  %v11492_v37 = vpack.c.bf16 %v2652_v18, %v2651_v19 }
0x3009   :  { %12231 = vpow2.f32 %v4328_v38  ;;  %v11937_v32 = vunpack.i.h.bf16 %v11935_v30  ;;  %v11936_v29 = vunpack.i.l.bf16 %v11935_v30  ;;  %v2654_v38 = vld [vmem:[#allocation2 + $0xb8] sm:$0xff] }
0x300a   :  { %12233 = vpow2.f32 %v4326_v34 }
0x300b   :  { %v11478_v44 = vpack.c.bf16 %v11937_v32, %v11936_v29 }
0x300c   :  { %v4428_v61 = vpop.permute.xlu1 %4427 }
0x300d   :  { %11479 = vmatprep.subr.bf16.mxu1 %v11478_v44 }
0x300e   :  { %11481 = vmatpush3.bf16.msra.mxu1 %v11478_v44 }
0x3010   :  { %v4430_v42 = vpop.permute.xlu1 %4429 }
0x3013   :  { %v12232_v24 = vpop.eup %12231 }
0x3014   :  { %v4333_v8 = vsel %vm492_vm6, %v12232_v24, 0.0  ;;  %v12234_v45 = vpop.eup %12233 }
0x3015   :  { %4334 = vadd.xlane.f32.xlu0 %v4333_v8  ;;  %v4330_v52 = vsel %vm492_vm6, %v12234_v45, 0.0 }
0x3019   :  { %4331 = vadd.xlane.f32.xlu0 %v4330_v52 }
0x302f   :  { %11939 = vrot.lane.b32.xlu0 %v12660_v63, %s12482_s3 }
0x30a2   :  { %v4335_v41 = vpop.xlane.xlu0 %4334 }
0x30a3   :  { %12235 = vrcp.f32 %v4335_v41 }
0x30a6   :  { %v4332_v46 = vpop.xlane.xlu0 %4331 }
0x30a7   :  { %12237 = vrcp.f32 %v4332_v46 }
0x30aa   :  { %v11940_v4 = vpop.permute.xlu0 %11939 }
0x30ab   :  { %v11942_v49 = vunpack.i.h.bf16 %v11940_v4  ;;  %v11941_v51 = vunpack.i.l.bf16 %v11940_v4 }
0x30ad   :  { %v11482_v6 = vpack.c.bf16 %v11942_v49, %v11941_v51  ;;  %v12236_v53 = vpop.eup %12235 }
0x30ae   :  { %v4339_v60 = vmul.f32 %v12236_v53, %v12232_v24 }
0x30af   :  { %11484 = vmatprep.subr.msk.bf16.mxu1 %vm12683_vm5, %v11482_v6 }
0x30b1   :  { %v12238_v54 = vpop.eup %12237 }
0x30b2   :  { %v4338_v59 = vmul.f32 %v12238_v54, %v12234_v45 }
0x30b4   :  { %10830 = vmatprep.mubr.msk.f32.mxu1 %vm492_vm6, %v4338_v59 }
0x30b5   :  { %10831 = vmatmul.mubr.msk.f32.vlgmr.msra.gmra.mrb[44].mxu1 %vm492_vm6, %v4339_v60 }
0x30b6   :  { %11487 = vmatpush3.bf16.xpose.msk.msra.mxu1 %vm12683_vm5, %v11482_v6  ;;  %10837 = vmatprep.mubr.msk.f32.mxu1 %vm404_vm4, %v4428_v61 }
0x30bd   :  { %10838 = vmatmul.mubr.msk.f32.vlgmr.msra.gmra.mrb[46].mxu1 %vm404_vm4, %v4430_v42 }
0x3188   :  { %v10832_v2 = vpop.f32.mrb[44].mxu1 }
0x3189   :  { %v4418_v50 = vpop.f32.mrb[45].mxu1 }
0x3190   :  { %v10839_v55 = vpop.f32.mrb[46].mxu1 }
0x3191   :  { %v4519_v23 = vmul.f32 0.35355338, %v10839_v55  ;;  %v4509_v58 = vpop.f32.mrb[47].mxu1 }
0x3192   :  { %v4518_v21 = vmul.f32 0.35355338, %v4509_v58 }
0x3193   :  { %v4521_v10 = vadd.f32 %v13218_v15, %v4519_v23 }
0x3194   :  { %v4520_v16 = vadd.f32 %v13212_v9, %v4518_v21 }
0x3195   :  { %v4525_v12 = vsel %vm492_vm6, %v4521_v10, -inf }
0x3196   :  { %4526 = vmax.xlane.f32.xlu1 %v4525_v12  ;;  %v4522_v62 = vsel %vm492_vm6, %v4520_v16, -inf }
0x3197   :  { %4523 = vmax.xlane.f32.xlu0 %v4522_v62  ;;  %v2657_v62 = vld [vmem:[#allocation2 + $0xc8] sm:$0xff] }
0x31a7   :  { %11944 = vrot.lane.b32.xlu1 %v12660_v63, %s12469_s14 }
0x31ab   :  { %4635 = vrot.lane.b32.xlu1 %v13261_v13, %s12469_s14 }
0x31af   :  { %4641 = vrot.lane.b32.xlu1 %v4418_v50, %s12483_s22 }
0x3223   :  { %v4527_v5 = vpop.xlane.xlu1 %4526 }
0x3224   :  { %v4529_v20 = vsub.f32 %v4521_v10, %v4527_v5  ;;  %v4524_v22 = vpop.xlane.xlu0 %4523  ;;  %v2658_v5 = vld [vmem:[#allocation2 + $0xd0] sm:$0xff] }
0x3225   :  { %v4528_v15 = vsub.f32 %v4520_v16, %v4524_v22  ;;  %v2659_v22 = vld [vmem:[#allocation2 + $0xd8] sm:$0xff] }
0x3226   :  { %v4532_v3 = vmul.f32 1.442695, %v4529_v20 }
0x3227   :  { %v4530_v9 = vmul.f32 1.442695, %v4528_v15  ;;  %v11945_v25 = vpop.permute.xlu1 %11944  ;;  %v11504_v15 = vpack.c.bf16 %v2659_v22, %v2658_v5 }
0x3228   :  { %v11947_v26 = vunpack.i.h.bf16 %v11945_v25  ;;  %v11946_v57 = vunpack.i.l.bf16 %v11945_v25 }
0x3229   :  { %12239 = vpow2.f32 %v4530_v9  ;;  %v2662_v9 = vld [vmem:[#allocation2 + $0xe8] sm:$0xff] }
0x322a   :  { %v11488_v56 = vpack.c.bf16 %v11947_v26, %v11946_v57  ;;  %12241 = vpow2.f32 %v4532_v3  ;;  %v2661_v3 = vld [vmem:[#allocation2 + $0xe0] sm:$0xff] }
0x322b   :  { %v4636_v29 = vpop.permute.xlu1 %4635  ;;  %v11508_v25 = vpack.c.bf16 %v2662_v9, %v2661_v3  ;;  %v9909_v3 = vld [vmem:[%s14082_s11 + $0x1a] ss:$0 sm:$0xff] }
0x322c   :  { %11489 = vmatprep.subr.bf16.mxu0 %v11488_v56  ;;  %v4656_v52 = vsel %vm404_vm4, %v13235_v39, %v4636_v29 }
0x322d   :  { %11491 = vmatpush3.bf16.msra.mxu0 %v11488_v56 }
0x322e   :  { %11493 = vmatprep.subr.bf16.mxu0 %v11492_v37 }
0x322f   :  { %v4642_v24 = vpop.permute.xlu1 %4641 }
0x3233   :  { %v12240_v63 = vpop.eup %12239 }
0x3234   :  { %v4534_v28 = vsel %vm492_vm6, %v12240_v63, 0.0  ;;  %v12242_v13 = vpop.eup %12241 }
0x3235   :  { %4535 = vadd.xlane.f32.xlu0 %v4534_v28  ;;  %v4537_v31 = vsel %vm492_vm6, %v12242_v13, 0.0 }
0x3239   :  { %4538 = vadd.xlane.f32.xlu0 %v4537_v31 }
0x324f   :  { %4633 = vrot.lane.b32.xlu0 %v13263_v27, %s12469_s14  ;;  %v11496_v27 = vpack.c.bf16 %v2654_v38, %v2653_v36  ;;  %v2664_v38 = vld [vmem:[#allocation2 + $0xf8] sm:$0xff] }
0x3253   :  { %4643 = vrot.lane.b32.xlu0 %v10832_v2, %s12483_s22 }
0x32c2   :  { %v4536_v33 = vpop.xlane.xlu0 %4535 }
0x32c3   :  { %12243 = vrcp.f32 %v4536_v33  ;;  %v9901_v33 = vld [vmem:[%s14082_s11 + $0x18] ss:$0 sm:$0xff] }
0x32c6   :  { %v4539_v47 = vpop.xlane.xlu0 %4538 }
0x32c7   :  { %12245 = vrcp.f32 %v4539_v47 }
0x32ca   :  { %v4634_v32 = vpop.permute.xlu0 %4633 }
0x32cb   :  { %v4655_v8 = vsel %vm404_vm4, %v13237_v40, %v4634_v32  ;;  %v9898_v40 = vld [vmem:[%s14082_s11 + $0x13] ss:$0 sm:$0xff] }
0x32cc   :  { %v4657_v46 = vsel %vm492_vm6, %v4655_v8, %v4642_v24 }
0x32cd   :  { %v12244_v48 = vpop.eup %12243 }
0x32ce   :  { %v4542_v14 = vmul.f32 %v12244_v48, %v12240_v63  ;;  %v4644_v44 = vpop.permute.xlu0 %4643 }
0x32cf   :  { %v4658_v4 = vsel %vm492_vm6, %v4656_v52, %v4644_v44 }
0x32d0   :  { %10844 = vmatprep.mubr.msk.f32.mxu0 %vm492_vm6, %v4542_v14 }
0x32d1   :  { %v12246_v17 = vpop.eup %12245 }
0x32d2   :  { %v4543_v35 = vmul.f32 %v12246_v17, %v12242_v13  ;;  %v9902_v17 = vld [vmem:[%s14082_s11 + $0x19] ss:$0 sm:$0xff] }
0x32d4   :  { %10845 = vmatmul.mubr.msk.f32.vlgmr.msra.gmra.mrb[38].mxu0 %vm492_vm6, %v4543_v35 }
0x32d5   :  { %11495 = vmatpush3.bf16.msra.mxu0 %v11492_v37  ;;  %v2663_v37 = vld [vmem:[#allocation2 + $0xf0] sm:$0xff] }
0x32d6   :  { %11497 = vmatprep.subr.bf16.mxu0 %v11496_v27 }
0x32d9   :  { %11499 = vmatpush3.bf16.msra.mxu0 %v11496_v27  ;;  %v11512_v27 = vpack.c.bf16 %v2664_v38, %v2663_v37 }
0x32da   :  { %11509 = vmatprep.subr.bf16.mxu0 %v11508_v25 }
0x33a7   :  { %v10846_v34 = vpop.f32.mrb[38].mxu0 }
0x33a8   :  { %4651 = vrot.lane.b32.xlu0 %v10846_v34, %s12484_s26  ;;  %v4622_v30 = vpop.f32.mrb[39].mxu0  ;;  %v9903_v34 = vld [vmem:[%s14082_s11 + $0x14] ss:$0 sm:$0xff] }
0x33a9   :  { %4649 = vrot.lane.b32.xlu1 %v4622_v30, %s12484_s26 }
0x341a   :  { %v4652_v45 = vpop.permute.xlu0 %4651 }
0x341b   :  { %v4650_v41 = vpop.permute.xlu1 %4649  ;;  %v4660_v51 = vsel %vm1242_vm7, %v4658_v4, %v4652_v45  ;;  %v9906_v45 = vld [vmem:[%s14082_s11 + $0x15] ss:$0 sm:$0xff] }
0x341c   :  { %v4659_v49 = vsel %vm1242_vm7, %v4657_v46, %v4650_v41 }
0x341d   :  { %10855 = vmatprep.mubr.msk.f32.mxu0 %vm190_vm0, %v4659_v49 }
0x341e   :  { %10856 = vmatmul.mubr.msk.f32.vlgmr.msra.gmra.mrb[40].mxu0 %vm190_vm0, %v4660_v51 }
0x341f   :  { %11511 = vmatpush3.bf16.msra.mxu0 %v11508_v25 }
0x3420   :  { %11513 = vmatprep.subr.bf16.mxu0 %v11512_v27 }
0x3423   :  { %11515 = vmatpush3.bf16.msra.mxu0 %v11512_v27 }
0x34f1   :  { %v10857_v6 = vpop.f32.mrb[40].mxu0 }
0x34f2   :  { %v4743_v53 = vadd.f32 %v10857_v6, %v9898_v40  ;;  %v4737_v39 = vpop.f32.mrb[41].mxu0 }
0x34f3   :  { %v4738_v54 = vadd.f32 %v9898_v40, %v4737_v39 }
0x34f4   :  { %v4747_v59 = vadd.f32 %v4743_v53, %v13188_v43 }
0x34f5   :  { %v4746_v60 = vadd.f32 %v4738_v54, %v13186_v7  ;;  %v2656_v7 = vld [vmem:[#allocation2 + $0xc0] sm:$0xff] }
0x34f6   :  { %v4751_v61 = vsel %vm190_vm0, %v4747_v59, 0.0  ;;  %v11500_v20 = vpack.c.bf16 %v2657_v62, %v2656_v7 }
0x34f7   :  { %4752 = vadd.xlane.f32.xlu0 %v4751_v61  ;;  %v4748_v42 = vsel %vm190_vm0, %v4746_v60, 0.0 }
0x34f8   :  { %4749 = vadd.xlane.f32.xlu1 %v4748_v42  ;;  %11501 = vmatprep.subr.bf16.mxu1 %v11500_v20 }
0x34f9   :  { %11503 = vmatpush3.bf16.msra.mxu1 %v11500_v20 }
0x34fa   :  { %11505 = vmatprep.subr.bf16.mxu1 %v11504_v15 }
0x34fd   :  { %11507 = vmatpush3.bf16.msra.mxu1 %v11504_v15 }
0x3584   :  { %v4753_v2 = vpop.xlane.xlu0 %4752 }
0x3585   :  { %v4755_v50 = vmul.f32 0.03125, %v4753_v2  ;;  %v4750_v55 = vpop.xlane.xlu1 %4749 }
0x3586   :  { %v4754_v23 = vmul.f32 0.03125, %v4750_v55 }
0x3587   :  { %v4757_v58 = vsub.f32 %v4747_v59, %v4755_v50 }
0x3588   :  { %v4756_v21 = vsub.f32 %v4746_v60, %v4754_v23  ;;  %v9911_v23 = vld [vmem:[%s14077_s6 + $0x40] sm:$0xff] }
0x3589   :  { %v4759_v10 = vmul.f32 %v4757_v58, %v4757_v58 }
0x358a   :  { %v4758_v16 = vmul.f32 %v4756_v21, %v4756_v21 }
0x358b   :  { %v4763_v12 = vsel %vm190_vm0, %v4759_v10, 0.0 }
0x358c   :  { %4764 = vadd.xlane.f32.xlu1 %v4763_v12  ;;  %v4760_v43 = vsel %vm190_vm0, %v4758_v16, 0.0  ;;  %v9914_v16 = vld [vmem:[%s14077_s6 + $0x58] sm:$0xff] }
0x358d   :  { %4761 = vadd.xlane.f32.xlu0 %v4760_v43 }
0x3619   :  { %v4765_v26 = vpop.xlane.xlu1 %4764 }
0x361a   :  { %v4767_v57 = vmul.f32 0.03125, %v4765_v26  ;;  %v4762_v56 = vpop.xlane.xlu0 %4761 }
0x361b   :  { %v4766_v63 = vmul.f32 0.03125, %v4762_v56 }
0x361c   :  { %v4769_v28 = vadd.f32 1e-05, %v4767_v57  ;;  %v9910_v57 = vld [vmem:[%s14082_s11 + $0x1b] ss:$0 sm:$0xff] }
0x361d   :  { %v4768_v13 = vadd.f32 1e-05, %v4766_v63 }
0x361e   :  { %12247 = vrsqrt.f32 %v4769_v28 }
0x361f   :  { %12249 = vrsqrt.f32 %v4768_v13 }
0x3628   :  { %v12248_v31 = vpop.eup %12247 }
0x3629   :  { %v12250_v47 = vpop.eup %12249  ;;  %v4773_v48 = vmul.f32 %v12248_v31, %v4757_v58  ;;  %v9912_v58 = vld [vmem:[%s14077_s6 + $0x48] sm:$0xff]  ;;  %v9931_v31 = vld [vmem:[%s14082_s11 + $0x20] ss:$0 sm:$0xff] }
0x362a   :  { %v4772_v14 = vmul.f32 %v12250_v47, %v4756_v21  ;;  %v9913_v21 = vld [vmem:[%s14077_s6 + $0x50] sm:$0xff]  ;;  %v11516_v10 = vpack.c.bf16 %v9912_v58, %v9911_v23 }
0x362b   :  { %v4779_v35 = vmul.f32 %v9901_v33, %v4773_v48  ;;  %v11520_v12 = vpack.c.bf16 %v9914_v16, %v9913_v21 }
0x362c   :  { %v4778_v19 = vmul.f32 %v9901_v33, %v4772_v14  ;;  %11517 = vmatprep.subr.bf16.mxu1 %v11516_v10 }
0x362d   :  { %v4785_v36 = vadd.f32 %v9902_v17, %v4779_v35 }
0x362e   :  { %v4784_v18 = vadd.f32 %v9902_v17, %v4778_v19 }
0x3630   :  { %10866 = vmatprep.mubr.msk.f32.mxu1 %vm190_vm0, %v4784_v18 }
0x3631   :  { %10867 = vmatmul.mubr.msk.f32.vlgmr.msra.gmra.mrb[48].mxu1 %vm190_vm0, %v4785_v36 }
0x3632   :  { %11519 = vmatpush3.bf16.msra.mxu1 %v11516_v10 }
0x3633   :  { %11521 = vmatprep.subr.bf16.mxu1 %v11520_v12 }
0x3636   :  { %11523 = vmatpush3.bf16.msra.mxu1 %v11520_v12 }
0x3704   :  { %v10868_v30 = vpop.f32.mrb[48].mxu1 }
0x3705   :  { %v4868_v32 = vadd.f32 %v10868_v30, %v9903_v34  ;;  %v4862_v29 = vpop.f32.mrb[49].mxu1  ;;  %v13400_v30 = vld [vmem:[%s14075_s4] sm:$0xff] }
0x3706   :  { %v4863_v44 = vadd.f32 %v9903_v34, %v4862_v29  ;;  %v13406_v29 = vld [vmem:[%s14075_s4 + $0x8] sm:$0xff] }
0x3707   :  { %v4872_v8 = vmax.f32 %v4868_v32, 0.0 }
0x3708   :  { %v4871_v24 = vmax.f32 %v4863_v44, 0.0 }
0x370a   :  { %10877 = vmatprep.mubr.msk.f32.mxu0 %vm190_vm0, %v4871_v24 }
0x370b   :  { %10878 = vmatmul.mubr.msk.f32.vlgmr.msra.gmra.mrb[42].mxu0 %vm190_vm0, %v4872_v8 }
0x37de   :  { %v10879_v52 = vpop.f32.mrb[42].mxu0 }
0x37df   :  { %v4955_v41 = vadd.f32 %v10879_v52, %v9906_v45  ;;  %v4949_v46 = vpop.f32.mrb[43].mxu0 }
0x37e0   :  { %v4950_v4 = vadd.f32 %v9906_v45, %v4949_v46 }
0x37e1   :  { %v4959_v49 = vadd.f32 %v4955_v41, %v4785_v36 }
0x37e2   :  { %v4958_v51 = vadd.f32 %v4950_v4, %v4784_v18 }
0x37e3   :  { %v4963_v40 = vsel %vm190_vm0, %v4959_v49, 0.0 }
0x37e4   :  { %4964 = vadd.xlane.f32.xlu1 %v4963_v40  ;;  %v4960_v6 = vsel %vm190_vm0, %v4958_v51, 0.0 }
0x37e5   :  { %4961 = vadd.xlane.f32.xlu0 %v4960_v6 }
0x3871   :  { %v4965_v53 = vpop.xlane.xlu1 %4964 }
0x3872   :  { %v4967_v39 = vmul.f32 0.03125, %v4965_v53  ;;  %v4962_v54 = vpop.xlane.xlu0 %4961 }
0x3873   :  { %v4966_v59 = vmul.f32 0.03125, %v4962_v54 }
0x3874   :  { %v4969_v60 = vsub.f32 %v4959_v49, %v4967_v39 }
0x3875   :  { %v4968_v61 = vsub.f32 %v4958_v51, %v4966_v59 }
0x3876   :  { %v4971_v42 = vmul.f32 %v4969_v60, %v4969_v60 }
0x3877   :  { %v4970_v2 = vmul.f32 %v4968_v61, %v4968_v61 }
0x3878   :  { %v4975_v50 = vsel %vm190_vm0, %v4971_v42, 0.0 }
0x3879   :  { %4976 = vadd.xlane.f32.xlu1 %v4975_v50  ;;  %v4972_v55 = vsel %vm190_vm0, %v4970_v2, 0.0 }
0x387a   :  { %4973 = vadd.xlane.f32.xlu0 %v4972_v55 }
0x3906   :  { %v4977_v43 = vpop.xlane.xlu1 %4976 }
0x3907   :  { %v4979_v7 = vmul.f32 0.03125, %v4977_v43  ;;  %v4974_v62 = vpop.xlane.xlu0 %4973 }
0x3908   :  { %v4978_v5 = vmul.f32 0.03125, %v4974_v62 }
0x3909   :  { %v4981_v20 = vadd.f32 1e-05, %v4979_v7 }
0x390a   :  { %v4980_v22 = vadd.f32 1e-05, %v4978_v5 }
0x390b   :  { %12251 = vrsqrt.f32 %v4981_v20 }
0x390c   :  { %12253 = vrsqrt.f32 %v4980_v22 }
0x3915   :  { %v12252_v15 = vpop.eup %12251 }
0x3916   :  { %v12254_v9 = vpop.eup %12253  ;;  %v4985_v25 = vmul.f32 %v12252_v15, %v4969_v60 }
0x3917   :  { %v4984_v26 = vmul.f32 %v12254_v9, %v4968_v61 }
0x3918   :  { %v4991_v56 = vmul.f32 %v9909_v3, %v4985_v25 }
0x3919   :  { %v4990_v63 = vmul.f32 %v9909_v3, %v4984_v26 }
0x391a   :  { %v13364_v13 = vadd.f32 %v9910_v57, %v4991_v56 }
0x391b   :  { %v13362_v28 = vadd.f32 %v9910_v57, %v4990_v63 }
0x391d   :  { %10888 = vmatprep.mubr.msk.f32.mxu1 %vm190_vm0, %v13362_v28 }
0x391e   :  { %10889 = vmatmul.mubr.msk.f32.vlgmr.msra.gmra.mrb[50].mxu1 %vm190_vm0, %v13364_v13 }
0x39f1   :  { %v10890_v33 = vpop.f32.mrb[50].mxu1 }
0x39f2   :  { %v13373_v47 = vadd.f32 %v10890_v33, %v9931_v31  ;;  %v5117_v48 = vpop.f32.mrb[51].mxu1 }
0x39f3   :  { %v13375_v14 = vadd.f32 %v9931_v31, %v5117_v48 }
0x39f5   :  { %10895 = vmatprep.mubr.msk.f32.mxu0 %vm404_vm4, %v13375_v14  ;;  %v13381_v17 = vpack.i.bf16 %v13373_v47, %v13375_v14 }
0x39f7   :  { %11949 = vrot.lane.b32.xlu0 %v13381_v17, %s12472_s30 }
0x39fb   :  { %11959 = vrot.lane.b32.xlu0 %v13381_v17, %s12473_s18 }
0x39ff   :  { %5328 = vrot.lane.b32.xlu0 %v13375_v14, %s12474_s19 }
0x3a03   :  { %5330 = vrot.lane.b32.xlu0 %v13373_v47, %s12474_s19 }
0x3a69   :  { %v11950_v35 = vpop.permute.xlu0 %11949 }
0x3a6a   :  { %v11952_v19 = vunpack.i.h.bf16 %v11950_v35  ;;  %v11951_v18 = vunpack.i.l.bf16 %v11950_v35 }
0x3a6c   :  { %v11524_v36 = vpack.c.bf16 %v11952_v19, %v11951_v18 }
0x3a6d   :  { %v11960_v59 = vpop.permute.xlu0 %11959 }
0x3a6e   :  { %11526 = vmatprep.subr.msk.bf16.mxu0 %vm12683_vm5, %v11524_v36  ;;  %v11962_v61 = vunpack.i.h.bf16 %v11960_v59  ;;  %v11961_v42 = vunpack.i.l.bf16 %v11960_v59 }
0x3a6f   :  { %11529 = vmatpush3.bf16.xpose.msk.msra.mxu0 %vm12683_vm5, %v11524_v36 }
0x3a70   :  { %v11534_v23 = vpack.c.bf16 %v11962_v61, %v11961_v42 }
0x3a71   :  { %v5329_v12 = vpop.permute.xlu0 %5328 }
0x3a75   :  { %v5331_v43 = vpop.permute.xlu0 %5330 }
0x3a76   :  { %10896 = vmatmul.mubr.msk.f32.vlgmr.msra.gmra.mrb[44].mxu0 %vm404_vm4, %v13373_v47 }
0x3b49   :  { %v10897_v37 = vpop.f32.mrb[44].mxu0 }
0x3b4a   :  { %v5206_v38 = vpop.f32.mrb[45].mxu0  ;;  %v5216_v27 = vmul.f32 0.35355338, %v10897_v37 }
0x3b4b   :  { %v5215_v34 = vmul.f32 0.35355338, %v5206_v38 }
0x3b4c   :  { %v5218_v44 = vadd.f32 %v13406_v29, %v5216_v27 }
0x3b4d   :  { %v5217_v32 = vadd.f32 %v13400_v30, %v5215_v34 }
0x3b4e   :  { %v5222_v8 = vsel %vm492_vm6, %v5218_v44, -inf }
0x3b4f   :  { %v5219_v24 = vsel %vm492_vm6, %v5217_v32, -inf }
0x3b50   :  { %5220 = vmax.xlane.f32.xlu1 %v5219_v24 }
0x3b54   :  { %5223 = vmax.xlane.f32.xlu1 %v5222_v8 }
0x3bdd   :  { %v5221_v45 = vpop.xlane.xlu1 %5220 }
0x3bde   :  { %v5225_v52 = vsub.f32 %v5217_v32, %v5221_v45 }
0x3be0   :  { %v5227_v4 = vmul.f32 1.442695, %v5225_v52 }
0x3be1   :  { %v5224_v41 = vpop.xlane.xlu1 %5223 }
0x3be2   :  { %v5226_v46 = vsub.f32 %v5218_v44, %v5224_v41 }
0x3be4   :  { %v5229_v49 = vmul.f32 1.442695, %v5226_v46 }
0x3be6   :  { %12255 = vpow2.f32 %v5229_v49 }
0x3be7   :  { %12257 = vpow2.f32 %v5227_v4 }
0x3bf0   :  { %v12256_v51 = vpop.eup %12255 }
0x3bf1   :  { %v5234_v40 = vsel %vm492_vm6, %v12256_v51, 0.0  ;;  %v12258_v6 = vpop.eup %12257 }
0x3bf2   :  { %5235 = vadd.xlane.f32.xlu1 %v5234_v40  ;;  %v5231_v53 = vsel %vm492_vm6, %v12258_v6, 0.0 }
0x3bf6   :  { %5232 = vadd.xlane.f32.xlu1 %v5231_v53 }
0x3c07   :  { %11954 = vrot.lane.b32.xlu1 %v13381_v17, %s12475_s20 }
0x3c7f   :  { %v5236_v39 = vpop.xlane.xlu1 %5235 }
0x3c80   :  { %12259 = vrcp.f32 %v5236_v39 }
0x3c83   :  { %v5233_v54 = vpop.xlane.xlu1 %5232 }
0x3c84   :  { %12261 = vrcp.f32 %v5233_v54 }
0x3c87   :  { %v11955_v60 = vpop.permute.xlu1 %11954 }
0x3c88   :  { %v11957_v2 = vunpack.i.h.bf16 %v11955_v60  ;;  %v11956_v50 = vunpack.i.l.bf16 %v11955_v60 }
0x3c8a   :  { %v11530_v55 = vpack.c.bf16 %v11957_v2, %v11956_v50  ;;  %v12260_v58 = vpop.eup %12259 }
0x3c8b   :  { %v5240_v16 = vmul.f32 %v12260_v58, %v12256_v51 }
0x3c8c   :  { %11531 = vmatprep.subr.bf16.mxu1 %v11530_v55 }
0x3c8d   :  { %11533 = vmatpush3.bf16.msra.mxu1 %v11530_v55 }
0x3c8e   :  { %v12262_v21 = vpop.eup %12261  ;;  %11536 = vmatprep.subr.msk.bf16.mxu1 %vm12683_vm5, %v11534_v23 }
0x3c8f   :  { %v5239_v10 = vmul.f32 %v12262_v21, %v12258_v6 }
0x3c91   :  { %10902 = vmatprep.mubr.msk.f32.mxu1 %vm492_vm6, %v5239_v10 }
0x3c92   :  { %10903 = vmatmul.mubr.msk.f32.vlgmr.msra.gmra.mrb[52].mxu1 %vm492_vm6, %v5240_v16 }
0x3c93   :  { %10909 = vmatprep.mubr.msk.f32.mxu1 %vm404_vm4, %v5329_v12 }
0x3c96   :  { %11539 = vmatpush3.bf16.xpose.msk.msra.mxu1 %vm12683_vm5, %v11534_v23 }
0x3c9d   :  { %10910 = vmatmul.mubr.msk.f32.vlgmr.msra.gmra.mrb[54].mxu1 %vm404_vm4, %v5331_v43 }
0x3d65   :  { %v13423_v7 = vpop.f32.mrb[52].mxu1 }
0x3d66   :  { %v13425_v62 = vpop.f32.mrb[53].mxu1 }
0x3d70   :  { %v10911_v5 = vpop.f32.mrb[54].mxu1 }
0x3d71   :  { %v5420_v20 = vmul.f32 0.35355338, %v10911_v5  ;;  %v5410_v22 = vpop.f32.mrb[55].mxu1 }
0x3d72   :  { %v5419_v15 = vmul.f32 0.35355338, %v5410_v22 }
0x3d73   :  { %v5422_v3 = vadd.f32 %v13406_v29, %v5420_v20 }
0x3d74   :  { %v5421_v9 = vadd.f32 %v13400_v30, %v5419_v15 }
0x3d75   :  { %v5426_v25 = vsel %vm492_vm6, %v5422_v3, -inf }
0x3d76   :  { %5427 = vmax.xlane.f32.xlu1 %v5426_v25  ;;  %v5423_v26 = vsel %vm492_vm6, %v5421_v9, -inf }
0x3d77   :  { %5424 = vmax.xlane.f32.xlu0 %v5423_v26 }
0x3d87   :  { %11964 = vrot.lane.b32.xlu1 %v13381_v17, %s12478_s23 }
0x3d8b   :  { %5532 = vrot.lane.b32.xlu1 %v13375_v14, %s12477_s21 }
0x3d8f   :  { %5534 = vrot.lane.b32.xlu1 %v13373_v47, %s12477_s21 }
0x3e03   :  { %v5428_v57 = vpop.xlane.xlu1 %5427 }
0x3e04   :  { %v5430_v56 = vsub.f32 %v5422_v3, %v5428_v57  ;;  %v5425_v63 = vpop.xlane.xlu0 %5424 }
0x3e05   :  { %v5429_v31 = vsub.f32 %v5421_v9, %v5425_v63 }
0x3e06   :  { %v5433_v33 = vmul.f32 1.442695, %v5430_v56 }
0x3e07   :  { %v5431_v48 = vmul.f32 1.442695, %v5429_v31  ;;  %v11965_v35 = vpop.permute.xlu1 %11964 }
0x3e08   :  { %12263 = vpow2.f32 %v5433_v33  ;;  %v11967_v19 = vunpack.i.h.bf16 %v11965_v35  ;;  %v11966_v18 = vunpack.i.l.bf16 %v11965_v35 }
0x3e09   :  { %12265 = vpow2.f32 %v5431_v48 }
0x3e0a   :  { %v11540_v36 = vpack.c.bf16 %v11967_v19, %v11966_v18 }
0x3e0b   :  { %v5533_v51 = vpop.permute.xlu1 %5532 }
0x3e0c   :  { %11541 = vmatprep.subr.bf16.mxu0 %v11540_v36 }
0x3e0d   :  { %11543 = vmatpush3.bf16.msra.mxu0 %v11540_v36 }
0x3e0f   :  { %v5535_v40 = vpop.permute.xlu1 %5534 }
0x3e12   :  { %v12264_v37 = vpop.eup %12263 }
0x3e13   :  { %v5438_v38 = vsel %vm492_vm6, %v12264_v37, 0.0  ;;  %v12266_v27 = vpop.eup %12265 }
0x3e14   :  { %5439 = vadd.xlane.f32.xlu0 %v5438_v38  ;;  %v5435_v34 = vsel %vm492_vm6, %v12266_v27, 0.0 }
0x3e18   :  { %5436 = vadd.xlane.f32.xlu0 %v5435_v34 }
0x3e2e   :  { %11969 = vrot.lane.b32.xlu0 %v13381_v17, %s12476_s8 }
0x3ea1   :  { %v5440_v32 = vpop.xlane.xlu0 %5439 }
0x3ea2   :  { %12267 = vrcp.f32 %v5440_v32 }
0x3ea5   :  { %v5437_v44 = vpop.xlane.xlu0 %5436 }
0x3ea6   :  { %12269 = vrcp.f32 %v5437_v44 }
0x3ea9   :  { %v11970_v24 = vpop.permute.xlu0 %11969 }
0x3eaa   :  { %v11972_v8 = vunpack.i.h.bf16 %v11970_v24  ;;  %v11971_v45 = vunpack.i.l.bf16 %v11970_v24 }
0x3eac   :  { %v11544_v52 = vpack.c.bf16 %v11972_v8, %v11971_v45  ;;  %v12268_v41 = vpop.eup %12267 }
0x3ead   :  { %v5444_v49 = vmul.f32 %v12268_v41, %v12264_v37 }
0x3eae   :  { %11546 = vmatprep.subr.msk.bf16.mxu0 %vm12683_vm5, %v11544_v52 }
0x3eb0   :  { %v12270_v46 = vpop.eup %12269 }
0x3eb1   :  { %v5443_v4 = vmul.f32 %v12270_v46, %v12266_v27 }
0x3eb3   :  { %10916 = vmatprep.mubr.msk.f32.mxu0 %vm492_vm6, %v5443_v4 }
0x3eb4   :  { %10917 = vmatmul.mubr.msk.f32.vlgmr.msra.gmra.mrb[46].mxu0 %vm492_vm6, %v5444_v49 }
0x3eb5   :  { %11549 = vmatpush3.bf16.xpose.msk.msra.mxu0 %vm12683_vm5, %v11544_v52  ;;  %10923 = vmatprep.mubr.msk.f32.mxu0 %vm404_vm4, %v5533_v51 }
0x3ebc   :  { %10924 = vmatmul.mubr.msk.f32.vlgmr.msra.gmra.mrb[48].mxu0 %vm404_vm4, %v5535_v40 }
0x3f87   :  { %v13449_v6 = vpop.f32.mrb[46].mxu0 }
0x3f88   :  { %v13451_v53 = vpop.f32.mrb[47].mxu0 }
0x3f8f   :  { %v10925_v39 = vpop.f32.mrb[48].mxu0 }
0x3f90   :  { %v5624_v54 = vmul.f32 0.35355338, %v10925_v39  ;;  %v5614_v59 = vpop.f32.mrb[49].mxu0 }
0x3f91   :  { %v5623_v60 = vmul.f32 0.35355338, %v5614_v59  ;;  %v5009_v59 = vld [vmem:[#allocation2 + $0x100] sm:$0xff] }
0x3f92   :  { %v5626_v61 = vadd.f32 %v13406_v29, %v5624_v54 }
0x3f93   :  { %v5625_v42 = vadd.f32 %v13400_v30, %v5623_v60  ;;  %v5010_v60 = vld [vmem:[#allocation2 + $0x108] sm:$0xff] }
0x3f94   :  { %v5630_v2 = vsel %vm492_vm6, %v5626_v61, -inf }
0x3f95   :  { %5631 = vmax.xlane.f32.xlu1 %v5630_v2  ;;  %v5627_v50 = vsel %vm492_vm6, %v5625_v42, -inf }
0x3f96   :  { %5628 = vmax.xlane.f32.xlu0 %v5627_v50 }
0x3fa6   :  { %11974 = vrot.lane.b32.xlu1 %v13381_v17, %s12479_s24 }
0x3faa   :  { %5736 = vrot.lane.b32.xlu1 %v13375_v14, %s12480_s25 }
0x3fae   :  { %5738 = vrot.lane.b32.xlu1 %v13373_v47, %s12480_s25 }
0x4022   :  { %v5632_v55 = vpop.xlane.xlu1 %5631 }
0x4023   :  { %v5634_v23 = vsub.f32 %v5626_v61, %v5632_v55  ;;  %v5629_v58 = vpop.xlane.xlu0 %5628  ;;  %v11564_v61 = vpack.c.bf16 %v5010_v60, %v5009_v59  ;;  %v9962_v59 = vld [vmem:[%s14082_s11 + $0x27] ss:$0 sm:$0xff] }
0x4024   :  { %v5633_v21 = vsub.f32 %v5625_v42, %v5629_v58  ;;  %v5012_v58 = vld [vmem:[#allocation2 + $0x118] sm:$0xff] }
0x4025   :  { %v5637_v10 = vmul.f32 1.442695, %v5634_v23  ;;  %v5011_v23 = vld [vmem:[#allocation2 + $0x110] sm:$0xff] }
0x4026   :  { %v5635_v16 = vmul.f32 1.442695, %v5633_v21  ;;  %v11975_v12 = vpop.permute.xlu1 %11974 }
0x4027   :  { %12271 = vpow2.f32 %v5637_v10  ;;  %v11977_v43 = vunpack.i.h.bf16 %v11975_v12  ;;  %v11976_v5 = vunpack.i.l.bf16 %v11975_v12 }
0x4028   :  { %12273 = vpow2.f32 %v5635_v16  ;;  %v11568_v16 = vpack.c.bf16 %v5012_v58, %v5011_v23 }
0x4029   :  { %v11550_v20 = vpack.c.bf16 %v11977_v43, %v11976_v5 }
0x402a   :  { %v5737_v35 = vpop.permute.xlu1 %5736 }
0x402b   :  { %11551 = vmatprep.subr.bf16.mxu1 %v11550_v20 }
0x402c   :  { %11553 = vmatpush3.bf16.msra.mxu1 %v11550_v20 }
0x402e   :  { %v5739_v19 = vpop.permute.xlu1 %5738 }
0x4031   :  { %v12272_v22 = vpop.eup %12271 }
0x4032   :  { %v5642_v14 = vsel %vm492_vm6, %v12272_v22, 0.0  ;;  %v12274_v15 = vpop.eup %12273 }
0x4033   :  { %5643 = vadd.xlane.f32.xlu0 %v5642_v14  ;;  %v5639_v47 = vsel %vm492_vm6, %v12274_v15, 0.0 }
0x4037   :  { %5640 = vadd.xlane.f32.xlu0 %v5639_v47 }
0x404d   :  { %11979 = vrot.lane.b32.xlu0 %v13381_v17, %s12481_s10 }
0x40c0   :  { %v5644_v3 = vpop.xlane.xlu0 %5643 }
0x40c1   :  { %12275 = vrcp.f32 %v5644_v3 }
0x40c4   :  { %v5641_v9 = vpop.xlane.xlu0 %5640 }
0x40c5   :  { %12277 = vrcp.f32 %v5641_v9 }
0x40c8   :  { %v11980_v25 = vpop.permute.xlu0 %11979 }
0x40c9   :  { %v11982_v26 = vunpack.i.h.bf16 %v11980_v25  ;;  %v11981_v57 = vunpack.i.l.bf16 %v11980_v25 }
0x40cb   :  { %v11554_v56 = vpack.c.bf16 %v11982_v26, %v11981_v57  ;;  %v12276_v63 = vpop.eup %12275 }
0x40cc   :  { %v5648_v48 = vmul.f32 %v12276_v63, %v12272_v22 }
0x40cd   :  { %11556 = vmatprep.subr.msk.bf16.mxu1 %vm12683_vm5, %v11554_v56 }
0x40cf   :  { %v12278_v31 = vpop.eup %12277 }
0x40d0   :  { %v5647_v33 = vmul.f32 %v12278_v31, %v12274_v15 }
0x40d2   :  { %10930 = vmatprep.mubr.msk.f32.mxu1 %vm492_vm6, %v5647_v33 }
0x40d3   :  { %10931 = vmatmul.mubr.msk.f32.vlgmr.msra.gmra.mrb[56].mxu1 %vm492_vm6, %v5648_v48 }
0x40d4   :  { %11559 = vmatpush3.bf16.xpose.msk.msra.mxu1 %vm12683_vm5, %v11554_v56  ;;  %10937 = vmatprep.mubr.msk.f32.mxu1 %vm404_vm4, %v5737_v35 }
0x40db   :  { %10938 = vmatmul.mubr.msk.f32.vlgmr.msra.gmra.mrb[58].mxu1 %vm404_vm4, %v5739_v19 }
0x41a6   :  { %v10932_v18 = vpop.f32.mrb[56].mxu1 }
0x41a7   :  { %v5727_v36 = vpop.f32.mrb[57].mxu1 }
0x41ae   :  { %v10939_v37 = vpop.f32.mrb[58].mxu1 }
0x41af   :  { %v5828_v38 = vmul.f32 0.35355338, %v10939_v37  ;;  %v5818_v27 = vpop.f32.mrb[59].mxu1 }
0x41b0   :  { %v5827_v34 = vmul.f32 0.35355338, %v5818_v27 }
0x41b1   :  { %v5830_v32 = vadd.f32 %v13406_v29, %v5828_v38 }
0x41b2   :  { %v5829_v44 = vadd.f32 %v13400_v30, %v5827_v34 }
0x41b3   :  { %v5834_v24 = vsel %vm492_vm6, %v5830_v32, -inf }
0x41b4   :  { %5835 = vmax.xlane.f32.xlu1 %v5834_v24  ;;  %v5831_v8 = vsel %vm492_vm6, %v5829_v44, -inf  ;;  %v9916_v24 = vld [vmem:[%s14078_s7 + $0x48] sm:$0xff] }
0x41b5   :  { %5832 = vmax.xlane.f32.xlu0 %v5831_v8  ;;  %v9917_v8 = vld [vmem:[%s14078_s7 + $0x50] sm:$0xff] }
0x41c5   :  { %11984 = vrot.lane.b32.xlu1 %v13381_v17, %s12482_s3 }
0x41c9   :  { %5944 = vrot.lane.b32.xlu1 %v13449_v6, %s12469_s14 }
0x41cd   :  { %5950 = vrot.lane.b32.xlu1 %v5727_v36, %s12483_s22 }
0x4241   :  { %v5836_v45 = vpop.xlane.xlu1 %5835 }
0x4242   :  { %v5838_v52 = vsub.f32 %v5830_v32, %v5836_v45  ;;  %v5833_v41 = vpop.xlane.xlu0 %5832 }
0x4243   :  { %v5837_v29 = vsub.f32 %v5829_v44, %v5833_v41 }
0x4244   :  { %v5841_v46 = vmul.f32 1.442695, %v5838_v52  ;;  %v9918_v52 = vld [vmem:[%s14078_s7 + $0x58] sm:$0xff] }
0x4245   :  { %v5839_v30 = vmul.f32 1.442695, %v5837_v29  ;;  %v11985_v4 = vpop.permute.xlu1 %11984  ;;  %v11576_v41 = vpack.c.bf16 %v9918_v52, %v9917_v8 }
0x4246   :  { %v11987_v49 = vunpack.i.h.bf16 %v11985_v4  ;;  %v11986_v51 = vunpack.i.l.bf16 %v11985_v4 }
0x4247   :  { %12279 = vpow2.f32 %v5839_v30 }
0x4248   :  { %v11560_v40 = vpack.c.bf16 %v11987_v49, %v11986_v51  ;;  %12281 = vpow2.f32 %v5841_v46 }
0x4249   :  { %v5945_v5 = vpop.permute.xlu1 %5944 }
0x424a   :  { %11561 = vmatprep.subr.bf16.mxu0 %v11560_v40  ;;  %v5965_v47 = vsel %vm404_vm4, %v13423_v7, %v5945_v5  ;;  %v9958_v7 = vld [vmem:[%s14082_s11 + $0x22] ss:$0 sm:$0xff] }
0x424b   :  { %11563 = vmatpush3.bf16.msra.mxu0 %v11560_v40 }
0x424c   :  { %11565 = vmatprep.subr.bf16.mxu0 %v11564_v61 }
0x424d   :  { %v5951_v22 = vpop.permute.xlu1 %5950 }
0x4251   :  { %v12280_v17 = vpop.eup %12279 }
0x4252   :  { %v5843_v39 = vsel %vm492_vm6, %v12280_v17, 0.0  ;;  %v12282_v6 = vpop.eup %12281 }
0x4253   :  { %5844 = vadd.xlane.f32.xlu0 %v5843_v39  ;;  %v5846_v54 = vsel %vm492_vm6, %v12282_v6, 0.0 }
0x4257   :  { %5847 = vadd.xlane.f32.xlu0 %v5846_v54 }
0x426d   :  { %5942 = vrot.lane.b32.xlu0 %v13451_v53, %s12469_s14 }
0x4271   :  { %5952 = vrot.lane.b32.xlu0 %v10932_v18, %s12483_s22 }
0x42e0   :  { %v5845_v42 = vpop.xlane.xlu0 %5844 }
0x42e1   :  { %12283 = vrcp.f32 %v5845_v42 }
0x42e4   :  { %v5848_v2 = vpop.xlane.xlu0 %5847 }
0x42e5   :  { %12285 = vrcp.f32 %v5848_v2 }
0x42e8   :  { %v5943_v43 = vpop.permute.xlu0 %5942 }
0x42e9   :  { %v5964_v14 = vsel %vm404_vm4, %v13425_v62, %v5943_v43  ;;  %v13558_v43 = vld [vmem:[%s14076_s5 + $0x8] sm:$0xff] }
0x42ea   :  { %v5966_v9 = vsel %vm492_vm6, %v5964_v14, %v5951_v22 }
0x42eb   :  { %v12284_v50 = vpop.eup %12283 }
0x42ec   :  { %v5851_v55 = vmul.f32 %v12284_v50, %v12280_v17  ;;  %v5953_v20 = vpop.permute.xlu0 %5952  ;;  %v9961_v17 = vld [vmem:[%s14082_s11 + $0x26] ss:$0 sm:$0xff]  ;;  %v9963_v50 = vld [vmem:[%s14082_s11 + $0x21] ss:$0 sm:$0xff] }
0x42ed   :  { %v5967_v25 = vsel %vm492_vm6, %v5965_v47, %v5953_v20  ;;  %v13564_v20 = vld [vmem:[%s14076_s5] sm:$0xff] }
0x42ee   :  { %10944 = vmatprep.mubr.msk.f32.mxu0 %vm492_vm6, %v5851_v55 }
0x42ef   :  { %v12286_v21 = vpop.eup %12285 }
0x42f0   :  { %v5852_v10 = vmul.f32 %v12286_v21, %v12282_v6 }
0x42f2   :  { %10945 = vmatmul.mubr.msk.f32.vlgmr.msra.gmra.mrb[50].mxu0 %vm492_vm6, %v5852_v10 }
0x42f3   :  { %11567 = vmatpush3.bf16.msra.mxu0 %v11564_v61 }
0x42f4   :  { %11569 = vmatprep.subr.bf16.mxu0 %v11568_v16 }
0x42f7   :  { %11571 = vmatpush3.bf16.msra.mxu0 %v11568_v16 }
0x42f8   :  { %11582 = vmatprep.subr.msk.bf16.mxu0 %vm12683_vm5, %v12662_v0 }
0x43c5   :  { %v10946_v53 = vpop.f32.mrb[50].mxu0 }
0x43c6   :  { %5960 = vrot.lane.b32.xlu0 %v10946_v53, %s12484_s26  ;;  %v5931_v12 = vpop.f32.mrb[51].mxu0 }
0x43c7   :  { %5958 = vrot.lane.b32.xlu1 %v5931_v12, %s12484_s26 }
0x4438   :  { %v5961_v15 = vpop.permute.xlu0 %5960 }
0x4439   :  { %v5959_v3 = vpop.permute.xlu1 %5958  ;;  %v5969_v57 = vsel %vm1242_vm7, %v5967_v25, %v5961_v15 }
0x443a   :  { %v5968_v26 = vsel %vm1242_vm7, %v5966_v9, %v5959_v3 }
0x443b   :  { %10955 = vmatprep.mubr.msk.f32.mxu0 %vm190_vm0, %v5968_v26 }
0x443c   :  { %10956 = vmatmul.mubr.msk.f32.vlgmr.msra.gmra.mrb[52].mxu0 %vm190_vm0, %v5969_v57 }
0x443d   :  { %11585 = vmatpush3.bf16.xpose.msk.msra.mxu0 %vm12683_vm5, %v12662_v0 }
0x450f   :  { %v10957_v62 = vpop.f32.mrb[52].mxu0 }
0x4510   :  { %v6052_v56 = vadd.f32 %v10957_v62, %v9958_v7  ;;  %v6046_v63 = vpop.f32.mrb[53].mxu0 }
0x4511   :  { %v6047_v31 = vadd.f32 %v9958_v7, %v6046_v63 }
0x4512   :  { %v6056_v33 = vadd.f32 %v6052_v56, %v13364_v13 }
0x4513   :  { %v6055_v48 = vadd.f32 %v6047_v31, %v13362_v28  ;;  %v9915_v28 = vld [vmem:[%s14078_s7 + $0x40] sm:$0xff] }
0x4514   :  { %v6060_v35 = vsel %vm190_vm0, %v6056_v33, 0.0  ;;  %v11572_v45 = vpack.c.bf16 %v9916_v24, %v9915_v28 }
0x4515   :  { %6061 = vadd.xlane.f32.xlu0 %v6060_v35  ;;  %v6057_v19 = vsel %vm190_vm0, %v6055_v48, 0.0 }
0x4516   :  { %6058 = vadd.xlane.f32.xlu1 %v6057_v19  ;;  %11573 = vmatprep.subr.bf16.mxu1 %v11572_v45 }
0x4517   :  { %11575 = vmatpush3.bf16.msra.mxu1 %v11572_v45 }
0x4518   :  { %11577 = vmatprep.subr.bf16.mxu1 %v11576_v41 }
0x451b   :  { %11579 = vmatpush3.bf16.msra.mxu1 %v11576_v41 }
0x45a2   :  { %v6062_v18 = vpop.xlane.xlu0 %6061 }
0x45a3   :  { %v6064_v0 = vmul.f32 0.03125, %v6062_v18  ;;  %v6059_v36 = vpop.xlane.xlu1 %6058 }
0x45a4   :  { %v6063_v37 = vmul.f32 0.03125, %v6059_v36 }
0x45a5   :  { %v6066_v38 = vsub.f32 %v6056_v33, %v6064_v0 }
0x45a6   :  { %v6065_v27 = vsub.f32 %v6055_v48, %v6063_v37 }
0x45a7   :  { %v6068_v34 = vmul.f32 %v6066_v38, %v6066_v38 }
0x45a8   :  { %v6067_v32 = vmul.f32 %v6065_v27, %v6065_v27 }
0x45a9   :  { %v6072_v44 = vsel %vm190_vm0, %v6068_v34, 0.0 }
0x45aa   :  { %6073 = vadd.xlane.f32.xlu1 %v6072_v44  ;;  %v6069_v13 = vsel %vm190_vm0, %v6067_v32, 0.0 }
0x45ab   :  { %6070 = vadd.xlane.f32.xlu0 %v6069_v13 }
0x4637   :  { %v6074_v29 = vpop.xlane.xlu1 %6073 }
0x4638   :  { %v6076_v46 = vmul.f32 0.03125, %v6074_v29  ;;  %v6071_v30 = vpop.xlane.xlu0 %6070 }
0x4639   :  { %v6075_v4 = vmul.f32 0.03125, %v6071_v30 }
0x463a   :  { %v6078_v49 = vadd.f32 1e-05, %v6076_v46 }
0x463b   :  { %v6077_v51 = vadd.f32 1e-05, %v6075_v4 }
0x463c   :  { %12287 = vrsqrt.f32 %v6078_v49 }
0x463d   :  { %12289 = vrsqrt.f32 %v6077_v51 }
0x4646   :  { %v12288_v40 = vpop.eup %12287 }
0x4647   :  { %v12290_v39 = vpop.eup %12289  ;;  %v6082_v6 = vmul.f32 %v12288_v40, %v6066_v38 }
0x4648   :  { %v6081_v54 = vmul.f32 %v12290_v39, %v6065_v27 }
0x4649   :  { %v6088_v60 = vmul.f32 %v9961_v17, %v6082_v6 }
0x464a   :  { %v6087_v61 = vmul.f32 %v9961_v17, %v6081_v54 }
0x464b   :  { %v13538_v2 = vadd.f32 %v9962_v59, %v6088_v60 }
0x464c   :  { %v13536_v42 = vadd.f32 %v9962_v59, %v6087_v61 }
0x464e   :  { %10966 = vmatprep.mubr.msk.f32.mxu1 %vm190_vm0, %v13536_v42 }
0x464f   :  { %10967 = vmatmul.mubr.msk.f32.vlgmr.msra.gmra.mrb[60].mxu1 %vm190_vm0, %v13538_v2 }
0x4722   :  { %v10968_v55 = vpop.f32.mrb[60].mxu1 }
0x4723   :  { %v6171_v23 = vpop.f32.mrb[61].mxu1  ;;  %v13549_v21 = vadd.f32 %v10968_v55, %v9963_v50 }
0x4724   :  { %v13547_v58 = vadd.f32 %v9963_v50, %v6171_v23 }
0x4726   :  { %10973 = vmatprep.mubr.msk.f32.mxu0 %vm404_vm4, %v13547_v58 }
0x4727   :  { %10974 = vmatmul.mubr.msk.f32.vlgmr.msra.gmra.mrb[54].mxu0 %vm404_vm4, %v13549_v21 }
0x47fa   :  { %v10975_v10 = vpop.f32.mrb[54].mxu0 }
0x47fb   :  { %v6268_v16 = vmul.f32 0.35355338, %v10975_v10  ;;  %v6258_v53 = vpop.f32.mrb[55].mxu0 }
0x47fc   :  { %v6267_v12 = vmul.f32 0.35355338, %v6258_v53 }
0x47fd   :  { %v6270_v5 = vadd.f32 %v13558_v43, %v6268_v16 }
0x47fe   :  { %v6269_v22 = vadd.f32 %v13564_v20, %v6267_v12 }
0x47ff   :  { %v6274_v14 = vsel %vm492_vm6, %v6270_v5, -inf }
0x4800   :  { %6275 = vmax.xlane.f32.xlu1 %v6274_v14  ;;  %v6271_v15 = vsel %vm492_vm6, %v6269_v22, -inf }
0x4801   :  { %6272 = vmax.xlane.f32.xlu0 %v6271_v15 }
0x488d   :  { %v6276_v47 = vpop.xlane.xlu1 %6275 }
0x488e   :  { %v6278_v3 = vsub.f32 %v6270_v5, %v6276_v47  ;;  %v6273_v9 = vpop.xlane.xlu0 %6272 }
0x488f   :  { %v6277_v25 = vsub.f32 %v6269_v22, %v6273_v9 }
0x4890   :  { %v6281_v26 = vmul.f32 1.442695, %v6278_v3 }
0x4891   :  { %v6279_v57 = vmul.f32 1.442695, %v6277_v25 }
0x4892   :  { %12291 = vpow2.f32 %v6281_v26 }
0x4893   :  { %12293 = vpow2.f32 %v6279_v57 }
0x489c   :  { %v12292_v7 = vpop.eup %12291 }
0x489d   :  { %v12294_v62 = vpop.eup %12293  ;;  %v6286_v56 = vsel %vm492_vm6, %v12292_v7, 0.0 }
0x489e   :  { %6287 = vadd.xlane.f32.xlu1 %v6286_v56  ;;  %v6283_v63 = vsel %vm492_vm6, %v12294_v62, 0.0 }
0x489f   :  { %6284 = vadd.xlane.f32.xlu0 %v6283_v63 }
0x48af   :  { %11994 = vrot.lane.b32.xlu1 %v12664_v1, %s12474_s19 }
0x48b3   :  { %6380 = vrot.lane.b32.xlu1 %v13547_v58, %s12474_s19 }
0x48b5   :  { %11989 = vrot.lane.b32.xlu0 %v12664_v1, %s12472_s30 }
0x48b9   :  { %6382 = vrot.lane.b32.xlu0 %v13549_v21, %s12474_s19 }
0x492b   :  { %v6288_v31 = vpop.xlane.xlu1 %6287 }
0x492c   :  { %12295 = vrcp.f32 %v6288_v31  ;;  %v6285_v33 = vpop.xlane.xlu0 %6284 }
0x492d   :  { %12297 = vrcp.f32 %v6285_v33 }
0x492f   :  { %v11995_v48 = vpop.permute.xlu1 %11994 }
0x4930   :  { %v11990_v35 = vpop.permute.xlu0 %11989  ;;  %v11997_v19 = vunpack.i.h.bf16 %v11995_v48  ;;  %v11996_v18 = vunpack.i.l.bf16 %v11995_v48 }
0x4931   :  { %v11992_v0 = vunpack.i.h.bf16 %v11990_v35  ;;  %v11991_v36 = vunpack.i.l.bf16 %v11990_v35 }
0x4932   :  { %v11590_v38 = vpack.c.bf16 %v11997_v19, %v11996_v18 }
0x4933   :  { %v11586_v37 = vpack.c.bf16 %v11992_v0, %v11991_v36  ;;  %v6381_v13 = vpop.permute.xlu1 %6380 }
0x4934   :  { %v6383_v28 = vpop.permute.xlu0 %6382 }
0x4935   :  { %11587 = vmatprep.subr.bf16.mxu1 %v11586_v37 }
0x4936   :  { %v12296_v27 = vpop.eup %12295  ;;  %11589 = vmatpush3.bf16.msra.mxu1 %v11586_v37 }
0x4937   :  { %v12298_v34 = vpop.eup %12297  ;;  %11592 = vmatprep.subr.msk.bf16.mxu1 %vm12683_vm5, %v11590_v38  ;;  %v6292_v44 = vmul.f32 %v12296_v27, %v12292_v7 }
0x4938   :  { %v6291_v32 = vmul.f32 %v12298_v34, %v12294_v62 }
0x493a   :  { %10980 = vmatprep.mubr.msk.f32.mxu1 %vm492_vm6, %v6291_v32 }
0x493b   :  { %10981 = vmatmul.mubr.msk.f32.vlgmr.msra.gmra.mrb[62].mxu1 %vm492_vm6, %v6292_v44 }
0x493c   :  { %10987 = vmatprep.mubr.msk.f32.mxu1 %vm404_vm4, %v6381_v13 }
0x493f   :  { %11595 = vmatpush3.bf16.xpose.msk.msra.mxu1 %vm12683_vm5, %v11590_v38 }
0x4946   :  { %10988 = vmatmul.mubr.msk.f32.vlgmr.msra.gmra.mrb[64].mxu1 %vm404_vm4, %v6383_v28 }
0x4a0e   :  { %v13587_v24 = vpop.f32.mrb[62].mxu1 }
0x4a0f   :  { %v13589_v8 = vpop.f32.mrb[63].mxu1 }
0x4a19   :  { %v10989_v45 = vpop.f32.mrb[64].mxu1 }
0x4a1a   :  { %v6472_v52 = vmul.f32 0.35355338, %v10989_v45  ;;  %v6462_v41 = vpop.f32.mrb[65].mxu1 }
0x4a1b   :  { %v6471_v29 = vmul.f32 0.35355338, %v6462_v41 }
0x4a1c   :  { %v6474_v46 = vadd.f32 %v13558_v43, %v6472_v52 }
0x4a1d   :  { %v6473_v30 = vadd.f32 %v13564_v20, %v6471_v29 }
0x4a1e   :  { %v6478_v4 = vsel %vm492_vm6, %v6474_v46, -inf }
0x4a1f   :  { %6479 = vmax.xlane.f32.xlu0 %v6478_v4  ;;  %v6475_v49 = vsel %vm492_vm6, %v6473_v30, -inf }
0x4a20   :  { %6476 = vmax.xlane.f32.xlu1 %v6475_v49 }
0x4aac   :  { %v6480_v51 = vpop.xlane.xlu0 %6479 }
0x4aad   :  { %v6482_v40 = vsub.f32 %v6474_v46, %v6480_v51  ;;  %v6477_v17 = vpop.xlane.xlu1 %6476 }
0x4aae   :  { %v6481_v39 = vsub.f32 %v6473_v30, %v6477_v17 }
0x4aaf   :  { %v6485_v6 = vmul.f32 1.442695, %v6482_v40 }
0x4ab0   :  { %v6483_v54 = vmul.f32 1.442695, %v6481_v39 }
0x4ab1   :  { %12299 = vpow2.f32 %v6485_v6 }
0x4ab2   :  { %12301 = vpow2.f32 %v6483_v54 }
0x4abb   :  { %v12300_v59 = vpop.eup %12299 }
0x4abc   :  { %v12302_v60 = vpop.eup %12301  ;;  %v6490_v61 = vsel %vm492_vm6, %v12300_v59, 0.0 }
0x4abd   :  { %6491 = vadd.xlane.f32.xlu1 %v6490_v61  ;;  %v6487_v50 = vsel %vm492_vm6, %v12302_v60, 0.0 }
0x4abe   :  { %6488 = vadd.xlane.f32.xlu0 %v6487_v50 }
0x4ace   :  { %12004 = vrot.lane.b32.xlu1 %v12664_v1, %s12477_s21 }
0x4ad2   :  { %6584 = vrot.lane.b32.xlu1 %v13547_v58, %s12477_s21 }
0x4ad4   :  { %11999 = vrot.lane.b32.xlu0 %v12664_v1, %s12473_s18 }
0x4ad8   :  { %6586 = vrot.lane.b32.xlu0 %v13549_v21, %s12477_s21 }
0x4b4a   :  { %v6492_v55 = vpop.xlane.xlu1 %6491 }
0x4b4b   :  { %12303 = vrcp.f32 %v6492_v55  ;;  %v6489_v23 = vpop.xlane.xlu0 %6488 }
0x4b4c   :  { %12305 = vrcp.f32 %v6489_v23 }
0x4b4e   :  { %v12005_v10 = vpop.permute.xlu1 %12004 }
0x4b4f   :  { %v12000_v16 = vpop.permute.xlu0 %11999  ;;  %v12007_v53 = vunpack.i.h.bf16 %v12005_v10  ;;  %v12006_v12 = vunpack.i.l.bf16 %v12005_v10 }
0x4b50   :  { %v12002_v5 = vunpack.i.h.bf16 %v12000_v16  ;;  %v12001_v22 = vunpack.i.l.bf16 %v12000_v16 }
0x4b51   :  { %v11600_v15 = vpack.c.bf16 %v12007_v53, %v12006_v12 }
0x4b52   :  { %v11596_v14 = vpack.c.bf16 %v12002_v5, %v12001_v22  ;;  %v6585_v26 = vpop.permute.xlu1 %6584 }
0x4b53   :  { %v6587_v57 = vpop.permute.xlu0 %6586 }
0x4b54   :  { %11597 = vmatprep.subr.bf16.mxu0 %v11596_v14 }
0x4b55   :  { %v12304_v47 = vpop.eup %12303  ;;  %11599 = vmatpush3.bf16.msra.mxu0 %v11596_v14 }
0x4b56   :  { %v12306_v3 = vpop.eup %12305  ;;  %11602 = vmatprep.subr.msk.bf16.mxu0 %vm12683_vm5, %v11600_v15  ;;  %v6496_v25 = vmul.f32 %v12304_v47, %v12300_v59 }
0x4b57   :  { %v6495_v9 = vmul.f32 %v12306_v3, %v12302_v60 }
0x4b59   :  { %10994 = vmatprep.mubr.msk.f32.mxu0 %vm492_vm6, %v6495_v9 }
0x4b5a   :  { %10995 = vmatmul.mubr.msk.f32.vlgmr.msra.gmra.mrb[56].mxu0 %vm492_vm6, %v6496_v25 }
0x4b5b   :  { %11001 = vmatprep.mubr.msk.f32.mxu0 %vm404_vm4, %v6585_v26 }
0x4b5e   :  { %11605 = vmatpush3.bf16.xpose.msk.msra.mxu0 %vm12683_vm5, %v11600_v15 }
0x4b65   :  { %11002 = vmatmul.mubr.msk.f32.vlgmr.msra.gmra.mrb[58].mxu0 %vm404_vm4, %v6587_v57 }
0x4c2d   :  { %v13613_v7 = vpop.f32.mrb[56].mxu0 }
0x4c2e   :  { %v13615_v62 = vpop.f32.mrb[57].mxu0 }
0x4c38   :  { %v11003_v56 = vpop.f32.mrb[58].mxu0 }
0x4c39   :  { %v6676_v63 = vmul.f32 0.35355338, %v11003_v56  ;;  %v6666_v31 = vpop.f32.mrb[59].mxu0 }
0x4c3a   :  { %v6675_v33 = vmul.f32 0.35355338, %v6666_v31 }
0x4c3b   :  { %v6678_v48 = vadd.f32 %v13558_v43, %v6676_v63 }
0x4c3c   :  { %v6677_v35 = vadd.f32 %v13564_v20, %v6675_v33 }
0x4c3d   :  { %v6682_v19 = vsel %vm492_vm6, %v6678_v48, -inf }
0x4c3e   :  { %6683 = vmax.xlane.f32.xlu0 %v6682_v19  ;;  %v6679_v18 = vsel %vm492_vm6, %v6677_v35, -inf  ;;  %v5014_v19 = vld [vmem:[#allocation2 + $0x120] sm:$0xff] }
0x4c3f   :  { %6680 = vmax.xlane.f32.xlu1 %v6679_v18  ;;  %v5015_v18 = vld [vmem:[#allocation2 + $0x128] sm:$0xff] }
0x4ccb   :  { %v6684_v0 = vpop.xlane.xlu0 %6683 }
0x4ccc   :  { %v6686_v36 = vsub.f32 %v6678_v48, %v6684_v0  ;;  %v6681_v37 = vpop.xlane.xlu1 %6680  ;;  %v5016_v0 = vld [vmem:[#allocation2 + $0x130] sm:$0xff] }
0x4ccd   :  { %v6685_v38 = vsub.f32 %v6677_v35, %v6681_v37  ;;  %v5017_v37 = vld [vmem:[#allocation2 + $0x138] sm:$0xff] }
0x4cce   :  { %v6689_v27 = vmul.f32 1.442695, %v6686_v36  ;;  %v11620_v36 = vpack.c.bf16 %v5015_v18, %v5014_v19 }
0x4ccf   :  { %v6687_v34 = vmul.f32 1.442695, %v6685_v38  ;;  %v11624_v38 = vpack.c.bf16 %v5017_v37, %v5016_v0  ;;  %v5026_v0 = vld [vmem:[#allocation2 + $0x170] sm:$0xff] }
0x4cd0   :  { %12307 = vpow2.f32 %v6689_v27 }
0x4cd1   :  { %12309 = vpow2.f32 %v6687_v34 }
0x4cda   :  { %v12308_v32 = vpop.eup %12307 }
0x4cdb   :  { %v12310_v44 = vpop.eup %12309  ;;  %v6694_v13 = vsel %vm492_vm6, %v12308_v32, 0.0 }
0x4cdc   :  { %6695 = vadd.xlane.f32.xlu1 %v6694_v13  ;;  %v6691_v28 = vsel %vm492_vm6, %v12310_v44, 0.0 }
0x4cdd   :  { %6692 = vadd.xlane.f32.xlu0 %v6691_v28 }
0x4ced   :  { %12014 = vrot.lane.b32.xlu1 %v12664_v1, %s12480_s25 }
0x4cf1   :  { %6788 = vrot.lane.b32.xlu1 %v13547_v58, %s12480_s25 }
0x4cf3   :  { %12009 = vrot.lane.b32.xlu0 %v12664_v1, %s12476_s8 }
0x4cf7   :  { %6790 = vrot.lane.b32.xlu0 %v13549_v21, %s12480_s25 }
0x4d69   :  { %v6696_v45 = vpop.xlane.xlu1 %6695 }
0x4d6a   :  { %12311 = vrcp.f32 %v6696_v45  ;;  %v6693_v52 = vpop.xlane.xlu0 %6692 }
0x4d6b   :  { %12313 = vrcp.f32 %v6693_v52 }
0x4d6d   :  { %v12015_v41 = vpop.permute.xlu1 %12014 }
0x4d6e   :  { %v12010_v29 = vpop.permute.xlu0 %12009  ;;  %v12017_v46 = vunpack.i.h.bf16 %v12015_v41  ;;  %v12016_v30 = vunpack.i.l.bf16 %v12015_v41 }
0x4d6f   :  { %v12012_v4 = vunpack.i.h.bf16 %v12010_v29  ;;  %v12011_v49 = vunpack.i.l.bf16 %v12010_v29 }
0x4d70   :  { %v11610_v40 = vpack.c.bf16 %v12017_v46, %v12016_v30 }
0x4d71   :  { %v11606_v51 = vpack.c.bf16 %v12012_v4, %v12011_v49  ;;  %v6789_v6 = vpop.permute.xlu1 %6788 }
0x4d72   :  { %v6791_v54 = vpop.permute.xlu0 %6790 }
0x4d73   :  { %11607 = vmatprep.subr.bf16.mxu1 %v11606_v51 }
0x4d74   :  { %v12312_v58 = vpop.eup %12311  ;;  %11609 = vmatpush3.bf16.msra.mxu1 %v11606_v51 }
0x4d75   :  { %v12314_v17 = vpop.eup %12313  ;;  %11612 = vmatprep.subr.msk.bf16.mxu1 %vm12683_vm5, %v11610_v40  ;;  %v6700_v39 = vmul.f32 %v12312_v58, %v12308_v32 }
0x4d76   :  { %v6699_v21 = vmul.f32 %v12314_v17, %v12310_v44 }
0x4d78   :  { %11008 = vmatprep.mubr.msk.f32.mxu1 %vm492_vm6, %v6699_v21 }
0x4d79   :  { %11009 = vmatmul.mubr.msk.f32.vlgmr.msra.gmra.mrb[66].mxu1 %vm492_vm6, %v6700_v39 }
0x4d7a   :  { %11015 = vmatprep.mubr.msk.f32.mxu1 %vm404_vm4, %v6789_v6 }
0x4d7d   :  { %11615 = vmatpush3.bf16.xpose.msk.msra.mxu1 %vm12683_vm5, %v11610_v40 }
0x4d84   :  { %11016 = vmatmul.mubr.msk.f32.vlgmr.msra.gmra.mrb[68].mxu1 %vm404_vm4, %v6791_v54 }
0x4e4c   :  { %v11010_v59 = vpop.f32.mrb[66].mxu1 }
0x4e4d   :  { %v6779_v60 = vpop.f32.mrb[67].mxu1 }
0x4e57   :  { %v11017_v61 = vpop.f32.mrb[68].mxu1 }
0x4e58   :  { %v6880_v50 = vmul.f32 0.35355338, %v11017_v61  ;;  %v6870_v55 = vpop.f32.mrb[69].mxu1 }
0x4e59   :  { %v6879_v23 = vmul.f32 0.35355338, %v6870_v55 }
0x4e5a   :  { %v6882_v10 = vadd.f32 %v13558_v43, %v6880_v50 }
0x4e5b   :  { %v6881_v16 = vadd.f32 %v13564_v20, %v6879_v23 }
0x4e5c   :  { %v6886_v53 = vsel %vm492_vm6, %v6882_v10, -inf }
0x4e5d   :  { %6887 = vmax.xlane.f32.xlu0 %v6886_v53  ;;  %v6883_v12 = vsel %vm492_vm6, %v6881_v16, -inf  ;;  %v5020_v53 = vld [vmem:[#allocation2 + $0x148] sm:$0xff] }
0x4e5e   :  { %6884 = vmax.xlane.f32.xlu1 %v6883_v12 }
0x4eea   :  { %v6888_v5 = vpop.xlane.xlu0 %6887 }
0x4eeb   :  { %v6890_v22 = vsub.f32 %v6882_v10, %v6888_v5  ;;  %v6885_v14 = vpop.xlane.xlu1 %6884  ;;  %v5021_v5 = vld [vmem:[#allocation2 + $0x150] sm:$0xff] }
0x4eec   :  { %v6889_v15 = vsub.f32 %v6881_v16, %v6885_v14 }
0x4eed   :  { %v6893_v47 = vmul.f32 1.442695, %v6890_v22  ;;  %v5022_v22 = vld [vmem:[#allocation2 + $0x158] sm:$0xff] }
0x4eee   :  { %v6891_v3 = vmul.f32 1.442695, %v6889_v15  ;;  %v11632_v14 = vpack.c.bf16 %v5022_v22, %v5021_v5  ;;  %v5024_v15 = vld [vmem:[#allocation2 + $0x160] sm:$0xff] }
0x4eef   :  { %12315 = vpow2.f32 %v6893_v47  ;;  %v5025_v47 = vld [vmem:[#allocation2 + $0x168] sm:$0xff] }
0x4ef0   :  { %12317 = vpow2.f32 %v6891_v3  ;;  %v11636_v3 = vpack.c.bf16 %v5025_v47, %v5024_v15 }
0x4ef9   :  { %v12316_v9 = vpop.eup %12315 }
0x4efa   :  { %v12318_v25 = vpop.eup %12317  ;;  %v6898_v43 = vsel %vm492_vm6, %v12316_v9, 0.0 }
0x4efb   :  { %6899 = vadd.xlane.f32.xlu1 %v6898_v43  ;;  %v6895_v20 = vsel %vm492_vm6, %v12318_v25, 0.0 }
0x4efc   :  { %6896 = vadd.xlane.f32.xlu0 %v6895_v20 }
0x4f0c   :  { %6994 = vrot.lane.b32.xlu1 %v13615_v62, %s12469_s14 }
0x4f10   :  { %6996 = vrot.lane.b32.xlu1 %v13613_v7, %s12469_s14 }
0x4f12   :  { %12019 = vrot.lane.b32.xlu0 %v12664_v1, %s12481_s10 }
0x4f14   :  { %7004 = vrot.lane.b32.xlu1 %v11010_v59, %s12483_s22 }
0x4f16   :  { %7002 = vrot.lane.b32.xlu0 %v6779_v60, %s12483_s22 }
0x4f88   :  { %v6900_v26 = vpop.xlane.xlu1 %6899 }
0x4f89   :  { %12319 = vrcp.f32 %v6900_v26  ;;  %v6897_v57 = vpop.xlane.xlu0 %6896 }
0x4f8a   :  { %12321 = vrcp.f32 %v6897_v57 }
0x4f8c   :  { %v6995_v32 = vpop.permute.xlu1 %6994 }
0x4f8d   :  { %v12020_v56 = vpop.permute.xlu0 %12019  ;;  %v7016_v45 = vsel %vm404_vm4, %v13589_v8, %v6995_v32  ;;  %v9990_v8 = vld [vmem:[%s14082_s11 + $0x23] ss:$0 sm:$0xff] }
0x4f8e   :  { %v12022_v63 = vunpack.i.h.bf16 %v12020_v56  ;;  %v12021_v31 = vunpack.i.l.bf16 %v12020_v56 }
0x4f90   :  { %v11616_v33 = vpack.c.bf16 %v12022_v63, %v12021_v31  ;;  %v6997_v44 = vpop.permute.xlu1 %6996  ;;  %v9993_v63 = vld [vmem:[%s14082_s11 + $0x28] ss:$0 sm:$0xff] }
0x4f91   :  { %v7003_v28 = vpop.permute.xlu0 %7002  ;;  %v7017_v41 = vsel %vm404_vm4, %v13587_v24, %v6997_v44 }
0x4f92   :  { %11617 = vmatprep.subr.bf16.mxu0 %v11616_v33  ;;  %v7018_v29 = vsel %vm492_vm6, %v7016_v45, %v7003_v28  ;;  %v9998_v45 = vld [vmem:[%s14082_s11 + $0x25] ss:$0 sm:$0xff] }
0x4f93   :  { %v12320_v62 = vpop.eup %12319  ;;  %11619 = vmatpush3.bf16.msra.mxu0 %v11616_v33  ;;  %v9994_v33 = vld [vmem:[%s14082_s11 + $0x29] ss:$0 sm:$0xff] }
0x4f94   :  { %v12322_v48 = vpop.eup %12321  ;;  %v6904_v35 = vmul.f32 %v12320_v62, %v12316_v9  ;;  %11621 = vmatprep.subr.bf16.mxu0 %v11620_v36  ;;  %v7005_v13 = vpop.permute.xlu1 %7004 }
0x4f95   :  { %v6903_v7 = vmul.f32 %v12322_v48, %v12318_v25  ;;  %v7019_v30 = vsel %vm492_vm6, %v7017_v41, %v7005_v13 }
0x4f97   :  { %11022 = vmatprep.mubr.msk.f32.mxu0 %vm492_vm6, %v6903_v7 }
0x4f98   :  { %11023 = vmatmul.mubr.msk.f32.vlgmr.msra.gmra.mrb[60].mxu0 %vm492_vm6, %v6904_v35 }
0x4f99   :  { %11623 = vmatpush3.bf16.msra.mxu0 %v11620_v36  ;;  %v5027_v36 = vld [vmem:[#allocation2 + $0x178] sm:$0xff] }
0x4f9a   :  { %11625 = vmatprep.subr.bf16.mxu0 %v11624_v38  ;;  %v11640_v37 = vpack.c.bf16 %v5027_v36, %v5026_v0 }
0x4f9d   :  { %11627 = vmatpush3.bf16.msra.mxu0 %v11624_v38  ;;  %v9995_v38 = vld [vmem:[%s14082_s11 + $0x24] ss:$0 sm:$0xff] }
0x4f9e   :  { %11637 = vmatprep.subr.bf16.mxu0 %v11636_v3 }
0x506b   :  { %v11024_v27 = vpop.f32.mrb[60].mxu0 }
0x506c   :  { %7012 = vrot.lane.b32.xlu1 %v11024_v27, %s12484_s26  ;;  %v6983_v34 = vpop.f32.mrb[61].mxu0 }
0x506d   :  { %7010 = vrot.lane.b32.xlu0 %v6983_v34, %s12484_s26 }
0x50de   :  { %v7013_v52 = vpop.permute.xlu1 %7012 }
0x50df   :  { %v7011_v46 = vpop.permute.xlu0 %7010  ;;  %v7021_v49 = vsel %vm1242_vm7, %v7019_v30, %v7013_v52 }
0x50e0   :  { %v7020_v4 = vsel %vm1242_vm7, %v7018_v29, %v7011_v46 }
0x50e1   :  { %11033 = vmatprep.mubr.msk.f32.mxu0 %vm190_vm0, %v7020_v4 }
0x50e2   :  { %11034 = vmatmul.mubr.msk.f32.vlgmr.msra.gmra.mrb[62].mxu0 %vm190_vm0, %v7021_v49 }
0x50e3   :  { %11639 = vmatpush3.bf16.msra.mxu0 %v11636_v3 }
0x50e4   :  { %11641 = vmatprep.subr.bf16.mxu0 %v11640_v37 }
0x50e7   :  { %11643 = vmatpush3.bf16.msra.mxu0 %v11640_v37 }
0x51b5   :  { %v11035_v51 = vpop.f32.mrb[62].mxu0 }
0x51b6   :  { %v7104_v40 = vadd.f32 %v11035_v51, %v9990_v8  ;;  %v7098_v24 = vpop.f32.mrb[63].mxu0 }
0x51b7   :  { %v7099_v58 = vadd.f32 %v9990_v8, %v7098_v24 }
0x51b8   :  { %v7108_v17 = vadd.f32 %v7104_v40, %v13538_v2 }
0x51b9   :  { %v7107_v21 = vadd.f32 %v7099_v58, %v13536_v42  ;;  %v5019_v42 = vld [vmem:[#allocation2 + $0x140] sm:$0xff] }
0x51ba   :  { %v7112_v39 = vsel %vm190_vm0, %v7108_v17, 0.0  ;;  %v11628_v12 = vpack.c.bf16 %v5020_v53, %v5019_v42 }
0x51bb   :  { %7113 = vadd.xlane.f32.xlu1 %v7112_v39  ;;  %v7109_v6 = vsel %vm190_vm0, %v7107_v21, 0.0 }
0x51bc   :  { %7110 = vadd.xlane.f32.xlu0 %v7109_v6  ;;  %11629 = vmatprep.subr.bf16.mxu1 %v11628_v12 }
0x51bd   :  { %11631 = vmatpush3.bf16.msra.mxu1 %v11628_v12 }
0x51be   :  { %11633 = vmatprep.subr.bf16.mxu1 %v11632_v14 }
0x51c1   :  { %11635 = vmatpush3.bf16.msra.mxu1 %v11632_v14  ;;  %v10001_v14 = vld [vmem:[%s14082_s11 + $0x2a] ss:$0 sm:$0xff] }
0x5248   :  { %v7114_v54 = vpop.xlane.xlu1 %7113 }
0x5249   :  { %v7116_v59 = vmul.f32 0.03125, %v7114_v54  ;;  %v7111_v60 = vpop.xlane.xlu0 %7110 }
0x524a   :  { %v7115_v61 = vmul.f32 0.03125, %v7111_v60  ;;  %v10003_v60 = vld [vmem:[%s14077_s6 + $0x60] sm:$0xff] }
0x524b   :  { %v7118_v50 = vsub.f32 %v7108_v17, %v7116_v59 }
0x524c   :  { %v7117_v55 = vsub.f32 %v7107_v21, %v7115_v61  ;;  %v10004_v61 = vld [vmem:[%s14077_s6 + $0x68] sm:$0xff] }
0x524d   :  { %v7120_v16 = vmul.f32 %v7118_v50, %v7118_v50 }
0x524e   :  { %v7119_v23 = vmul.f32 %v7117_v55, %v7117_v55 }
0x524f   :  { %v7124_v2 = vsel %vm190_vm0, %v7120_v16, 0.0 }
0x5250   :  { %v7121_v10 = vsel %vm190_vm0, %v7119_v23, 0.0  ;;  %v10006_v23 = vld [vmem:[%s14077_s6 + $0x78] sm:$0xff] }
0x5251   :  { %7122 = vadd.xlane.f32.xlu0 %v7121_v10 }
0x5255   :  { %7125 = vadd.xlane.f32.xlu0 %v7124_v2 }
0x52de   :  { %v7123_v9 = vpop.xlane.xlu0 %7122 }
0x52df   :  { %v7127_v25 = vmul.f32 0.03125, %v7123_v9  ;;  %v10002_v9 = vld [vmem:[%s14082_s11 + $0x2b] ss:$0 sm:$0xff] }
0x52e1   :  { %v7129_v43 = vadd.f32 1e-05, %v7127_v25 }
0x52e2   :  { %v7126_v20 = vpop.xlane.xlu0 %7125 }
0x52e3   :  { %12323 = vrsqrt.f32 %v7129_v43  ;;  %v7128_v26 = vmul.f32 0.03125, %v7126_v20 }
0x52e5   :  { %v7130_v57 = vadd.f32 1e-05, %v7128_v26 }
0x52e7   :  { %12325 = vrsqrt.f32 %v7130_v57  ;;  %v10023_v57 = vld [vmem:[%s14082_s11 + $0x30] ss:$0 sm:$0xff] }
0x52ed   :  { %v12324_v56 = vpop.eup %12323 }
0x52ee   :  { %v7133_v31 = vmul.f32 %v12324_v56, %v7117_v55  ;;  %v10005_v55 = vld [vmem:[%s14077_s6 + $0x70] sm:$0xff]  ;;  %s12486_s6 = smov [#allocation5]  }
0x52ef   :  { %v11648_v10 = vpack.c.bf16 %v10006_v23, %v10005_v55  ;;  %s9729_s2 = sshll.u32 %s12486_s6, 4  ;;  %s9730_s2 = int_to_ptr.vmem [resolvable:$true] %s9729_s2 }
0x52f0   :  { %v7139_v62 = vmul.f32 %v9993_v63, %v7133_v31  ;;  %p12446_p9 = scmp.lt.s32.totalorder %s9730_s2, %s9730_s2 }
0x52f1   :  { %v12326_v48 = vpop.eup %12325 }
0x52f2   :  { %v7134_v7 = vmul.f32 %v12326_v48, %v7118_v50  ;;  %v7145_v35 = vadd.f32 %v9994_v33, %v7139_v62  ;;  %v11644_v50 = vpack.c.bf16 %v10004_v61, %v10003_v60 }
0x52f4   :  { %v7140_v19 = vmul.f32 %v9993_v63, %v7134_v7  ;;  %11044 = vmatprep.mubr.msk.f32.mxu1 %vm190_vm0, %v7145_v35  ;;  %11645 = vmatprep.subr.bf16.mxu1 %v11644_v50 }
0x52f6   :  { %v7146_v18 = vadd.f32 %v9994_v33, %v7140_v19 }
0x52f8   :  { %11045 = vmatmul.mubr.msk.f32.vlgmr.msra.gmra.mrb[70].mxu1 %vm190_vm0, %v7146_v18 }
0x52f9   :  { %11647 = vmatpush3.bf16.msra.mxu1 %v11644_v50 }
0x52fa   :  { %11649 = vmatprep.subr.bf16.mxu1 %v11648_v10 }
0x52fd   :  { %11651 = vmatpush3.bf16.msra.mxu1 %v11648_v10 }
0x53cb   :  { %v11046_v27 = vpop.f32.mrb[70].mxu1 }
0x53cc   :  { %v7229_v34 = vadd.f32 %v11046_v27, %v9995_v38  ;;  %v7223_v32 = vpop.f32.mrb[71].mxu1 }
0x53cd   :  { %v7224_v44 = vadd.f32 %v9995_v38, %v7223_v32 }
0x53ce   :  { %v7233_v28 = vmax.f32 %v7229_v34, 0.0 }
0x53cf   :  { %v7232_v13 = vmax.f32 %v7224_v44, 0.0  ;;  %v13752_v44 = vld [vmem:[%s14075_s4] sm:$0xff] }
0x53d1   :  { %11055 = vmatprep.mubr.msk.f32.mxu0 %vm190_vm0, %v7232_v13 }
0x53d2   :  { %11056 = vmatmul.mubr.msk.f32.vlgmr.msra.gmra.mrb[64].mxu0 %vm190_vm0, %v7233_v28  ;;  %v13758_v28 = vld [vmem:[%s14075_s4 + $0x8] sm:$0xff] }
0x54a5   :  { %v11057_v52 = vpop.f32.mrb[64].mxu0 }
0x54a6   :  { %v7316_v41 = vadd.f32 %v11057_v52, %v9998_v45  ;;  %v7310_v29 = vpop.f32.mrb[65].mxu0 }
0x54a7   :  { %v7311_v46 = vadd.f32 %v9998_v45, %v7310_v29 }
0x54a8   :  { %v7320_v30 = vadd.f32 %v7316_v41, %v7146_v18 }
0x54a9   :  { %v7319_v4 = vadd.f32 %v7311_v46, %v7145_v35 }
0x54aa   :  { %v7324_v49 = vsel %vm190_vm0, %v7320_v30, 0.0 }
0x54ab   :  { %7325 = vadd.xlane.f32.xlu0 %v7324_v49  ;;  %v7321_v8 = vsel %vm190_vm0, %v7319_v4, 0.0 }
0x54ac   :  { %7322 = vadd.xlane.f32.xlu1 %v7321_v8 }
0x5538   :  { %v7326_v51 = vpop.xlane.xlu0 %7325 }
0x5539   :  { %v7328_v40 = vmul.f32 0.03125, %v7326_v51  ;;  %v7323_v24 = vpop.xlane.xlu1 %7322 }
0x553a   :  { %v7327_v58 = vmul.f32 0.03125, %v7323_v24 }
0x553b   :  { %v7330_v17 = vsub.f32 %v7320_v30, %v7328_v40 }
0x553c   :  { %v7329_v21 = vsub.f32 %v7319_v4, %v7327_v58 }
0x553d   :  { %v7332_v39 = vmul.f32 %v7330_v17, %v7330_v17 }
0x553e   :  { %v7331_v6 = vmul.f32 %v7329_v21, %v7329_v21 }
0x553f   :  { %v7336_v54 = vsel %vm190_vm0, %v7332_v39, 0.0 }
0x5540   :  { %7337 = vadd.xlane.f32.xlu0 %v7336_v54  ;;  %v7333_v59 = vsel %vm190_vm0, %v7331_v6, 0.0 }
0x5541   :  { %7334 = vadd.xlane.f32.xlu1 %v7333_v59 }
0x55cd   :  { %v7338_v16 = vpop.xlane.xlu0 %7337 }
0x55ce   :  { %v7340_v2 = vmul.f32 0.03125, %v7338_v16  ;;  %v7335_v42 = vpop.xlane.xlu1 %7334 }
0x55cf   :  { %v7339_v53 = vmul.f32 0.03125, %v7335_v42 }
0x55d0   :  { %v7342_v12 = vadd.f32 1e-05, %v7340_v2 }
0x55d1   :  { %v7341_v5 = vadd.f32 1e-05, %v7339_v53 }
0x55d2   :  { %12327 = vrsqrt.f32 %v7342_v12 }
0x55d3   :  { %12329 = vrsqrt.f32 %v7341_v5 }
0x55dc   :  { %v12328_v22 = vpop.eup %12327 }
0x55dd   :  { %v12330_v15 = vpop.eup %12329  ;;  %v7346_v47 = vmul.f32 %v12328_v22, %v7330_v17 }
0x55de   :  { %v7345_v3 = vmul.f32 %v12330_v15, %v7329_v21 }
0x55df   :  { %v7352_v25 = vmul.f32 %v10001_v14, %v7346_v47 }
0x55e0   :  { %v7351_v43 = vmul.f32 %v10001_v14, %v7345_v3 }
0x55e1   :  { %v13716_v26 = vadd.f32 %v10002_v9, %v7352_v25 }
0x55e2   :  { %v13714_v20 = vadd.f32 %v10002_v9, %v7351_v43 }
0x55e4   :  { %11066 = vmatprep.mubr.msk.f32.mxu1 %vm190_vm0, %v13714_v20 }
0x55e5   :  { %11067 = vmatmul.mubr.msk.f32.vlgmr.msra.gmra.mrb[72].mxu1 %vm190_vm0, %v13716_v26 }
0x56b8   :  { %v11068_v56 = vpop.f32.mrb[72].mxu1 }
0x56b9   :  { %v13725_v63 = vadd.f32 %v11068_v56, %v10023_v57  ;;  %v7478_v31 = vpop.f32.mrb[73].mxu1 }
0x56ba   :  { %v13727_v33 = vadd.f32 %v10023_v57, %v7478_v31 }
0x56bc   :  { %11073 = vmatprep.mubr.msk.f32.mxu0 %vm404_vm4, %v13727_v33  ;;  %v13733_v62 = vpack.i.bf16 %v13725_v63, %v13727_v33 }
0x56be   :  { %12024 = vrot.lane.b32.xlu1 %v13733_v62, %s12472_s30 }
0x56c2   :  { %12029 = vrot.lane.b32.xlu1 %v13733_v62, %s12475_s20 }
0x56c6   :  { %7689 = vrot.lane.b32.xlu1 %v13727_v33, %s12474_s19 }
0x56ca   :  { %7691 = vrot.lane.b32.xlu1 %v13725_v63, %s12474_s19 }
0x5730   :  { %v12025_v48 = vpop.permute.xlu1 %12024 }
0x5731   :  { %v12027_v7 = vunpack.i.h.bf16 %v12025_v48  ;;  %v12026_v35 = vunpack.i.l.bf16 %v12025_v48 }
0x5733   :  { %v11652_v19 = vpack.c.bf16 %v12027_v7, %v12026_v35 }
0x5734   :  { %v12030_v18 = vpop.permute.xlu1 %12029 }
0x5735   :  { %v12032_v0 = vunpack.i.h.bf16 %v12030_v18  ;;  %v12031_v36 = vunpack.i.l.bf16 %v12030_v18  ;;  %11654 = vmatprep.subr.msk.bf16.mxu0 %vm12683_vm5, %v11652_v19 }
0x5736   :  { %11657 = vmatpush3.bf16.xpose.msk.msra.mxu0 %vm12683_vm5, %v11652_v19 }
0x5737   :  { %v11658_v37 = vpack.c.bf16 %v12032_v0, %v12031_v36 }
0x5738   :  { %v7690_v23 = vpop.permute.xlu1 %7689 }
0x5739   :  { %11659 = vmatprep.subr.bf16.mxu1 %v11658_v37 }
0x573a   :  { %11661 = vmatpush3.bf16.msra.mxu1 %v11658_v37 }
0x573c   :  { %v7692_v10 = vpop.permute.xlu1 %7691 }
0x573d   :  { %11074 = vmatmul.mubr.msk.f32.vlgmr.msra.gmra.mrb[66].mxu0 %vm404_vm4, %v13725_v63 }
0x5810   :  { %v11075_v38 = vpop.f32.mrb[66].mxu0 }
0x5811   :  { %v7567_v27 = vpop.f32.mrb[67].mxu0  ;;  %v7577_v34 = vmul.f32 0.35355338, %v11075_v38 }
0x5812   :  { %v7576_v32 = vmul.f32 0.35355338, %v7567_v27 }
0x5813   :  { %v7579_v45 = vadd.f32 %v13758_v28, %v7577_v34 }
0x5814   :  { %v7578_v13 = vadd.f32 %v13752_v44, %v7576_v32 }
0x5815   :  { %v7583_v41 = vsel %vm492_vm6, %v7579_v45, -inf }
0x5816   :  { %v7580_v52 = vsel %vm492_vm6, %v7578_v13, -inf }
0x5817   :  { %7581 = vmax.xlane.f32.xlu0 %v7580_v52 }
0x581b   :  { %7584 = vmax.xlane.f32.xlu0 %v7583_v41 }
0x58a4   :  { %v7582_v29 = vpop.xlane.xlu0 %7581 }
0x58a5   :  { %v7586_v46 = vsub.f32 %v7578_v13, %v7582_v29 }
0x58a7   :  { %v7588_v49 = vmul.f32 1.442695, %v7586_v46 }
0x58a8   :  { %v7585_v30 = vpop.xlane.xlu0 %7584 }
0x58a9   :  { %v7587_v4 = vsub.f32 %v7579_v45, %v7585_v30 }
0x58ab   :  { %v7590_v8 = vmul.f32 1.442695, %v7587_v4 }
0x58ad   :  { %12331 = vpow2.f32 %v7590_v8 }
0x58ae   :  { %12333 = vpow2.f32 %v7588_v49 }
0x58b7   :  { %v12332_v51 = vpop.eup %12331 }
0x58b8   :  { %v7595_v40 = vsel %vm492_vm6, %v12332_v51, 0.0  ;;  %v12334_v24 = vpop.eup %12333 }
0x58b9   :  { %7596 = vadd.xlane.f32.xlu0 %v7595_v40  ;;  %v7592_v58 = vsel %vm492_vm6, %v12334_v24, 0.0 }
0x58bd   :  { %7593 = vadd.xlane.f32.xlu0 %v7592_v58 }
0x58d3   :  { %12034 = vrot.lane.b32.xlu0 %v13733_v62, %s12473_s18 }
0x5946   :  { %v7597_v17 = vpop.xlane.xlu0 %7596 }
0x5947   :  { %12335 = vrcp.f32 %v7597_v17 }
0x594a   :  { %v7594_v21 = vpop.xlane.xlu0 %7593 }
0x594b   :  { %12337 = vrcp.f32 %v7594_v21 }
0x594e   :  { %v12035_v39 = vpop.permute.xlu0 %12034 }
0x594f   :  { %v12037_v6 = vunpack.i.h.bf16 %v12035_v39  ;;  %v12036_v54 = vunpack.i.l.bf16 %v12035_v39 }
0x5951   :  { %v11662_v59 = vpack.c.bf16 %v12037_v6, %v12036_v54  ;;  %v12336_v60 = vpop.eup %12335 }
0x5952   :  { %v7601_v55 = vmul.f32 %v12336_v60, %v12332_v51 }
0x5953   :  { %11664 = vmatprep.subr.msk.bf16.mxu1 %vm12683_vm5, %v11662_v59 }
0x5955   :  { %v12338_v61 = vpop.eup %12337 }
0x5956   :  { %v7600_v50 = vmul.f32 %v12338_v61, %v12334_v24 }
0x5958   :  { %11080 = vmatprep.mubr.msk.f32.mxu1 %vm492_vm6, %v7600_v50 }
0x5959   :  { %11081 = vmatmul.mubr.msk.f32.vlgmr.msra.gmra.mrb[74].mxu1 %vm492_vm6, %v7601_v55 }
0x595a   :  { %11667 = vmatpush3.bf16.xpose.msk.msra.mxu1 %vm12683_vm5, %v11662_v59  ;;  %11087 = vmatprep.mubr.msk.f32.mxu1 %vm404_vm4, %v7690_v23 }
0x5961   :  { %11088 = vmatmul.mubr.msk.f32.vlgmr.msra.gmra.mrb[76].mxu1 %vm404_vm4, %v7692_v10 }
0x5a2c   :  { %v13775_v16 = vpop.f32.mrb[74].mxu1 }
0x5a2d   :  { %v13777_v2 = vpop.f32.mrb[75].mxu1 }
0x5a34   :  { %v11089_v42 = vpop.f32.mrb[76].mxu1 }
0x5a35   :  { %v7781_v53 = vmul.f32 0.35355338, %v11089_v42  ;;  %v7771_v12 = vpop.f32.mrb[77].mxu1 }
0x5a36   :  { %v7780_v5 = vmul.f32 0.35355338, %v7771_v12 }
0x5a37   :  { %v7783_v22 = vadd.f32 %v13758_v28, %v7781_v53 }
0x5a38   :  { %v7782_v14 = vadd.f32 %v13752_v44, %v7780_v5 }
0x5a39   :  { %v7787_v15 = vsel %vm492_vm6, %v7783_v22, -inf }
0x5a3a   :  { %7788 = vmax.xlane.f32.xlu0 %v7787_v15  ;;  %v7784_v47 = vsel %vm492_vm6, %v7782_v14, -inf }
0x5a3b   :  { %7785 = vmax.xlane.f32.xlu1 %v7784_v47 }
0x5a4c   :  { %12044 = vrot.lane.b32.xlu1 %v13733_v62, %s12476_s8 }
0x5a50   :  { %12039 = vrot.lane.b32.xlu0 %v13733_v62, %s12478_s23 }
0x5a54   :  { %7895 = vrot.lane.b32.xlu0 %v13725_v63, %s12477_s21 }
0x5ac7   :  { %v7789_v3 = vpop.xlane.xlu0 %7788 }
0x5ac8   :  { %v7791_v9 = vsub.f32 %v7783_v22, %v7789_v3  ;;  %v7786_v25 = vpop.xlane.xlu1 %7785 }
0x5ac9   :  { %v7790_v43 = vsub.f32 %v7782_v14, %v7786_v25 }
0x5aca   :  { %v7794_v57 = vmul.f32 1.442695, %v7791_v9 }
0x5acb   :  { %v7792_v56 = vmul.f32 1.442695, %v7790_v43  ;;  %v12040_v31 = vpop.permute.xlu0 %12039 }
0x5acc   :  { %12339 = vpow2.f32 %v7794_v57  ;;  %v12042_v48 = vunpack.i.h.bf16 %v12040_v31  ;;  %v12041_v7 = vunpack.i.l.bf16 %v12040_v31  ;;  %v12045_v35 = vpop.permute.xlu1 %12044 }
0x5acd   :  { %v12047_v19 = vunpack.i.h.bf16 %v12045_v35  ;;  %v12046_v18 = vunpack.i.l.bf16 %v12045_v35  ;;  %12341 = vpow2.f32 %v7792_v56 }
0x5ace   :  { %v11668_v0 = vpack.c.bf16 %v12042_v48, %v12041_v7 }
0x5acf   :  { %v11672_v36 = vpack.c.bf16 %v12047_v19, %v12046_v18  ;;  %v7896_v30 = vpop.permute.xlu0 %7895 }
0x5ad0   :  { %11669 = vmatprep.subr.bf16.mxu0 %v11668_v0 }
0x5ad1   :  { %11671 = vmatpush3.bf16.msra.mxu0 %v11668_v0 }
0x5ad2   :  { %11674 = vmatprep.subr.msk.bf16.mxu0 %vm12683_vm5, %v11672_v36 }
0x5ad6   :  { %v12340_v37 = vpop.eup %12339 }
0x5ad7   :  { %v7799_v38 = vsel %vm492_vm6, %v12340_v37, 0.0  ;;  %v12342_v27 = vpop.eup %12341 }
0x5ad8   :  { %7800 = vadd.xlane.f32.xlu1 %v7799_v38  ;;  %v7796_v34 = vsel %vm492_vm6, %v12342_v27, 0.0 }
0x5adc   :  { %7797 = vadd.xlane.f32.xlu1 %v7796_v34 }
0x5aed   :  { %7893 = vrot.lane.b32.xlu1 %v13727_v33, %s12477_s21 }
0x5b65   :  { %v7801_v32 = vpop.xlane.xlu1 %7800 }
0x5b66   :  { %12343 = vrcp.f32 %v7801_v32 }
0x5b69   :  { %v7798_v13 = vpop.xlane.xlu1 %7797 }
0x5b6a   :  { %12345 = vrcp.f32 %v7798_v13 }
0x5b6d   :  { %v7894_v46 = vpop.permute.xlu1 %7893 }
0x5b70   :  { %v12344_v45 = vpop.eup %12343 }
0x5b71   :  { %v7805_v29 = vmul.f32 %v12344_v45, %v12340_v37 }
0x5b74   :  { %v12346_v52 = vpop.eup %12345 }
0x5b75   :  { %v7804_v41 = vmul.f32 %v12346_v52, %v12342_v27 }
0x5b77   :  { %11094 = vmatprep.mubr.msk.f32.mxu0 %vm492_vm6, %v7804_v41 }
0x5b78   :  { %11095 = vmatmul.mubr.msk.f32.vlgmr.msra.gmra.mrb[68].mxu0 %vm492_vm6, %v7805_v29 }
0x5b79   :  { %11677 = vmatpush3.bf16.xpose.msk.msra.mxu0 %vm12683_vm5, %v11672_v36  ;;  %11101 = vmatprep.mubr.msk.f32.mxu0 %vm404_vm4, %v7894_v46 }
0x5b80   :  { %11102 = vmatmul.mubr.msk.f32.vlgmr.msra.gmra.mrb[70].mxu0 %vm404_vm4, %v7896_v30 }
0x5c4b   :  { %v13801_v4 = vpop.f32.mrb[68].mxu0 }
0x5c4c   :  { %v13803_v49 = vpop.f32.mrb[69].mxu0 }
0x5c53   :  { %v11103_v8 = vpop.f32.mrb[70].mxu0 }
0x5c54   :  { %v7985_v51 = vmul.f32 0.35355338, %v11103_v8  ;;  %v7975_v40 = vpop.f32.mrb[71].mxu0 }
0x5c55   :  { %v7984_v24 = vmul.f32 0.35355338, %v7975_v40 }
0x5c56   :  { %v7987_v58 = vadd.f32 %v13758_v28, %v7985_v51 }
0x5c57   :  { %v7986_v17 = vadd.f32 %v13752_v44, %v7984_v24 }
0x5c58   :  { %v7991_v21 = vsel %vm492_vm6, %v7987_v58, -inf }
0x5c59   :  { %7992 = vmax.xlane.f32.xlu0 %v7991_v21  ;;  %v7988_v39 = vsel %vm492_vm6, %v7986_v17, -inf }
0x5c5a   :  { %7989 = vmax.xlane.f32.xlu1 %v7988_v39  ;;  %v7371_v39 = vld [vmem:[#allocation2 + $0x188] sm:$0xff] }
0x5ce6   :  { %v7993_v6 = vpop.xlane.xlu0 %7992 }
0x5ce7   :  { %v7995_v54 = vsub.f32 %v7987_v58, %v7993_v6  ;;  %v7990_v59 = vpop.xlane.xlu1 %7989  ;;  %v7372_v6 = vld [vmem:[#allocation2 + $0x190] sm:$0xff] }
0x5ce8   :  { %v7994_v60 = vsub.f32 %v7986_v17, %v7990_v59  ;;  %v7373_v59 = vld [vmem:[#allocation2 + $0x198] sm:$0xff] }
0x5ce9   :  { %v7998_v61 = vmul.f32 1.442695, %v7995_v54 }
0x5cea   :  { %v7996_v50 = vmul.f32 1.442695, %v7994_v60  ;;  %v11696_v60 = vpack.c.bf16 %v7373_v59, %v7372_v6 }
0x5ceb   :  { %12347 = vpow2.f32 %v7998_v61 }
0x5cec   :  { %12349 = vpow2.f32 %v7996_v50 }
0x5cf5   :  { %v12348_v55 = vpop.eup %12347 }
0x5cf6   :  { %v12350_v23 = vpop.eup %12349  ;;  %v8003_v10 = vsel %vm492_vm6, %v12348_v55, 0.0 }
0x5cf7   :  { %8004 = vadd.xlane.f32.xlu1 %v8003_v10  ;;  %v8000_v42 = vsel %vm492_vm6, %v12350_v23, 0.0 }
0x5cf8   :  { %8001 = vadd.xlane.f32.xlu0 %v8000_v42 }
0x5d08   :  { %12054 = vrot.lane.b32.xlu1 %v13733_v62, %s12481_s10 }
0x5d0c   :  { %8097 = vrot.lane.b32.xlu1 %v13727_v33, %s12480_s25 }
0x5d0e   :  { %12049 = vrot.lane.b32.xlu0 %v13733_v62, %s12479_s24 }
0x5d12   :  { %8099 = vrot.lane.b32.xlu0 %v13725_v63, %s12480_s25 }
0x5d84   :  { %v8005_v53 = vpop.xlane.xlu1 %8004 }
0x5d85   :  { %12351 = vrcp.f32 %v8005_v53  ;;  %v8002_v12 = vpop.xlane.xlu0 %8001 }
0x5d86   :  { %12353 = vrcp.f32 %v8002_v12 }
0x5d88   :  { %v12055_v5 = vpop.permute.xlu1 %12054 }
0x5d89   :  { %v12050_v22 = vpop.permute.xlu0 %12049  ;;  %v12057_v14 = vunpack.i.h.bf16 %v12055_v5  ;;  %v12056_v15 = vunpack.i.l.bf16 %v12055_v5 }
0x5d8a   :  { %v12052_v47 = vunpack.i.h.bf16 %v12050_v22  ;;  %v12051_v3 = vunpack.i.l.bf16 %v12050_v22 }
0x5d8b   :  { %v11682_v25 = vpack.c.bf16 %v12057_v14, %v12056_v15 }
0x5d8c   :  { %v11678_v9 = vpack.c.bf16 %v12052_v47, %v12051_v3  ;;  %v8098_v56 = vpop.permute.xlu1 %8097 }
0x5d8d   :  { %v8100_v31 = vpop.permute.xlu0 %8099 }
0x5d8e   :  { %11679 = vmatprep.subr.bf16.mxu1 %v11678_v9 }
0x5d8f   :  { %v12352_v33 = vpop.eup %12351  ;;  %11681 = vmatpush3.bf16.msra.mxu1 %v11678_v9 }
0x5d90   :  { %v12354_v43 = vpop.eup %12353  ;;  %11684 = vmatprep.subr.msk.bf16.mxu1 %vm12683_vm5, %v11682_v25  ;;  %v8009_v57 = vmul.f32 %v12352_v33, %v12348_v55 }
0x5d91   :  { %v8008_v63 = vmul.f32 %v12354_v43, %v12350_v23 }
0x5d93   :  { %11108 = vmatprep.mubr.msk.f32.mxu1 %vm492_vm6, %v8008_v63 }
0x5d94   :  { %11109 = vmatmul.mubr.msk.f32.vlgmr.msra.gmra.mrb[78].mxu1 %vm492_vm6, %v8009_v57 }
0x5d95   :  { %11115 = vmatprep.mubr.msk.f32.mxu1 %vm404_vm4, %v8098_v56 }
0x5d98   :  { %11687 = vmatpush3.bf16.xpose.msk.msra.mxu1 %vm12683_vm5, %v11682_v25 }
0x5d9f   :  { %11116 = vmatmul.mubr.msk.f32.vlgmr.msra.gmra.mrb[80].mxu1 %vm404_vm4, %v8100_v31  ;;  %v10007_v31 = vld [vmem:[%s14078_s7 + $0x60] sm:$0xff] }
0x5e67   :  { %v11110_v48 = vpop.f32.mrb[78].mxu1 }
0x5e68   :  { %v8088_v7 = vpop.f32.mrb[79].mxu1 }
0x5e72   :  { %v11117_v35 = vpop.f32.mrb[80].mxu1 }
0x5e73   :  { %v8189_v19 = vmul.f32 0.35355338, %v11117_v35  ;;  %v8179_v18 = vpop.f32.mrb[81].mxu1 }
0x5e74   :  { %v8188_v0 = vmul.f32 0.35355338, %v8179_v18 }
0x5e75   :  { %v8191_v36 = vadd.f32 %v13758_v28, %v8189_v19 }
0x5e76   :  { %v8190_v37 = vadd.f32 %v13752_v44, %v8188_v0 }
0x5e77   :  { %v8195_v38 = vsel %vm492_vm6, %v8191_v36, -inf }
0x5e78   :  { %8196 = vmax.xlane.f32.xlu0 %v8195_v38  ;;  %v8192_v27 = vsel %vm492_vm6, %v8190_v37, -inf }
0x5e79   :  { %8193 = vmax.xlane.f32.xlu1 %v8192_v27 }
0x5f05   :  { %v8197_v34 = vpop.xlane.xlu0 %8196 }
0x5f06   :  { %v8199_v32 = vsub.f32 %v8191_v36, %v8197_v34  ;;  %v8194_v13 = vpop.xlane.xlu1 %8193 }
0x5f07   :  { %v8198_v45 = vsub.f32 %v8190_v37, %v8194_v13 }
0x5f08   :  { %v8202_v52 = vmul.f32 1.442695, %v8199_v32 }
0x5f09   :  { %v8200_v41 = vmul.f32 1.442695, %v8198_v45 }
0x5f0a   :  { %12355 = vpow2.f32 %v8202_v52 }
0x5f0b   :  { %12357 = vpow2.f32 %v8200_v41 }
0x5f14   :  { %v12356_v29 = vpop.eup %12355 }
0x5f15   :  { %v12358_v46 = vpop.eup %12357  ;;  %v8207_v28 = vsel %vm492_vm6, %v12356_v29, 0.0 }
0x5f16   :  { %8208 = vadd.xlane.f32.xlu1 %v8207_v28  ;;  %v8204_v44 = vsel %vm492_vm6, %v12358_v46, 0.0 }
0x5f17   :  { %8205 = vadd.xlane.f32.xlu0 %v8204_v44 }
0x5f27   :  { %8303 = vrot.lane.b32.xlu1 %v13803_v49, %s12469_s14 }
0x5f2b   :  { %8305 = vrot.lane.b32.xlu1 %v13801_v4, %s12469_s14 }
0x5f2d   :  { %12059 = vrot.lane.b32.xlu0 %v13733_v62, %s12482_s3  ;;  %v7370_v62 = vld [vmem:[#allocation2 + $0x180] sm:$0xff] }
0x5f2e   :  { %v11692_v54 = vpack.c.bf16 %v7371_v39, %v7370_v62  ;;  %v10054_v62 = vld [vmem:[%s14082_s11 + $0x37] ss:$0 sm:$0xff] }
0x5f2f   :  { %8313 = vrot.lane.b32.xlu1 %v11110_v48, %s12483_s22  ;;  %v10008_v48 = vld [vmem:[%s14078_s7 + $0x68] sm:$0xff] }
0x5f31   :  { %8311 = vrot.lane.b32.xlu0 %v8088_v7, %s12483_s22  ;;  %v10010_v7 = vld [vmem:[%s14078_s7 + $0x78] sm:$0xff] }
0x5fa3   :  { %v8209_v30 = vpop.xlane.xlu1 %8208 }
0x5fa4   :  { %12359 = vrcp.f32 %v8209_v30  ;;  %v8206_v8 = vpop.xlane.xlu0 %8205 }
0x5fa5   :  { %12361 = vrcp.f32 %v8206_v8 }
0x5fa7   :  { %v8304_v55 = vpop.permute.xlu1 %8303 }
0x5fa8   :  { %v12060_v51 = vpop.permute.xlu0 %12059  ;;  %v8325_v53 = vsel %vm404_vm4, %v13777_v2, %v8304_v55  ;;  %v10050_v2 = vld [vmem:[%s14082_s11 + $0x32] ss:$0 sm:$0xff] }
0x5fa9   :  { %v12062_v40 = vunpack.i.h.bf16 %v12060_v51  ;;  %v12061_v24 = vunpack.i.l.bf16 %v12060_v51 }
0x5fab   :  { %v11688_v58 = vpack.c.bf16 %v12062_v40, %v12061_v24  ;;  %v8306_v23 = vpop.permute.xlu1 %8305 }
0x5fac   :  { %v8312_v42 = vpop.permute.xlu0 %8311  ;;  %v8326_v5 = vsel %vm404_vm4, %v13775_v16, %v8306_v23 }
0x5fad   :  { %11689 = vmatprep.subr.bf16.mxu0 %v11688_v58  ;;  %v8327_v22 = vsel %vm492_vm6, %v8325_v53, %v8312_v42 }
0x5fae   :  { %v12360_v49 = vpop.eup %12359  ;;  %11691 = vmatpush3.bf16.msra.mxu0 %v11688_v58 }
0x5faf   :  { %v12362_v17 = vpop.eup %12361  ;;  %v8213_v21 = vmul.f32 %v12360_v49, %v12356_v29  ;;  %11693 = vmatprep.subr.bf16.mxu0 %v11692_v54  ;;  %v8314_v10 = vpop.permute.xlu1 %8313 }
0x5fb0   :  { %v8212_v4 = vmul.f32 %v12362_v17, %v12358_v46  ;;  %v8328_v15 = vsel %vm492_vm6, %v8326_v5, %v8314_v10 }
0x5fb2   :  { %11122 = vmatprep.mubr.msk.f32.mxu0 %vm492_vm6, %v8212_v4  ;;  %v10053_v4 = vld [vmem:[%s14082_s11 + $0x36] ss:$0 sm:$0xff] }
0x5fb3   :  { %11123 = vmatmul.mubr.msk.f32.vlgmr.msra.gmra.mrb[72].mxu0 %vm492_vm6, %v8213_v21 }
0x5fb4   :  { %11695 = vmatpush3.bf16.msra.mxu0 %v11692_v54 }
0x5fb5   :  { %11697 = vmatprep.subr.bf16.mxu0 %v11696_v60 }
0x5fb8   :  { %11699 = vmatpush3.bf16.msra.mxu0 %v11696_v60 }
0x6086   :  { %v11124_v61 = vpop.f32.mrb[72].mxu0 }
0x6087   :  { %8321 = vrot.lane.b32.xlu1 %v11124_v61, %s12484_s26  ;;  %v8292_v50 = vpop.f32.mrb[73].mxu0 }
0x6088   :  { %8319 = vrot.lane.b32.xlu0 %v8292_v50, %s12484_s26  ;;  %v10055_v50 = vld [vmem:[%s14082_s11 + $0x31] ss:$0 sm:$0xff] }
0x60f9   :  { %v8322_v12 = vpop.permute.xlu1 %8321 }
0x60fa   :  { %v8320_v14 = vpop.permute.xlu0 %8319  ;;  %v8330_v3 = vsel %vm1242_vm7, %v8328_v15, %v8322_v12 }
0x60fb   :  { %v8329_v47 = vsel %vm1242_vm7, %v8327_v22, %v8320_v14  ;;  %v13916_v14 = vld [vmem:[%s14076_s5] sm:$0xff] }
0x60fc   :  { %11133 = vmatprep.mubr.msk.f32.mxu0 %vm190_vm0, %v8329_v47  ;;  %v13922_v47 = vld [vmem:[%s14076_s5 + $0x8] sm:$0xff] }
0x60fd   :  { %11134 = vmatmul.mubr.msk.f32.vlgmr.msra.gmra.mrb[74].mxu0 %vm190_vm0, %v8330_v3 }
0x61d0   :  { %v11135_v9 = vpop.f32.mrb[74].mxu0 }
0x61d1   :  { %v8413_v25 = vadd.f32 %v11135_v9, %v10050_v2  ;;  %v8407_v16 = vpop.f32.mrb[75].mxu0 }
0x61d2   :  { %v8408_v33 = vadd.f32 %v10050_v2, %v8407_v16 }
0x61d3   :  { %v8417_v43 = vadd.f32 %v8413_v25, %v13716_v26  ;;  %v11700_v26 = vpack.c.bf16 %v10008_v48, %v10007_v31 }
0x61d4   :  { %v8416_v63 = vadd.f32 %v8408_v33, %v13714_v20  ;;  %v10009_v20 = vld [vmem:[%s14078_s7 + $0x70] sm:$0xff] }
0x61d5   :  { %v8421_v57 = vsel %vm190_vm0, %v8417_v43, 0.0  ;;  %11701 = vmatprep.subr.bf16.mxu1 %v11700_v26  ;;  %v11704_v35 = vpack.c.bf16 %v10010_v7, %v10009_v20 }
0x61d6   :  { %8422 = vadd.xlane.f32.xlu1 %v8421_v57  ;;  %v8418_v56 = vsel %vm190_vm0, %v8416_v63, 0.0  ;;  %11703 = vmatpush3.bf16.msra.mxu1 %v11700_v26 }
0x61d7   :  { %8419 = vadd.xlane.f32.xlu0 %v8418_v56  ;;  %11705 = vmatprep.subr.bf16.mxu1 %v11704_v35 }
0x61da   :  { %11707 = vmatpush3.bf16.msra.mxu1 %v11704_v35 }
0x61e7   :  { %12064 = vrot.lane.b32.xlu1 %v12664_v1, %s12475_s20  ;;  %s12441_s20 = scalar_lea.vmem %s9730_s2, 256 }
0x61e8   :  { %p12442_p8 = scmp.ne.s32.totalorder %s9730_s2, %s12441_s20  ;;  %p12447_p10 = scmp.lt.s32.totalorder %s12441_s20, %s12441_s20 }
0x61ea   :  { %p12448_p11 = por %p12447_p10, %p12446_p9 }
0x61eb   :  { %12069 = vrot.lane.b32.xlu1 %v12664_v1, %s12485_s17 }
0x61ec   :  { %p12449_p12 = pnand %p12448_p11, %p12442_p8 }
0x6263   :  { %v8423_v19 = vpop.xlane.xlu1 %8422 }
0x6264   :  { %v8425_v18 = vmul.f32 0.03125, %v8423_v19  ;;  %v8420_v0 = vpop.xlane.xlu0 %8419 }
0x6265   :  { %v8424_v36 = vmul.f32 0.03125, %v8420_v0 }
0x6266   :  { %v8427_v37 = vsub.f32 %v8417_v43, %v8425_v18 }
0x6267   :  { %v8426_v38 = vsub.f32 %v8416_v63, %v8424_v36  ;;  %v12065_v27 = vpop.permute.xlu1 %12064 }
0x6268   :  { %v12067_v34 = vunpack.i.h.bf16 %v12065_v27  ;;  %v12066_v32 = vunpack.i.l.bf16 %v12065_v27  ;;  %v8429_v29 = vmul.f32 %v8427_v37, %v8427_v37 }
0x6269   :  { %v8428_v13 = vmul.f32 %v8426_v38, %v8426_v38 }
0x626a   :  { %v11708_v45 = vpack.c.bf16 %v12067_v34, %v12066_v32  ;;  %v8433_v30 = vsel %vm190_vm0, %v8429_v29, 0.0 }
0x626b   :  { %v12070_v52 = vpop.permute.xlu1 %12069  ;;  %v8430_v41 = vsel %vm190_vm0, %v8428_v13, 0.0 }
0x626c   :  { %v12072_v46 = vunpack.i.h.bf16 %v12070_v52  ;;  %v12071_v28 = vunpack.i.l.bf16 %v12070_v52  ;;  %11710 = vmatprep.subr.msk.bf16.mxu0 %vm12683_vm5, %v11708_v45  ;;  %8431 = vadd.xlane.f32.xlu0 %v8430_v41 }
0x626d   :  { %11713 = vmatpush3.bf16.xpose.msk.msra.mxu0 %vm12683_vm5, %v11708_v45 }
0x626e   :  { %v11714_v44 = vpack.c.bf16 %v12072_v46, %v12071_v28 }
0x6270   :  { %11715 = vmatprep.subr.bf16.mxu1 %v11714_v44  ;;  %8434 = vadd.xlane.f32.xlu0 %v8433_v30 }
0x62f9   :  { %v8432_v8 = vpop.xlane.xlu0 %8431 }
0x62fa   :  { %v8436_v51 = vmul.f32 0.03125, %v8432_v8 }
0x62fc   :  { %v8438_v40 = vadd.f32 1e-05, %v8436_v51 }
0x62fd   :  { %v8435_v24 = vpop.xlane.xlu0 %8434 }
0x62fe   :  { %12363 = vrsqrt.f32 %v8438_v40  ;;  %v8437_v58 = vmul.f32 0.03125, %v8435_v24 }
0x6300   :  { %v8439_v49 = vadd.f32 1e-05, %v8437_v58 }
0x6302   :  { %12365 = vrsqrt.f32 %v8439_v49 }
0x6308   :  { %v12364_v17 = vpop.eup %12363 }
0x6309   :  { %v8442_v21 = vmul.f32 %v12364_v17, %v8426_v38 }
0x630b   :  { %v8448_v39 = vmul.f32 %v10053_v4, %v8442_v21 }
0x630c   :  { %v12366_v6 = vpop.eup %12365 }
0x630d   :  { %v8443_v54 = vmul.f32 %v12366_v6, %v8427_v37  ;;  %v13890_v59 = vadd.f32 %v10054_v62, %v8448_v39 }
0x630f   :  { %v8449_v60 = vmul.f32 %v10053_v4, %v8443_v54  ;;  %11144 = vmatprep.mubr.msk.f32.mxu1 %vm190_vm0, %v13890_v59 }
0x6311   :  { %v13894_v61 = vadd.f32 %v10054_v62, %v8449_v60 }
0x6313   :  { %11145 = vmatmul.mubr.msk.f32.vlgmr.msra.gmra.mrb[82].mxu1 %vm190_vm0, %v13894_v61 }
0x6314   :  { %11717 = vmatpush3.bf16.msra.mxu1 %v11714_v44 }
0x63e6   :  { %v11146_v55 = vpop.f32.mrb[82].mxu1 }
0x63e7   :  { %v8532_v23 = vpop.f32.mrb[83].mxu1  ;;  %v13903_v42 = vadd.f32 %v11146_v55, %v10055_v50 }
0x63e8   :  { %v13901_v10 = vadd.f32 %v10055_v50, %v8532_v23 }
0x63ea   :  { %8743 = vrot.lane.b32.xlu1 %v13901_v10, %s12474_s19  ;;  %11151 = vmatprep.mubr.msk.f32.mxu0 %vm404_vm4, %v13901_v10 }
0x63eb   :  { %11152 = vmatmul.mubr.msk.f32.vlgmr.msra.gmra.mrb[76].mxu0 %vm404_vm4, %v13903_v42 }
0x63ee   :  { %8745 = vrot.lane.b32.xlu1 %v13903_v42, %s12474_s19 }
0x645c   :  { %v8744_v34 = vpop.permute.xlu1 %8743 }
0x6460   :  { %v8746_v32 = vpop.permute.xlu1 %8745 }
0x64be   :  { %v11153_v53 = vpop.f32.mrb[76].mxu0 }
0x64bf   :  { %v8621_v12 = vpop.f32.mrb[77].mxu0  ;;  %v8631_v5 = vmul.f32 0.35355338, %v11153_v53 }
0x64c0   :  { %v8630_v22 = vmul.f32 0.35355338, %v8621_v12 }
0x64c1   :  { %v8633_v3 = vadd.f32 %v13922_v47, %v8631_v5 }
0x64c2   :  { %v8632_v15 = vadd.f32 %v13916_v14, %v8630_v22 }
0x64c3   :  { %v8637_v9 = vsel %vm492_vm6, %v8633_v3, -inf }
0x64c4   :  { %v8634_v2 = vsel %vm492_vm6, %v8632_v15, -inf }
0x64c5   :  { %8635 = vmax.xlane.f32.xlu0 %v8634_v2 }
0x64c9   :  { %8638 = vmax.xlane.f32.xlu0 %v8637_v9 }
0x6552   :  { %v8636_v25 = vpop.xlane.xlu0 %8635 }
0x6553   :  { %v8640_v16 = vsub.f32 %v8632_v15, %v8636_v25 }
0x6555   :  { %v8642_v63 = vmul.f32 1.442695, %v8640_v16 }
0x6556   :  { %v8639_v33 = vpop.xlane.xlu0 %8638 }
0x6557   :  { %v8641_v43 = vsub.f32 %v8633_v3, %v8639_v33 }
0x6559   :  { %v8644_v57 = vmul.f32 1.442695, %v8641_v43 }
0x655b   :  { %12367 = vpow2.f32 %v8644_v57 }
0x655c   :  { %12369 = vpow2.f32 %v8642_v63 }
0x6565   :  { %v12368_v56 = vpop.eup %12367 }
0x6566   :  { %v8649_v31 = vsel %vm492_vm6, %v12368_v56, 0.0  ;;  %v12370_v48 = vpop.eup %12369 }
0x6567   :  { %8650 = vadd.xlane.f32.xlu0 %v8649_v31  ;;  %v8646_v26 = vsel %vm492_vm6, %v12370_v48, 0.0 }
0x656b   :  { %8647 = vadd.xlane.f32.xlu0 %v8646_v26 }
0x6581   :  { %12074 = vrot.lane.b32.xlu0 %v12664_v1, %s12478_s23 }
0x65f4   :  { %v8651_v20 = vpop.xlane.xlu0 %8650 }
0x65f5   :  { %12371 = vrcp.f32 %v8651_v20 }
0x65f8   :  { %v8648_v7 = vpop.xlane.xlu0 %8647 }
0x65f9   :  { %12373 = vrcp.f32 %v8648_v7 }
0x65fc   :  { %v12075_v35 = vpop.permute.xlu0 %12074 }
0x65fd   :  { %v12077_v19 = vunpack.i.h.bf16 %v12075_v35  ;;  %v12076_v18 = vunpack.i.l.bf16 %v12075_v35 }
0x65ff   :  { %v11718_v0 = vpack.c.bf16 %v12077_v19, %v12076_v18  ;;  %v12372_v36 = vpop.eup %12371 }
0x6600   :  { %v8655_v27 = vmul.f32 %v12372_v36, %v12368_v56 }
0x6601   :  { %11720 = vmatprep.subr.msk.bf16.mxu1 %vm12683_vm5, %v11718_v0 }
0x6603   :  { %v12374_v37 = vpop.eup %12373 }
0x6604   :  { %v8654_v38 = vmul.f32 %v12374_v37, %v12370_v48 }
0x6606   :  { %11158 = vmatprep.mubr.msk.f32.mxu1 %vm492_vm6, %v8654_v38 }
0x6607   :  { %11159 = vmatmul.mubr.msk.f32.vlgmr.msra.gmra.mrb[84].mxu1 %vm492_vm6, %v8655_v27 }
0x6608   :  { %11723 = vmatpush3.bf16.xpose.msk.msra.mxu1 %vm12683_vm5, %v11718_v0  ;;  %11165 = vmatprep.mubr.msk.f32.mxu1 %vm404_vm4, %v8744_v34 }
0x660f   :  { %11166 = vmatmul.mubr.msk.f32.vlgmr.msra.gmra.mrb[86].mxu1 %vm404_vm4, %v8746_v32 }
0x66da   :  { %v13939_v13 = vpop.f32.mrb[84].mxu1 }
0x66db   :  { %v13941_v45 = vpop.f32.mrb[85].mxu1 }
0x66e2   :  { %v11167_v52 = vpop.f32.mrb[86].mxu1 }
0x66e3   :  { %v8835_v41 = vmul.f32 0.35355338, %v11167_v52  ;;  %v8825_v29 = vpop.f32.mrb[87].mxu1 }
0x66e4   :  { %v8834_v46 = vmul.f32 0.35355338, %v8825_v29 }
0x66e5   :  { %v8837_v28 = vadd.f32 %v13922_v47, %v8835_v41 }
0x66e6   :  { %v8836_v44 = vadd.f32 %v13916_v14, %v8834_v46 }
0x66e7   :  { %v8841_v30 = vsel %vm492_vm6, %v8837_v28, -inf }
0x66e8   :  { %8842 = vmax.xlane.f32.xlu0 %v8841_v30  ;;  %v8838_v8 = vsel %vm492_vm6, %v8836_v44, -inf }
0x66e9   :  { %8839 = vmax.xlane.f32.xlu1 %v8838_v8 }
0x66fa   :  { %12084 = vrot.lane.b32.xlu1 %v12664_v1, %s12479_s24 }
0x66fe   :  { %12079 = vrot.lane.b32.xlu0 %v12664_v1, %s12484_s26 }
0x6702   :  { %8949 = vrot.lane.b32.xlu0 %v13903_v42, %s12477_s21 }
0x6775   :  { %v8843_v51 = vpop.xlane.xlu0 %8842 }
0x6776   :  { %v8845_v40 = vsub.f32 %v8837_v28, %v8843_v51  ;;  %v8840_v24 = vpop.xlane.xlu1 %8839 }
0x6777   :  { %v8844_v58 = vsub.f32 %v8836_v44, %v8840_v24 }
0x6778   :  { %v8848_v49 = vmul.f32 1.442695, %v8845_v40 }
0x6779   :  { %v8846_v17 = vmul.f32 1.442695, %v8844_v58  ;;  %v12080_v4 = vpop.permute.xlu0 %12079 }
0x677a   :  { %12375 = vpow2.f32 %v8848_v49  ;;  %v12082_v21 = vunpack.i.h.bf16 %v12080_v4  ;;  %v12081_v62 = vunpack.i.l.bf16 %v12080_v4  ;;  %v12085_v39 = vpop.permute.xlu1 %12084 }
0x677b   :  { %v12087_v6 = vunpack.i.h.bf16 %v12085_v39  ;;  %v12086_v54 = vunpack.i.l.bf16 %v12085_v39  ;;  %12377 = vpow2.f32 %v8846_v17 }
0x677c   :  { %v11724_v60 = vpack.c.bf16 %v12082_v21, %v12081_v62 }
0x677d   :  { %v11728_v50 = vpack.c.bf16 %v12087_v6, %v12086_v54  ;;  %v8950_v16 = vpop.permute.xlu0 %8949 }
0x677e   :  { %11725 = vmatprep.subr.bf16.mxu0 %v11724_v60 }
0x677f   :  { %11727 = vmatpush3.bf16.msra.mxu0 %v11724_v60 }
0x6780   :  { %11730 = vmatprep.subr.msk.bf16.mxu0 %vm12683_vm5, %v11728_v50 }
0x6784   :  { %v12376_v55 = vpop.eup %12375 }
0x6785   :  { %v8853_v23 = vsel %vm492_vm6, %v12376_v55, 0.0  ;;  %v12378_v53 = vpop.eup %12377 }
0x6786   :  { %8854 = vadd.xlane.f32.xlu1 %v8853_v23  ;;  %v8850_v12 = vsel %vm492_vm6, %v12378_v53, 0.0 }
0x678a   :  { %8851 = vadd.xlane.f32.xlu1 %v8850_v12 }
0x679b   :  { %8947 = vrot.lane.b32.xlu1 %v13901_v10, %s12477_s21 }
0x6813   :  { %v8855_v5 = vpop.xlane.xlu1 %8854 }
0x6814   :  { %12379 = vrcp.f32 %v8855_v5 }
0x6817   :  { %v8852_v22 = vpop.xlane.xlu1 %8851 }
0x6818   :  { %12381 = vrcp.f32 %v8852_v22 }
0x681b   :  { %v8948_v25 = vpop.permute.xlu1 %8947 }
0x681e   :  { %v12380_v15 = vpop.eup %12379 }
0x681f   :  { %v8859_v9 = vmul.f32 %v12380_v15, %v12376_v55 }
0x6822   :  { %v12382_v3 = vpop.eup %12381 }
0x6823   :  { %v8858_v2 = vmul.f32 %v12382_v3, %v12378_v53 }
0x6825   :  { %11172 = vmatprep.mubr.msk.f32.mxu0 %vm492_vm6, %v8858_v2 }
0x6826   :  { %11173 = vmatmul.mubr.msk.f32.vlgmr.msra.gmra.mrb[78].mxu0 %vm492_vm6, %v8859_v9 }
0x6827   :  { %11733 = vmatpush3.bf16.xpose.msk.msra.mxu0 %vm12683_vm5, %v11728_v50  ;;  %11179 = vmatprep.mubr.msk.f32.mxu0 %vm404_vm4, %v8948_v25 }
0x682e   :  { %11180 = vmatmul.mubr.msk.f32.vlgmr.msra.gmra.mrb[80].mxu0 %vm404_vm4, %v8950_v16 }
0x68f9   :  { %v13965_v33 = vpop.f32.mrb[78].mxu0 }
0x68fa   :  { %v13967_v43 = vpop.f32.mrb[79].mxu0 }
0x6901   :  { %v11181_v63 = vpop.f32.mrb[80].mxu0 }
0x6902   :  { %v9039_v57 = vmul.f32 0.35355338, %v11181_v63  ;;  %v9029_v56 = vpop.f32.mrb[81].mxu0 }
0x6903   :  { %v9038_v31 = vmul.f32 0.35355338, %v9029_v56 }
0x6904   :  { %v9041_v48 = vadd.f32 %v13922_v47, %v9039_v57 }
0x6905   :  { %v9040_v26 = vadd.f32 %v13916_v14, %v9038_v31 }
0x6906   :  { %v9045_v20 = vsel %vm492_vm6, %v9041_v48, -inf }
0x6907   :  { %9046 = vmax.xlane.f32.xlu0 %v9045_v20  ;;  %v9042_v7 = vsel %vm492_vm6, %v9040_v26, -inf  ;;  %v7377_v20 = vld [vmem:[#allocation2 + $0x1b0] sm:$0xff] }
0x6908   :  { %9043 = vmax.xlane.f32.xlu1 %v9042_v7 }
0x6994   :  { %v9047_v35 = vpop.xlane.xlu0 %9046 }
0x6995   :  { %v9049_v19 = vsub.f32 %v9041_v48, %v9047_v35  ;;  %v9044_v18 = vpop.xlane.xlu1 %9043  ;;  %v7378_v35 = vld [vmem:[#allocation2 + $0x1b8] sm:$0xff] }
0x6996   :  { %v9048_v0 = vsub.f32 %v9040_v26, %v9044_v18  ;;  %v7376_v26 = vld [vmem:[#allocation2 + $0x1a8] sm:$0xff] }
0x6997   :  { %v9052_v36 = vmul.f32 1.442695, %v9049_v19  ;;  %v11752_v19 = vpack.c.bf16 %v7378_v35, %v7377_v20 }
0x6998   :  { %v9050_v37 = vmul.f32 1.442695, %v9048_v0 }
0x6999   :  { %12383 = vpow2.f32 %v9052_v36 }
0x699a   :  { %12385 = vpow2.f32 %v9050_v37 }
0x69a3   :  { %v12384_v38 = vpop.eup %12383 }
0x69a4   :  { %v12386_v27 = vpop.eup %12385  ;;  %v9057_v34 = vsel %vm492_vm6, %v12384_v38, 0.0 }
0x69a5   :  { %9058 = vadd.xlane.f32.xlu1 %v9057_v34  ;;  %v9054_v32 = vsel %vm492_vm6, %v12386_v27, 0.0 }
0x69a6   :  { %9055 = vadd.xlane.f32.xlu0 %v9054_v32 }
0x69b6   :  { %12094 = vrot.lane.b32.xlu1 %v12664_v1, %s12482_s3 }
0x69ba   :  { %9151 = vrot.lane.b32.xlu1 %v13901_v10, %s12480_s25 }
0x69bc   :  { %12089 = vrot.lane.b32.xlu0 %v12664_v1, %s12483_s22 }
0x69c0   :  { %9153 = vrot.lane.b32.xlu0 %v13903_v42, %s12480_s25 }
0x6a32   :  { %v9059_v52 = vpop.xlane.xlu1 %9058 }
0x6a33   :  { %12387 = vrcp.f32 %v9059_v52  ;;  %v9056_v41 = vpop.xlane.xlu0 %9055 }
0x6a34   :  { %12389 = vrcp.f32 %v9056_v41 }
0x6a36   :  { %v12095_v29 = vpop.permute.xlu1 %12094 }
0x6a37   :  { %v12090_v46 = vpop.permute.xlu0 %12089  ;;  %v12097_v28 = vunpack.i.h.bf16 %v12095_v29  ;;  %v12096_v44 = vunpack.i.l.bf16 %v12095_v29 }
0x6a38   :  { %v12092_v30 = vunpack.i.h.bf16 %v12090_v46  ;;  %v12091_v8 = vunpack.i.l.bf16 %v12090_v46 }
0x6a39   :  { %v11738_v40 = vpack.c.bf16 %v12097_v28, %v12096_v44 }
0x6a3a   :  { %v11734_v51 = vpack.c.bf16 %v12092_v30, %v12091_v8  ;;  %v9152_v49 = vpop.permute.xlu1 %9151 }
0x6a3b   :  { %v9154_v17 = vpop.permute.xlu0 %9153 }
0x6a3c   :  { %11735 = vmatprep.subr.bf16.mxu1 %v11734_v51 }
0x6a3d   :  { %v12388_v10 = vpop.eup %12387  ;;  %11737 = vmatpush3.bf16.msra.mxu1 %v11734_v51 }
0x6a3e   :  { %v12390_v24 = vpop.eup %12389  ;;  %11740 = vmatprep.subr.msk.bf16.mxu1 %vm12683_vm5, %v11738_v40  ;;  %v9063_v58 = vmul.f32 %v12388_v10, %v12384_v38 }
0x6a3f   :  { %v9062_v42 = vmul.f32 %v12390_v24, %v12386_v27 }
0x6a41   :  { %11186 = vmatprep.mubr.msk.f32.mxu1 %vm492_vm6, %v9062_v42 }
0x6a42   :  { %11187 = vmatmul.mubr.msk.f32.vlgmr.msra.gmra.mrb[88].mxu1 %vm492_vm6, %v9063_v58 }
0x6a43   :  { %11193 = vmatprep.mubr.msk.f32.mxu1 %vm404_vm4, %v9152_v49 }
0x6a46   :  { %11743 = vmatpush3.bf16.xpose.msk.msra.mxu1 %vm12683_vm5, %v11738_v40 }
0x6a4d   :  { %11194 = vmatmul.mubr.msk.f32.vlgmr.msra.gmra.mrb[90].mxu1 %vm404_vm4, %v9154_v17 }
0x6b15   :  { %v11188_v4 = vpop.f32.mrb[88].mxu1 }
0x6b16   :  { %v9142_v21 = vpop.f32.mrb[89].mxu1 }
0x6b20   :  { %v11195_v62 = vpop.f32.mrb[90].mxu1 }
0x6b21   :  { %v9243_v39 = vmul.f32 0.35355338, %v11195_v62  ;;  %v9233_v6 = vpop.f32.mrb[91].mxu1 }
0x6b22   :  { %v9242_v54 = vmul.f32 0.35355338, %v9233_v6 }
0x6b23   :  { %v9245_v60 = vadd.f32 %v13922_v47, %v9243_v39 }
0x6b24   :  { %v9244_v50 = vadd.f32 %v13916_v14, %v9242_v54 }
0x6b25   :  { %v9249_v55 = vsel %vm492_vm6, %v9245_v60, -inf }
0x6b26   :  { %9250 = vmax.xlane.f32.xlu0 %v9249_v55  ;;  %v9246_v23 = vsel %vm492_vm6, %v9244_v50, -inf  ;;  %v7382_v55 = vld [vmem:[#allocation2 + $0x1d0] sm:$0xff] }
0x6b27   :  { %9247 = vmax.xlane.f32.xlu1 %v9246_v23  ;;  %v7383_v23 = vld [vmem:[#allocation2 + $0x1d8] sm:$0xff] }
0x6bb3   :  { %v9251_v11 = vpop.xlane.xlu0 %9250 }
0x6bb4   :  { %v9253_v53 = vsub.f32 %v9245_v60, %v9251_v11  ;;  %v9248_v12 = vpop.xlane.xlu1 %9247  ;;  %v7381_v60 = vld [vmem:[#allocation2 + $0x1c8] sm:$0xff]  ;;  %v11760_v11 = vpack.c.bf16 %v7383_v23, %v7382_v55 }
0x6bb5   :  { %v9252_v5 = vsub.f32 %v9244_v50, %v9248_v12  ;;  %v7386_v12 = vld [vmem:[#allocation2 + $0x1e8] sm:$0xff] }
0x6bb6   :  { %v9256_v22 = vmul.f32 1.442695, %v9253_v53  ;;  %v7385_v53 = vld [vmem:[#allocation2 + $0x1e0] sm:$0xff] }
0x6bb7   :  { %v9254_v15 = vmul.f32 1.442695, %v9252_v5  ;;  %v11764_v5 = vpack.c.bf16 %v7386_v12, %v7385_v53 }
0x6bb8   :  { %12391 = vpow2.f32 %v9256_v22 }
0x6bb9   :  { %12393 = vpow2.f32 %v9254_v15 }
0x6bc2   :  { %v12392_v3 = vpop.eup %12391 }
0x6bc3   :  { %v12394_v2 = vpop.eup %12393  ;;  %v9261_v47 = vsel %vm492_vm6, %v12392_v3, 0.0 }
0x6bc4   :  { %9262 = vadd.xlane.f32.xlu1 %v9261_v47  ;;  %v9258_v14 = vsel %vm492_vm6, %v12394_v2, 0.0 }
0x6bc5   :  { %9259 = vadd.xlane.f32.xlu0 %v9258_v14 }
0x6bd5   :  { %9357 = vrot.lane.b32.xlu1 %v13967_v43, %s12469_s14 }
0x6bd9   :  { %9359 = vrot.lane.b32.xlu1 %v13965_v33, %s12469_s14 }
0x6bdb   :  { %12099 = vrot.lane.b32.xlu0 %v12664_v1, %s12469_s14  ;;  %v7375_v1 = vld [vmem:[#allocation2 + $0x1a0] sm:$0xff] }
0x6bdc   :  { %v11748_v7 = vpack.c.bf16 %v7376_v26, %v7375_v1  ;;  %v7387_v1 = vld [vmem:[#allocation2 + $0x1f0] sm:$0xff]  ;;  %v7388_v26 = vld [vmem:[#allocation2 + $0x1f8] sm:$0xff] }
0x6bdd   :  { %9367 = vrot.lane.b32.xlu1 %v11188_v4, %s12483_s22  ;;  %v11768_v20 = vpack.c.bf16 %v7388_v26, %v7387_v1 }
0x6bdf   :  { %9365 = vrot.lane.b32.xlu0 %v9142_v21, %s12483_s22 }
0x6c51   :  { %v9263_v9 = vpop.xlane.xlu1 %9262 }
0x6c52   :  { %12395 = vrcp.f32 %v9263_v9  ;;  %v9260_v25 = vpop.xlane.xlu0 %9259 }
0x6c53   :  { %12397 = vrcp.f32 %v9260_v25  ;;  %v10085_v25 = vld [vmem:[%s14082_s11 + $0x38] ss:$0 sm:$0xff] }
0x6c55   :  { %v9358_v36 = vpop.permute.xlu1 %9357 }
0x6c56   :  { %v12100_v16 = vpop.permute.xlu0 %12099  ;;  %v9379_v34 = vsel %vm404_vm4, %v13941_v45, %v9358_v36  ;;  %v10082_v45 = vld [vmem:[%s14082_s11 + $0x33] ss:$0 sm:$0xff] }
0x6c57   :  { %v12102_v63 = vunpack.i.h.bf16 %v12100_v16  ;;  %v12101_v57 = vunpack.i.l.bf16 %v12100_v16 }
0x6c59   :  { %v11744_v56 = vpack.c.bf16 %v12102_v63, %v12101_v57  ;;  %v9360_v37 = vpop.permute.xlu1 %9359  ;;  %v10086_v63 = vld [vmem:[%s14082_s11 + $0x39] ss:$0 sm:$0xff] }
0x6c5a   :  { %v9366_v27 = vpop.permute.xlu0 %9365  ;;  %v9380_v52 = vsel %vm404_vm4, %v13939_v13, %v9360_v37 }
0x6c5b   :  { %11745 = vmatprep.subr.bf16.mxu0 %v11744_v56  ;;  %v9381_v41 = vsel %vm492_vm6, %v9379_v34, %v9366_v27 }
0x6c5c   :  { %v12396_v43 = vpop.eup %12395  ;;  %11747 = vmatpush3.bf16.msra.mxu0 %v11744_v56 }
0x6c5d   :  { %v12398_v31 = vpop.eup %12397  ;;  %v9267_v48 = vmul.f32 %v12396_v43, %v12392_v3  ;;  %11749 = vmatprep.subr.bf16.mxu0 %v11748_v7  ;;  %v9368_v38 = vpop.permute.xlu1 %9367 }
0x6c5e   :  { %v9266_v33 = vmul.f32 %v12398_v31, %v12394_v2  ;;  %v9382_v46 = vsel %vm492_vm6, %v9380_v52, %v9368_v38  ;;  %v10090_v38 = vld [vmem:[%s14082_s11 + $0x35] ss:$0 sm:$0xff] }
0x6c60   :  { %11200 = vmatprep.mubr.msk.f32.mxu0 %vm492_vm6, %v9266_v33 }
0x6c61   :  { %11201 = vmatmul.mubr.msk.f32.vlgmr.msra.gmra.mrb[82].mxu0 %vm492_vm6, %v9267_v48 }
0x6c62   :  { %11751 = vmatpush3.bf16.msra.mxu0 %v11748_v7  ;;  %v10087_v7 = vld [vmem:[%s14082_s11 + $0x34] ss:$0 sm:$0xff] }
0x6c63   :  { %11753 = vmatprep.subr.bf16.mxu0 %v11752_v19 }
0x6c66   :  { %11755 = vmatpush3.bf16.msra.mxu0 %v11752_v19 }
0x6c67   :  { %11765 = vmatprep.subr.bf16.mxu0 %v11764_v5 }
0x6d34   :  { %v11202_v18 = vpop.f32.mrb[82].mxu0 }
0x6d35   :  { %9375 = vrot.lane.b32.xlu1 %v11202_v18, %s12484_s26  ;;  %v9346_v0 = vpop.f32.mrb[83].mxu0 }
0x6d36   :  { %9373 = vrot.lane.b32.xlu0 %v9346_v0, %s12484_s26 }
0x6da7   :  { %v9376_v32 = vpop.permute.xlu1 %9375 }
0x6da8   :  { %v9374_v29 = vpop.permute.xlu0 %9373  ;;  %v9384_v44 = vsel %vm1242_vm7, %v9382_v46, %v9376_v32 }
0x6da9   :  { %v9383_v28 = vsel %vm1242_vm7, %v9381_v41, %v9374_v29 }
0x6daa   :  { %11211 = vmatprep.mubr.msk.f32.mxu0 %vm190_vm0, %v9383_v28 }
0x6dab   :  { %11212 = vmatmul.mubr.msk.f32.vlgmr.msra.gmra.mrb[84].mxu0 %vm190_vm0, %v9384_v44 }
0x6dac   :  { %11767 = vmatpush3.bf16.msra.mxu0 %v11764_v5 }
0x6dad   :  { %11769 = vmatprep.subr.bf16.mxu0 %v11768_v20 }
0x6db0   :  { %11771 = vmatpush3.bf16.msra.mxu0 %v11768_v20 }
0x6e7e   :  { %v11213_v30 = vpop.f32.mrb[84].mxu0 }
0x6e7f   :  { %v9467_v8 = vadd.f32 %v11213_v30, %v10082_v45  ;;  %v9461_v13 = vpop.f32.mrb[85].mxu0 }
0x6e80   :  { %v9462_v51 = vadd.f32 %v10082_v45, %v9461_v13 }
0x6e81   :  { %v9471_v40 = vadd.f32 %v9467_v8, %v13894_v61 }
0x6e82   :  { %v9470_v10 = vadd.f32 %v9462_v51, %v13890_v59  ;;  %v7380_v59 = vld [vmem:[#allocation2 + $0x1c0] sm:$0xff] }
0x6e83   :  { %v9475_v24 = vsel %vm190_vm0, %v9471_v40, 0.0  ;;  %v11756_v50 = vpack.c.bf16 %v7381_v60, %v7380_v59  ;;  %v10094_v60 = vld [vmem:[%s14082_s11 + $0x3b] ss:$0 sm:$0xff] }
0x6e84   :  { %9476 = vadd.xlane.f32.xlu1 %v9475_v24  ;;  %v9472_v42 = vsel %vm190_vm0, %v9470_v10, 0.0 }
0x6e85   :  { %9473 = vadd.xlane.f32.xlu0 %v9472_v42  ;;  %11757 = vmatprep.subr.bf16.mxu1 %v11756_v50 }
0x6e86   :  { %11759 = vmatpush3.bf16.msra.mxu1 %v11756_v50 }
0x6e87   :  { %11761 = vmatprep.subr.bf16.mxu1 %v11760_v11 }
0x6e8a   :  { %11763 = vmatpush3.bf16.msra.mxu1 %v11760_v11 }
0x6f11   :  { %v9477_v58 = vpop.xlane.xlu1 %9476 }
0x6f12   :  { %v9479_v49 = vmul.f32 0.03125, %v9477_v58  ;;  %v9474_v17 = vpop.xlane.xlu0 %9473 }
0x6f13   :  { %v9478_v4 = vmul.f32 0.03125, %v9474_v17 }
0x6f14   :  { %v9481_v21 = vsub.f32 %v9471_v40, %v9479_v49 }
0x6f15   :  { %v9480_v62 = vsub.f32 %v9470_v10, %v9478_v4 }
0x6f16   :  { %v9483_v54 = vmul.f32 %v9481_v21, %v9481_v21 }
0x6f17   :  { %v9482_v39 = vmul.f32 %v9480_v62, %v9480_v62 }
0x6f18   :  { %v9487_v61 = vsel %vm190_vm0, %v9483_v54, 0.0 }
0x6f19   :  { %v9484_v6 = vsel %vm190_vm0, %v9482_v39, 0.0 }
0x6f1a   :  { %9485 = vadd.xlane.f32.xlu0 %v9484_v6  ;;  %v10093_v6 = vld [vmem:[%s14082_s11 + $0x3a] ss:$0 sm:$0xff] }
0x6f1e   :  { %9488 = vadd.xlane.f32.xlu0 %v9487_v61 }
0x6fa7   :  { %v9486_v22 = vpop.xlane.xlu0 %9485 }
0x6fa8   :  { %v9490_v15 = vmul.f32 0.03125, %v9486_v22 }
0x6faa   :  { %v9492_v3 = vadd.f32 1e-05, %v9490_v15 }
0x6fab   :  { %v9489_v2 = vpop.xlane.xlu0 %9488 }
0x6fac   :  { %12399 = vrsqrt.f32 %v9492_v3  ;;  %v9491_v47 = vmul.f32 0.03125, %v9489_v2 }
0x6fae   :  { %v9493_v14 = vadd.f32 1e-05, %v9491_v47 }
0x6fb0   :  { %12401 = vrsqrt.f32 %v9493_v14 }
0x6fb6   :  { %v12400_v9 = vpop.eup %12399 }
0x6fb7   :  { %v9496_v16 = vmul.f32 %v12400_v9, %v9480_v62 }
0x6fb9   :  { %v9502_v57 = vmul.f32 %v10085_v25, %v9496_v16 }
0x6fba   :  { %v12402_v56 = vpop.eup %12401 }
0x6fbb   :  { %v9497_v43 = vmul.f32 %v12402_v56, %v9481_v21  ;;  %v9508_v31 = vadd.f32 %v10086_v63, %v9502_v57 }
0x6fbd   :  { %v9503_v33 = vmul.f32 %v10085_v25, %v9497_v43  ;;  %11222 = vmatprep.mubr.msk.f32.mxu1 %vm190_vm0, %v9508_v31 }
0x6fbf   :  { %v9509_v48 = vadd.f32 %v10086_v63, %v9503_v33 }
0x6fc1   :  { %11223 = vmatmul.mubr.msk.f32.vlgmr.msra.gmra.mrb[92].mxu1 %vm190_vm0, %v9509_v48 }
0x7094   :  { %v11224_v35 = vpop.f32.mrb[92].mxu1 }
0x7095   :  { %v9592_v19 = vadd.f32 %v11224_v35, %v10087_v7  ;;  %v9586_v18 = vpop.f32.mrb[93].mxu1 }
0x7096   :  { %v9587_v0 = vadd.f32 %v10087_v7, %v9586_v18 }
0x7097   :  { %v9596_v37 = vmax.f32 %v9592_v19, 0.0 }
0x7098   :  { %v9595_v36 = vmax.f32 %v9587_v0, 0.0 }
0x709a   :  { %11233 = vmatprep.mubr.msk.f32.mxu0 %vm190_vm0, %v9595_v36 }
0x709b   :  { %11234 = vmatmul.mubr.msk.f32.vlgmr.msra.gmra.mrb[86].mxu0 %vm190_vm0, %v9596_v37 }
0x716e   :  { %v11235_v27 = vpop.f32.mrb[86].mxu0 }
0x716f   :  { %v9679_v34 = vadd.f32 %v11235_v27, %v10090_v38  ;;  %v9673_v32 = vpop.f32.mrb[87].mxu0 }
0x7170   :  { %v9674_v52 = vadd.f32 %v10090_v38, %v9673_v32 }
0x7171   :  { %v9683_v41 = vadd.f32 %v9679_v34, %v9509_v48 }
0x7172   :  { %v9682_v29 = vadd.f32 %v9674_v52, %v9508_v31 }
0x7173   :  { %v9687_v46 = vsel %vm190_vm0, %v9683_v41, 0.0 }
0x7174   :  { %9688 = vadd.xlane.f32.xlu0 %v9687_v46  ;;  %v9684_v28 = vsel %vm190_vm0, %v9682_v29, 0.0 }
0x7175   :  { %9685 = vadd.xlane.f32.xlu1 %v9684_v28 }
0x7201   :  { %v9689_v44 = vpop.xlane.xlu0 %9688 }
0x7202   :  { %v9691_v45 = vmul.f32 0.03125, %v9689_v44  ;;  %v9686_v30 = vpop.xlane.xlu1 %9685 }
0x7203   :  { %v9690_v8 = vmul.f32 0.03125, %v9686_v30 }
0x7204   :  { %v9693_v13 = vsub.f32 %v9683_v41, %v9691_v45 }
0x7205   :  { %v9692_v51 = vsub.f32 %v9682_v29, %v9690_v8 }
0x7206   :  { %v9695_v40 = vmul.f32 %v9693_v13, %v9693_v13 }
0x7207   :  { %v9694_v10 = vmul.f32 %v9692_v51, %v9692_v51 }
0x7208   :  { %v9699_v24 = vsel %vm190_vm0, %v9695_v40, 0.0 }
0x7209   :  { %9700 = vadd.xlane.f32.xlu0 %v9699_v24  ;;  %v9696_v42 = vsel %vm190_vm0, %v9694_v10, 0.0 }
0x720a   :  { %9697 = vadd.xlane.f32.xlu1 %v9696_v42 }
0x7296   :  { %v9701_v58 = vpop.xlane.xlu0 %9700 }
0x7297   :  { %v9703_v49 = vmul.f32 0.03125, %v9701_v58  ;;  %v9698_v17 = vpop.xlane.xlu1 %9697 }
0x7298   :  { %v9702_v4 = vmul.f32 0.03125, %v9698_v17 }
0x7299   :  { %v9705_v21 = vadd.f32 1e-05, %v9703_v49 }
0x729a   :  { %v9704_v62 = vadd.f32 1e-05, %v9702_v4 }
0x729b   :  { %12403 = vrsqrt.f32 %v9705_v21 }
0x729c   :  { %12405 = vrsqrt.f32 %v9704_v62 }
0x72a5   :  { %v12404_v39 = vpop.eup %12403 }
0x72a6   :  { %v12406_v54 = vpop.eup %12405  ;;  %v9709_v61 = vmul.f32 %v12404_v39, %v9693_v13 }
0x72a7   :  { %v9708_v59 = vmul.f32 %v12406_v54, %v9692_v51 }
0x72a8   :  { %v9715_v50 = vmul.f32 %v10093_v6, %v9709_v61 }
0x72a9   :  { %v9714_v55 = vmul.f32 %v10093_v6, %v9708_v59 }
0x72aa   :  { %v9721_v23 = vadd.f32 %v10094_v60, %v9715_v50 }
0x72ab   :  { %v9720_v11 = vadd.f32 %v10094_v60, %v9714_v55 }
0x72ac   :  { %9723 = vst.msk [vmem:[#allocation5 + $0x8] sm:$0xff] %vm190_vm0, %v9721_v23 }
0x72ad   :  { %9722 = vst.msk [vmem:[#allocation5] sm:$0xff] %vm190_vm0, %v9720_v11 }
0x72ae   :  { %12452 = shalt.err (!%p12449_p12)
}
0x72af   :  { %s12453_s17 = scalar_lea.hbm %s14083_s12, 256 }
0x72b0   :  { %p12454_p13 = scmp.ne.s32.totalorder %s14083_s12, %s12453_s17  ;;  %p12457_p0 = scmp.lt.u32.totalorder %s12453_s17, %s14083_s12 }
0x72b2   :  { %p12459_p1 = pnand %p12457_p0, %p12454_p13 }
0x72b4   :  { %12462 = shalt.err (!%p12459_p1)
}
0x72b5   :  { %9735 = dma.vmem_to_hbm [thread:$0]  %s9730_s2, 256, %s14083_s12, [#allocation4], %s12468_s13, %s12468_s13, %s12469_s14  }
0x72b6   :  { %12465 = dma.done.wait [#allocation4], 256  }
0x72b7   :  { %12466 = vsyncadd [#allocation4], 4294967040 }
0x72b8   :  { %9739 = vsyncpa [#allocation3], 1 }
0x72b9   :  { %9740 = vsyncpa [#allocation4], 1 }

</bundles_post_ra>
